<compile_context>
chip_gen: v6e
topology: v6e:2x2x1
jax: 0.10.0
libtpu: 0.0.40
codegen_flags: <defaults>
</compile_context>

<pallas_src>
import jax
import jax.numpy as jnp
from jax import lax
from jax.experimental import pallas as pl
from jax.experimental.pallas import tpu as pltpu

MXU_DTYPE = jnp.bfloat16  # set to jnp.float32 for full-precision matmuls


# ---------------- fused Pallas kernel (one image per grid step) ----------------

def _fused_kernel(x_ref, w1_ref, b1_ref, w2_ref, b2_ref, wf_ref, bf_ref, o_ref):
    x = x_ref[0]                                              # [28, 32] f32 (W zero-padded)

    # ---- conv1: 5 banded MXU matmuls over the input width --------------------------------
    # w1_ref[i] : [32, 3072] with columns ordered (wo%2, wo//2, cout_pad128).
    acc1 = None
    for i in range(5):
        xi = x[i:i + 24, :].astype(MXU_DTYPE)                 # output row ho reads x row ho+i
        d = jnp.dot(xi, w1_ref[i], preferred_element_type=jnp.float32)   # [24, 3072]
        acc1 = d if acc1 is None else acc1 + d

    # ---- 2x2 max-pool + bias + ReLU -------------------------------------------------------
    # W-pool: even/odd wo live in the two aligned 1536-wide lane halves.
    h1 = jnp.maximum(acc1[:, :1536], acc1[:, 1536:])          # [24, 1536]  cols = (wp, cout)
    h1m = h1.astype(MXU_DTYPE)
    # H-pool: exact 0/1 selection matmuls picking even / odd rows (MXU, no strided slices).
    r_i = lax.broadcasted_iota(jnp.int32, (12, 24), 0)
    c_i = lax.broadcasted_iota(jnp.int32, (12, 24), 1)
    sel_even = (c_i == 2 * r_i).astype(MXU_DTYPE)
    sel_odd = (c_i == 2 * r_i + 1).astype(MXU_DTYPE)
    p1 = jnp.maximum(
        jnp.dot(sel_even, h1m, preferred_element_type=jnp.float32),
        jnp.dot(sel_odd, h1m, preferred_element_type=jnp.float32))       # [12, 1536]
    p1 = jnp.maximum(p1 + b1_ref[...], 0.0)                   # conv1 bias + ReLU (f32)

    # ---- conv2: 5 kh-taps x 8 output columns of [8,640]x[640,128] MXU matmuls -------------
    # TODO(synk): conv2_drop (Dropout2d) is identity at inference; training-mode channel
    # masking is not implemented.
    y2 = [None] * 8                                           # per wo: [8(ho), 128(cout2)]
    for i in range(5):
        rows = p1[i:i + 8, :].astype(MXU_DTYPE)               # [8, 1536]
        wcat = w2_ref[i]                                      # [640, 128]  rows = (kw, cin)
        for wo in range(8):
            blk = rows[:, wo * 128:wo * 128 + 640]            # aligned 5-tap lane window
            d = jnp.dot(blk, wcat, preferred_element_type=jnp.float32)   # [8, 128]
            y2[wo] = d if y2[wo] is None else y2[wo] + d

    # ---- 2x2 max-pool + bias + ReLU + fc1, fully fused -------------------------------------
    b2 = b2_ref[...]                                          # [1, 128]
    out = jnp.zeros((1, 128), jnp.float32)
    for wp in range(4):                                       # pooled W index
        pw = jnp.maximum(y2[2 * wp], y2[2 * wp + 1])          # [8, 128]
        for hp in range(4):                                   # pooled H index
            z = jnp.maximum(pw[2 * hp:2 * hp + 1, :], pw[2 * hp + 1:2 * hp + 2, :])
            z = jnp.maximum(z + b2, 0.0)                      # conv2 bias + ReLU
            out = out + jnp.dot(z.astype(MXU_DTYPE), wf_ref[hp * 4 + wp],
                                preferred_element_type=jnp.float32)
    out = jnp.maximum(out + bf_ref[...], 0.0)                 # fc1 bias + ReLU
    o_ref[0] = out                                            # lane-dense [1, 128] store


# ---------------- host-side weight repacking (lane-dense, 128-padded) ----------------

def _prepare_operands(params):
    w1, b1, w2, b2, wf, bf = params

    # conv1 -> banded matrices M[i][w_in, (p, h, co)] = w1[co, 0, i, w_in - (2h+p)]
    w1s = w1[:, 0, :, :].astype(jnp.float32)                  # [10(co), 5(kh), 5(kw)]
    w_in = jnp.arange(32)[:, None, None, None]
    jj = jnp.arange(5)[None, :, None, None]
    pp = jnp.arange(2)[None, None, :, None]
    hh = jnp.arange(12)[None, None, None, :]
    onehot = (w_in == 2 * hh + pp + jj).astype(jnp.float32)   # [32, 5, 2, 12]
    m1 = jnp.einsum('oij,wjph->iwpho', w1s, onehot)           # [5, 32, 2, 12, 10]
    m1 = jnp.pad(m1, ((0, 0), (0, 0), (0, 0), (0, 0), (0, 118)))
    w1b = m1.reshape(5, 32, 3072).astype(MXU_DTYPE)
    b1t = jnp.tile(jnp.pad(b1.astype(jnp.float32), (0, 118)), 12).reshape(1, 1536)

    # conv2 -> per-kh [kw*cin_pad128, cout_pad128] stacks (torch weight is [co, ci, kh, kw])
    w2c = jnp.transpose(w2.astype(jnp.float32), (2, 3, 1, 0))  # [5(kh), 5(kw), 10(ci), 20(co)]
    w2c = jnp.pad(w2c, ((0, 0), (0, 0), (0, 118), (0, 108)))   # [5, 5, 128, 128]
    w2c = w2c.reshape(5, 640, 128).astype(MXU_DTYPE)
    b2p = jnp.pad(b2.astype(jnp.float32), (0, 108)).reshape(1, 128)

    # fc1 -> per-(h,w) [cin_pad128, nout_pad128] blocks reproducing torch's NCHW flatten
    wfb = jnp.transpose(wf.astype(jnp.float32).reshape(50, 20, 4, 4), (2, 3, 1, 0))
    wfb = jnp.pad(wfb.reshape(16, 20, 50), ((0, 0), (0, 108), (0, 78))).astype(MXU_DTYPE)
    bfp = jnp.pad(bf.astype(jnp.float32), (0, 78)).reshape(1, 128)

    return w1b, b1t, w2c, b2p, wfb, bfp


# ---------------- forward ----------------

def net_without_last_forward(x_nchw, params):
    B = x_nchw.shape[0]
    w1b, b1t, w2c, b2p, wfb, bfp = _prepare_operands(params)
    # squeeze Cin=1 and zero-pad W 28 -> 32 (padded columns hit zero rows of the banded weights)
    x = jnp.pad(x_nchw[:, 0, :, :].astype(jnp.float32), ((0, 0), (0, 0), (0, 4)))  # [B, 28, 32]

    out = pl.pallas_call(
        _fused_kernel,
        out_shape=jax.ShapeDtypeStruct((B, 1, 128), jnp.float32),
        grid_spec=pltpu.PrefetchScalarGridSpec(
            num_scalar_prefetch=0,
            grid=(B,),
            in_specs=[
                pl.BlockSpec((1, 28, 32), lambda b: (b, 0, 0)),     # per-image input tile
                pl.BlockSpec((5, 32, 3072), lambda b: (0, 0, 0)),   # VMEM-resident weights
                pl.BlockSpec((1, 1536), lambda b: (0, 0)),
                pl.BlockSpec((5, 640, 128), lambda b: (0, 0, 0)),
                pl.BlockSpec((1, 128), lambda b: (0, 0)),
                pl.BlockSpec((16, 128, 128), lambda b: (0, 0, 0)),
                pl.BlockSpec((1, 128), lambda b: (0, 0)),
            ],
            out_specs=pl.BlockSpec((1, 1, 128), lambda b: (b, 0, 0)),
        ),
        compiler_params=pltpu.CompilerParams(
            dimension_semantics=("parallel",),
            vmem_limit_bytes=32 * 1024 * 1024,
        ),
    )(x, w1b, b1t, w2c, b2p, wfb, bfp)
    return out[:, 0, :50]                                      # drop the lane padding


def init_params(key):
    # Shapes from the original Net: conv1=Conv2d(1,10,5), conv2=Conv2d(10,20,5), fc1=Linear(320,50)
    k1, k2, k3, k4, k5, k6 = jax.random.split(key, 6)
    w1 = 0.10 * jax.random.normal(k1, (10, 1, 5, 5), jnp.float32)
    b1 = 0.10 * jax.random.normal(k2, (10,), jnp.float32)
    w2 = 0.05 * jax.random.normal(k3, (20, 10, 5, 5), jnp.float32)
    b2 = 0.05 * jax.random.normal(k4, (20,), jnp.float32)
    wf = 0.05 * jax.random.normal(k5, (50, 320), jnp.float32)   # torch fc1.weight shape
    bf = 0.05 * jax.random.normal(k6, (50,), jnp.float32)
    return (w1, b1, w2, b2, wf, bf)


if __name__ == "__main__":
    key = jax.random.PRNGKey(0)
    pkey, xkey = jax.random.split(key)
    params = init_params(pkey)
    # MNIST-like input: 28x28 is required so the flatten produces 320 features.
    x = jax.random.normal(xkey, (2, 1, 28, 28), jnp.float32)    # NCHW
    fwd = jax.jit(net_without_last_forward)
    out = jax.block_until_ready(fwd(x, params))
    assert out.shape == (2, 50)
    assert out.dtype == jnp.float32
    print("KERNEL_OK")
</pallas_src>

<mosaic_0001>
module attributes {stable_mosaic.version = 11 : i64} {
  func.func @_fused_kernel(%arg0: i32, %arg1: memref<1x28x32xf32, #tpu.memory_space<vmem>>, %arg2: memref<5x32x3072xbf16, #tpu.memory_space<vmem>>, %arg3: memref<1x1536xf32, #tpu.memory_space<vmem>>, %arg4: memref<5x640x128xbf16, #tpu.memory_space<vmem>>, %arg5: memref<1x128xf32, #tpu.memory_space<vmem>>, %arg6: memref<16x128x128xbf16, #tpu.memory_space<vmem>>, %arg7: memref<1x128xf32, #tpu.memory_space<vmem>>, %arg8: memref<1x1x128xf32, #tpu.memory_space<vmem>>) attributes {dimension_semantics = [#tpu.dimension_semantics<parallel>], iteration_bounds = array<i64: 2>, scalar_prefetch = 0 : i64, scratch_operands = 0 : i64, tpu.core_type = #tpu.core_type<tc>, window_params = [{transform_indices = @transform_0, window_bounds = array<i64: 1, 28, 32>}, {pipeline_mode = #tpu.pipeline_mode<synchronous>, transform_indices = @transform_1, window_bounds = array<i64: 5, 32, 3072>}, {pipeline_mode = #tpu.pipeline_mode<synchronous>, transform_indices = @transform_2, window_bounds = array<i64: 1, 1536>}, {pipeline_mode = #tpu.pipeline_mode<synchronous>, transform_indices = @transform_3, window_bounds = array<i64: 5, 640, 128>}, {pipeline_mode = #tpu.pipeline_mode<synchronous>, transform_indices = @transform_4, window_bounds = array<i64: 1, 128>}, {pipeline_mode = #tpu.pipeline_mode<synchronous>, transform_indices = @transform_5, window_bounds = array<i64: 16, 128, 128>}, {pipeline_mode = #tpu.pipeline_mode<synchronous>, transform_indices = @transform_6, window_bounds = array<i64: 1, 128>}, {transform_indices = @transform_7, window_bounds = array<i64: 1, 1, 128>}]} {
    %c0 = arith.constant 0 : index
    %c0_0 = arith.constant 0 : index
    %c0_1 = arith.constant 0 : index
    %0 = vector.load %arg1[%c0, %c0_0, %c0_1] : memref<1x28x32xf32, #tpu.memory_space<vmem>>, vector<1x28x32xf32>
    %1 = vector.shape_cast %0 : vector<1x28x32xf32> to vector<28x32xf32>
    %2 = vector.extract_strided_slice %1 {offsets = [0, 0], sizes = [24, 32], strides = [1, 1]} : vector<28x32xf32> to vector<24x32xf32>
    %3 = arith.truncf %2 : vector<24x32xf32> to vector<24x32xbf16>
    %c0_2 = arith.constant 0 : index
    %c0_3 = arith.constant 0 : index
    %c0_4 = arith.constant 0 : index
    %4 = vector.load %arg2[%c0_2, %c0_3, %c0_4] : memref<5x32x3072xbf16, #tpu.memory_space<vmem>>, vector<1x32x3072xbf16>
    %5 = vector.shape_cast %4 : vector<1x32x3072xbf16> to vector<32x3072xbf16>
    %cst = arith.constant dense<0.000000e+00> : vector<24x3072xf32>
    %6 = tpu.matmul %3, %5, %cst {dimension_numbers = #tpu.dot_dimension_numbers<[1], [0], [0], [1], [0, 0, 1, 1], [], []>} : vector<24x32xbf16>, vector<32x3072xbf16>, vector<24x3072xf32> -> vector<24x3072xf32>
    %7 = vector.extract_strided_slice %1 {offsets = [1, 0], sizes = [24, 32], strides = [1, 1]} : vector<28x32xf32> to vector<24x32xf32>
    %8 = arith.truncf %7 : vector<24x32xf32> to vector<24x32xbf16>
    %c1 = arith.constant 1 : index
    %c0_5 = arith.constant 0 : index
    %c0_6 = arith.constant 0 : index
    %9 = vector.load %arg2[%c1, %c0_5, %c0_6] : memref<5x32x3072xbf16, #tpu.memory_space<vmem>>, vector<1x32x3072xbf16>
    %10 = vector.shape_cast %9 : vector<1x32x3072xbf16> to vector<32x3072xbf16>
    %cst_7 = arith.constant dense<0.000000e+00> : vector<24x3072xf32>
    %11 = tpu.matmul %8, %10, %cst_7 {dimension_numbers = #tpu.dot_dimension_numbers<[1], [0], [0], [1], [0, 0, 1, 1], [], []>} : vector<24x32xbf16>, vector<32x3072xbf16>, vector<24x3072xf32> -> vector<24x3072xf32>
    %12 = arith.addf %6, %11 : vector<24x3072xf32>
    %13 = vector.extract_strided_slice %1 {offsets = [2, 0], sizes = [24, 32], strides = [1, 1]} : vector<28x32xf32> to vector<24x32xf32>
    %14 = arith.truncf %13 : vector<24x32xf32> to vector<24x32xbf16>
    %c2 = arith.constant 2 : index
    %c0_8 = arith.constant 0 : index
    %c0_9 = arith.constant 0 : index
    %15 = vector.load %arg2[%c2, %c0_8, %c0_9] : memref<5x32x3072xbf16, #tpu.memory_space<vmem>>, vector<1x32x3072xbf16>
    %16 = vector.shape_cast %15 : vector<1x32x3072xbf16> to vector<32x3072xbf16>
    %cst_10 = arith.constant dense<0.000000e+00> : vector<24x3072xf32>
    %17 = tpu.matmul %14, %16, %cst_10 {dimension_numbers = #tpu.dot_dimension_numbers<[1], [0], [0], [1], [0, 0, 1, 1], [], []>} : vector<24x32xbf16>, vector<32x3072xbf16>, vector<24x3072xf32> -> vector<24x3072xf32>
    %18 = arith.addf %12, %17 : vector<24x3072xf32>
    %19 = vector.extract_strided_slice %1 {offsets = [3, 0], sizes = [24, 32], strides = [1, 1]} : vector<28x32xf32> to vector<24x32xf32>
    %20 = arith.truncf %19 : vector<24x32xf32> to vector<24x32xbf16>
    %c3 = arith.constant 3 : index
    %c0_11 = arith.constant 0 : index
    %c0_12 = arith.constant 0 : index
    %21 = vector.load %arg2[%c3, %c0_11, %c0_12] : memref<5x32x3072xbf16, #tpu.memory_space<vmem>>, vector<1x32x3072xbf16>
    %22 = vector.shape_cast %21 : vector<1x32x3072xbf16> to vector<32x3072xbf16>
    %cst_13 = arith.constant dense<0.000000e+00> : vector<24x3072xf32>
    %23 = tpu.matmul %20, %22, %cst_13 {dimension_numbers = #tpu.dot_dimension_numbers<[1], [0], [0], [1], [0, 0, 1, 1], [], []>} : vector<24x32xbf16>, vector<32x3072xbf16>, vector<24x3072xf32> -> vector<24x3072xf32>
    %24 = arith.addf %18, %23 : vector<24x3072xf32>
    %25 = vector.extract_strided_slice %1 {offsets = [4, 0], sizes = [24, 32], strides = [1, 1]} : vector<28x32xf32> to vector<24x32xf32>
    %26 = arith.truncf %25 : vector<24x32xf32> to vector<24x32xbf16>
    %c4 = arith.constant 4 : index
    %c0_14 = arith.constant 0 : index
    %c0_15 = arith.constant 0 : index
    %27 = vector.load %arg2[%c4, %c0_14, %c0_15] : memref<5x32x3072xbf16, #tpu.memory_space<vmem>>, vector<1x32x3072xbf16>
    %28 = vector.shape_cast %27 : vector<1x32x3072xbf16> to vector<32x3072xbf16>
    %cst_16 = arith.constant dense<0.000000e+00> : vector<24x3072xf32>
    %29 = tpu.matmul %26, %28, %cst_16 {dimension_numbers = #tpu.dot_dimension_numbers<[1], [0], [0], [1], [0, 0, 1, 1], [], []>} : vector<24x32xbf16>, vector<32x3072xbf16>, vector<24x3072xf32> -> vector<24x3072xf32>
    %30 = arith.addf %24, %29 : vector<24x3072xf32>
    %31 = vector.extract_strided_slice %30 {offsets = [0, 0], sizes = [24, 1536], strides = [1, 1]} : vector<24x3072xf32> to vector<24x1536xf32>
    %32 = vector.extract_strided_slice %30 {offsets = [0, 1536], sizes = [24, 1536], strides = [1, 1]} : vector<24x3072xf32> to vector<24x1536xf32>
    %33 = arith.maximumf %31, %32 : vector<24x1536xf32>
    %34 = arith.truncf %33 : vector<24x1536xf32> to vector<24x1536xbf16>
    %35 = tpu.iota {dimensions = array<i32: 0>} : vector<12x24xi32>
    %36 = tpu.iota {dimensions = array<i32: 1>} : vector<12x24xi32>
    %c2_i32 = arith.constant 2 : i32
    %37 = vector.broadcast %c2_i32 : i32 to vector<12x24xi32>
    %38 = arith.muli %37, %35 : vector<12x24xi32>
    %39 = arith.cmpi eq, %36, %38 : vector<12x24xi32>
    %40 = arith.extui %39 : vector<12x24xi1> to vector<12x24xi32>
    %41 = arith.sitofp %40 : vector<12x24xi32> to vector<12x24xf32>
    %42 = arith.truncf %41 : vector<12x24xf32> to vector<12x24xbf16>
    %c2_i32_17 = arith.constant 2 : i32
    %43 = vector.broadcast %c2_i32_17 : i32 to vector<12x24xi32>
    %44 = arith.muli %43, %35 : vector<12x24xi32>
    %c1_i32 = arith.constant 1 : i32
    %45 = vector.broadcast %c1_i32 : i32 to vector<12x24xi32>
    %46 = arith.addi %44, %45 : vector<12x24xi32>
    %47 = arith.cmpi eq, %36, %46 : vector<12x24xi32>
    %48 = arith.extui %47 : vector<12x24xi1> to vector<12x24xi32>
    %49 = arith.sitofp %48 : vector<12x24xi32> to vector<12x24xf32>
    %50 = arith.truncf %49 : vector<12x24xf32> to vector<12x24xbf16>
    %cst_18 = arith.constant dense<0.000000e+00> : vector<12x1536xf32>
    %51 = tpu.matmul %42, %34, %cst_18 {dimension_numbers = #tpu.dot_dimension_numbers<[1], [0], [0], [1], [0, 0, 1, 1], [], []>} : vector<12x24xbf16>, vector<24x1536xbf16>, vector<12x1536xf32> -> vector<12x1536xf32>
    %cst_19 = arith.constant dense<0.000000e+00> : vector<12x1536xf32>
    %52 = tpu.matmul %50, %34, %cst_19 {dimension_numbers = #tpu.dot_dimension_numbers<[1], [0], [0], [1], [0, 0, 1, 1], [], []>} : vector<12x24xbf16>, vector<24x1536xbf16>, vector<12x1536xf32> -> vector<12x1536xf32>
    %53 = arith.maximumf %51, %52 : vector<12x1536xf32>
    %c0_20 = arith.constant 0 : index
    %c0_21 = arith.constant 0 : index
    %54 = vector.load %arg3[%c0_20, %c0_21] : memref<1x1536xf32, #tpu.memory_space<vmem>>, vector<1x1536xf32>
    %55 = vector.broadcast %54 : vector<1x1536xf32> to vector<12x1536xf32>
    %56 = arith.addf %53, %55 : vector<12x1536xf32>
    %cst_22 = arith.constant 0.000000e+00 : f32
    %57 = vector.broadcast %cst_22 : f32 to vector<12x1536xf32>
    %58 = arith.maximumf %56, %57 : vector<12x1536xf32>
    %59 = vector.extract_strided_slice %58 {offsets = [0, 0], sizes = [8, 1536], strides = [1, 1]} : vector<12x1536xf32> to vector<8x1536xf32>
    %60 = arith.truncf %59 : vector<8x1536xf32> to vector<8x1536xbf16>
    %c0_23 = arith.constant 0 : index
    %c0_24 = arith.constant 0 : index
    %c0_25 = arith.constant 0 : index
    %61 = vector.load %arg4[%c0_23, %c0_24, %c0_25] : memref<5x640x128xbf16, #tpu.memory_space<vmem>>, vector<1x640x128xbf16>
    %62 = vector.shape_cast %61 : vector<1x640x128xbf16> to vector<640x128xbf16>
    %63 = vector.extract_strided_slice %60 {offsets = [0, 0], sizes = [8, 640], strides = [1, 1]} : vector<8x1536xbf16> to vector<8x640xbf16>
    %cst_26 = arith.constant dense<0.000000e+00> : vector<8x128xf32>
    %64 = tpu.matmul %63, %62, %cst_26 {dimension_numbers = #tpu.dot_dimension_numbers<[1], [0], [0], [1], [0, 0, 1, 1], [], []>} : vector<8x640xbf16>, vector<640x128xbf16>, vector<8x128xf32> -> vector<8x128xf32>
    %65 = vector.extract_strided_slice %60 {offsets = [0, 128], sizes = [8, 640], strides = [1, 1]} : vector<8x1536xbf16> to vector<8x640xbf16>
    %cst_27 = arith.constant dense<0.000000e+00> : vector<8x128xf32>
    %66 = tpu.matmul %65, %62, %cst_27 {dimension_numbers = #tpu.dot_dimension_numbers<[1], [0], [0], [1], [0, 0, 1, 1], [], []>} : vector<8x640xbf16>, vector<640x128xbf16>, vector<8x128xf32> -> vector<8x128xf32>
    %67 = vector.extract_strided_slice %60 {offsets = [0, 256], sizes = [8, 640], strides = [1, 1]} : vector<8x1536xbf16> to vector<8x640xbf16>
    %cst_28 = arith.constant dense<0.000000e+00> : vector<8x128xf32>
    %68 = tpu.matmul %67, %62, %cst_28 {dimension_numbers = #tpu.dot_dimension_numbers<[1], [0], [0], [1], [0, 0, 1, 1], [], []>} : vector<8x640xbf16>, vector<640x128xbf16>, vector<8x128xf32> -> vector<8x128xf32>
    %69 = vector.extract_strided_slice %60 {offsets = [0, 384], sizes = [8, 640], strides = [1, 1]} : vector<8x1536xbf16> to vector<8x640xbf16>
    %cst_29 = arith.constant dense<0.000000e+00> : vector<8x128xf32>
    %70 = tpu.matmul %69, %62, %cst_29 {dimension_numbers = #tpu.dot_dimension_numbers<[1], [0], [0], [1], [0, 0, 1, 1], [], []>} : vector<8x640xbf16>, vector<640x128xbf16>, vector<8x128xf32> -> vector<8x128xf32>
    %71 = vector.extract_strided_slice %60 {offsets = [0, 512], sizes = [8, 640], strides = [1, 1]} : vector<8x1536xbf16> to vector<8x640xbf16>
    %cst_30 = arith.constant dense<0.000000e+00> : vector<8x128xf32>
    %72 = tpu.matmul %71, %62, %cst_30 {dimension_numbers = #tpu.dot_dimension_numbers<[1], [0], [0], [1], [0, 0, 1, 1], [], []>} : vector<8x640xbf16>, vector<640x128xbf16>, vector<8x128xf32> -> vector<8x128xf32>
    %73 = vector.extract_strided_slice %60 {offsets = [0, 640], sizes = [8, 640], strides = [1, 1]} : vector<8x1536xbf16> to vector<8x640xbf16>
    %cst_31 = arith.constant dense<0.000000e+00> : vector<8x128xf32>
    %74 = tpu.matmul %73, %62, %cst_31 {dimension_numbers = #tpu.dot_dimension_numbers<[1], [0], [0], [1], [0, 0, 1, 1], [], []>} : vector<8x640xbf16>, vector<640x128xbf16>, vector<8x128xf32> -> vector<8x128xf32>
    %75 = vector.extract_strided_slice %60 {offsets = [0, 768], sizes = [8, 640], strides = [1, 1]} : vector<8x1536xbf16> to vector<8x640xbf16>
    %cst_32 = arith.constant dense<0.000000e+00> : vector<8x128xf32>
    %76 = tpu.matmul %75, %62, %cst_32 {dimension_numbers = #tpu.dot_dimension_numbers<[1], [0], [0], [1], [0, 0, 1, 1], [], []>} : vector<8x640xbf16>, vector<640x128xbf16>, vector<8x128xf32> -> vector<8x128xf32>
    %77 = vector.extract_strided_slice %60 {offsets = [0, 896], sizes = [8, 640], strides = [1, 1]} : vector<8x1536xbf16> to vector<8x640xbf16>
    %cst_33 = arith.constant dense<0.000000e+00> : vector<8x128xf32>
    %78 = tpu.matmul %77, %62, %cst_33 {dimension_numbers = #tpu.dot_dimension_numbers<[1], [0], [0], [1], [0, 0, 1, 1], [], []>} : vector<8x640xbf16>, vector<640x128xbf16>, vector<8x128xf32> -> vector<8x128xf32>
    %79 = vector.extract_strided_slice %58 {offsets = [1, 0], sizes = [8, 1536], strides = [1, 1]} : vector<12x1536xf32> to vector<8x1536xf32>
    %80 = arith.truncf %79 : vector<8x1536xf32> to vector<8x1536xbf16>
    %c1_34 = arith.constant 1 : index
    %c0_35 = arith.constant 0 : index
    %c0_36 = arith.constant 0 : index
    %81 = vector.load %arg4[%c1_34, %c0_35, %c0_36] : memref<5x640x128xbf16, #tpu.memory_space<vmem>>, vector<1x640x128xbf16>
    %82 = vector.shape_cast %81 : vector<1x640x128xbf16> to vector<640x128xbf16>
    %83 = vector.extract_strided_slice %80 {offsets = [0, 0], sizes = [8, 640], strides = [1, 1]} : vector<8x1536xbf16> to vector<8x640xbf16>
    %cst_37 = arith.constant dense<0.000000e+00> : vector<8x128xf32>
    %84 = tpu.matmul %83, %82, %cst_37 {dimension_numbers = #tpu.dot_dimension_numbers<[1], [0], [0], [1], [0, 0, 1, 1], [], []>} : vector<8x640xbf16>, vector<640x128xbf16>, vector<8x128xf32> -> vector<8x128xf32>
    %85 = arith.addf %64, %84 : vector<8x128xf32>
    %86 = vector.extract_strided_slice %80 {offsets = [0, 128], sizes = [8, 640], strides = [1, 1]} : vector<8x1536xbf16> to vector<8x640xbf16>
    %cst_38 = arith.constant dense<0.000000e+00> : vector<8x128xf32>
    %87 = tpu.matmul %86, %82, %cst_38 {dimension_numbers = #tpu.dot_dimension_numbers<[1], [0], [0], [1], [0, 0, 1, 1], [], []>} : vector<8x640xbf16>, vector<640x128xbf16>, vector<8x128xf32> -> vector<8x128xf32>
    %88 = arith.addf %66, %87 : vector<8x128xf32>
    %89 = vector.extract_strided_slice %80 {offsets = [0, 256], sizes = [8, 640], strides = [1, 1]} : vector<8x1536xbf16> to vector<8x640xbf16>
    %cst_39 = arith.constant dense<0.000000e+00> : vector<8x128xf32>
    %90 = tpu.matmul %89, %82, %cst_39 {dimension_numbers = #tpu.dot_dimension_numbers<[1], [0], [0], [1], [0, 0, 1, 1], [], []>} : vector<8x640xbf16>, vector<640x128xbf16>, vector<8x128xf32> -> vector<8x128xf32>
    %91 = arith.addf %68, %90 : vector<8x128xf32>
    %92 = vector.extract_strided_slice %80 {offsets = [0, 384], sizes = [8, 640], strides = [1, 1]} : vector<8x1536xbf16> to vector<8x640xbf16>
    %cst_40 = arith.constant dense<0.000000e+00> : vector<8x128xf32>
    %93 = tpu.matmul %92, %82, %cst_40 {dimension_numbers = #tpu.dot_dimension_numbers<[1], [0], [0], [1], [0, 0, 1, 1], [], []>} : vector<8x640xbf16>, vector<640x128xbf16>, vector<8x128xf32> -> vector<8x128xf32>
    %94 = arith.addf %70, %93 : vector<8x128xf32>
    %95 = vector.extract_strided_slice %80 {offsets = [0, 512], sizes = [8, 640], strides = [1, 1]} : vector<8x1536xbf16> to vector<8x640xbf16>
    %cst_41 = arith.constant dense<0.000000e+00> : vector<8x128xf32>
    %96 = tpu.matmul %95, %82, %cst_41 {dimension_numbers = #tpu.dot_dimension_numbers<[1], [0], [0], [1], [0, 0, 1, 1], [], []>} : vector<8x640xbf16>, vector<640x128xbf16>, vector<8x128xf32> -> vector<8x128xf32>
    %97 = arith.addf %72, %96 : vector<8x128xf32>
    %98 = vector.extract_strided_slice %80 {offsets = [0, 640], sizes = [8, 640], strides = [1, 1]} : vector<8x1536xbf16> to vector<8x640xbf16>
    %cst_42 = arith.constant dense<0.000000e+00> : vector<8x128xf32>
    %99 = tpu.matmul %98, %82, %cst_42 {dimension_numbers = #tpu.dot_dimension_numbers<[1], [0], [0], [1], [0, 0, 1, 1], [], []>} : vector<8x640xbf16>, vector<640x128xbf16>, vector<8x128xf32> -> vector<8x128xf32>
    %100 = arith.addf %74, %99 : vector<8x128xf32>
    %101 = vector.extract_strided_slice %80 {offsets = [0, 768], sizes = [8, 640], strides = [1, 1]} : vector<8x1536xbf16> to vector<8x640xbf16>
    %cst_43 = arith.constant dense<0.000000e+00> : vector<8x128xf32>
    %102 = tpu.matmul %101, %82, %cst_43 {dimension_numbers = #tpu.dot_dimension_numbers<[1], [0], [0], [1], [0, 0, 1, 1], [], []>} : vector<8x640xbf16>, vector<640x128xbf16>, vector<8x128xf32> -> vector<8x128xf32>
    %103 = arith.addf %76, %102 : vector<8x128xf32>
    %104 = vector.extract_strided_slice %80 {offsets = [0, 896], sizes = [8, 640], strides = [1, 1]} : vector<8x1536xbf16> to vector<8x640xbf16>
    %cst_44 = arith.constant dense<0.000000e+00> : vector<8x128xf32>
    %105 = tpu.matmul %104, %82, %cst_44 {dimension_numbers = #tpu.dot_dimension_numbers<[1], [0], [0], [1], [0, 0, 1, 1], [], []>} : vector<8x640xbf16>, vector<640x128xbf16>, vector<8x128xf32> -> vector<8x128xf32>
    %106 = arith.addf %78, %105 : vector<8x128xf32>
    %107 = vector.extract_strided_slice %58 {offsets = [2, 0], sizes = [8, 1536], strides = [1, 1]} : vector<12x1536xf32> to vector<8x1536xf32>
    %108 = arith.truncf %107 : vector<8x1536xf32> to vector<8x1536xbf16>
    %c2_45 = arith.constant 2 : index
    %c0_46 = arith.constant 0 : index
    %c0_47 = arith.constant 0 : index
    %109 = vector.load %arg4[%c2_45, %c0_46, %c0_47] : memref<5x640x128xbf16, #tpu.memory_space<vmem>>, vector<1x640x128xbf16>
    %110 = vector.shape_cast %109 : vector<1x640x128xbf16> to vector<640x128xbf16>
    %111 = vector.extract_strided_slice %108 {offsets = [0, 0], sizes = [8, 640], strides = [1, 1]} : vector<8x1536xbf16> to vector<8x640xbf16>
    %cst_48 = arith.constant dense<0.000000e+00> : vector<8x128xf32>
    %112 = tpu.matmul %111, %110, %cst_48 {dimension_numbers = #tpu.dot_dimension_numbers<[1], [0], [0], [1], [0, 0, 1, 1], [], []>} : vector<8x640xbf16>, vector<640x128xbf16>, vector<8x128xf32> -> vector<8x128xf32>
    %113 = arith.addf %85, %112 : vector<8x128xf32>
    %114 = vector.extract_strided_slice %108 {offsets = [0, 128], sizes = [8, 640], strides = [1, 1]} : vector<8x1536xbf16> to vector<8x640xbf16>
    %cst_49 = arith.constant dense<0.000000e+00> : vector<8x128xf32>
    %115 = tpu.matmul %114, %110, %cst_49 {dimension_numbers = #tpu.dot_dimension_numbers<[1], [0], [0], [1], [0, 0, 1, 1], [], []>} : vector<8x640xbf16>, vector<640x128xbf16>, vector<8x128xf32> -> vector<8x128xf32>
    %116 = arith.addf %88, %115 : vector<8x128xf32>
    %117 = vector.extract_strided_slice %108 {offsets = [0, 256], sizes = [8, 640], strides = [1, 1]} : vector<8x1536xbf16> to vector<8x640xbf16>
    %cst_50 = arith.constant dense<0.000000e+00> : vector<8x128xf32>
    %118 = tpu.matmul %117, %110, %cst_50 {dimension_numbers = #tpu.dot_dimension_numbers<[1], [0], [0], [1], [0, 0, 1, 1], [], []>} : vector<8x640xbf16>, vector<640x128xbf16>, vector<8x128xf32> -> vector<8x128xf32>
    %119 = arith.addf %91, %118 : vector<8x128xf32>
    %120 = vector.extract_strided_slice %108 {offsets = [0, 384], sizes = [8, 640], strides = [1, 1]} : vector<8x1536xbf16> to vector<8x640xbf16>
    %cst_51 = arith.constant dense<0.000000e+00> : vector<8x128xf32>
    %121 = tpu.matmul %120, %110, %cst_51 {dimension_numbers = #tpu.dot_dimension_numbers<[1], [0], [0], [1], [0, 0, 1, 1], [], []>} : vector<8x640xbf16>, vector<640x128xbf16>, vector<8x128xf32> -> vector<8x128xf32>
    %122 = arith.addf %94, %121 : vector<8x128xf32>
    %123 = vector.extract_strided_slice %108 {offsets = [0, 512], sizes = [8, 640], strides = [1, 1]} : vector<8x1536xbf16> to vector<8x640xbf16>
    %cst_52 = arith.constant dense<0.000000e+00> : vector<8x128xf32>
    %124 = tpu.matmul %123, %110, %cst_52 {dimension_numbers = #tpu.dot_dimension_numbers<[1], [0], [0], [1], [0, 0, 1, 1], [], []>} : vector<8x640xbf16>, vector<640x128xbf16>, vector<8x128xf32> -> vector<8x128xf32>
    %125 = arith.addf %97, %124 : vector<8x128xf32>
    %126 = vector.extract_strided_slice %108 {offsets = [0, 640], sizes = [8, 640], strides = [1, 1]} : vector<8x1536xbf16> to vector<8x640xbf16>
    %cst_53 = arith.constant dense<0.000000e+00> : vector<8x128xf32>
    %127 = tpu.matmul %126, %110, %cst_53 {dimension_numbers = #tpu.dot_dimension_numbers<[1], [0], [0], [1], [0, 0, 1, 1], [], []>} : vector<8x640xbf16>, vector<640x128xbf16>, vector<8x128xf32> -> vector<8x128xf32>
    %128 = arith.addf %100, %127 : vector<8x128xf32>
    %129 = vector.extract_strided_slice %108 {offsets = [0, 768], sizes = [8, 640], strides = [1, 1]} : vector<8x1536xbf16> to vector<8x640xbf16>
    %cst_54 = arith.constant dense<0.000000e+00> : vector<8x128xf32>
    %130 = tpu.matmul %129, %110, %cst_54 {dimension_numbers = #tpu.dot_dimension_numbers<[1], [0], [0], [1], [0, 0, 1, 1], [], []>} : vector<8x640xbf16>, vector<640x128xbf16>, vector<8x128xf32> -> vector<8x128xf32>
    %131 = arith.addf %103, %130 : vector<8x128xf32>
    %132 = vector.extract_strided_slice %108 {offsets = [0, 896], sizes = [8, 640], strides = [1, 1]} : vector<8x1536xbf16> to vector<8x640xbf16>
    %cst_55 = arith.constant dense<0.000000e+00> : vector<8x128xf32>
    %133 = tpu.matmul %132, %110, %cst_55 {dimension_numbers = #tpu.dot_dimension_numbers<[1], [0], [0], [1], [0, 0, 1, 1], [], []>} : vector<8x640xbf16>, vector<640x128xbf16>, vector<8x128xf32> -> vector<8x128xf32>
    %134 = arith.addf %106, %133 : vector<8x128xf32>
    %135 = vector.extract_strided_slice %58 {offsets = [3, 0], sizes = [8, 1536], strides = [1, 1]} : vector<12x1536xf32> to vector<8x1536xf32>
    %136 = arith.truncf %135 : vector<8x1536xf32> to vector<8x1536xbf16>
    %c3_56 = arith.constant 3 : index
    %c0_57 = arith.constant 0 : index
    %c0_58 = arith.constant 0 : index
    %137 = vector.load %arg4[%c3_56, %c0_57, %c0_58] : memref<5x640x128xbf16, #tpu.memory_space<vmem>>, vector<1x640x128xbf16>
    %138 = vector.shape_cast %137 : vector<1x640x128xbf16> to vector<640x128xbf16>
    %139 = vector.extract_strided_slice %136 {offsets = [0, 0], sizes = [8, 640], strides = [1, 1]} : vector<8x1536xbf16> to vector<8x640xbf16>
    %cst_59 = arith.constant dense<0.000000e+00> : vector<8x128xf32>
    %140 = tpu.matmul %139, %138, %cst_59 {dimension_numbers = #tpu.dot_dimension_numbers<[1], [0], [0], [1], [0, 0, 1, 1], [], []>} : vector<8x640xbf16>, vector<640x128xbf16>, vector<8x128xf32> -> vector<8x128xf32>
    %141 = arith.addf %113, %140 : vector<8x128xf32>
    %142 = vector.extract_strided_slice %136 {offsets = [0, 128], sizes = [8, 640], strides = [1, 1]} : vector<8x1536xbf16> to vector<8x640xbf16>
    %cst_60 = arith.constant dense<0.000000e+00> : vector<8x128xf32>
    %143 = tpu.matmul %142, %138, %cst_60 {dimension_numbers = #tpu.dot_dimension_numbers<[1], [0], [0], [1], [0, 0, 1, 1], [], []>} : vector<8x640xbf16>, vector<640x128xbf16>, vector<8x128xf32> -> vector<8x128xf32>
    %144 = arith.addf %116, %143 : vector<8x128xf32>
    %145 = vector.extract_strided_slice %136 {offsets = [0, 256], sizes = [8, 640], strides = [1, 1]} : vector<8x1536xbf16> to vector<8x640xbf16>
    %cst_61 = arith.constant dense<0.000000e+00> : vector<8x128xf32>
    %146 = tpu.matmul %145, %138, %cst_61 {dimension_numbers = #tpu.dot_dimension_numbers<[1], [0], [0], [1], [0, 0, 1, 1], [], []>} : vector<8x640xbf16>, vector<640x128xbf16>, vector<8x128xf32> -> vector<8x128xf32>
    %147 = arith.addf %119, %146 : vector<8x128xf32>
    %148 = vector.extract_strided_slice %136 {offsets = [0, 384], sizes = [8, 640], strides = [1, 1]} : vector<8x1536xbf16> to vector<8x640xbf16>
    %cst_62 = arith.constant dense<0.000000e+00> : vector<8x128xf32>
    %149 = tpu.matmul %148, %138, %cst_62 {dimension_numbers = #tpu.dot_dimension_numbers<[1], [0], [0], [1], [0, 0, 1, 1], [], []>} : vector<8x640xbf16>, vector<640x128xbf16>, vector<8x128xf32> -> vector<8x128xf32>
    %150 = arith.addf %122, %149 : vector<8x128xf32>
    %151 = vector.extract_strided_slice %136 {offsets = [0, 512], sizes = [8, 640], strides = [1, 1]} : vector<8x1536xbf16> to vector<8x640xbf16>
    %cst_63 = arith.constant dense<0.000000e+00> : vector<8x128xf32>
    %152 = tpu.matmul %151, %138, %cst_63 {dimension_numbers = #tpu.dot_dimension_numbers<[1], [0], [0], [1], [0, 0, 1, 1], [], []>} : vector<8x640xbf16>, vector<640x128xbf16>, vector<8x128xf32> -> vector<8x128xf32>
    %153 = arith.addf %125, %152 : vector<8x128xf32>
    %154 = vector.extract_strided_slice %136 {offsets = [0, 640], sizes = [8, 640], strides = [1, 1]} : vector<8x1536xbf16> to vector<8x640xbf16>
    %cst_64 = arith.constant dense<0.000000e+00> : vector<8x128xf32>
    %155 = tpu.matmul %154, %138, %cst_64 {dimension_numbers = #tpu.dot_dimension_numbers<[1], [0], [0], [1], [0, 0, 1, 1], [], []>} : vector<8x640xbf16>, vector<640x128xbf16>, vector<8x128xf32> -> vector<8x128xf32>
    %156 = arith.addf %128, %155 : vector<8x128xf32>
    %157 = vector.extract_strided_slice %136 {offsets = [0, 768], sizes = [8, 640], strides = [1, 1]} : vector<8x1536xbf16> to vector<8x640xbf16>
    %cst_65 = arith.constant dense<0.000000e+00> : vector<8x128xf32>
    %158 = tpu.matmul %157, %138, %cst_65 {dimension_numbers = #tpu.dot_dimension_numbers<[1], [0], [0], [1], [0, 0, 1, 1], [], []>} : vector<8x640xbf16>, vector<640x128xbf16>, vector<8x128xf32> -> vector<8x128xf32>
    %159 = arith.addf %131, %158 : vector<8x128xf32>
    %160 = vector.extract_strided_slice %136 {offsets = [0, 896], sizes = [8, 640], strides = [1, 1]} : vector<8x1536xbf16> to vector<8x640xbf16>
    %cst_66 = arith.constant dense<0.000000e+00> : vector<8x128xf32>
    %161 = tpu.matmul %160, %138, %cst_66 {dimension_numbers = #tpu.dot_dimension_numbers<[1], [0], [0], [1], [0, 0, 1, 1], [], []>} : vector<8x640xbf16>, vector<640x128xbf16>, vector<8x128xf32> -> vector<8x128xf32>
    %162 = arith.addf %134, %161 : vector<8x128xf32>
    %163 = vector.extract_strided_slice %58 {offsets = [4, 0], sizes = [8, 1536], strides = [1, 1]} : vector<12x1536xf32> to vector<8x1536xf32>
    %164 = arith.truncf %163 : vector<8x1536xf32> to vector<8x1536xbf16>
    %c4_67 = arith.constant 4 : index
    %c0_68 = arith.constant 0 : index
    %c0_69 = arith.constant 0 : index
    %165 = vector.load %arg4[%c4_67, %c0_68, %c0_69] : memref<5x640x128xbf16, #tpu.memory_space<vmem>>, vector<1x640x128xbf16>
    %166 = vector.shape_cast %165 : vector<1x640x128xbf16> to vector<640x128xbf16>
    %167 = vector.extract_strided_slice %164 {offsets = [0, 0], sizes = [8, 640], strides = [1, 1]} : vector<8x1536xbf16> to vector<8x640xbf16>
    %cst_70 = arith.constant dense<0.000000e+00> : vector<8x128xf32>
    %168 = tpu.matmul %167, %166, %cst_70 {dimension_numbers = #tpu.dot_dimension_numbers<[1], [0], [0], [1], [0, 0, 1, 1], [], []>} : vector<8x640xbf16>, vector<640x128xbf16>, vector<8x128xf32> -> vector<8x128xf32>
    %169 = arith.addf %141, %168 : vector<8x128xf32>
    %170 = vector.extract_strided_slice %164 {offsets = [0, 128], sizes = [8, 640], strides = [1, 1]} : vector<8x1536xbf16> to vector<8x640xbf16>
    %cst_71 = arith.constant dense<0.000000e+00> : vector<8x128xf32>
    %171 = tpu.matmul %170, %166, %cst_71 {dimension_numbers = #tpu.dot_dimension_numbers<[1], [0], [0], [1], [0, 0, 1, 1], [], []>} : vector<8x640xbf16>, vector<640x128xbf16>, vector<8x128xf32> -> vector<8x128xf32>
    %172 = arith.addf %144, %171 : vector<8x128xf32>
    %173 = vector.extract_strided_slice %164 {offsets = [0, 256], sizes = [8, 640], strides = [1, 1]} : vector<8x1536xbf16> to vector<8x640xbf16>
    %cst_72 = arith.constant dense<0.000000e+00> : vector<8x128xf32>
    %174 = tpu.matmul %173, %166, %cst_72 {dimension_numbers = #tpu.dot_dimension_numbers<[1], [0], [0], [1], [0, 0, 1, 1], [], []>} : vector<8x640xbf16>, vector<640x128xbf16>, vector<8x128xf32> -> vector<8x128xf32>
    %175 = arith.addf %147, %174 : vector<8x128xf32>
    %176 = vector.extract_strided_slice %164 {offsets = [0, 384], sizes = [8, 640], strides = [1, 1]} : vector<8x1536xbf16> to vector<8x640xbf16>
    %cst_73 = arith.constant dense<0.000000e+00> : vector<8x128xf32>
    %177 = tpu.matmul %176, %166, %cst_73 {dimension_numbers = #tpu.dot_dimension_numbers<[1], [0], [0], [1], [0, 0, 1, 1], [], []>} : vector<8x640xbf16>, vector<640x128xbf16>, vector<8x128xf32> -> vector<8x128xf32>
    %178 = arith.addf %150, %177 : vector<8x128xf32>
    %179 = vector.extract_strided_slice %164 {offsets = [0, 512], sizes = [8, 640], strides = [1, 1]} : vector<8x1536xbf16> to vector<8x640xbf16>
    %cst_74 = arith.constant dense<0.000000e+00> : vector<8x128xf32>
    %180 = tpu.matmul %179, %166, %cst_74 {dimension_numbers = #tpu.dot_dimension_numbers<[1], [0], [0], [1], [0, 0, 1, 1], [], []>} : vector<8x640xbf16>, vector<640x128xbf16>, vector<8x128xf32> -> vector<8x128xf32>
    %181 = arith.addf %153, %180 : vector<8x128xf32>
    %182 = vector.extract_strided_slice %164 {offsets = [0, 640], sizes = [8, 640], strides = [1, 1]} : vector<8x1536xbf16> to vector<8x640xbf16>
    %cst_75 = arith.constant dense<0.000000e+00> : vector<8x128xf32>
    %183 = tpu.matmul %182, %166, %cst_75 {dimension_numbers = #tpu.dot_dimension_numbers<[1], [0], [0], [1], [0, 0, 1, 1], [], []>} : vector<8x640xbf16>, vector<640x128xbf16>, vector<8x128xf32> -> vector<8x128xf32>
    %184 = arith.addf %156, %183 : vector<8x128xf32>
    %185 = vector.extract_strided_slice %164 {offsets = [0, 768], sizes = [8, 640], strides = [1, 1]} : vector<8x1536xbf16> to vector<8x640xbf16>
    %cst_76 = arith.constant dense<0.000000e+00> : vector<8x128xf32>
    %186 = tpu.matmul %185, %166, %cst_76 {dimension_numbers = #tpu.dot_dimension_numbers<[1], [0], [0], [1], [0, 0, 1, 1], [], []>} : vector<8x640xbf16>, vector<640x128xbf16>, vector<8x128xf32> -> vector<8x128xf32>
    %187 = arith.addf %159, %186 : vector<8x128xf32>
    %188 = vector.extract_strided_slice %164 {offsets = [0, 896], sizes = [8, 640], strides = [1, 1]} : vector<8x1536xbf16> to vector<8x640xbf16>
    %cst_77 = arith.constant dense<0.000000e+00> : vector<8x128xf32>
    %189 = tpu.matmul %188, %166, %cst_77 {dimension_numbers = #tpu.dot_dimension_numbers<[1], [0], [0], [1], [0, 0, 1, 1], [], []>} : vector<8x640xbf16>, vector<640x128xbf16>, vector<8x128xf32> -> vector<8x128xf32>
    %190 = arith.addf %162, %189 : vector<8x128xf32>
    %c0_78 = arith.constant 0 : index
    %c0_79 = arith.constant 0 : index
    %191 = vector.load %arg5[%c0_78, %c0_79] : memref<1x128xf32, #tpu.memory_space<vmem>>, vector<1x128xf32>
    %cst_80 = arith.constant 0.000000e+00 : f32
    %192 = vector.broadcast %cst_80 : f32 to vector<1x128xf32>
    %193 = arith.maximumf %169, %172 : vector<8x128xf32>
    %194 = vector.extract_strided_slice %193 {offsets = [0, 0], sizes = [1, 128], strides = [1, 1]} : vector<8x128xf32> to vector<1x128xf32>
    %195 = vector.extract_strided_slice %193 {offsets = [1, 0], sizes = [1, 128], strides = [1, 1]} : vector<8x128xf32> to vector<1x128xf32>
    %196 = arith.maximumf %194, %195 : vector<1x128xf32>
    %197 = arith.addf %196, %191 : vector<1x128xf32>
    %cst_81 = arith.constant 0.000000e+00 : f32
    %198 = vector.broadcast %cst_81 : f32 to vector<1x128xf32>
    %199 = arith.maximumf %197, %198 : vector<1x128xf32>
    %200 = arith.truncf %199 : vector<1x128xf32> to vector<1x128xbf16>
    %c0_82 = arith.constant 0 : index
    %c0_83 = arith.constant 0 : index
    %c0_84 = arith.constant 0 : index
    %201 = vector.load %arg6[%c0_82, %c0_83, %c0_84] : memref<16x128x128xbf16, #tpu.memory_space<vmem>>, vector<1x128x128xbf16>
    %202 = vector.shape_cast %201 : vector<1x128x128xbf16> to vector<128x128xbf16>
    %cst_85 = arith.constant dense<0.000000e+00> : vector<1x128xf32>
    %203 = tpu.matmul %200, %202, %cst_85 {dimension_numbers = #tpu.dot_dimension_numbers<[1], [0], [0], [1], [0, 0, 1, 1], [], []>} : vector<1x128xbf16>, vector<128x128xbf16>, vector<1x128xf32> -> vector<1x128xf32>
    %204 = arith.addf %192, %203 : vector<1x128xf32>
    %205 = vector.extract_strided_slice %193 {offsets = [2, 0], sizes = [1, 128], strides = [1, 1]} : vector<8x128xf32> to vector<1x128xf32>
    %206 = vector.extract_strided_slice %193 {offsets = [3, 0], sizes = [1, 128], strides = [1, 1]} : vector<8x128xf32> to vector<1x128xf32>
    %207 = arith.maximumf %205, %206 : vector<1x128xf32>
    %208 = arith.addf %207, %191 : vector<1x128xf32>
    %cst_86 = arith.constant 0.000000e+00 : f32
    %209 = vector.broadcast %cst_86 : f32 to vector<1x128xf32>
    %210 = arith.maximumf %208, %209 : vector<1x128xf32>
    %211 = arith.truncf %210 : vector<1x128xf32> to vector<1x128xbf16>
    %c4_87 = arith.constant 4 : index
    %c0_88 = arith.constant 0 : index
    %c0_89 = arith.constant 0 : index
    %212 = vector.load %arg6[%c4_87, %c0_88, %c0_89] : memref<16x128x128xbf16, #tpu.memory_space<vmem>>, vector<1x128x128xbf16>
    %213 = vector.shape_cast %212 : vector<1x128x128xbf16> to vector<128x128xbf16>
    %cst_90 = arith.constant dense<0.000000e+00> : vector<1x128xf32>
    %214 = tpu.matmul %211, %213, %cst_90 {dimension_numbers = #tpu.dot_dimension_numbers<[1], [0], [0], [1], [0, 0, 1, 1], [], []>} : vector<1x128xbf16>, vector<128x128xbf16>, vector<1x128xf32> -> vector<1x128xf32>
    %215 = arith.addf %204, %214 : vector<1x128xf32>
    %216 = vector.extract_strided_slice %193 {offsets = [4, 0], sizes = [1, 128], strides = [1, 1]} : vector<8x128xf32> to vector<1x128xf32>
    %217 = vector.extract_strided_slice %193 {offsets = [5, 0], sizes = [1, 128], strides = [1, 1]} : vector<8x128xf32> to vector<1x128xf32>
    %218 = arith.maximumf %216, %217 : vector<1x128xf32>
    %219 = arith.addf %218, %191 : vector<1x128xf32>
    %cst_91 = arith.constant 0.000000e+00 : f32
    %220 = vector.broadcast %cst_91 : f32 to vector<1x128xf32>
    %221 = arith.maximumf %219, %220 : vector<1x128xf32>
    %222 = arith.truncf %221 : vector<1x128xf32> to vector<1x128xbf16>
    %c8 = arith.constant 8 : index
    %c0_92 = arith.constant 0 : index
    %c0_93 = arith.constant 0 : index
    %223 = vector.load %arg6[%c8, %c0_92, %c0_93] : memref<16x128x128xbf16, #tpu.memory_space<vmem>>, vector<1x128x128xbf16>
    %224 = vector.shape_cast %223 : vector<1x128x128xbf16> to vector<128x128xbf16>
    %cst_94 = arith.constant dense<0.000000e+00> : vector<1x128xf32>
    %225 = tpu.matmul %222, %224, %cst_94 {dimension_numbers = #tpu.dot_dimension_numbers<[1], [0], [0], [1], [0, 0, 1, 1], [], []>} : vector<1x128xbf16>, vector<128x128xbf16>, vector<1x128xf32> -> vector<1x128xf32>
    %226 = arith.addf %215, %225 : vector<1x128xf32>
    %227 = vector.extract_strided_slice %193 {offsets = [6, 0], sizes = [1, 128], strides = [1, 1]} : vector<8x128xf32> to vector<1x128xf32>
    %228 = vector.extract_strided_slice %193 {offsets = [7, 0], sizes = [1, 128], strides = [1, 1]} : vector<8x128xf32> to vector<1x128xf32>
    %229 = arith.maximumf %227, %228 : vector<1x128xf32>
    %230 = arith.addf %229, %191 : vector<1x128xf32>
    %cst_95 = arith.constant 0.000000e+00 : f32
    %231 = vector.broadcast %cst_95 : f32 to vector<1x128xf32>
    %232 = arith.maximumf %230, %231 : vector<1x128xf32>
    %233 = arith.truncf %232 : vector<1x128xf32> to vector<1x128xbf16>
    %c12 = arith.constant 12 : index
    %c0_96 = arith.constant 0 : index
    %c0_97 = arith.constant 0 : index
    %234 = vector.load %arg6[%c12, %c0_96, %c0_97] : memref<16x128x128xbf16, #tpu.memory_space<vmem>>, vector<1x128x128xbf16>
    %235 = vector.shape_cast %234 : vector<1x128x128xbf16> to vector<128x128xbf16>
    %cst_98 = arith.constant dense<0.000000e+00> : vector<1x128xf32>
    %236 = tpu.matmul %233, %235, %cst_98 {dimension_numbers = #tpu.dot_dimension_numbers<[1], [0], [0], [1], [0, 0, 1, 1], [], []>} : vector<1x128xbf16>, vector<128x128xbf16>, vector<1x128xf32> -> vector<1x128xf32>
    %237 = arith.addf %226, %236 : vector<1x128xf32>
    %238 = arith.maximumf %175, %178 : vector<8x128xf32>
    %239 = vector.extract_strided_slice %238 {offsets = [0, 0], sizes = [1, 128], strides = [1, 1]} : vector<8x128xf32> to vector<1x128xf32>
    %240 = vector.extract_strided_slice %238 {offsets = [1, 0], sizes = [1, 128], strides = [1, 1]} : vector<8x128xf32> to vector<1x128xf32>
    %241 = arith.maximumf %239, %240 : vector<1x128xf32>
    %242 = arith.addf %241, %191 : vector<1x128xf32>
    %cst_99 = arith.constant 0.000000e+00 : f32
    %243 = vector.broadcast %cst_99 : f32 to vector<1x128xf32>
    %244 = arith.maximumf %242, %243 : vector<1x128xf32>
    %245 = arith.truncf %244 : vector<1x128xf32> to vector<1x128xbf16>
    %c1_100 = arith.constant 1 : index
    %c0_101 = arith.constant 0 : index
    %c0_102 = arith.constant 0 : index
    %246 = vector.load %arg6[%c1_100, %c0_101, %c0_102] : memref<16x128x128xbf16, #tpu.memory_space<vmem>>, vector<1x128x128xbf16>
    %247 = vector.shape_cast %246 : vector<1x128x128xbf16> to vector<128x128xbf16>
    %cst_103 = arith.constant dense<0.000000e+00> : vector<1x128xf32>
    %248 = tpu.matmul %245, %247, %cst_103 {dimension_numbers = #tpu.dot_dimension_numbers<[1], [0], [0], [1], [0, 0, 1, 1], [], []>} : vector<1x128xbf16>, vector<128x128xbf16>, vector<1x128xf32> -> vector<1x128xf32>
    %249 = arith.addf %237, %248 : vector<1x128xf32>
    %250 = vector.extract_strided_slice %238 {offsets = [2, 0], sizes = [1, 128], strides = [1, 1]} : vector<8x128xf32> to vector<1x128xf32>
    %251 = vector.extract_strided_slice %238 {offsets = [3, 0], sizes = [1, 128], strides = [1, 1]} : vector<8x128xf32> to vector<1x128xf32>
    %252 = arith.maximumf %250, %251 : vector<1x128xf32>
    %253 = arith.addf %252, %191 : vector<1x128xf32>
    %cst_104 = arith.constant 0.000000e+00 : f32
    %254 = vector.broadcast %cst_104 : f32 to vector<1x128xf32>
    %255 = arith.maximumf %253, %254 : vector<1x128xf32>
    %256 = arith.truncf %255 : vector<1x128xf32> to vector<1x128xbf16>
    %c5 = arith.constant 5 : index
    %c0_105 = arith.constant 0 : index
    %c0_106 = arith.constant 0 : index
    %257 = vector.load %arg6[%c5, %c0_105, %c0_106] : memref<16x128x128xbf16, #tpu.memory_space<vmem>>, vector<1x128x128xbf16>
    %258 = vector.shape_cast %257 : vector<1x128x128xbf16> to vector<128x128xbf16>
    %cst_107 = arith.constant dense<0.000000e+00> : vector<1x128xf32>
    %259 = tpu.matmul %256, %258, %cst_107 {dimension_numbers = #tpu.dot_dimension_numbers<[1], [0], [0], [1], [0, 0, 1, 1], [], []>} : vector<1x128xbf16>, vector<128x128xbf16>, vector<1x128xf32> -> vector<1x128xf32>
    %260 = arith.addf %249, %259 : vector<1x128xf32>
    %261 = vector.extract_strided_slice %238 {offsets = [4, 0], sizes = [1, 128], strides = [1, 1]} : vector<8x128xf32> to vector<1x128xf32>
    %262 = vector.extract_strided_slice %238 {offsets = [5, 0], sizes = [1, 128], strides = [1, 1]} : vector<8x128xf32> to vector<1x128xf32>
    %263 = arith.maximumf %261, %262 : vector<1x128xf32>
    %264 = arith.addf %263, %191 : vector<1x128xf32>
    %cst_108 = arith.constant 0.000000e+00 : f32
    %265 = vector.broadcast %cst_108 : f32 to vector<1x128xf32>
    %266 = arith.maximumf %264, %265 : vector<1x128xf32>
    %267 = arith.truncf %266 : vector<1x128xf32> to vector<1x128xbf16>
    %c9 = arith.constant 9 : index
    %c0_109 = arith.constant 0 : index
    %c0_110 = arith.constant 0 : index
    %268 = vector.load %arg6[%c9, %c0_109, %c0_110] : memref<16x128x128xbf16, #tpu.memory_space<vmem>>, vector<1x128x128xbf16>
    %269 = vector.shape_cast %268 : vector<1x128x128xbf16> to vector<128x128xbf16>
    %cst_111 = arith.constant dense<0.000000e+00> : vector<1x128xf32>
    %270 = tpu.matmul %267, %269, %cst_111 {dimension_numbers = #tpu.dot_dimension_numbers<[1], [0], [0], [1], [0, 0, 1, 1], [], []>} : vector<1x128xbf16>, vector<128x128xbf16>, vector<1x128xf32> -> vector<1x128xf32>
    %271 = arith.addf %260, %270 : vector<1x128xf32>
    %272 = vector.extract_strided_slice %238 {offsets = [6, 0], sizes = [1, 128], strides = [1, 1]} : vector<8x128xf32> to vector<1x128xf32>
    %273 = vector.extract_strided_slice %238 {offsets = [7, 0], sizes = [1, 128], strides = [1, 1]} : vector<8x128xf32> to vector<1x128xf32>
    %274 = arith.maximumf %272, %273 : vector<1x128xf32>
    %275 = arith.addf %274, %191 : vector<1x128xf32>
    %cst_112 = arith.constant 0.000000e+00 : f32
    %276 = vector.broadcast %cst_112 : f32 to vector<1x128xf32>
    %277 = arith.maximumf %275, %276 : vector<1x128xf32>
    %278 = arith.truncf %277 : vector<1x128xf32> to vector<1x128xbf16>
    %c13 = arith.constant 13 : index
    %c0_113 = arith.constant 0 : index
    %c0_114 = arith.constant 0 : index
    %279 = vector.load %arg6[%c13, %c0_113, %c0_114] : memref<16x128x128xbf16, #tpu.memory_space<vmem>>, vector<1x128x128xbf16>
    %280 = vector.shape_cast %279 : vector<1x128x128xbf16> to vector<128x128xbf16>
    %cst_115 = arith.constant dense<0.000000e+00> : vector<1x128xf32>
    %281 = tpu.matmul %278, %280, %cst_115 {dimension_numbers = #tpu.dot_dimension_numbers<[1], [0], [0], [1], [0, 0, 1, 1], [], []>} : vector<1x128xbf16>, vector<128x128xbf16>, vector<1x128xf32> -> vector<1x128xf32>
    %282 = arith.addf %271, %281 : vector<1x128xf32>
    %283 = arith.maximumf %181, %184 : vector<8x128xf32>
    %284 = vector.extract_strided_slice %283 {offsets = [0, 0], sizes = [1, 128], strides = [1, 1]} : vector<8x128xf32> to vector<1x128xf32>
    %285 = vector.extract_strided_slice %283 {offsets = [1, 0], sizes = [1, 128], strides = [1, 1]} : vector<8x128xf32> to vector<1x128xf32>
    %286 = arith.maximumf %284, %285 : vector<1x128xf32>
    %287 = arith.addf %286, %191 : vector<1x128xf32>
    %cst_116 = arith.constant 0.000000e+00 : f32
    %288 = vector.broadcast %cst_116 : f32 to vector<1x128xf32>
    %289 = arith.maximumf %287, %288 : vector<1x128xf32>
    %290 = arith.truncf %289 : vector<1x128xf32> to vector<1x128xbf16>
    %c2_117 = arith.constant 2 : index
    %c0_118 = arith.constant 0 : index
    %c0_119 = arith.constant 0 : index
    %291 = vector.load %arg6[%c2_117, %c0_118, %c0_119] : memref<16x128x128xbf16, #tpu.memory_space<vmem>>, vector<1x128x128xbf16>
    %292 = vector.shape_cast %291 : vector<1x128x128xbf16> to vector<128x128xbf16>
    %cst_120 = arith.constant dense<0.000000e+00> : vector<1x128xf32>
    %293 = tpu.matmul %290, %292, %cst_120 {dimension_numbers = #tpu.dot_dimension_numbers<[1], [0], [0], [1], [0, 0, 1, 1], [], []>} : vector<1x128xbf16>, vector<128x128xbf16>, vector<1x128xf32> -> vector<1x128xf32>
    %294 = arith.addf %282, %293 : vector<1x128xf32>
    %295 = vector.extract_strided_slice %283 {offsets = [2, 0], sizes = [1, 128], strides = [1, 1]} : vector<8x128xf32> to vector<1x128xf32>
    %296 = vector.extract_strided_slice %283 {offsets = [3, 0], sizes = [1, 128], strides = [1, 1]} : vector<8x128xf32> to vector<1x128xf32>
    %297 = arith.maximumf %295, %296 : vector<1x128xf32>
    %298 = arith.addf %297, %191 : vector<1x128xf32>
    %cst_121 = arith.constant 0.000000e+00 : f32
    %299 = vector.broadcast %cst_121 : f32 to vector<1x128xf32>
    %300 = arith.maximumf %298, %299 : vector<1x128xf32>
    %301 = arith.truncf %300 : vector<1x128xf32> to vector<1x128xbf16>
    %c6 = arith.constant 6 : index
    %c0_122 = arith.constant 0 : index
    %c0_123 = arith.constant 0 : index
    %302 = vector.load %arg6[%c6, %c0_122, %c0_123] : memref<16x128x128xbf16, #tpu.memory_space<vmem>>, vector<1x128x128xbf16>
    %303 = vector.shape_cast %302 : vector<1x128x128xbf16> to vector<128x128xbf16>
    %cst_124 = arith.constant dense<0.000000e+00> : vector<1x128xf32>
    %304 = tpu.matmul %301, %303, %cst_124 {dimension_numbers = #tpu.dot_dimension_numbers<[1], [0], [0], [1], [0, 0, 1, 1], [], []>} : vector<1x128xbf16>, vector<128x128xbf16>, vector<1x128xf32> -> vector<1x128xf32>
    %305 = arith.addf %294, %304 : vector<1x128xf32>
    %306 = vector.extract_strided_slice %283 {offsets = [4, 0], sizes = [1, 128], strides = [1, 1]} : vector<8x128xf32> to vector<1x128xf32>
    %307 = vector.extract_strided_slice %283 {offsets = [5, 0], sizes = [1, 128], strides = [1, 1]} : vector<8x128xf32> to vector<1x128xf32>
    %308 = arith.maximumf %306, %307 : vector<1x128xf32>
    %309 = arith.addf %308, %191 : vector<1x128xf32>
    %cst_125 = arith.constant 0.000000e+00 : f32
    %310 = vector.broadcast %cst_125 : f32 to vector<1x128xf32>
    %311 = arith.maximumf %309, %310 : vector<1x128xf32>
    %312 = arith.truncf %311 : vector<1x128xf32> to vector<1x128xbf16>
    %c10 = arith.constant 10 : index
    %c0_126 = arith.constant 0 : index
    %c0_127 = arith.constant 0 : index
    %313 = vector.load %arg6[%c10, %c0_126, %c0_127] : memref<16x128x128xbf16, #tpu.memory_space<vmem>>, vector<1x128x128xbf16>
    %314 = vector.shape_cast %313 : vector<1x128x128xbf16> to vector<128x128xbf16>
    %cst_128 = arith.constant dense<0.000000e+00> : vector<1x128xf32>
    %315 = tpu.matmul %312, %314, %cst_128 {dimension_numbers = #tpu.dot_dimension_numbers<[1], [0], [0], [1], [0, 0, 1, 1], [], []>} : vector<1x128xbf16>, vector<128x128xbf16>, vector<1x128xf32> -> vector<1x128xf32>
    %316 = arith.addf %305, %315 : vector<1x128xf32>
    %317 = vector.extract_strided_slice %283 {offsets = [6, 0], sizes = [1, 128], strides = [1, 1]} : vector<8x128xf32> to vector<1x128xf32>
    %318 = vector.extract_strided_slice %283 {offsets = [7, 0], sizes = [1, 128], strides = [1, 1]} : vector<8x128xf32> to vector<1x128xf32>
    %319 = arith.maximumf %317, %318 : vector<1x128xf32>
    %320 = arith.addf %319, %191 : vector<1x128xf32>
    %cst_129 = arith.constant 0.000000e+00 : f32
    %321 = vector.broadcast %cst_129 : f32 to vector<1x128xf32>
    %322 = arith.maximumf %320, %321 : vector<1x128xf32>
    %323 = arith.truncf %322 : vector<1x128xf32> to vector<1x128xbf16>
    %c14 = arith.constant 14 : index
    %c0_130 = arith.constant 0 : index
    %c0_131 = arith.constant 0 : index
    %324 = vector.load %arg6[%c14, %c0_130, %c0_131] : memref<16x128x128xbf16, #tpu.memory_space<vmem>>, vector<1x128x128xbf16>
    %325 = vector.shape_cast %324 : vector<1x128x128xbf16> to vector<128x128xbf16>
    %cst_132 = arith.constant dense<0.000000e+00> : vector<1x128xf32>
    %326 = tpu.matmul %323, %325, %cst_132 {dimension_numbers = #tpu.dot_dimension_numbers<[1], [0], [0], [1], [0, 0, 1, 1], [], []>} : vector<1x128xbf16>, vector<128x128xbf16>, vector<1x128xf32> -> vector<1x128xf32>
    %327 = arith.addf %316, %326 : vector<1x128xf32>
    %328 = arith.maximumf %187, %190 : vector<8x128xf32>
    %329 = vector.extract_strided_slice %328 {offsets = [0, 0], sizes = [1, 128], strides = [1, 1]} : vector<8x128xf32> to vector<1x128xf32>
    %330 = vector.extract_strided_slice %328 {offsets = [1, 0], sizes = [1, 128], strides = [1, 1]} : vector<8x128xf32> to vector<1x128xf32>
    %331 = arith.maximumf %329, %330 : vector<1x128xf32>
    %332 = arith.addf %331, %191 : vector<1x128xf32>
    %cst_133 = arith.constant 0.000000e+00 : f32
    %333 = vector.broadcast %cst_133 : f32 to vector<1x128xf32>
    %334 = arith.maximumf %332, %333 : vector<1x128xf32>
    %335 = arith.truncf %334 : vector<1x128xf32> to vector<1x128xbf16>
    %c3_134 = arith.constant 3 : index
    %c0_135 = arith.constant 0 : index
    %c0_136 = arith.constant 0 : index
    %336 = vector.load %arg6[%c3_134, %c0_135, %c0_136] : memref<16x128x128xbf16, #tpu.memory_space<vmem>>, vector<1x128x128xbf16>
    %337 = vector.shape_cast %336 : vector<1x128x128xbf16> to vector<128x128xbf16>
    %cst_137 = arith.constant dense<0.000000e+00> : vector<1x128xf32>
    %338 = tpu.matmul %335, %337, %cst_137 {dimension_numbers = #tpu.dot_dimension_numbers<[1], [0], [0], [1], [0, 0, 1, 1], [], []>} : vector<1x128xbf16>, vector<128x128xbf16>, vector<1x128xf32> -> vector<1x128xf32>
    %339 = arith.addf %327, %338 : vector<1x128xf32>
    %340 = vector.extract_strided_slice %328 {offsets = [2, 0], sizes = [1, 128], strides = [1, 1]} : vector<8x128xf32> to vector<1x128xf32>
    %341 = vector.extract_strided_slice %328 {offsets = [3, 0], sizes = [1, 128], strides = [1, 1]} : vector<8x128xf32> to vector<1x128xf32>
    %342 = arith.maximumf %340, %341 : vector<1x128xf32>
    %343 = arith.addf %342, %191 : vector<1x128xf32>
    %cst_138 = arith.constant 0.000000e+00 : f32
    %344 = vector.broadcast %cst_138 : f32 to vector<1x128xf32>
    %345 = arith.maximumf %343, %344 : vector<1x128xf32>
    %346 = arith.truncf %345 : vector<1x128xf32> to vector<1x128xbf16>
    %c7 = arith.constant 7 : index
    %c0_139 = arith.constant 0 : index
    %c0_140 = arith.constant 0 : index
    %347 = vector.load %arg6[%c7, %c0_139, %c0_140] : memref<16x128x128xbf16, #tpu.memory_space<vmem>>, vector<1x128x128xbf16>
    %348 = vector.shape_cast %347 : vector<1x128x128xbf16> to vector<128x128xbf16>
    %cst_141 = arith.constant dense<0.000000e+00> : vector<1x128xf32>
    %349 = tpu.matmul %346, %348, %cst_141 {dimension_numbers = #tpu.dot_dimension_numbers<[1], [0], [0], [1], [0, 0, 1, 1], [], []>} : vector<1x128xbf16>, vector<128x128xbf16>, vector<1x128xf32> -> vector<1x128xf32>
    %350 = arith.addf %339, %349 : vector<1x128xf32>
    %351 = vector.extract_strided_slice %328 {offsets = [4, 0], sizes = [1, 128], strides = [1, 1]} : vector<8x128xf32> to vector<1x128xf32>
    %352 = vector.extract_strided_slice %328 {offsets = [5, 0], sizes = [1, 128], strides = [1, 1]} : vector<8x128xf32> to vector<1x128xf32>
    %353 = arith.maximumf %351, %352 : vector<1x128xf32>
    %354 = arith.addf %353, %191 : vector<1x128xf32>
    %cst_142 = arith.constant 0.000000e+00 : f32
    %355 = vector.broadcast %cst_142 : f32 to vector<1x128xf32>
    %356 = arith.maximumf %354, %355 : vector<1x128xf32>
    %357 = arith.truncf %356 : vector<1x128xf32> to vector<1x128xbf16>
    %c11 = arith.constant 11 : index
    %c0_143 = arith.constant 0 : index
    %c0_144 = arith.constant 0 : index
    %358 = vector.load %arg6[%c11, %c0_143, %c0_144] : memref<16x128x128xbf16, #tpu.memory_space<vmem>>, vector<1x128x128xbf16>
    %359 = vector.shape_cast %358 : vector<1x128x128xbf16> to vector<128x128xbf16>
    %cst_145 = arith.constant dense<0.000000e+00> : vector<1x128xf32>
    %360 = tpu.matmul %357, %359, %cst_145 {dimension_numbers = #tpu.dot_dimension_numbers<[1], [0], [0], [1], [0, 0, 1, 1], [], []>} : vector<1x128xbf16>, vector<128x128xbf16>, vector<1x128xf32> -> vector<1x128xf32>
    %361 = arith.addf %350, %360 : vector<1x128xf32>
    %362 = vector.extract_strided_slice %328 {offsets = [6, 0], sizes = [1, 128], strides = [1, 1]} : vector<8x128xf32> to vector<1x128xf32>
    %363 = vector.extract_strided_slice %328 {offsets = [7, 0], sizes = [1, 128], strides = [1, 1]} : vector<8x128xf32> to vector<1x128xf32>
    %364 = arith.maximumf %362, %363 : vector<1x128xf32>
    %365 = arith.addf %364, %191 : vector<1x128xf32>
    %cst_146 = arith.constant 0.000000e+00 : f32
    %366 = vector.broadcast %cst_146 : f32 to vector<1x128xf32>
    %367 = arith.maximumf %365, %366 : vector<1x128xf32>
    %368 = arith.truncf %367 : vector<1x128xf32> to vector<1x128xbf16>
    %c15 = arith.constant 15 : index
    %c0_147 = arith.constant 0 : index
    %c0_148 = arith.constant 0 : index
    %369 = vector.load %arg6[%c15, %c0_147, %c0_148] : memref<16x128x128xbf16, #tpu.memory_space<vmem>>, vector<1x128x128xbf16>
    %370 = vector.shape_cast %369 : vector<1x128x128xbf16> to vector<128x128xbf16>
    %cst_149 = arith.constant dense<0.000000e+00> : vector<1x128xf32>
    %371 = tpu.matmul %368, %370, %cst_149 {dimension_numbers = #tpu.dot_dimension_numbers<[1], [0], [0], [1], [0, 0, 1, 1], [], []>} : vector<1x128xbf16>, vector<128x128xbf16>, vector<1x128xf32> -> vector<1x128xf32>
    %372 = arith.addf %361, %371 : vector<1x128xf32>
    %c0_150 = arith.constant 0 : index
    %c0_151 = arith.constant 0 : index
    %373 = vector.load %arg7[%c0_150, %c0_151] : memref<1x128xf32, #tpu.memory_space<vmem>>, vector<1x128xf32>
    %374 = arith.addf %372, %373 : vector<1x128xf32>
    %cst_152 = arith.constant 0.000000e+00 : f32
    %375 = vector.broadcast %cst_152 : f32 to vector<1x128xf32>
    %376 = arith.maximumf %374, %375 : vector<1x128xf32>
    %c0_153 = arith.constant 0 : index
    %c0_154 = arith.constant 0 : index
    %c0_155 = arith.constant 0 : index
    %377 = vector.load %arg8[%c0_153, %c0_154, %c0_155] : memref<1x1x128xf32, #tpu.memory_space<vmem>>, vector<1x1x128xf32>
    %378 = vector.shape_cast %377 : vector<1x1x128xf32> to vector<1x128xf32>
    %379 = vector.shape_cast %376 : vector<1x128xf32> to vector<1x1x128xf32>
    tpu.vector_store %arg8[%c0_153, %c0_154, %c0_155], %379 {strides = array<i32>} : memref<1x1x128xf32, #tpu.memory_space<vmem>>, vector<1x1x128xf32>,
    return
  }
  func.func @transform_0(%arg0: i32) -> (i32, i32, i32) {
    %c0_i32 = arith.constant 0 : i32
    %c0_i32_0 = arith.constant 0 : i32
    %c0_i32_1 = arith.constant 0 : i32
    return %arg0, %c0_i32, %c0_i32_0 : i32, i32, i32
  }
  func.func @transform_1(%arg0: i32) -> (i32, i32, i32) {
    %c0_i32 = arith.constant 0 : i32
    %c0_i32_0 = arith.constant 0 : i32
    %c0_i32_1 = arith.constant 0 : i32
    %c0_i32_2 = arith.constant 0 : i32
    return %c0_i32, %c0_i32_0, %c0_i32_1 : i32, i32, i32
  }
  func.func @transform_2(%arg0: i32) -> (i32, i32) {
    %c0_i32 = arith.constant 0 : i32
    %c0_i32_0 = arith.constant 0 : i32
    %c0_i32_1 = arith.constant 0 : i32
    return %c0_i32, %c0_i32_0 : i32, i32
  }
  func.func @transform_3(%arg0: i32) -> (i32, i32, i32) {
    %c0_i32 = arith.constant 0 : i32
    %c0_i32_0 = arith.constant 0 : i32
    %c0_i32_1 = arith.constant 0 : i32
    %c0_i32_2 = arith.constant 0 : i32
    return %c0_i32, %c0_i32_0, %c0_i32_1 : i32, i32, i32
  }
  func.func @transform_4(%arg0: i32) -> (i32, i32) {
    %c0_i32 = arith.constant 0 : i32
    %c0_i32_0 = arith.constant 0 : i32
    %c0_i32_1 = arith.constant 0 : i32
    return %c0_i32, %c0_i32_0 : i32, i32
  }
  func.func @transform_5(%arg0: i32) -> (i32, i32, i32) {
    %c0_i32 = arith.constant 0 : i32
    %c0_i32_0 = arith.constant 0 : i32
    %c0_i32_1 = arith.constant 0 : i32
    %c0_i32_2 = arith.constant 0 : i32
    return %c0_i32, %c0_i32_0, %c0_i32_1 : i32, i32, i32
  }
  func.func @transform_6(%arg0: i32) -> (i32, i32) {
    %c0_i32 = arith.constant 0 : i32
    %c0_i32_0 = arith.constant 0 : i32
    %c0_i32_1 = arith.constant 0 : i32
    return %c0_i32, %c0_i32_0 : i32, i32
  }
  func.func @transform_7(%arg0: i32) -> (i32, i32, i32) {
    %c0_i32 = arith.constant 0 : i32
    %c0_i32_0 = arith.constant 0 : i32
    %c0_i32_1 = arith.constant 0 : i32
    return %arg0, %c0_i32, %c0_i32_0 : i32, i32, i32
  }
}

</mosaic_0001>

<bundles_post_ra>
// kernel: net_without_last_forward.1
= control target key start
LH: loop header
LB: loop body
LE: loop exit
PB: predicated region body
PF: predicated region fallthrough
CT: control target
= control target key end

     0   :  { %12 = vsyncpa [#allocation3], 0  ;;  %s27253_s0 = inlined_call_operand.vmem [shape: f32[2,28,32], index: 0, kind: input, shape index: {}]   ;;  %s27254_s1 = inlined_call_operand.vmem [shape: bf16[5,32,3072], index: 1, kind: input, shape index: {}]   ;;  %s27255_s2 = inlined_call_operand.vmem [shape: f32[1,1536], index: 2, kind: input, shape index: {}]   ;;  %s27256_s3 = inlined_call_operand.vmem [shape: bf16[5,640,128], index: 3, kind: input, shape index: {}]   ;;  %s27257_s4 = inlined_call_operand.vmem [shape: f32[1,128], index: 4, kind: input, shape index: {}]   ;;  %s27258_s5 = inlined_call_operand.vmem [shape: bf16[16,128,128], index: 5, kind: input, shape index: {}]   ;;  %s27259_s6 = inlined_call_operand.vmem [shape: f32[1,128], index: 6, kind: input, shape index: {}]   ;;  %s27260_s7 = inlined_call_operand.hbm [shape: f32[2,1,128], index: 7, kind: output, shape index: {}]  }
   0x1   :  { %14 = vsyncpa [#allocation3 + $0x1], 0  ;;  %s19866_s24 = smov 0   ;;  %s19868_s25 = smov 0  }
   0x2   :  { %s19870_s26 = smov 0   ;;  %s19872_s27 = smov 0  }
   0x3 LB: > { %s19887_s28 = sadd.s32 4294967295, %s19820_s27   ;;  %s14347_s29 = sadd.s32 4294967294, %s19820_s27   ;;  %s19820_s27 = sphi %s19872_s27, %s28338_s27   ;;  %s19816_s26 = sphi %s19870_s26, %s28337_s26   ;;  %s19812_s25 = sphi %s19868_s25, %s28336_s25   ;;  %s19808_s24 = sphi %s19866_s24, %s28335_s24  }
   0x4   : > { %s19891_s30 = sadd.s32 1, %s19820_s27   ;;  %s179_s8 = sadd.s32 1, %s19816_s26 }
   0x5   : > { %s176_s9 = ssub.s32 %s19820_s27, %s19891_s30  ;;  %p189_p0 = scmp.ne.s32.totalorder %s19816_s26, %s19812_s25 }
   0x6   : > { %p177_p1 = scmp.eq.s32.totalorder %s176_s9, 0  ;;  %p190_p2 = scmp.eq.s32.totalorder %s19887_s28, 1 }
   0x7   : > { %p195_p3 = scmp.ne.s32.totalorder %s19812_s25, %s19808_s24  ;;  %p196_p4 = scmp.eq.s32.totalorder %s14347_s29, 1 }
   0x8   : > { %s19902_s10 = scalar_select %p177_p1, %s19816_s26, %s179_s8  }
   0x9   : > { %p19904_p5 = por %p190_p2, %p189_p0  ;;  %p19908_p6 = por %p196_p4, %p195_p3 }
   0xa   : > { %p14350_p7 = scmp.ge.s32.totalorder %s19820_s27, 1  ;;  %p240_p8 = scmp.lt.s32.totalorder %s19820_s27, 3 }
   0xc   : > { %p241_p9 = pnand %p14350_p7, %p240_p8 }
   0xe   : > { %244 = sbr.rel (%p241_p9) target bundleno = 3303 (0xce7), region = 48 }
  0x13   : > { %v14377_v0 = vld [vmem:[%s27254_s1 + $0x240] sm:$0xff]  ;;  %v14378_v2 = vld [vmem:[%s27254_s1 + $0x248] sm:$0xff]  ;;  %p271_p10 = scmp.lt.s32.totalorder %s19887_s28, 1  ;;  %v27263_v8 = vmov 0   ;;  %v14379_v14 = vld [vmem:[%s27254_s1 + $0x250] sm:$0xff]  ;;  %vm637_vm1 = vcmask 261120  }
  0x14   : > { %v14389_v1 = vld [vmem:[%s27254_s1 + $0x2a0] sm:$0xff]  ;;  %v14390_v4 = vld [vmem:[%s27254_s1 + $0x2a8] sm:$0xff]  ;;  %676 = vmatprep.mubr.bf16.mxu0 %v27263_v8  ;;  %727 = vmatprep.mubr.bf16.mxu1 %v27263_v8  ;;  %v14391_v16 = vld [vmem:[%s27254_s1 + $0x2b0] sm:$0xff]  ;;  %vm381_vm0 = vsmask.f32 7424  ;;  %vm2164_vm2 = vcmask 1046528  }
  0x15   : > { %v14426_v3 = vcombine.high %v14377_v0, %v14389_v1  ;;  %v14425_v5 = vcombine.low %v14377_v0, %v14389_v1  ;;  %v14353_v6 = vld [vmem:[%s27254_s1 + $0x180] sm:$0xff]  ;;  %v14428_v9 = vcombine.high %v14378_v2, %v14390_v4  ;;  %v14427_v10 = vcombine.low %v14378_v2, %v14390_v4  ;;  %v14354_v12 = vld [vmem:[%s27254_s1 + $0x188] sm:$0xff]  ;;  %s272_s15 = scalar_select %p271_p10, %s19887_s28, 1  ;;  %v14380_v17 = vld [vmem:[%s27254_s1 + $0x258] sm:$0xff] }
  0x16   : > { %v14365_v7 = vld [vmem:[%s27254_s1 + $0x1e0] sm:$0xff]  ;;  %v14366_v13 = vld [vmem:[%s27254_s1 + $0x1e8] sm:$0xff]  ;;  %v14392_v18 = vld [vmem:[%s27254_s1 + $0x2b8] sm:$0xff]  ;;  %v14430_v21 = vcombine.high %v14379_v14, %v14391_v16  ;;  %v14429_v42 = vcombine.low %v14379_v14, %v14391_v16  ;;  %vm3147_vm3 = vsmask.f32 6400  ;;  %vm4134_vm4 = vcmask 1045504  }
  0x17   : > { %v14402_v11 = vcombine.high %v14353_v6, %v14365_v7  ;;  %656 = vmatprep.subr.bf16.mxu0 %v14426_v3  ;;  %v14404_v15 = vcombine.high %v14354_v12, %v14366_v13  ;;  %707 = vmatprep.subr.bf16.mxu1 %v14428_v9  ;;  %v14401_v19 = vcombine.low %v14353_v6, %v14365_v7  ;;  %s15824_s29 = sshll.u32 %s272_s15, 5  ;;  %v14355_v34 = vld [vmem:[%s27254_s1 + $0x190] sm:$0xff]  ;;  %v14356_v39 = vld [vmem:[%s27254_s1 + $0x198] sm:$0xff]  ;;  %v14381_v45 = vld [vmem:[%s27254_s1 + $0x260] sm:$0xff]  ;;  %vm5155_vm7 = vcmask 1043456  }
  0x18   : > { %657 = vmatpush1.bf16.msra.mxu0 %v14425_v5  ;;  %708 = vmatpush1.bf16.msra.mxu1 %v14427_v10  ;;  %v14403_v20 = vcombine.low %v14354_v12, %v14366_v13  ;;  %s275_s13 = scalar_lea.vmem %s27253_s0, %s15824_s29  ;;  %v14432_v25 = vcombine.high %v14380_v17, %v14392_v18  ;;  %v14367_v38 = vld [vmem:[%s27254_s1 + $0x1f0] sm:$0xff]  ;;  %v14368_v40 = vld [vmem:[%s27254_s1 + $0x1f8] sm:$0xff]  ;;  %v14431_v43 = vcombine.low %v14380_v17, %v14392_v18  ;;  %v14393_v49 = vld [vmem:[%s27254_s1 + $0x2c0] sm:$0xff]  ;;  %vm5151_vm8 = vcmask 195584   ;;  %s269_s29 = sand.u32 1, %s19812_s25  }
  0x19   : > { %658 = vmatprep.subr.bf16.mxu0 %v14402_v11  ;;  %709 = vmatprep.subr.bf16.mxu1 %v14404_v15  ;;  %v277_v22 = vld [vmem:[%s275_s13] sm:$0xff]  ;;  %v278_v23 = vld [vmem:[%s275_s13 + $0x8] sm:$0xff]  ;;  %v19959_v24 = vld [vmem:[%s275_s13 + $0x10] sm:$0xff]  ;;  %v14406_v47 = vcombine.high %v14355_v34, %v14367_v38  ;;  %v14408_v48 = vcombine.high %v14356_v39, %v14368_v40  ;;  %v14405_v52 = vcombine.low %v14355_v34, %v14367_v38  ;;  %vm19824_vm11 = vmmov 0   ;;  %s270_s14 = scalar_lea.vmem [#allocation2], %s269_s29  ;;  %s14280_s19 = scalar_lea.sflag [#allocation3], %s269_s29 }
  0x1a   : > { %v280_v26 = vld [vmem:[%s275_s13 + $0x18] sm:$0xf]  ;;  %v19961_v27 = vpack.c.bf16 %v278_v23, %v277_v22  ;;  %v14382_v50 = vld [vmem:[%s27254_s1 + $0x268] sm:$0xff]  ;;  %v14407_v53 = vcombine.low %v14356_v39, %v14368_v40  ;;  %v14434_v54 = vcombine.high %v14381_v45, %v14393_v49  ;;  %v14357_v57 = vld [vmem:[%s27254_s1 + $0x1a0] sm:$0xff]  ;;  %v14433_v61 = vcombine.low %v14381_v45, %v14393_v49  ;;  %s15821_s13 = sshll.u32 %s19887_s28, 4  ;;  %s14292_s15 = sshll.u32 %s270_s14, 4  ;;  %s14293_s15 = int_to_ptr.vmem [resolvable:$true] %s14292_s15 }
  0x1b   : > { %v19964_v28 = vpack.c.bf16 %v280_v26, %v19959_v24  ;;  %v14394_v51 = vld [vmem:[%s27254_s1 + $0x2c8] sm:$0xff]  ;;  %v14369_v58 = vld [vmem:[%s27254_s1 + $0x200] sm:$0xff]  ;;  %v14383_v63 = vld [vmem:[%s27254_s1 + $0x270] sm:$0xff]  ;;  %s14290_s18 = scalar_lea.hbm %s27260_s7, %s15821_s13  ;;  %s19760_s20 = scalar_lea.vmem %s14293_s15, 16 }
  0x1c   : > { %659 = vmatpush1.bf16.msra.mxu0 %v14401_v19  ;;  %710 = vmatpush1.bf16.msra.mxu1 %v14403_v20  ;;  %v27262_v29 = vshrl.u32 %v19961_v27, 16  ;;  %v27261_v30 = vshll.u32 %v19961_v27, 16  ;;  %v14436_v55 = vcombine.high %v14382_v50, %v14394_v51  ;;  %v14358_v59 = vld [vmem:[%s27254_s1 + $0x1a8] sm:$0xff]  ;;  %v14435_v62 = vcombine.low %v14382_v50, %v14394_v51  ;;  %v14395_v0 = vld [vmem:[%s27254_s1 + $0x2d0] sm:$0xff]  ;;  %v14384_v1 = vld [vmem:[%s27254_s1 + $0x278] sm:$0xff]  ;;  %p19761_p11 = scmp.ne.s32.totalorder %s14293_s15, %s19760_s20  ;;  %s19825_s28 = smov [#allocation2]  }
  0x1d   : > { %758 = vmatprep.subr.bf16.mxu0 %v14430_v21  ;;  %v390_v31 = vshll.u32 %v19964_v28, 16  ;;  %v394_v32 = vshrl.u32 %v19964_v28, 16  ;;  %809 = vmatprep.subr.bf16.mxu1 %v14432_v25  ;;  %v14370_v60 = vld [vmem:[%s27254_s1 + $0x208] sm:$0xff]  ;;  %v14396_v2 = vld [vmem:[%s27254_s1 + $0x2d8] sm:$0xff]  ;;  %v14410_v3 = vcombine.high %v14357_v57, %v14369_v58  ;;  %v14409_v5 = vcombine.low %v14357_v57, %v14369_v58  ;;  %v14359_v10 = vld [vmem:[%s27254_s1 + $0x1b0] sm:$0xff]  ;;  %s19764_s21 = sshll.u32 %s19825_s28, 4  ;;  %s19765_s21 = int_to_ptr.vmem [resolvable:$false] %s19764_s21 }
  0x1e   : > { %v387_v33 = vrot.slane %v27261_v30, 1  ;;  %v14412_v4 = vcombine.high %v14358_v59, %v14370_v60  ;;  %v14411_v6 = vcombine.low %v14358_v59, %v14370_v60  ;;  %v14438_v7 = vcombine.high %v14383_v63, %v14395_v0  ;;  %v14371_v11 = vld [vmem:[%s27254_s1 + $0x210] sm:$0xff]  ;;  %v14360_v12 = vld [vmem:[%s27254_s1 + $0x1b8] sm:$0xff]  ;;  %v14385_v16 = vld [vmem:[%s27254_s1 + $0x280] sm:$0xff]  ;;  %p19762_p12 = pnand %p19761_p11, %p19904_p5  ;;  %s19766_s22 = scalar_lea.vmem %s19765_s21, 32 }
  0x1f   : > { %v392_v35 = vrot.slane %v390_v31, 1  ;;  %v3151_v36 = vrot.slane %v394_v32, 1  ;;  %v3152_v37 = vrot.slane %v390_v31, 2  ;;  %v14440_v9 = vcombine.high %v14384_v1, %v14396_v2  ;;  %v14372_v13 = vld [vmem:[%s27254_s1 + $0x218] sm:$0xff]  ;;  %v14397_v17 = vld [vmem:[%s27254_s1 + $0x2e0] sm:$0xff]  ;;  %v14386_v18 = vld [vmem:[%s27254_s1 + $0x288] sm:$0xff]  ;;  %p19767_p0 = scmp.lt.s32.totalorder %s14293_s15, %s19765_s21  ;;  %p19768_p1 = scmp.lt.s32.totalorder %s19766_s22, %s19760_s20 }
  0x20   : > { %v388_v41 = vor.u32 %v387_v33, %v27262_v29  ;;  %v14437_v14 = vcombine.low %v14383_v63, %v14395_v0  ;;  %v14439_v15 = vcombine.low %v14384_v1, %v14396_v2  ;;  %v14398_v19 = vld [vmem:[%s27254_s1 + $0x2e8] sm:$0xff]  ;;  %v14414_v20 = vcombine.high %v14359_v10, %v14371_v11  ;;  %v14361_v31 = vld [vmem:[%s27254_s1 + $0x1c0] sm:$0xff]  ;;  %v14399_v38 = vld [vmem:[%s27254_s1 + $0x2f0] sm:$0xff]  ;;  %p19763_p13 = pneg %p19762_p12 }
  0x21   : > { %v19986_v44 = vor.u32 %v3152_v37, %v3151_v36  ;;  %v20008_v56 = vor.u32 %v394_v32, %v392_v35  ;;  %v14416_v21 = vcombine.high %v14360_v12, %v14372_v13  ;;  %v14413_v22 = vcombine.low %v14359_v10, %v14371_v11  ;;  %v14373_v32 = vld [vmem:[%s27254_s1 + $0x220] sm:$0xff]  ;;  %v14362_v33 = vld [vmem:[%s27254_s1 + $0x1c8] sm:$0xff]  ;;  %v14387_v37 = vld [vmem:[%s27254_s1 + $0x290] sm:$0xff]  ;;  %p19769_p2 = por %p19768_p1, %p19767_p0 }
  0x22   : > { %v19991_v46 = vsel %vm381_vm0, %v388_v41, %v392_v35  ;;  %v14415_v23 = vcombine.low %v14360_v12, %v14372_v13  ;;  %v14442_v25 = vcombine.high %v14385_v16, %v14397_v17  ;;  %v14444_v26 = vcombine.high %v14386_v18, %v14398_v19  ;;  %v14374_v34 = vld [vmem:[%s27254_s1 + $0x228] sm:$0xff]  ;;  %v14388_v39 = vld [vmem:[%s27254_s1 + $0x298] sm:$0xff]  ;;  %v14363_v49 = vld [vmem:[%s27254_s1 + $0x1d0] sm:$0xff] }
  0x23   : > { %14449 = vmatmul.mubr.msk.bf16.vlgmr.msra.gmra.mxu0 %vm637_vm1, %v19991_v46  ;;  %14451 = vmatmul.mubr.msk.bf16.vlgmr.msra.gmra.mxu1 %vm637_vm1, %v19991_v46  ;;  %v14441_v35 = vcombine.low %v14385_v16, %v14397_v17  ;;  %v14443_v36 = vcombine.low %v14386_v18, %v14398_v19  ;;  %v14400_v40 = vld [vmem:[%s27254_s1 + $0x2f8] sm:$0xff]  ;;  %v14418_v41 = vcombine.high %v14361_v31, %v14373_v32  ;;  %v14375_v50 = vld [vmem:[%s27254_s1 + $0x230] sm:$0xff]  ;;  %v319_v57 = vld [vmem:[%s27254_s1 + $0x120] sm:$0xff]  ;;  %p19770_p3 = pnand %p19769_p2, %p19763_p13 }
  0x24   : > { %759 = vmatpush1.bf16.msra.mxu0 %v14429_v42  ;;  %810 = vmatpush1.bf16.msra.mxu1 %v14431_v43  ;;  %v14420_v42 = vcombine.high %v14362_v33, %v14374_v34  ;;  %v14417_v43 = vcombine.low %v14361_v31, %v14373_v32  ;;  %v14419_v45 = vcombine.low %v14362_v33, %v14374_v34  ;;  %v14364_v51 = vld [vmem:[%s27254_s1 + $0x1d8] sm:$0xff]  ;;  %v308_v58 = vld [vmem:[%s27254_s1 + $0xc8] sm:$0xff]  ;;  %v283_v2 = vld [vmem:[%s27254_s1] sm:$0xff] }
  0x25   : > { %686 = vmatprep.mubr.bf16.mxu0 %v27263_v8  ;;  %737 = vmatprep.mubr.bf16.mxu1 %v27263_v8  ;;  %v320_v59 = vld [vmem:[%s27254_s1 + $0x128] sm:$0xff]  ;;  %v14422_v60 = vcombine.high %v14363_v49, %v14375_v50  ;;  %v321_v10 = vld [vmem:[%s27254_s1 + $0x130] sm:$0xff]  ;;  %v310_v11 = vld [vmem:[%s27254_s1 + $0xd8] sm:$0xff] }
  0x26   : > { %760 = vmatprep.subr.bf16.mxu0 %v14406_v47  ;;  %811 = vmatprep.subr.bf16.mxu1 %v14408_v48  ;;  %v14446_v47 = vcombine.high %v14387_v37, %v14399_v38  ;;  %v14448_v48 = vcombine.high %v14388_v39, %v14400_v40  ;;  %v14500_v1 = vcombine.high %v308_v58, %v320_v59  ;;  %v322_v12 = vld [vmem:[%s27254_s1 + $0x138] sm:$0xff]  ;;  %v297_v19 = vld [vmem:[%s27254_s1 + $0x70] sm:$0xff]  ;;  %v324_v31 = vld [vmem:[%s27254_s1 + $0x148] sm:$0xff] }
  0x27   : > { %v14504_v18 = vcombine.high %v310_v11, %v322_v12 }
  0x28   : > { %761 = vmatpush1.bf16.msra.mxu0 %v14405_v52  ;;  %812 = vmatpush1.bf16.msra.mxu1 %v14407_v53  ;;  %v14376_v52 = vld [vmem:[%s27254_s1 + $0x238] sm:$0xff]  ;;  %v14445_v53 = vcombine.low %v14387_v37, %v14399_v38  ;;  %v20228_v38 = vpack.c.bf16 %v19959_v24, %v19959_v24  ;;  %v299_v24 = vld [vmem:[%s27254_s1 + $0x80] sm:$0xff] }
  0x29   : > { %860 = vmatprep.subr.bf16.mxu0 %v14434_v54  ;;  %911 = vmatprep.subr.bf16.mxu1 %v14436_v55  ;;  %v14447_v54 = vcombine.low %v14388_v39, %v14400_v40  ;;  %v307_v55 = vld [vmem:[%s27254_s1 + $0xc0] sm:$0xff]  ;;  %v14423_v63 = vcombine.low %v14364_v51, %v14376_v52  ;;  %v288_v40 = vld [vmem:[%s27254_s1 + $0x28] sm:$0xff] }
  0x2a   : > { %v14498_v0 = vcombine.high %v307_v55, %v319_v57  ;;  %v287_v39 = vld [vmem:[%s27254_s1 + $0x20] sm:$0xff] }
  0x2b   : > { %14450 = vmatmul.mubr.msk.bf16.gmra.mxu0 %vm637_vm1, %v20008_v56  ;;  %14452 = vmatmul.mubr.msk.bf16.gmra.mxu1 %vm637_vm1, %v20008_v56 }
  0x2c   : > { %778 = vmatprep.mubr.bf16.mxu0 %v27263_v8  ;;  %829 = vmatprep.mubr.bf16.mxu1 %v27263_v8 }
  0x33   : > { %14453 = vmatmul.mubr.msk.bf16.vlgmr.msra.gmra.mxu0 %vm637_vm1, %v19991_v46  ;;  %14455 = vmatmul.mubr.msk.bf16.vlgmr.msra.gmra.mxu1 %vm637_vm1, %v19991_v46 }
  0x34   : > { %861 = vmatpush1.bf16.msra.mxu0 %v14433_v61  ;;  %912 = vmatpush1.bf16.msra.mxu1 %v14435_v62  ;;  %v14424_v61 = vcombine.high %v14364_v51, %v14376_v52  ;;  %v14421_v62 = vcombine.low %v14363_v49, %v14375_v50  ;;  %v326_v49 = vld [vmem:[%s27254_s1 + $0x158] sm:$0xff]  ;;  %v14482_v50 = vcombine.high %v287_v39, %v299_v24 }
  0x35   : > { %788 = vmatprep.mubr.bf16.mxu0 %v27263_v8  ;;  %839 = vmatprep.mubr.bf16.mxu1 %v27263_v8  ;;  %v14481_v52 = vcombine.low %v287_v39, %v299_v24  ;;  %v14582_v39 = vld [vmem:[%s27254_s1 + $0x428] sm:$0xff] }
  0x36   : > { %862 = vmatprep.subr.bf16.mxu0 %v14410_v3  ;;  %913 = vmatprep.subr.bf16.mxu1 %v14412_v4  ;;  %v295_v3 = vld [vmem:[%s27254_s1 + $0x60] sm:$0xff]  ;;  %v284_v4 = vld [vmem:[%s27254_s1 + $0x8] sm:$0xff] }
  0x37   : > { %v14474_v13 = vcombine.high %v283_v2, %v295_v3 }
  0x38   : > { %863 = vmatpush1.bf16.msra.mxu0 %v14409_v5  ;;  %914 = vmatpush1.bf16.msra.mxu1 %v14411_v6  ;;  %v296_v5 = vld [vmem:[%s27254_s1 + $0x68] sm:$0xff]  ;;  %v14497_v6 = vcombine.low %v307_v55, %v319_v57  ;;  %v289_v57 = vld [vmem:[%s27254_s1 + $0x30] sm:$0xff] }
  0x39   : > { %962 = vmatprep.subr.bf16.mxu0 %v14438_v7  ;;  %1013 = vmatprep.subr.bf16.mxu1 %v14440_v9  ;;  %v14499_v7 = vcombine.low %v308_v58, %v320_v59  ;;  %v309_v9 = vld [vmem:[%s27254_s1 + $0xd0] sm:$0xff]  ;;  %v14475_v16 = vcombine.low %v284_v4, %v296_v5  ;;  %v290_v59 = vld [vmem:[%s27254_s1 + $0x38] sm:$0xff] }
  0x3a   : > { %v14502_v17 = vcombine.high %v309_v9, %v321_v10  ;;  %v301_v58 = vld [vmem:[%s27254_s1 + $0x90] sm:$0xff] }
  0x3b   : > { %14454 = vmatmul.mubr.msk.bf16.gmra.mxu0 %vm637_vm1, %v20008_v56  ;;  %14456 = vmatmul.mubr.msk.bf16.gmra.mxu1 %vm637_vm1, %v20008_v56 }
  0x3c   : > { %880 = vmatprep.mubr.bf16.mxu0 %v27263_v8  ;;  %931 = vmatprep.mubr.bf16.mxu1 %v27263_v8 }
  0x43   : > { %14457 = vmatmul.mubr.msk.bf16.vlgmr.msra.gmra.mxu0 %vm637_vm1, %v19991_v46  ;;  %14459 = vmatmul.mubr.msk.bf16.vlgmr.msra.gmra.mxu1 %vm637_vm1, %v19991_v46 }
  0x44   : > { %963 = vmatpush1.bf16.msra.mxu0 %v14437_v14  ;;  %1014 = vmatpush1.bf16.msra.mxu1 %v14439_v15  ;;  %v14476_v14 = vcombine.high %v284_v4, %v296_v5  ;;  %v14473_v15 = vcombine.low %v283_v2, %v295_v3  ;;  %v328_v2 = vld [vmem:[%s27254_s1 + $0x168] sm:$0xff]  ;;  %v14486_v3 = vcombine.high %v289_v57, %v301_v58 }
  0x45   : > { %890 = vmatprep.mubr.bf16.mxu0 %v27263_v8  ;;  %941 = vmatprep.mubr.bf16.mxu1 %v27263_v8  ;;  %v14485_v5 = vcombine.low %v289_v57, %v301_v58  ;;  %v14584_v57 = vld [vmem:[%s27254_s1 + $0x438] sm:$0xff] }
  0x46   : > { %964 = vmatprep.subr.bf16.mxu0 %v14414_v20  ;;  %1015 = vmatprep.subr.bf16.mxu1 %v14416_v21  ;;  %v286_v20 = vld [vmem:[%s27254_s1 + $0x18] sm:$0xff]  ;;  %v14501_v21 = vcombine.low %v309_v9, %v321_v10  ;;  %v291_v10 = vld [vmem:[%s27254_s1 + $0x40] sm:$0xff] }
  0x48   : > { %965 = vmatpush1.bf16.msra.mxu0 %v14413_v22  ;;  %1016 = vmatpush1.bf16.msra.mxu1 %v14415_v23  ;;  %v14503_v22 = vcombine.low %v310_v11, %v322_v12  ;;  %v311_v23 = vld [vmem:[%s27254_s1 + $0xe0] sm:$0xff]  ;;  %v292_v12 = vld [vmem:[%s27254_s1 + $0x48] sm:$0xff] }
  0x49   : > { %1064 = vmatprep.subr.bf16.mxu0 %v14442_v25  ;;  %1115 = vmatprep.subr.bf16.mxu1 %v14444_v26  ;;  %v323_v25 = vld [vmem:[%s27254_s1 + $0x140] sm:$0xff]  ;;  %v312_v26 = vld [vmem:[%s27254_s1 + $0xe8] sm:$0xff] }
  0x4a   : > { %v14508_v37 = vcombine.high %v312_v26, %v324_v31  ;;  %v303_v11 = vld [vmem:[%s27254_s1 + $0xa0] sm:$0xff] }
  0x4b   : > { %14458 = vmatmul.mubr.msk.bf16.gmra.mxu0 %vm637_vm1, %v20008_v56  ;;  %14460 = vmatmul.mubr.msk.bf16.gmra.mxu1 %vm637_vm1, %v20008_v56 }
  0x4c   : > { %982 = vmatprep.mubr.bf16.mxu0 %v27263_v8  ;;  %1033 = vmatprep.mubr.bf16.mxu1 %v27263_v8 }
  0x53   : > { %14461 = vmatmul.mubr.msk.bf16.vlgmr.msra.gmra.mxu0 %vm637_vm1, %v19991_v46  ;;  %14463 = vmatmul.mubr.msk.bf16.vlgmr.msra.gmra.mxu1 %vm637_vm1, %v19991_v46 }
  0x54   : > { %1065 = vmatpush1.bf16.msra.mxu0 %v14441_v35  ;;  %1116 = vmatpush1.bf16.msra.mxu1 %v14443_v36  ;;  %v14506_v36 = vcombine.high %v311_v23, %v323_v25 }
  0x55   : > { %992 = vmatprep.mubr.bf16.mxu0 %v27263_v8  ;;  %1043 = vmatprep.mubr.bf16.mxu1 %v27263_v8 }
  0x56   : > { %1066 = vmatprep.subr.bf16.mxu0 %v14418_v41  ;;  %1117 = vmatprep.subr.bf16.mxu1 %v14420_v42  ;;  %v300_v41 = vld [vmem:[%s27254_s1 + $0x88] sm:$0xff]  ;;  %v14505_v42 = vcombine.low %v311_v23, %v323_v25  ;;  %v293_v25 = vld [vmem:[%s27254_s1 + $0x50] sm:$0xff] }
  0x57   : > { %v14484_v51 = vcombine.high %v288_v40, %v300_v41 }
  0x58   : > { %1067 = vmatpush1.bf16.msra.mxu0 %v14417_v43  ;;  %1118 = vmatpush1.bf16.msra.mxu1 %v14419_v45  ;;  %v14507_v43 = vcombine.low %v312_v26, %v324_v31  ;;  %v313_v45 = vld [vmem:[%s27254_s1 + $0xf0] sm:$0xff]  ;;  %v294_v31 = vld [vmem:[%s27254_s1 + $0x58] sm:$0xff] }
  0x59   : > { %1166 = vmatprep.subr.bf16.mxu0 %v14446_v47  ;;  %1217 = vmatprep.subr.bf16.mxu1 %v14448_v48  ;;  %v325_v47 = vld [vmem:[%s27254_s1 + $0x150] sm:$0xff]  ;;  %v314_v48 = vld [vmem:[%s27254_s1 + $0xf8] sm:$0xff] }
  0x5a   : > { %v14512_v55 = vcombine.high %v314_v48, %v326_v49  ;;  %v305_v26 = vld [vmem:[%s27254_s1 + $0xb0] sm:$0xff] }
  0x5b   : > { %14462 = vmatmul.mubr.msk.bf16.gmra.mxu0 %vm637_vm1, %v20008_v56  ;;  %14464 = vmatmul.mubr.msk.bf16.gmra.mxu1 %vm637_vm1, %v20008_v56  ;;  %v14494_v24 = vcombine.high %v293_v25, %v305_v26 }
  0x5c   : > { %1084 = vmatprep.mubr.bf16.mxu0 %v27263_v8  ;;  %1135 = vmatprep.mubr.bf16.mxu1 %v27263_v8 }
  0x63   : > { %14465 = vmatmul.mubr.msk.bf16.vlgmr.msra.gmra.mxu0 %vm637_vm1, %v19991_v46  ;;  %14467 = vmatmul.mubr.msk.bf16.vlgmr.msra.gmra.mxu1 %vm637_vm1, %v19991_v46 }
  0x64   : > { %1167 = vmatpush1.bf16.msra.mxu0 %v14445_v53  ;;  %1218 = vmatpush1.bf16.msra.mxu1 %v14447_v54  ;;  %v14483_v53 = vcombine.low %v288_v40, %v300_v41  ;;  %v14510_v54 = vcombine.high %v313_v45, %v325_v47  ;;  %v14493_v41 = vcombine.low %v293_v25, %v305_v26 }
  0x65   : > { %1094 = vmatprep.mubr.bf16.mxu0 %v27263_v8  ;;  %1145 = vmatprep.mubr.bf16.mxu1 %v27263_v8 }
  0x66   : > { %1168 = vmatprep.subr.bf16.mxu0 %v14422_v60  ;;  %1219 = vmatprep.subr.bf16.mxu1 %v14424_v61  ;;  %v302_v60 = vld [vmem:[%s27254_s1 + $0x98] sm:$0xff]  ;;  %v14509_v61 = vcombine.low %v313_v45, %v325_v47  ;;  %v14545_v47 = vld [vmem:[%s27254_s1 + $0x300] sm:$0xff] }
  0x67   : > { %v14488_v4 = vcombine.high %v290_v59, %v302_v60 }
  0x68   : > { %1169 = vmatpush1.bf16.msra.mxu0 %v14421_v62  ;;  %1220 = vmatpush1.bf16.msra.mxu1 %v14423_v63  ;;  %v14511_v62 = vcombine.low %v314_v48, %v326_v49  ;;  %v315_v63 = vld [vmem:[%s27254_s1 + $0x100] sm:$0xff]  ;;  %v14546_v49 = vld [vmem:[%s27254_s1 + $0x308] sm:$0xff] }
  0x69   : > { %1513 = vmatprep.subr.bf16.mxu0 %v14498_v0  ;;  %1564 = vmatprep.subr.bf16.mxu1 %v14500_v1  ;;  %v327_v0 = vld [vmem:[%s27254_s1 + $0x160] sm:$0xff]  ;;  %v316_v1 = vld [vmem:[%s27254_s1 + $0x108] sm:$0xff] }
  0x6a   : > { %v14516_v9 = vcombine.high %v316_v1, %v328_v2  ;;  %v14557_v48 = vld [vmem:[%s27254_s1 + $0x360] sm:$0xff] }
  0x6b   : > { %14466 = vmatmul.mubr.msk.bf16.gmra.mxu0 %vm637_vm1, %v20008_v56  ;;  %14468 = vmatmul.mubr.msk.bf16.gmra.mxu1 %vm637_vm1, %v20008_v56  ;;  %v14594_v58 = vcombine.high %v14545_v47, %v14557_v48 }
  0x6c   : > { %1186 = vmatprep.mubr.bf16.mxu0 %v27263_v8  ;;  %1237 = vmatprep.mubr.bf16.mxu1 %v27263_v8 }
  0x73   : > { %14469 = vmatmul.mubr.msk.bf16.vlgmr.msra.gmra.mxu0 %vm637_vm1, %v19991_v46  ;;  %14471 = vmatmul.mubr.msk.bf16.vlgmr.msra.gmra.mxu1 %vm637_vm1, %v19991_v46  ;;  %v285_v46 = vld [vmem:[%s27254_s1 + $0x10] sm:$0xff] }
  0x74   : > { %1514 = vmatpush1.bf16.msra.mxu0 %v14497_v6  ;;  %1565 = vmatpush1.bf16.msra.mxu1 %v14499_v7  ;;  %v14478_v32 = vcombine.high %v285_v46, %v297_v19  ;;  %v14477_v34 = vcombine.low %v285_v46, %v297_v19  ;;  %v14487_v6 = vcombine.low %v290_v59, %v302_v60  ;;  %v330_v46 = vld [vmem:[%s27254_s1 + $0x178] sm:$0xff] }
  0x75   : > { %1196 = vmatprep.mubr.bf16.mxu0 %v27263_v8  ;;  %1247 = vmatprep.mubr.bf16.mxu1 %v27263_v8  ;;  %v14514_v7 = vcombine.high %v315_v63, %v327_v0  ;;  %v14490_v19 = vcombine.high %v291_v10, %v303_v11  ;;  %v14593_v60 = vcombine.low %v14545_v47, %v14557_v48  ;;  %v14588_v47 = vld [vmem:[%s27254_s1 + $0x458] sm:$0xff] }
  0x76   : > { %1515 = vmatprep.subr.bf16.mxu0 %v14474_v13  ;;  %1566 = vmatprep.subr.bf16.mxu1 %v14476_v14  ;;  %v304_v13 = vld [vmem:[%s27254_s1 + $0xa8] sm:$0xff]  ;;  %v14513_v14 = vcombine.low %v315_v63, %v327_v0  ;;  %v20415_v0 = vrot.slane %v19964_v28, 1 }
  0x78   : > { %1516 = vmatpush1.bf16.msra.mxu0 %v14473_v15  ;;  %1567 = vmatpush1.bf16.msra.mxu1 %v14475_v16  ;;  %v14515_v15 = vcombine.low %v316_v1, %v328_v2  ;;  %v317_v16 = vld [vmem:[%s27254_s1 + $0x110] sm:$0xff]  ;;  %v2165_v1 = vrot.slane %v19961_v27, 1 }
  0x79   : > { %1615 = vmatprep.subr.bf16.mxu0 %v14502_v17  ;;  %1666 = vmatprep.subr.bf16.mxu1 %v14504_v18  ;;  %v329_v17 = vld [vmem:[%s27254_s1 + $0x170] sm:$0xff]  ;;  %v318_v18 = vld [vmem:[%s27254_s1 + $0x118] sm:$0xff] }
  0x7a   : > { %v14520_v23 = vcombine.high %v318_v18, %v330_v46  ;;  %v14547_v2 = vld [vmem:[%s27254_s1 + $0x310] sm:$0xff] }
  0x7b   : > { %14470 = vmatmul.mubr.msk.bf16.gmra.mxu0 %vm637_vm1, %v20008_v56  ;;  %14472 = vmatmul.mubr.msk.bf16.gmra.mxu1 %vm637_vm1, %v20008_v56  ;;  %v298_v56 = vld [vmem:[%s27254_s1 + $0x78] sm:$0xff] }
  0x7c   : > { %1533 = vmatprep.mubr.bf16.mxu0 %v27263_v8  ;;  %1584 = vmatprep.mubr.bf16.mxu1 %v27263_v8  ;;  %v14480_v33 = vcombine.high %v286_v20, %v298_v56  ;;  %v14479_v35 = vcombine.low %v286_v20, %v298_v56  ;;  %v14492_v20 = vcombine.high %v292_v12, %v304_v13 }
  0x7d   : > { %v14489_v56 = vcombine.low %v291_v10, %v303_v11  ;;  %v14585_v10 = vld [vmem:[%s27254_s1 + $0x440] sm:$0xff]  ;;  %v14574_v11 = vld [vmem:[%s27254_s1 + $0x3e8] sm:$0xff] }
  0x83   : > { %14521 = vmatmul.mubr.msk.bf16.vlgmr.msra.gmra.mxu0 %vm637_vm1, %v19961_v27  ;;  %14523 = vmatmul.mubr.msk.bf16.vlgmr.msra.gmra.mxu1 %vm637_vm1, %v19961_v27 }
  0x84   : > { %1616 = vmatpush1.bf16.msra.mxu0 %v14501_v21  ;;  %1667 = vmatpush1.bf16.msra.mxu1 %v14503_v22  ;;  %v14491_v21 = vcombine.low %v292_v12, %v304_v13  ;;  %v14518_v22 = vcombine.high %v317_v16, %v329_v17  ;;  %v14586_v12 = vld [vmem:[%s27254_s1 + $0x448] sm:$0xff] }
  0x85   : > { %1543 = vmatprep.mubr.bf16.mxu0 %v27263_v8  ;;  %1594 = vmatprep.mubr.bf16.mxu1 %v27263_v8 }
  0x86   : > { %1617 = vmatprep.subr.bf16.mxu0 %v14478_v32  ;;  %1668 = vmatprep.subr.bf16.mxu1 %v14480_v33  ;;  %v306_v32 = vld [vmem:[%s27254_s1 + $0xb8] sm:$0xff]  ;;  %v14517_v33 = vcombine.low %v317_v16, %v329_v17 }
  0x87   : > { %v14496_v40 = vcombine.high %v294_v31, %v306_v32 }
  0x88   : > { %1618 = vmatpush1.bf16.msra.mxu0 %v14477_v34  ;;  %1669 = vmatpush1.bf16.msra.mxu1 %v14479_v35  ;;  %v14519_v34 = vcombine.low %v318_v18, %v330_v46  ;;  %v14569_v35 = vld [vmem:[%s27254_s1 + $0x3c0] sm:$0xff] }
  0x89   : > { %1717 = vmatprep.subr.bf16.mxu0 %v14506_v36  ;;  %1768 = vmatprep.subr.bf16.mxu1 %v14508_v37  ;;  %v14581_v36 = vld [vmem:[%s27254_s1 + $0x420] sm:$0xff]  ;;  %v14570_v37 = vld [vmem:[%s27254_s1 + $0x3c8] sm:$0xff] }
  0x8a   : > { %v14620_v45 = vcombine.high %v14570_v37, %v14582_v39 }
  0x8b   : > { %14522 = vmatmul.mubr.msk.bf16.gmra.mxu0 %vm637_vm1, %v20228_v38  ;;  %14524 = vmatmul.mubr.msk.bf16.gmra.mxu1 %vm637_vm1, %v20228_v38 }
  0x8c   : > { %1635 = vmatprep.mubr.bf16.mxu0 %v27263_v8  ;;  %1686 = vmatprep.mubr.bf16.mxu1 %v27263_v8 }
  0x93   : > { %14525 = vmatmul.mubr.msk.bf16.vlgmr.msra.gmra.mxu0 %vm637_vm1, %v19961_v27  ;;  %14527 = vmatmul.mubr.msk.bf16.vlgmr.msra.gmra.mxu1 %vm637_vm1, %v19961_v27 }
  0x94   : > { %1718 = vmatpush1.bf16.msra.mxu0 %v14505_v42  ;;  %1769 = vmatpush1.bf16.msra.mxu1 %v14507_v43  ;;  %v14495_v42 = vcombine.low %v294_v31, %v306_v32  ;;  %v14618_v43 = vcombine.high %v14569_v35, %v14581_v36 }
  0x95   : > { %1645 = vmatprep.mubr.bf16.mxu0 %v27263_v8  ;;  %1696 = vmatprep.mubr.bf16.mxu1 %v27263_v8 }
  0x96   : > { %1719 = vmatprep.subr.bf16.mxu0 %v14482_v50  ;;  %1770 = vmatprep.subr.bf16.mxu1 %v14484_v51  ;;  %v14558_v50 = vld [vmem:[%s27254_s1 + $0x368] sm:$0xff]  ;;  %v14617_v51 = vcombine.low %v14569_v35, %v14581_v36  ;;  %v14561_v35 = vld [vmem:[%s27254_s1 + $0x380] sm:$0xff] }
  0x97   : > { %v14596_v59 = vcombine.high %v14546_v49, %v14558_v50  ;;  %v14550_v36 = vld [vmem:[%s27254_s1 + $0x328] sm:$0xff] }
  0x98   : > { %1720 = vmatpush1.bf16.msra.mxu0 %v14481_v52  ;;  %1771 = vmatpush1.bf16.msra.mxu1 %v14483_v53  ;;  %v14619_v52 = vcombine.low %v14570_v37, %v14582_v39  ;;  %v14571_v53 = vld [vmem:[%s27254_s1 + $0x3d0] sm:$0xff]  ;;  %v14562_v37 = vld [vmem:[%s27254_s1 + $0x388] sm:$0xff] }
  0x99   : > { %1819 = vmatprep.subr.bf16.mxu0 %v14510_v54  ;;  %1870 = vmatprep.subr.bf16.mxu1 %v14512_v55  ;;  %v14583_v54 = vld [vmem:[%s27254_s1 + $0x430] sm:$0xff]  ;;  %v14572_v55 = vld [vmem:[%s27254_s1 + $0x3d8] sm:$0xff] }
  0x9a   : > { %v14624_v63 = vcombine.high %v14572_v55, %v14584_v57 }
  0x9b   : > { %14526 = vmatmul.mubr.msk.bf16.gmra.mxu0 %vm637_vm1, %v20228_v38  ;;  %14528 = vmatmul.mubr.msk.bf16.gmra.mxu1 %vm637_vm1, %v20228_v38 }
  0x9c   : > { %1737 = vmatprep.mubr.bf16.mxu0 %v27263_v8  ;;  %1788 = vmatprep.mubr.bf16.mxu1 %v27263_v8 }
  0xa3   : > { %14529 = vmatmul.mubr.msk.bf16.vlgmr.msra.gmra.mxu0 %vm637_vm1, %v19961_v27  ;;  %14531 = vmatmul.mubr.msk.bf16.vlgmr.msra.gmra.mxu1 %vm637_vm1, %v19961_v27 }
  0xa4   : > { %1820 = vmatpush1.bf16.msra.mxu0 %v14509_v61  ;;  %1871 = vmatpush1.bf16.msra.mxu1 %v14511_v62  ;;  %v14595_v61 = vcombine.low %v14546_v49, %v14558_v50  ;;  %v14622_v62 = vcombine.high %v14571_v53, %v14583_v54 }
  0xa5   : > { %1747 = vmatprep.mubr.bf16.mxu0 %v27263_v8  ;;  %1798 = vmatprep.mubr.bf16.mxu1 %v27263_v8 }
  0xa6   : > { %1821 = vmatprep.subr.bf16.mxu0 %v14486_v3  ;;  %1872 = vmatprep.subr.bf16.mxu1 %v14488_v4  ;;  %v14559_v3 = vld [vmem:[%s27254_s1 + $0x370] sm:$0xff]  ;;  %v14560_v4 = vld [vmem:[%s27254_s1 + $0x378] sm:$0xff] }
  0xa7   : > { %v14598_v13 = vcombine.high %v14547_v2, %v14559_v3  ;;  %v14597_v17 = vcombine.low %v14547_v2, %v14559_v3 }
  0xa8   : > { %1822 = vmatpush1.bf16.msra.mxu0 %v14485_v5  ;;  %1873 = vmatpush1.bf16.msra.mxu1 %v14487_v6  ;;  %v20433_v5 = vsel %vm2164_vm2, %v2165_v1, %v20415_v0  ;;  %v14621_v6 = vcombine.low %v14571_v53, %v14583_v54 }
  0xa9   : > { %1921 = vmatprep.subr.bf16.mxu0 %v14514_v7  ;;  %1972 = vmatprep.subr.bf16.mxu1 %v14516_v9  ;;  %v14623_v7 = vcombine.low %v14572_v55, %v14584_v57  ;;  %v14573_v9 = vld [vmem:[%s27254_s1 + $0x3e0] sm:$0xff]  ;;  %v14603_v55 = vcombine.low %v14550_v36, %v14562_v37 }
  0xab   : > { %14530 = vmatmul.mubr.msk.bf16.gmra.mxu0 %vm637_vm1, %v20228_v38  ;;  %14532 = vmatmul.mubr.msk.bf16.gmra.mxu1 %vm637_vm1, %v20228_v38 }
  0xac   : > { %1839 = vmatprep.mubr.bf16.mxu0 %v27263_v8  ;;  %1890 = vmatprep.mubr.bf16.mxu1 %v27263_v8 }
  0xb3   : > { %14533 = vmatmul.mubr.msk.bf16.vlgmr.msra.gmra.mxu0 %vm637_vm1, %v19961_v27  ;;  %14535 = vmatmul.mubr.msk.bf16.vlgmr.msra.gmra.mxu1 %vm637_vm1, %v19961_v27 }
  0xb4   : > { %1922 = vmatpush1.bf16.msra.mxu0 %v14513_v14  ;;  %1973 = vmatpush1.bf16.msra.mxu1 %v14515_v15 }
  0xb5   : > { %1849 = vmatprep.mubr.bf16.mxu0 %v27263_v8  ;;  %1900 = vmatprep.mubr.bf16.mxu1 %v27263_v8 }
  0xb6   : > { %1923 = vmatprep.subr.bf16.mxu0 %v14490_v19  ;;  %1974 = vmatprep.subr.bf16.mxu1 %v14492_v20  ;;  %v14626_v20 = vcombine.high %v14573_v9, %v14585_v10 }
  0xb8   : > { %1924 = vmatpush1.bf16.msra.mxu0 %v14489_v56  ;;  %1975 = vmatpush1.bf16.msra.mxu1 %v14491_v21  ;;  %v14628_v56 = vcombine.high %v14574_v11, %v14586_v12 }
  0xb9   : > { %2023 = vmatprep.subr.bf16.mxu0 %v14518_v22  ;;  %2074 = vmatprep.subr.bf16.mxu1 %v14520_v23 }
  0xbb   : > { %14534 = vmatmul.mubr.msk.bf16.gmra.mxu0 %vm637_vm1, %v20228_v38  ;;  %14536 = vmatmul.mubr.msk.bf16.gmra.mxu1 %vm637_vm1, %v20228_v38 }
  0xbc   : > { %1941 = vmatprep.mubr.bf16.mxu0 %v27263_v8  ;;  %1992 = vmatprep.mubr.bf16.mxu1 %v27263_v8 }
  0xc3   : > { %14537 = vmatmul.mubr.msk.bf16.vlgmr.msra.gmra.mxu0 %vm637_vm1, %v19961_v27  ;;  %14539 = vmatmul.mubr.msk.bf16.vlgmr.msra.gmra.mxu1 %vm637_vm1, %v19961_v27 }
  0xc4   : > { %2024 = vmatpush1.bf16.msra.mxu0 %v14517_v33  ;;  %2075 = vmatpush1.bf16.msra.mxu1 %v14519_v34  ;;  %v14549_v34 = vld [vmem:[%s27254_s1 + $0x320] sm:$0xff] }
  0xc5   : > { %1951 = vmatprep.mubr.bf16.mxu0 %v27263_v8  ;;  %2002 = vmatprep.mubr.bf16.mxu1 %v27263_v8  ;;  %v14602_v50 = vcombine.high %v14549_v34, %v14561_v35  ;;  %v14601_v54 = vcombine.low %v14549_v34, %v14561_v35 }
  0xc6   : > { %2025 = vmatprep.subr.bf16.mxu0 %v14494_v24  ;;  %2076 = vmatprep.subr.bf16.mxu1 %v14496_v40  ;;  %v14625_v40 = vcombine.low %v14573_v9, %v14585_v10  ;;  %v14552_v9 = vld [vmem:[%s27254_s1 + $0x338] sm:$0xff] }
  0xc7   : > { %v14564_v10 = vld [vmem:[%s27254_s1 + $0x398] sm:$0xff] }
  0xc8   : > { %2026 = vmatpush1.bf16.msra.mxu0 %v14493_v41  ;;  %2077 = vmatpush1.bf16.msra.mxu1 %v14495_v42  ;;  %v14627_v41 = vcombine.low %v14574_v11, %v14586_v12  ;;  %v14575_v42 = vld [vmem:[%s27254_s1 + $0x3f0] sm:$0xff] }
  0xc9   : > { %2426 = vmatprep.subr.bf16.mxu0 %v14618_v43  ;;  %2477 = vmatprep.subr.bf16.mxu1 %v14620_v45  ;;  %v14587_v43 = vld [vmem:[%s27254_s1 + $0x450] sm:$0xff]  ;;  %v14576_v45 = vld [vmem:[%s27254_s1 + $0x3f8] sm:$0xff] }
  0xcb   : > { %14538 = vmatmul.mubr.msk.bf16.gmra.mxu0 %vm637_vm1, %v20228_v38  ;;  %14540 = vmatmul.mubr.msk.bf16.gmra.mxu1 %vm637_vm1, %v20228_v38 }
  0xcc   : > { %2043 = vmatprep.mubr.bf16.mxu0 %v27263_v8  ;;  %2094 = vmatprep.mubr.bf16.mxu1 %v27263_v8 }
  0xd3   : > { %14541 = vmatmul.mubr.msk.bf16.vlgmr.msra.gmra.mxu0 %vm637_vm1, %v19961_v27  ;;  %14543 = vmatmul.mubr.msk.bf16.vlgmr.msra.gmra.mxu1 %vm637_vm1, %v19961_v27 }
  0xd4   : > { %2427 = vmatpush1.bf16.msra.mxu0 %v14617_v51  ;;  %2478 = vmatpush1.bf16.msra.mxu1 %v14619_v52  ;;  %v14604_v51 = vcombine.high %v14550_v36, %v14562_v37  ;;  %v14608_v37 = vcombine.high %v14552_v9, %v14564_v10 }
  0xd5   : > { %2053 = vmatprep.mubr.bf16.mxu0 %v27263_v8  ;;  %2104 = vmatprep.mubr.bf16.mxu1 %v27263_v8 }
  0xd6   : > { %2428 = vmatprep.subr.bf16.mxu0 %v14594_v58  ;;  %2479 = vmatprep.subr.bf16.mxu1 %v14596_v59  ;;  %v14630_v59 = vcombine.high %v14575_v42, %v14587_v43 }
  0xd8   : > { %2429 = vmatpush1.bf16.msra.mxu0 %v14593_v60  ;;  %2480 = vmatpush1.bf16.msra.mxu1 %v14595_v61  ;;  %v14632_v60 = vcombine.high %v14576_v45, %v14588_v47 }
  0xd9   : > { %2528 = vmatprep.subr.bf16.mxu0 %v14622_v62  ;;  %2579 = vmatprep.subr.bf16.mxu1 %v14624_v63 }
  0xdb   : > { %14542 = vmatmul.mubr.msk.bf16.gmra.mxu0 %vm637_vm1, %v20228_v38  ;;  %14544 = vmatmul.mubr.msk.bf16.gmra.mxu1 %vm637_vm1, %v20228_v38  ;;  %v14548_v38 = vld [vmem:[%s27254_s1 + $0x318] sm:$0xff] }
  0xdc   : > { %2446 = vmatprep.mubr.bf16.mxu0 %v27263_v8  ;;  %2497 = vmatprep.mubr.bf16.mxu1 %v27263_v8  ;;  %v14600_v14 = vcombine.high %v14548_v38, %v14560_v4  ;;  %v14599_v18 = vcombine.low %v14548_v38, %v14560_v4 }
  0xe3   : > { %v20447_v15 = vpop.f32.mrf.mxu0  ;;  %v20449_v16 = vpop.f32.mrf.mxu1  ;;  %14641 = vmatmul.mubr.msk.bf16.vlgmr.msra.gmra.mxu0 %vm637_vm1, %v20433_v5  ;;  %14643 = vmatmul.mubr.msk.bf16.vlgmr.msra.gmra.mxu1 %vm637_vm1, %v20433_v5 }
  0xe4   : > { %2529 = vmatpush1.bf16.msra.mxu0 %v14621_v6  ;;  %2580 = vmatpush1.bf16.msra.mxu1 %v14623_v7  ;;  %v14551_v6 = vld [vmem:[%s27254_s1 + $0x330] sm:$0xff] }
  0xe5   : > { %v20455_v46 = vpop.f32.mrf.mxu0  ;;  %v20457_v19 = vpop.f32.mrf.mxu1  ;;  %2456 = vmatprep.mubr.bf16.mxu0 %v27263_v8  ;;  %2507 = vmatprep.mubr.bf16.mxu1 %v27263_v8  ;;  %v14563_v7 = vld [vmem:[%s27254_s1 + $0x390] sm:$0xff] }
  0xe6   : > { %2530 = vmatprep.subr.bf16.mxu0 %v14598_v13  ;;  %2581 = vmatprep.subr.bf16.mxu1 %v14600_v14  ;;  %v14629_v13 = vcombine.low %v14575_v42, %v14587_v43  ;;  %v14631_v14 = vcombine.low %v14576_v45, %v14588_v47  ;;  %v14606_v36 = vcombine.high %v14551_v6, %v14563_v7 }
  0xe7   : > { %v20461_v21 = vpop.f32.mrf.mxu0  ;;  %v20463_v22 = vpop.f32.mrf.mxu1 }
  0xe8   : > { %2531 = vmatpush1.bf16.msra.mxu0 %v14597_v17  ;;  %2582 = vmatpush1.bf16.msra.mxu1 %v14599_v18  ;;  %v14577_v17 = vld [vmem:[%s27254_s1 + $0x400] sm:$0xff] }
  0xe9   : > { %v20465_v23 = vpop.f32.mrf.mxu0  ;;  %v20467_v25 = vpop.f32.mrf.mxu1  ;;  %2630 = vmatprep.subr.bf16.mxu0 %v14626_v20  ;;  %2681 = vmatprep.subr.bf16.mxu1 %v14628_v56  ;;  %v14589_v18 = vld [vmem:[%s27254_s1 + $0x460] sm:$0xff]  ;;  %v14578_v20 = vld [vmem:[%s27254_s1 + $0x408] sm:$0xff] }
  0xea   : > { %v14590_v56 = vld [vmem:[%s27254_s1 + $0x468] sm:$0xff]  ;;  %v14634_v45 = vcombine.high %v14577_v17, %v14589_v18 }
  0xeb   : > { %v20469_v26 = vpop.f32.mrf.mxu0  ;;  %v20471_v31 = vpop.f32.mrf.mxu1  ;;  %14642 = vmatmul.mubr.msk.bf16.gmra.mxu0 %vm637_vm1, %v20415_v0  ;;  %14644 = vmatmul.mubr.msk.bf16.gmra.mxu1 %vm637_vm1, %v20415_v0  ;;  %v14636_v47 = vcombine.high %v14578_v20, %v14590_v56 }
  0xec   : > { %2548 = vmatprep.mubr.bf16.mxu0 %v27263_v8  ;;  %2599 = vmatprep.mubr.bf16.mxu1 %v27263_v8 }
  0xed   : > { %v20479_v32 = vpop.f32.mrf.mxu0  ;;  %v20481_v33 = vpop.f32.mrf.mxu1 }
  0xef   : > { %v692_v39 = vpop.f32.mrf.mxu0  ;;  %v743_v24 = vpop.f32.mrf.mxu1 }
  0xf1   : > { %v693_v48 = vpop.f32.mrf.mxu0  ;;  %v744_v49 = vpop.f32.mrf.mxu1 }
  0xf3   : > { %v20507_v52 = vpop.f32.mrf.mxu0  ;;  %v20509_v53 = vpop.f32.mrf.mxu1  ;;  %14645 = vmatmul.mubr.msk.bf16.vlgmr.msra.gmra.mxu0 %vm637_vm1, %v20433_v5  ;;  %14647 = vmatmul.mubr.msk.bf16.vlgmr.msra.gmra.mxu1 %vm637_vm1, %v20433_v5 }
  0xf4   : > { %2631 = vmatpush1.bf16.msra.mxu0 %v14625_v40  ;;  %2682 = vmatpush1.bf16.msra.mxu1 %v14627_v41  ;;  %v14605_v40 = vcombine.low %v14551_v6, %v14563_v7  ;;  %v14607_v41 = vcombine.low %v14552_v9, %v14564_v10  ;;  %v14553_v6 = vld [vmem:[%s27254_s1 + $0x340] sm:$0xff]  ;;  %v14554_v9 = vld [vmem:[%s27254_s1 + $0x348] sm:$0xff] }
  0xf5   : > { %v20515_v57 = vpop.f32.mrf.mxu0  ;;  %v20517_v58 = vpop.f32.mrf.mxu1  ;;  %2558 = vmatprep.mubr.bf16.mxu0 %v27263_v8  ;;  %2609 = vmatprep.mubr.bf16.mxu1 %v27263_v8  ;;  %v14565_v7 = vld [vmem:[%s27254_s1 + $0x3a0] sm:$0xff]  ;;  %v14566_v10 = vld [vmem:[%s27254_s1 + $0x3a8] sm:$0xff] }
  0xf6   : > { %2632 = vmatprep.subr.bf16.mxu0 %v14602_v50  ;;  %2683 = vmatprep.subr.bf16.mxu1 %v14604_v51 }
  0xf7   : > { %v20521_v61 = vpop.f32.mrf.mxu0  ;;  %v20523_v62 = vpop.f32.mrf.mxu1 }
  0xf8   : > { %2633 = vmatpush1.bf16.msra.mxu0 %v14601_v54  ;;  %2684 = vmatpush1.bf16.msra.mxu1 %v14603_v55 }
  0xf9   : > { %v20525_v63 = vpop.f32.mrf.mxu0  ;;  %v20527_v1 = vpop.f32.mrf.mxu1  ;;  %2732 = vmatprep.subr.bf16.mxu0 %v14630_v59  ;;  %2783 = vmatprep.subr.bf16.mxu1 %v14632_v60 }
  0xfb   : > { %v20529_v2 = vpop.f32.mrf.mxu0  ;;  %v20531_v3 = vpop.f32.mrf.mxu1  ;;  %14646 = vmatmul.mubr.msk.bf16.gmra.mxu0 %vm637_vm1, %v20415_v0  ;;  %14648 = vmatmul.mubr.msk.bf16.gmra.mxu1 %vm637_vm1, %v20415_v0 }
  0xfc   : > { %27541 = vst [vmem:[#allocation5_spill] sm:$0xff] %v20529_v2  ;;  %27542 = vst [vmem:[#allocation6_spill] sm:$0xff] %v20531_v3  ;;  %2650 = vmatprep.mubr.bf16.mxu0 %v27263_v8  ;;  %2701 = vmatprep.mubr.bf16.mxu1 %v27263_v8  ;;  %v14698_v3 = vld [vmem:[%s27254_s1 + $0x588] sm:$0xff] }
  0xfd   : > { %v20539_v38 = vpop.f32.mrf.mxu0  ;;  %v20541_v4 = vpop.f32.mrf.mxu1 }
  0xfe   : > { %27543 = vst [vmem:[#allocation7_spill] sm:$0xff] %v20539_v38  ;;  %27544 = vst [vmem:[#allocation8_spill] sm:$0xff] %v20541_v4 }
  0xff   : > { %v794_v11 = vpop.f32.mrf.mxu0  ;;  %v845_v12 = vpop.f32.mrf.mxu1 }
 0x101   : > { %v795_v34 = vpop.f32.mrf.mxu0  ;;  %v846_v35 = vpop.f32.mrf.mxu1 }
 0x102   : > { %v14579_v34 = vld [vmem:[%s27254_s1 + $0x410] sm:$0xff] }
 0x103   : > { %v20567_v39 = vpop.f32.mrf.mxu0  ;;  %v20569_v24 = vpop.f32.mrf.mxu1  ;;  %14649 = vmatmul.mubr.msk.bf16.vlgmr.msra.gmra.mxu0 %vm637_vm1, %v20433_v5  ;;  %14651 = vmatmul.mubr.msk.bf16.vlgmr.msra.gmra.mxu1 %vm637_vm1, %v20433_v5  ;;  %v14591_v35 = vld [vmem:[%s27254_s1 + $0x470] sm:$0xff] }
 0x104   : > { %27545 = vst [vmem:[#allocation9_spill] sm:$0xff] %v20567_v39  ;;  %27546 = vst [vmem:[#allocation10_spill] sm:$0xff] %v20569_v24  ;;  %2733 = vmatpush1.bf16.msra.mxu0 %v14629_v13  ;;  %2784 = vmatpush1.bf16.msra.mxu1 %v14631_v14  ;;  %v14633_v13 = vcombine.low %v14577_v17, %v14589_v18  ;;  %v14635_v14 = vcombine.low %v14578_v20, %v14590_v56 }
 0x105   : > { %v20575_v42 = vpop.f32.mrf.mxu0  ;;  %v20577_v43 = vpop.f32.mrf.mxu1  ;;  %2660 = vmatprep.mubr.bf16.mxu0 %v27263_v8  ;;  %2711 = vmatprep.mubr.bf16.mxu1 %v27263_v8  ;;  %v14610_v17 = vcombine.high %v14553_v6, %v14565_v7  ;;  %v14612_v18 = vcombine.high %v14554_v9, %v14566_v10 }
 0x106   : > { %27547 = vst [vmem:[#allocation11_spill] sm:$0xff] %v20575_v42  ;;  %27548 = vst [vmem:[#allocation12_spill] sm:$0xff] %v20577_v43  ;;  %2734 = vmatprep.subr.bf16.mxu0 %v14606_v36  ;;  %2785 = vmatprep.subr.bf16.mxu1 %v14608_v37  ;;  %v14580_v36 = vld [vmem:[%s27254_s1 + $0x418] sm:$0xff] }
 0x107   : > { %v20581_v48 = vpop.f32.mrf.mxu0  ;;  %v20583_v49 = vpop.f32.mrf.mxu1  ;;  %v14592_v37 = vld [vmem:[%s27254_s1 + $0x478] sm:$0xff] }
 0x108   : > { %27549 = vst [vmem:[#allocation13_spill] sm:$0xff] %v20581_v48  ;;  %27550 = vst [vmem:[#allocation14_spill] sm:$0xff] %v20583_v49  ;;  %2735 = vmatpush1.bf16.msra.mxu0 %v14605_v40  ;;  %2786 = vmatpush1.bf16.msra.mxu1 %v14607_v41 }
 0x109   : > { %v20585_v50 = vpop.f32.mrf.mxu0  ;;  %v20587_v51 = vpop.f32.mrf.mxu1  ;;  %2834 = vmatprep.subr.bf16.mxu0 %v14634_v45  ;;  %2885 = vmatprep.subr.bf16.mxu1 %v14636_v47  ;;  %v14609_v45 = vcombine.low %v14553_v6, %v14565_v7  ;;  %v14611_v47 = vcombine.low %v14554_v9, %v14566_v10 }
 0x10a   : > { %27551 = vst [vmem:[#allocation15_spill] sm:$0xff] %v20585_v50  ;;  %27552 = vst [vmem:[#allocation16_spill] sm:$0xff] %v20587_v51  ;;  %v14707_v51 = vld [vmem:[%s27254_s1 + $0x5d0] sm:$0xff]  ;;  %v14696_v50 = vld [vmem:[%s27254_s1 + $0x578] sm:$0xff] }
 0x10b   : > { %v20589_v54 = vpop.f32.mrf.mxu0  ;;  %v20591_v55 = vpop.f32.mrf.mxu1  ;;  %14650 = vmatmul.mubr.msk.bf16.gmra.mxu0 %vm637_vm1, %v20415_v0  ;;  %14652 = vmatmul.mubr.msk.bf16.gmra.mxu1 %vm637_vm1, %v20415_v0 }
 0x10c   : > { %27553 = vst [vmem:[#allocation17_spill] sm:$0xff] %v20589_v54  ;;  %27554 = vst [vmem:[#allocation18_spill] sm:$0xff] %v20591_v55  ;;  %2752 = vmatprep.mubr.bf16.mxu0 %v27263_v8  ;;  %2803 = vmatprep.mubr.bf16.mxu1 %v27263_v8 }
 0x10d   : > { %v20599_v59 = vpop.f32.mrf.mxu0  ;;  %v20601_v60 = vpop.f32.mrf.mxu1 }
 0x10e   : > { %27555 = vst [vmem:[#allocation19_spill] sm:$0xff] %v20599_v59  ;;  %27556 = vst [vmem:[#allocation20_spill] sm:$0xff] %v20601_v60 }
 0x10f   : > { %v896_v11 = vpop.f32.mrf.mxu0  ;;  %v947_v12 = vpop.f32.mrf.mxu1 }
 0x111   : > { %v897_v40 = vpop.f32.mrf.mxu0  ;;  %v948_v41 = vpop.f32.mrf.mxu1 }
 0x112   : > { %v14638_v40 = vcombine.high %v14579_v34, %v14591_v35  ;;  %v14640_v41 = vcombine.high %v14580_v36, %v14592_v37 }
 0x113   : > { %v20627_v20 = vpop.f32.mrf.mxu0  ;;  %v20629_v56 = vpop.f32.mrf.mxu1  ;;  %14653 = vmatmul.mubr.msk.bf16.vlgmr.msra.gmra.mxu0 %vm637_vm1, %v20433_v5  ;;  %14655 = vmatmul.mubr.msk.bf16.vlgmr.msra.gmra.mxu1 %vm637_vm1, %v20433_v5 }
 0x114   : > { %27557 = vst [vmem:[#allocation21_spill] sm:$0xff] %v20627_v20  ;;  %27558 = vst [vmem:[#allocation22_spill] sm:$0xff] %v20629_v56  ;;  %2835 = vmatpush1.bf16.msra.mxu0 %v14633_v13  ;;  %2886 = vmatpush1.bf16.msra.mxu1 %v14635_v14 }
 0x115   : > { %v20635_v11 = vpop.f32.mrf.mxu0  ;;  %v20637_v12 = vpop.f32.mrf.mxu1  ;;  %2762 = vmatprep.mubr.bf16.mxu0 %v27263_v8  ;;  %2813 = vmatprep.mubr.bf16.mxu1 %v27263_v8 }
 0x116   : > { %27559 = vst [vmem:[#allocation23_spill] sm:$0xff] %v20635_v11  ;;  %27560 = vst [vmem:[#allocation24_spill] sm:$0xff] %v20637_v12  ;;  %2836 = vmatprep.subr.bf16.mxu0 %v14610_v17  ;;  %2887 = vmatprep.subr.bf16.mxu1 %v14612_v18  ;;  %v14555_v17 = vld [vmem:[%s27254_s1 + $0x350] sm:$0xff] }
 0x117   : > { %v20641_v30 = vpop.f32.mrf.mxu0  ;;  %v20643_v29 = vpop.f32.mrf.mxu1  ;;  %v14567_v18 = vld [vmem:[%s27254_s1 + $0x3b0] sm:$0xff] }
 0x118   : > { %27561 = vst [vmem:[#allocation25_spill] sm:$0xff] %v20641_v30  ;;  %27562 = vst [vmem:[#allocation26_spill] sm:$0xff] %v20643_v29  ;;  %2837 = vmatpush1.bf16.msra.mxu0 %v14609_v45  ;;  %2888 = vmatpush1.bf16.msra.mxu1 %v14611_v47  ;;  %v14556_v45 = vld [vmem:[%s27254_s1 + $0x358] sm:$0xff]  ;;  %v27573_v30 = vmov 0  }
 0x119   : > { %v20645_v6 = vpop.f32.mrf.mxu0  ;;  %v20647_v7 = vpop.f32.mrf.mxu1  ;;  %2936 = vmatprep.subr.bf16.mxu0 %v14638_v40  ;;  %2987 = vmatprep.subr.bf16.mxu1 %v14640_v41  ;;  %v14568_v47 = vld [vmem:[%s27254_s1 + $0x3b8] sm:$0xff] }
 0x11a   : > { %27563 = vst [vmem:[#allocation27_spill] sm:$0xff] %v20645_v6  ;;  %27564 = vst [vmem:[#allocation28_spill] sm:$0xff] %v20647_v7 }
 0x11b   : > { %v20649_v9 = vpop.f32.mrf.mxu0  ;;  %v20651_v10 = vpop.f32.mrf.mxu1  ;;  %14654 = vmatmul.mubr.msk.bf16.gmra.mxu0 %vm637_vm1, %v20415_v0  ;;  %14656 = vmatmul.mubr.msk.bf16.gmra.mxu1 %vm637_vm1, %v20415_v0 }
 0x11c   : > { %27565 = vst [vmem:[#allocation29_spill] sm:$0xff] %v20649_v9  ;;  %27566 = vst [vmem:[#allocation30_spill] sm:$0xff] %v20651_v10  ;;  %2854 = vmatprep.mubr.bf16.mxu0 %v27263_v8  ;;  %2905 = vmatprep.mubr.bf16.mxu1 %v27263_v8  ;;  %v14637_v8 = vcombine.low %v14579_v34, %v14591_v35  ;;  %v14701_v10 = vld [vmem:[%s27254_s1 + $0x5a0] sm:$0xff]  ;;  %v14690_v9 = vld [vmem:[%s27254_s1 + $0x548] sm:$0xff]  ;;  %v14614_v34 = vcombine.high %v14555_v17, %v14567_v18 }
 0x11d   : > { %v20659_v13 = vpop.f32.mrf.mxu0  ;;  %v20661_v14 = vpop.f32.mrf.mxu1  ;;  %v14616_v35 = vcombine.high %v14556_v45, %v14568_v47 }
 0x11e   : > { %27567 = vst [vmem:[#allocation31_spill] sm:$0xff] %v20659_v13  ;;  %27568 = vst [vmem:[#allocation32_spill] sm:$0xff] %v20661_v14  ;;  %v14639_v14 = vcombine.low %v14580_v36, %v14592_v37  ;;  %v14689_v13 = vld [vmem:[%s27254_s1 + $0x540] sm:$0xff] }
 0x11f   : > { %v998_v40 = vpop.f32.mrf.mxu0  ;;  %v1049_v41 = vpop.f32.mrf.mxu1 }
 0x120   : > { %v14702_v40 = vld [vmem:[%s27254_s1 + $0x5a8] sm:$0xff] }
 0x121   : > { %v999_v7 = vpop.f32.mrf.mxu0  ;;  %v1050_v6 = vpop.f32.mrf.mxu1 }
 0x122   : > { %v14613_v7 = vcombine.low %v14555_v17, %v14567_v18  ;;  %v14615_v6 = vcombine.low %v14556_v45, %v14568_v47 }
 0x123   : > { %v20687_v36 = vpop.f32.mrf.mxu0  ;;  %v20689_v37 = vpop.f32.mrf.mxu1  ;;  %14657 = vmatmul.mubr.msk.bf16.vlgmr.msra.gmra.mxu0 %vm637_vm1, %v20433_v5  ;;  %14659 = vmatmul.mubr.msk.bf16.vlgmr.msra.gmra.mxu1 %vm637_vm1, %v20433_v5 }
 0x124   : > { %27569 = vst [vmem:[#allocation33_spill] sm:$0xff] %v20687_v36  ;;  %27570 = vst [vmem:[#allocation34_spill] sm:$0xff] %v20689_v37  ;;  %2937 = vmatpush1.bf16.msra.mxu0 %v14637_v8  ;;  %2988 = vmatpush1.bf16.msra.mxu1 %v14639_v14  ;;  %v14738_v36 = vcombine.high %v14689_v13, %v14701_v10  ;;  %v14740_v37 = vcombine.high %v14690_v9, %v14702_v40 }
 0x125   : > { %v20695_v41 = vpop.f32.mrf.mxu0  ;;  %v20697_v29 = vpop.f32.mrf.mxu1  ;;  %2864 = vmatprep.mubr.bf16.mxu0 %v27573_v30  ;;  %2915 = vmatprep.mubr.bf16.mxu1 %v27573_v30 }
 0x126   : > { %27571 = vst [vmem:[#allocation35_spill] sm:$0xff] %v20695_v41  ;;  %27572 = vst [vmem:[#allocation36_spill] sm:$0xff] %v20697_v29  ;;  %2938 = vmatprep.subr.bf16.mxu0 %v14614_v34  ;;  %2989 = vmatprep.subr.bf16.mxu1 %v14616_v35  ;;  %v14665_v34 = vld [vmem:[%s27254_s1 + $0x480] sm:$0xff] }
 0x127   : > { %v20701_v12 = vpop.f32.mrf.mxu0  ;;  %v20703_v11 = vpop.f32.mrf.mxu1  ;;  %v14677_v35 = vld [vmem:[%s27254_s1 + $0x4e0] sm:$0xff] }
 0x128   : > { %27574 = vst [vmem:[#allocation37_spill] sm:$0xff] %v20701_v12  ;;  %27575 = vst [vmem:[#allocation38_spill] sm:$0xff] %v20703_v11  ;;  %2939 = vmatpush1.bf16.msra.mxu0 %v14613_v7  ;;  %2990 = vmatpush1.bf16.msra.mxu1 %v14615_v6  ;;  %v14713_v11 = vcombine.low %v14665_v34, %v14677_v35 }
 0x129   : > { %v20705_v8 = vpop.f32.mrf.mxu0  ;;  %v20707_v14 = vpop.f32.mrf.mxu1  ;;  %3413 = vmatprep.subr.bf16.mxu0 %v14738_v36  ;;  %3464 = vmatprep.subr.bf16.mxu1 %v14740_v37  ;;  %v14666_v36 = vld [vmem:[%s27254_s1 + $0x488] sm:$0xff] }
 0x12a   : > { %27576 = vst [vmem:[#allocation39_spill] sm:$0xff] %v20705_v8  ;;  %27577 = vst [vmem:[#allocation40_spill] sm:$0xff] %v20707_v14  ;;  %v14678_v37 = vld [vmem:[%s27254_s1 + $0x4e8] sm:$0xff]  ;;  %v14737_v14 = vcombine.low %v14689_v13, %v14701_v10  ;;  %v14739_v8 = vcombine.low %v14690_v9, %v14702_v40  ;;  %v20753_v10 = vld [vmem:[%s27254_s1 + $0x5b8] sm:$0xff]  ;;  %v14714_v40 = vcombine.high %v14665_v34, %v14677_v35  ;;  %v27589_v35 = vshll.u32 %v19961_v27, 16 }
 0x12b   : > { %v20709_v17 = vpop.f32.mrf.mxu0  ;;  %v20711_v18 = vpop.f32.mrf.mxu1  ;;  %14658 = vmatmul.mubr.msk.bf16.gmra.mxu0 %vm637_vm1, %v20415_v0  ;;  %14660 = vmatmul.mubr.msk.bf16.gmra.mxu1 %vm637_vm1, %v20415_v0  ;;  %v14715_v12 = vcombine.low %v14666_v36, %v14678_v37 }
 0x12c   : > { %27578 = vst [vmem:[#allocation41_spill] sm:$0xff] %v20709_v17  ;;  %27579 = vst [vmem:[#allocation42_spill] sm:$0xff] %v20711_v18  ;;  %2956 = vmatprep.mubr.bf16.mxu0 %v27573_v30  ;;  %3007 = vmatprep.mubr.bf16.mxu1 %v27573_v30  ;;  %v20748_v18 = vld [vmem:[%s27254_s1 + $0x558] sm:$0xff] }
 0x12d   : > { %v20719_v45 = vpop.f32.mrf.mxu0  ;;  %v20721_v47 = vpop.f32.mrf.mxu1 }
 0x12e   : > { %27580 = vst [vmem:[#allocation43_spill] sm:$0xff] %v20719_v45  ;;  %27581 = vst [vmem:[#allocation44_spill] sm:$0xff] %v20721_v47  ;;  %v20738_v47 = vld [vmem:[%s27254_s1 + $0x550] sm:$0xff] }
 0x12f   : > { %v1100_v7 = vpop.f32.mrf.mxu0  ;;  %v1151_v6 = vpop.f32.mrf.mxu1  ;;  %v20743_v45 = vld [vmem:[%s27254_s1 + $0x5b0] sm:$0xff] }
 0x130   : > { %v14716_v7 = vcombine.high %v14666_v36, %v14678_v37  ;;  %v3149_v36 = vrot.slane %v27589_v35, 2 }
 0x131   : > { %v1101_v9 = vpop.f32.mrf.mxu0  ;;  %v1152_v13 = vpop.f32.mrf.mxu1 }
 0x132   : > { %v14742_v13 = vcombine.high %v20738_v47, %v20743_v45 }
 0x133   : > { %v20755_v6 = vpop.f32.mrf.mxu0  ;;  %v20757_v17 = vpop.f32.mrf.mxu1  ;;  %14661 = vmatmul.mubr.msk.bf16.vlgmr.msra.gmra.mxu0 %vm637_vm1, %v20433_v5  ;;  %14663 = vmatmul.mubr.msk.bf16.vlgmr.msra.gmra.mxu1 %vm637_vm1, %v20433_v5 }
 0x134   : > { %27582 = vst [vmem:[#allocation45_spill] sm:$0xff] %v20755_v6  ;;  %27583 = vst [vmem:[#allocation46_spill] sm:$0xff] %v20757_v17  ;;  %3414 = vmatpush1.bf16.msra.mxu0 %v14737_v14  ;;  %3465 = vmatpush1.bf16.msra.mxu1 %v14739_v8  ;;  %v14744_v17 = vcombine.high %v20748_v18, %v20753_v10  ;;  %v27588_v14 = vshrl.u32 %v19961_v27, 16 }
 0x135   : > { %v20763_v29 = vpop.f32.mrf.mxu0  ;;  %v20765_v9 = vpop.f32.mrf.mxu1  ;;  %2966 = vmatprep.mubr.bf16.mxu0 %v27573_v30  ;;  %3017 = vmatprep.mubr.bf16.mxu1 %v27573_v30 }
 0x136   : > { %27584 = vst [vmem:[#allocation47_spill] sm:$0xff] %v20763_v29  ;;  %27585 = vst [vmem:[#allocation48_spill] sm:$0xff] %v20765_v9  ;;  %3415 = vmatprep.subr.bf16.mxu0 %v14714_v40  ;;  %3466 = vmatprep.subr.bf16.mxu1 %v14716_v7  ;;  %v3148_v34 = vrot.slane %v27588_v14, 1 }
 0x137   : > { %v20773_v5 = vpop.f32.mrf.mxu0  ;;  %v20775_v8 = vpop.f32.mrf.mxu1 }
 0x138   : > { %27586 = vst [vmem:[#allocation49_spill] sm:$0xff] %v20773_v5  ;;  %27587 = vst [vmem:[#allocation50_spill] sm:$0xff] %v20775_v8  ;;  %3416 = vmatpush1.bf16.msra.mxu0 %v14713_v11  ;;  %3467 = vmatpush1.bf16.msra.mxu1 %v14715_v12  ;;  %v3150_v11 = vor.u32 %v3149_v36, %v3148_v34  ;;  %v14680_v34 = vld [vmem:[%s27254_s1 + $0x4f8] sm:$0xff]  ;;  %v14705_v8 = vld [vmem:[%s27254_s1 + $0x5c0] sm:$0xff] }
 0x139   : > { %v20781_v37 = vpop.f32.mrf.mxu0  ;;  %v20783_v9 = vpop.f32.mrf.mxu1  ;;  %3515 = vmatprep.subr.bf16.mxu0 %v14742_v13  ;;  %3566 = vmatprep.subr.bf16.mxu1 %v14744_v17  ;;  %v14667_v17 = vld [vmem:[%s27254_s1 + $0x490] sm:$0xff] }
 0x13a   : > { %27590 = vst [vmem:[#allocation51_spill] sm:$0xff] %v20781_v37  ;;  %27591 = vst [vmem:[#allocation52_spill] sm:$0xff] %v20783_v9  ;;  %v14668_v9 = vld [vmem:[%s27254_s1 + $0x498] sm:$0xff]  ;;  %v20812_v36 = vsel %vm3147_vm3, %v3150_v11, %v19986_v44  ;;  %v14741_v37 = vcombine.low %v20738_v47, %v20743_v45  ;;  %v14694_v11 = vld [vmem:[%s27254_s1 + $0x568] sm:$0xff] }
 0x13b   : > { %v20785_v40 = vpop.f32.mrf.mxu0  ;;  %v20787_v7 = vpop.f32.mrf.mxu1  ;;  %14662 = vmatmul.mubr.msk.bf16.gmra.mxu0 %vm637_vm1, %v20415_v0  ;;  %14664 = vmatmul.mubr.msk.bf16.gmra.mxu1 %vm637_vm1, %v20415_v0  ;;  %v14679_v0 = vld [vmem:[%s27254_s1 + $0x4f0] sm:$0xff] }
 0x13c   : > { %27592 = vst [vmem:[#allocation53_spill] sm:$0xff] %v20785_v40  ;;  %27593 = vst [vmem:[#allocation54_spill] sm:$0xff] %v20787_v7  ;;  %3433 = vmatprep.mubr.bf16.mxu0 %v27573_v30  ;;  %3484 = vmatprep.mubr.bf16.mxu1 %v27573_v30  ;;  %v14718_v7 = vcombine.high %v14667_v17, %v14679_v0  ;;  %v14720_v40 = vcombine.high %v14668_v9, %v14680_v34 }
 0x13d   : > { %v20795_v12 = vpop.f32.mrf.mxu0  ;;  %v20797_v14 = vpop.f32.mrf.mxu1 }
 0x13e   : > { %27594 = vst [vmem:[#allocation55_spill] sm:$0xff] %v20795_v12  ;;  %27595 = vst [vmem:[#allocation56_spill] sm:$0xff] %v20797_v14  ;;  %v14693_v12 = vld [vmem:[%s27254_s1 + $0x560] sm:$0xff] }
 0x13f   : > { %v1202_v13 = vpop.f32.mrf.mxu0  ;;  %v1253_v35 = vpop.f32.mrf.mxu1  ;;  %v14746_v29 = vcombine.high %v14693_v12, %v14705_v8  ;;  %v14745_v20 = vcombine.low %v14693_v12, %v14705_v8  ;;  %v14708_v8 = vld [vmem:[%s27254_s1 + $0x5d8] sm:$0xff] }
 0x140   : > { %v14743_v13 = vcombine.low %v20748_v18, %v20753_v10  ;;  %v14706_v18 = vld [vmem:[%s27254_s1 + $0x5c8] sm:$0xff]  ;;  %v14717_v10 = vcombine.low %v14667_v17, %v14679_v0  ;;  %v14752_v43 = vcombine.high %v14696_v50, %v14708_v8 }
 0x141   : > { %v1203_v35 = vpop.f32.mrf.mxu0  ;;  %v1254_v14 = vpop.f32.mrf.mxu1  ;;  %v14748_v6 = vcombine.high %v14694_v11, %v14706_v18  ;;  %v14747_v60 = vcombine.low %v14694_v11, %v14706_v18 }
 0x142   : > { %v14719_v14 = vcombine.low %v14668_v9, %v14680_v34 }
 0x143   : > { %v20830_v45 = vpop.f32.mrf.mxu0  ;;  %v20832_v47 = vpop.f32.mrf.mxu1  ;;  %14761 = vmatmul.mubr.msk.bf16.vlgmr.msra.gmra.mxu0 %vm637_vm1, %v20812_v36  ;;  %14763 = vmatmul.mubr.msk.bf16.vlgmr.msra.gmra.mxu1 %vm637_vm1, %v20812_v36 }
 0x144   : > { %3516 = vmatpush1.bf16.msra.mxu0 %v14741_v37  ;;  %3567 = vmatpush1.bf16.msra.mxu1 %v14743_v13  ;;  %v14681_v13 = vld [vmem:[%s27254_s1 + $0x500] sm:$0xff] }
 0x145   : > { %v20838_v35 = vpop.f32.mrf.mxu0  ;;  %v20840_v5 = vpop.f32.mrf.mxu1  ;;  %3443 = vmatprep.mubr.bf16.mxu0 %v27573_v30  ;;  %3494 = vmatprep.mubr.bf16.mxu1 %v27573_v30 }
 0x146   : > { %3517 = vmatprep.subr.bf16.mxu0 %v14718_v7  ;;  %3568 = vmatprep.subr.bf16.mxu1 %v14720_v40 }
 0x147   : > { %v20844_v41 = vpop.f32.mrf.mxu0  ;;  %v20846_v56 = vpop.f32.mrf.mxu1 }
 0x148   : > { %3518 = vmatpush1.bf16.msra.mxu0 %v14717_v10  ;;  %3569 = vmatpush1.bf16.msra.mxu1 %v14719_v14  ;;  %v14670_v10 = vld [vmem:[%s27254_s1 + $0x4a8] sm:$0xff] }
 0x149   : > { %v20848_v37 = vpop.f32.mrf.mxu0  ;;  %v20850_v9 = vpop.f32.mrf.mxu1  ;;  %3617 = vmatprep.subr.bf16.mxu0 %v14746_v29  ;;  %3668 = vmatprep.subr.bf16.mxu1 %v14748_v6  ;;  %v14669_v29 = vld [vmem:[%s27254_s1 + $0x4a0] sm:$0xff]  ;;  %v14682_v14 = vld [vmem:[%s27254_s1 + $0x508] sm:$0xff] }
 0x14a   : > { %v14724_v54 = vcombine.high %v14670_v10, %v14682_v14  ;;  %v14721_v12 = vcombine.low %v14669_v29, %v14681_v13  ;;  %v14723_v11 = vcombine.low %v14670_v10, %v14682_v14 }
 0x14b   : > { %v20852_v17 = vpop.f32.mrf.mxu0  ;;  %v20854_v0 = vpop.f32.mrf.mxu1  ;;  %14762 = vmatmul.mubr.msk.bf16.gmra.mxu0 %vm637_vm1, %v19986_v44  ;;  %14764 = vmatmul.mubr.msk.bf16.gmra.mxu1 %vm637_vm1, %v19986_v44 }
 0x14c   : > { %3535 = vmatprep.mubr.bf16.mxu0 %v27573_v30  ;;  %3586 = vmatprep.mubr.bf16.mxu1 %v27573_v30 }
 0x14d   : > { %v20862_v40 = vpop.f32.mrf.mxu0  ;;  %v20864_v7 = vpop.f32.mrf.mxu1 }
 0x14f   : > { %v1549_v6 = vpop.f32.mrf.mxu0  ;;  %v1600_v34 = vpop.f32.mrf.mxu1 }
 0x150   : > { %v14695_v6 = vld [vmem:[%s27254_s1 + $0x570] sm:$0xff]  ;;  %v14722_v34 = vcombine.high %v14669_v29, %v14681_v13 }
 0x151   : > { %v1550_v59 = vpop.f32.mrf.mxu0  ;;  %v1601_v55 = vpop.f32.mrf.mxu1  ;;  %v14750_v48 = vcombine.high %v14695_v6, %v14707_v51  ;;  %v14749_v39 = vcombine.low %v14695_v6, %v14707_v51 }
 0x153   : > { %v20890_v59 = vpop.f32.mrf.mxu0  ;;  %v20892_v55 = vpop.f32.mrf.mxu1  ;;  %14765 = vmatmul.mubr.msk.bf16.vlgmr.msra.gmra.mxu0 %vm637_vm1, %v20812_v36  ;;  %14767 = vmatmul.mubr.msk.bf16.vlgmr.msra.gmra.mxu1 %vm637_vm1, %v20812_v36 }
 0x154   : > { %3618 = vmatpush1.bf16.msra.mxu0 %v14745_v20  ;;  %3669 = vmatpush1.bf16.msra.mxu1 %v14747_v60 }
 0x155   : > { %v20898_v18 = vpop.f32.mrf.mxu0  ;;  %v20900_v49 = vpop.f32.mrf.mxu1  ;;  %3545 = vmatprep.mubr.bf16.mxu0 %v27573_v30  ;;  %3596 = vmatprep.mubr.bf16.mxu1 %v27573_v30 }
 0x156   : > { %3619 = vmatprep.subr.bf16.mxu0 %v14722_v34  ;;  %3670 = vmatprep.subr.bf16.mxu1 %v14724_v54  ;;  %v14683_v34 = vld [vmem:[%s27254_s1 + $0x510] sm:$0xff] }
 0x157   : > { %v20904_v42 = vpop.f32.mrf.mxu0  ;;  %v20906_v24 = vpop.f32.mrf.mxu1 }
 0x158   : > { %3620 = vmatpush1.bf16.msra.mxu0 %v14721_v12  ;;  %3671 = vmatpush1.bf16.msra.mxu1 %v14723_v11  ;;  %v14672_v12 = vld [vmem:[%s27254_s1 + $0x4b8] sm:$0xff] }
 0x159   : > { %v20908_v60 = vpop.f32.mrf.mxu0  ;;  %v20910_v20 = vpop.f32.mrf.mxu1  ;;  %3719 = vmatprep.subr.bf16.mxu0 %v14750_v48  ;;  %3770 = vmatprep.subr.bf16.mxu1 %v14752_v43  ;;  %v14671_v43 = vld [vmem:[%s27254_s1 + $0x4b0] sm:$0xff]  ;;  %v14684_v11 = vld [vmem:[%s27254_s1 + $0x518] sm:$0xff] }
 0x15a   : > { %27596 = vst [vmem:[#allocation57_spill] sm:$0xff] %v20910_v20  ;;  %v14728_v38 = vcombine.high %v14672_v12, %v14684_v11  ;;  %v14725_v6 = vcombine.low %v14671_v43, %v14683_v34 }
 0x15b   : > { %v20912_v29 = vpop.f32.mrf.mxu0  ;;  %v20914_v13 = vpop.f32.mrf.mxu1  ;;  %14766 = vmatmul.mubr.msk.bf16.gmra.mxu0 %vm637_vm1, %v19986_v44  ;;  %14768 = vmatmul.mubr.msk.bf16.gmra.mxu1 %vm637_vm1, %v19986_v44 }
 0x15c   : > { %27597 = vst [vmem:[#allocation58_spill] sm:$0xff] %v20912_v29  ;;  %27598 = vst [vmem:[#allocation59_spill] sm:$0xff] %v20914_v13  ;;  %3637 = vmatprep.mubr.bf16.mxu0 %v27573_v30  ;;  %3688 = vmatprep.mubr.bf16.mxu1 %v27573_v30  ;;  %v14709_v13 = vld [vmem:[%s27254_s1 + $0x5e0] sm:$0xff] }
 0x15d   : > { %v20922_v54 = vpop.f32.mrf.mxu0  ;;  %v20924_v10 = vpop.f32.mrf.mxu1 }
 0x15e   : > { %27599 = vst [vmem:[#allocation60_spill] sm:$0xff] %v20922_v54  ;;  %27600 = vst [vmem:[#allocation61_spill] sm:$0xff] %v20924_v10  ;;  %v14751_v10 = vcombine.low %v14696_v50, %v14708_v8  ;;  %v14710_v50 = vld [vmem:[%s27254_s1 + $0x5e8] sm:$0xff]  ;;  %v14727_v8 = vcombine.low %v14672_v12, %v14684_v11  ;;  %v14673_v11 = vld [vmem:[%s27254_s1 + $0x4c0] sm:$0xff] }
 0x15f   : > { %v1651_v48 = vpop.f32.mrf.mxu0  ;;  %v1702_v14 = vpop.f32.mrf.mxu1 }
 0x160   : > { %v14697_v48 = vld [vmem:[%s27254_s1 + $0x580] sm:$0xff]  ;;  %v14726_v14 = vcombine.high %v14671_v43, %v14683_v34 }
 0x161   : > { %v1652_v4 = vpop.f32.mrf.mxu0  ;;  %v1703_v54 = vpop.f32.mrf.mxu1 }
 0x163   : > { %v20950_v4 = vpop.f32.mrf.mxu0  ;;  %v20952_v51 = vpop.f32.mrf.mxu1  ;;  %14769 = vmatmul.mubr.msk.bf16.vlgmr.msra.gmra.mxu0 %vm637_vm1, %v20812_v36  ;;  %14771 = vmatmul.mubr.msk.bf16.vlgmr.msra.gmra.mxu1 %vm637_vm1, %v20812_v36 }
 0x164   : > { %27601 = vst [vmem:[#allocation62_spill] sm:$0xff] %v20950_v4  ;;  %27602 = vst [vmem:[#allocation63_spill] sm:$0xff] %v20952_v51  ;;  %3720 = vmatpush1.bf16.msra.mxu0 %v14749_v39  ;;  %3771 = vmatpush1.bf16.msra.mxu1 %v14751_v10  ;;  %v14754_v4 = vcombine.high %v14697_v48, %v14709_v13  ;;  %v14756_v51 = vcombine.high %v14698_v3, %v14710_v50 }
 0x165   : > { %v20958_v54 = vpop.f32.mrf.mxu0  ;;  %v20960_v29 = vpop.f32.mrf.mxu1  ;;  %3647 = vmatprep.mubr.bf16.mxu0 %v27573_v30  ;;  %3698 = vmatprep.mubr.bf16.mxu1 %v27573_v30 }
 0x166   : > { %27603 = vst [vmem:[#allocation64_spill] sm:$0xff] %v20958_v54  ;;  %27604 = vst [vmem:[#allocation65_spill] sm:$0xff] %v20960_v29  ;;  %3721 = vmatprep.subr.bf16.mxu0 %v14726_v14  ;;  %3772 = vmatprep.subr.bf16.mxu1 %v14728_v38 }
 0x167   : > { %v20964_v2 = vpop.f32.mrf.mxu0  ;;  %v20966_v20 = vpop.f32.mrf.mxu1 }
 0x168   : > { %27605 = vst [vmem:[#allocation66_spill] sm:$0xff] %v20964_v2  ;;  %27606 = vst [vmem:[#allocation67_spill] sm:$0xff] %v20966_v20  ;;  %3722 = vmatpush1.bf16.msra.mxu0 %v14725_v6  ;;  %3773 = vmatpush1.bf16.msra.mxu1 %v14727_v8  ;;  %v14674_v6 = vld [vmem:[%s27254_s1 + $0x4c8] sm:$0xff]  ;;  %v14700_v20 = vld [vmem:[%s27254_s1 + $0x598] sm:$0xff] }
 0x169   : > { %v20968_v39 = vpop.f32.mrf.mxu0  ;;  %v20970_v10 = vpop.f32.mrf.mxu1  ;;  %3821 = vmatprep.subr.bf16.mxu0 %v14754_v4  ;;  %3872 = vmatprep.subr.bf16.mxu1 %v14756_v51  ;;  %v14685_v51 = vld [vmem:[%s27254_s1 + $0x520] sm:$0xff]  ;;  %v14686_v8 = vld [vmem:[%s27254_s1 + $0x528] sm:$0xff] }
 0x16a   : > { %27607 = vst [vmem:[#allocation68_spill] sm:$0xff] %v20968_v39  ;;  %27608 = vst [vmem:[#allocation69_spill] sm:$0xff] %v20970_v10  ;;  %v14732_v10 = vcombine.high %v14674_v6, %v14686_v8  ;;  %v14711_v39 = vld [vmem:[%s27254_s1 + $0x5f0] sm:$0xff] }
 0x16b   : > { %v20972_v43 = vpop.f32.mrf.mxu0  ;;  %v20974_v34 = vpop.f32.mrf.mxu1  ;;  %14770 = vmatmul.mubr.msk.bf16.gmra.mxu0 %vm637_vm1, %v19986_v44  ;;  %14772 = vmatmul.mubr.msk.bf16.gmra.mxu1 %vm637_vm1, %v19986_v44 }
 0x16c   : > { %27609 = vst [vmem:[#allocation70_spill] sm:$0xff] %v20972_v43  ;;  %27610 = vst [vmem:[#allocation71_spill] sm:$0xff] %v20974_v34  ;;  %3739 = vmatprep.mubr.bf16.mxu0 %v27573_v30  ;;  %3790 = vmatprep.mubr.bf16.mxu1 %v27573_v30 }
 0x16d   : > { %v20982_v38 = vpop.f32.mrf.mxu0  ;;  %v20984_v12 = vpop.f32.mrf.mxu1 }
 0x16e   : > { %27611 = vst [vmem:[#allocation72_spill] sm:$0xff] %v20982_v38  ;;  %27612 = vst [vmem:[#allocation73_spill] sm:$0xff] %v20984_v12  ;;  %v14753_v38 = vcombine.low %v14697_v48, %v14709_v13  ;;  %v14755_v12 = vcombine.low %v14698_v3, %v14710_v50  ;;  %v14712_v3 = vld [vmem:[%s27254_s1 + $0x5f8] sm:$0xff]  ;;  %v14729_v50 = vcombine.low %v14673_v11, %v14685_v51 }
 0x16f   : > { %v1753_v14 = vpop.f32.mrf.mxu0  ;;  %v1804_v4 = vpop.f32.mrf.mxu1 }
 0x170   : > { %v14699_v14 = vld [vmem:[%s27254_s1 + $0x590] sm:$0xff]  ;;  %v14730_v4 = vcombine.high %v14673_v11, %v14685_v51 }
 0x171   : > { %v1754_v34 = vpop.f32.mrf.mxu0  ;;  %v1805_v43 = vpop.f32.mrf.mxu1 }
 0x172   : > { %v14731_v43 = vcombine.low %v14674_v6, %v14686_v8  ;;  %v14675_v8 = vld [vmem:[%s27254_s1 + $0x4d0] sm:$0xff] }
 0x173   : > { %v21010_v13 = vpop.f32.mrf.mxu0  ;;  %v21012_v48 = vpop.f32.mrf.mxu1  ;;  %14773 = vmatmul.mubr.msk.bf16.vlgmr.msra.gmra.mxu0 %vm637_vm1, %v20812_v36  ;;  %14775 = vmatmul.mubr.msk.bf16.vlgmr.msra.gmra.mxu1 %vm637_vm1, %v20812_v36 }
 0x174   : > { %27613 = vst [vmem:[#allocation74_spill] sm:$0xff] %v21010_v13  ;;  %27614 = vst [vmem:[#allocation75_spill] sm:$0xff] %v21012_v48  ;;  %3822 = vmatpush1.bf16.msra.mxu0 %v14753_v38  ;;  %3873 = vmatpush1.bf16.msra.mxu1 %v14755_v12  ;;  %v14758_v13 = vcombine.high %v14699_v14, %v14711_v39  ;;  %v14760_v48 = vcombine.high %v14700_v20, %v14712_v3 }
 0x175   : > { %v21018_v34 = vpop.f32.mrf.mxu0  ;;  %v21020_v2 = vpop.f32.mrf.mxu1  ;;  %3749 = vmatprep.mubr.bf16.mxu0 %v27573_v30  ;;  %3800 = vmatprep.mubr.bf16.mxu1 %v27573_v30 }
 0x176   : > { %27615 = vst [vmem:[#allocation76_spill] sm:$0xff] %v21018_v34  ;;  %27616 = vst [vmem:[#allocation77_spill] sm:$0xff] %v21020_v2  ;;  %3823 = vmatprep.subr.bf16.mxu0 %v14730_v4  ;;  %3874 = vmatprep.subr.bf16.mxu1 %v14732_v10 }
 0x177   : > { %v21024_v29 = vpop.f32.mrf.mxu0  ;;  %v21026_v54 = vpop.f32.mrf.mxu1 }
 0x178   : > { %27617 = vst [vmem:[#allocation78_spill] sm:$0xff] %v21024_v29  ;;  %27618 = vst [vmem:[#allocation79_spill] sm:$0xff] %v21026_v54  ;;  %3824 = vmatpush1.bf16.msra.mxu0 %v14729_v50  ;;  %3875 = vmatpush1.bf16.msra.mxu1 %v14731_v43  ;;  %v14676_v50 = vld [vmem:[%s27254_s1 + $0x4d8] sm:$0xff]  ;;  %v14810_v54 = vld [vmem:[%s27254_s1 + $0x6c8] sm:$0xff] }
 0x179   : > { %v21028_v38 = vpop.f32.mrf.mxu0  ;;  %v21030_v12 = vpop.f32.mrf.mxu1  ;;  %3923 = vmatprep.subr.bf16.mxu0 %v14758_v13  ;;  %3974 = vmatprep.subr.bf16.mxu1 %v14760_v48  ;;  %v14687_v48 = vld [vmem:[%s27254_s1 + $0x530] sm:$0xff]  ;;  %v14688_v43 = vld [vmem:[%s27254_s1 + $0x538] sm:$0xff] }
 0x17a   : > { %27619 = vst [vmem:[#allocation80_spill] sm:$0xff] %v21028_v38  ;;  %27620 = vst [vmem:[#allocation81_spill] sm:$0xff] %v21030_v12  ;;  %v14736_v12 = vcombine.high %v14676_v50, %v14688_v43  ;;  %v14821_v38 = vld [vmem:[%s27254_s1 + $0x720] sm:$0xff] }
 0x17b   : > { %v21032_v11 = vpop.f32.mrf.mxu0  ;;  %v21034_v51 = vpop.f32.mrf.mxu1  ;;  %14774 = vmatmul.mubr.msk.bf16.gmra.mxu0 %vm637_vm1, %v19986_v44  ;;  %14776 = vmatmul.mubr.msk.bf16.gmra.mxu1 %vm637_vm1, %v19986_v44 }
 0x17c   : > { %27621 = vst [vmem:[#allocation82_spill] sm:$0xff] %v21032_v11  ;;  %27622 = vst [vmem:[#allocation83_spill] sm:$0xff] %v21034_v51  ;;  %3841 = vmatprep.mubr.bf16.mxu0 %v27573_v30  ;;  %3892 = vmatprep.mubr.bf16.mxu1 %v27573_v30 }
 0x17d   : > { %v21042_v10 = vpop.f32.mrf.mxu0  ;;  %v21044_v6 = vpop.f32.mrf.mxu1 }
 0x17e   : > { %27623 = vst [vmem:[#allocation84_spill] sm:$0xff] %v21042_v10  ;;  %27624 = vst [vmem:[#allocation85_spill] sm:$0xff] %v21044_v6  ;;  %v14757_v10 = vcombine.low %v14699_v14, %v14711_v39  ;;  %v14759_v6 = vcombine.low %v14700_v20, %v14712_v3  ;;  %v14822_v20 = vld [vmem:[%s27254_s1 + $0x728] sm:$0xff]  ;;  %v14733_v3 = vcombine.low %v14675_v8, %v14687_v48 }
 0x17f   : > { %v1855_v4 = vpop.f32.mrf.mxu0  ;;  %v1906_v13 = vpop.f32.mrf.mxu1 }
 0x180   : > { %v14809_v4 = vld [vmem:[%s27254_s1 + $0x6c0] sm:$0xff]  ;;  %v14734_v13 = vcombine.high %v14675_v8, %v14687_v48 }
 0x181   : > { %v1856_v51 = vpop.f32.mrf.mxu0  ;;  %v1907_v11 = vpop.f32.mrf.mxu1 }
 0x182   : > { %v14735_v11 = vcombine.low %v14676_v50, %v14688_v43  ;;  %v14785_v43 = vld [vmem:[%s27254_s1 + $0x600] sm:$0xff] }
 0x183   : > { %v21070_v39 = vpop.f32.mrf.mxu0  ;;  %v21072_v14 = vpop.f32.mrf.mxu1  ;;  %14777 = vmatmul.mubr.msk.bf16.vlgmr.msra.gmra.mxu0 %vm637_vm1, %v20812_v36  ;;  %14779 = vmatmul.mubr.msk.bf16.vlgmr.msra.gmra.mxu1 %vm637_vm1, %v20812_v36 }
 0x184   : > { %27625 = vst [vmem:[#allocation86_spill] sm:$0xff] %v21070_v39  ;;  %27626 = vst [vmem:[#allocation87_spill] sm:$0xff] %v21072_v14  ;;  %3924 = vmatpush1.bf16.msra.mxu0 %v14757_v10  ;;  %3975 = vmatpush1.bf16.msra.mxu1 %v14759_v6  ;;  %v14858_v39 = vcombine.high %v14809_v4, %v14821_v38  ;;  %v14860_v14 = vcombine.high %v14810_v54, %v14822_v20 }
 0x185   : > { %v21078_v51 = vpop.f32.mrf.mxu0  ;;  %v21080_v29 = vpop.f32.mrf.mxu1  ;;  %3851 = vmatprep.mubr.bf16.mxu0 %v27573_v30  ;;  %3902 = vmatprep.mubr.bf16.mxu1 %v27573_v30 }
 0x186   : > { %3925 = vmatprep.subr.bf16.mxu0 %v14734_v13  ;;  %3976 = vmatprep.subr.bf16.mxu1 %v14736_v12 }
 0x187   : > { %v21084_v2 = vpop.f32.mrf.mxu0  ;;  %v21086_v34 = vpop.f32.mrf.mxu1 }
 0x188   : > { %27627 = vst [vmem:[#allocation88_spill] sm:$0xff] %v21084_v2  ;;  %27628 = vst [vmem:[#allocation89_spill] sm:$0xff] %v21086_v34  ;;  %3926 = vmatpush1.bf16.msra.mxu0 %v14733_v3  ;;  %3977 = vmatpush1.bf16.msra.mxu1 %v14735_v11  ;;  %v14786_v3 = vld [vmem:[%s27254_s1 + $0x608] sm:$0xff]  ;;  %v21131_v34 = vld [vmem:[%s27254_s1 + $0x6d8] sm:$0xff] }
 0x189   : > { %v21088_v10 = vpop.f32.mrf.mxu0  ;;  %v21090_v6 = vpop.f32.mrf.mxu1  ;;  %4396 = vmatprep.subr.bf16.mxu0 %v14858_v39  ;;  %4447 = vmatprep.subr.bf16.mxu1 %v14860_v14  ;;  %v14797_v14 = vld [vmem:[%s27254_s1 + $0x660] sm:$0xff]  ;;  %v14798_v11 = vld [vmem:[%s27254_s1 + $0x668] sm:$0xff] }
 0x18a   : > { %27629 = vst [vmem:[#allocation90_spill] sm:$0xff] %v21088_v10  ;;  %27630 = vst [vmem:[#allocation91_spill] sm:$0xff] %v21090_v6  ;;  %v14857_v6 = vcombine.low %v14809_v4, %v14821_v38  ;;  %v14859_v10 = vcombine.low %v14810_v54, %v14822_v20  ;;  %v21136_v54 = vld [vmem:[%s27254_s1 + $0x738] sm:$0xff]  ;;  %v14833_v20 = vcombine.low %v14785_v43, %v14797_v14 }
 0x18b   : > { %v21092_v8 = vpop.f32.mrf.mxu0  ;;  %v21094_v48 = vpop.f32.mrf.mxu1  ;;  %14778 = vmatmul.mubr.msk.bf16.gmra.mxu0 %vm637_vm1, %v19986_v44  ;;  %14780 = vmatmul.mubr.msk.bf16.gmra.mxu1 %vm637_vm1, %v19986_v44 }
 0x18c   : > { %27631 = vst [vmem:[#allocation92_spill] sm:$0xff] %v21092_v8  ;;  %27632 = vst [vmem:[#allocation93_spill] sm:$0xff] %v21094_v48  ;;  %3943 = vmatprep.mubr.bf16.mxu0 %v27573_v30  ;;  %3994 = vmatprep.mubr.bf16.mxu1 %v27573_v30  ;;  %v14836_v48 = vcombine.high %v14786_v3, %v14798_v11  ;;  %v21126_v8 = vld [vmem:[%s27254_s1 + $0x730] sm:$0xff] }
 0x18d   : > { %v21102_v12 = vpop.f32.mrf.mxu0  ;;  %v21104_v50 = vpop.f32.mrf.mxu1 }
 0x18e   : > { %27633 = vst [vmem:[#allocation94_spill] sm:$0xff] %v21102_v12  ;;  %27634 = vst [vmem:[#allocation95_spill] sm:$0xff] %v21104_v50 }
 0x18f   : > { %v1957_v13 = vpop.f32.mrf.mxu0  ;;  %v2008_v39 = vpop.f32.mrf.mxu1 }
 0x190   : > { %v21121_v13 = vld [vmem:[%s27254_s1 + $0x6d0] sm:$0xff]  ;;  %v14834_v39 = vcombine.high %v14785_v43, %v14797_v14 }
 0x191   : > { %v1958_v50 = vpop.f32.mrf.mxu0  ;;  %v2009_v12 = vpop.f32.mrf.mxu1 }
 0x192   : > { %v14835_v12 = vcombine.low %v14786_v3, %v14798_v11  ;;  %v4135_v11 = vrot.slane %v19961_v27, 2  ;;  %v14800_v27 = vld [vmem:[%s27254_s1 + $0x678] sm:$0xff] }
 0x193   : > { %v21138_v38 = vpop.f32.mrf.mxu0  ;;  %v21140_v4 = vpop.f32.mrf.mxu1  ;;  %14781 = vmatmul.mubr.msk.bf16.vlgmr.msra.gmra.mxu0 %vm637_vm1, %v20812_v36  ;;  %14783 = vmatmul.mubr.msk.bf16.vlgmr.msra.gmra.mxu1 %vm637_vm1, %v20812_v36 }
 0x194   : > { %27635 = vst [vmem:[#allocation96_spill] sm:$0xff] %v21138_v38  ;;  %27636 = vst [vmem:[#allocation97_spill] sm:$0xff] %v21140_v4  ;;  %4397 = vmatpush1.bf16.msra.mxu0 %v14857_v6  ;;  %4448 = vmatpush1.bf16.msra.mxu1 %v14859_v10  ;;  %v14862_v4 = vcombine.high %v21121_v13, %v21126_v8  ;;  %v14864_v38 = vcombine.high %v21131_v34, %v21136_v54 }
 0x195   : > { %v21146_v50 = vpop.f32.mrf.mxu0  ;;  %v21148_v2 = vpop.f32.mrf.mxu1  ;;  %3953 = vmatprep.mubr.bf16.mxu0 %v27573_v30  ;;  %4004 = vmatprep.mubr.bf16.mxu1 %v27573_v30 }
 0x196   : > { %27637 = vst [vmem:[#allocation98_spill] sm:$0xff] %v21148_v2  ;;  %4398 = vmatprep.subr.bf16.mxu0 %v14834_v39  ;;  %4449 = vmatprep.subr.bf16.mxu1 %v14836_v48  ;;  %v21173_v48 = vrot.slane %v19964_v28, 2  ;;  %v14799_v28 = vld [vmem:[%s27254_s1 + $0x670] sm:$0xff] }
 0x197   : > { %v21156_v36 = vpop.f32.mrf.mxu0  ;;  %v21158_v10 = vpop.f32.mrf.mxu1 }
 0x198   : > { %27638 = vst [vmem:[#allocation99_spill] sm:$0xff] %v21156_v36  ;;  %27639 = vst [vmem:[#allocation100_spill] sm:$0xff] %v21158_v10  ;;  %4399 = vmatpush1.bf16.msra.mxu0 %v14833_v20  ;;  %4450 = vmatpush1.bf16.msra.mxu1 %v14835_v12  ;;  %v14788_v12 = vld [vmem:[%s27254_s1 + $0x618] sm:$0xff] }
 0x199   : > { %v21160_v6 = vpop.f32.mrf.mxu0  ;;  %v21162_v43 = vpop.f32.mrf.mxu1  ;;  %4498 = vmatprep.subr.bf16.mxu0 %v14862_v4  ;;  %4549 = vmatprep.subr.bf16.mxu1 %v14864_v38  ;;  %v14787_v4 = vld [vmem:[%s27254_s1 + $0x610] sm:$0xff]  ;;  %v14840_v10 = vcombine.high %v14788_v12, %v14800_v27 }
 0x19a   : > { %27640 = vst [vmem:[#allocation101_spill] sm:$0xff] %v21160_v6  ;;  %27641 = vst [vmem:[#allocation102_spill] sm:$0xff] %v21162_v43  ;;  %v21195_v43 = vsel %vm4134_vm4, %v4135_v11, %v21173_v48  ;;  %v14861_v6 = vcombine.low %v21121_v13, %v21126_v8  ;;  %v1587_v11 = vadd.f32 %v20832_v47, %v20449_v16  ;;  %v21213_v8 = vld [vmem:[%s27254_s1 + $0x740] sm:$0xff]  ;;  %v21223_v13 = vld [vmem:[%s27254_s1 + $0x748] sm:$0xff] }
 0x19b   : > { %v21164_v14 = vpop.f32.mrf.mxu0  ;;  %v21166_v3 = vpop.f32.mrf.mxu1  ;;  %14782 = vmatmul.mubr.msk.bf16.gmra.mxu0 %vm637_vm1, %v19986_v44  ;;  %14784 = vmatmul.mubr.msk.bf16.gmra.mxu1 %vm637_vm1, %v19986_v44  ;;  %v14837_v47 = vcombine.low %v14787_v4, %v14799_v28 }
 0x19c   : > { %27642 = vst [vmem:[#allocation103_spill] sm:$0xff] %v21164_v14  ;;  %27643 = vst [vmem:[#allocation104_spill] sm:$0xff] %v21166_v3  ;;  %4416 = vmatprep.mubr.bf16.mxu0 %v27573_v30  ;;  %4467 = vmatprep.mubr.bf16.mxu1 %v27573_v30  ;;  %v1536_v3 = vadd.f32 %v20830_v45, %v20447_v15  ;;  %v14838_v14 = vcombine.high %v14787_v4, %v14799_v28 }
 0x19d   : > { %v21178_v39 = vpop.f32.mrf.mxu0  ;;  %v21180_v38 = vpop.f32.mrf.mxu1  ;;  %v1538_v15 = vadd.f32 %v20838_v35, %v20455_v46  ;;  %v1540_v46 = vadd.f32 %v20844_v41, %v20461_v21  ;;  %v1542_v21 = vadd.f32 %v20848_v37, %v20465_v23  ;;  %v1597_v23 = vadd.f32 %v20854_v0, %v20471_v31 }
 0x19e   : > { %27644 = vst [vmem:[#allocation105_spill] sm:$0xff] %v21178_v39  ;;  %27645 = vst [vmem:[#allocation106_spill] sm:$0xff] %v21180_v38  ;;  %v21204_v39 = vld [vmem:[%s27254_s1 + $0x6e0] sm:$0xff] }
 0x19f   : > { %v2059_v20 = vpop.f32.mrf.mxu0  ;;  %v2110_v44 = vpop.f32.mrf.mxu1  ;;  %v14866_v4 = vcombine.high %v21204_v39, %v21213_v8 }
 0x1a0   : > { %v14863_v20 = vcombine.low %v21131_v34, %v21136_v54  ;;  %v21218_v34 = vld [vmem:[%s27254_s1 + $0x6e8] sm:$0xff]  ;;  %v14839_v54 = vcombine.low %v14788_v12, %v14800_v27  ;;  %v1593_v12 = vadd.f32 %v20850_v9, %v20467_v25  ;;  %v1548_v25 = vadd.f32 %v20862_v40, %v20479_v32 }
 0x1a1   : > { %v2060_v44 = vpop.f32.mrf.mxu0  ;;  %v2111_v38 = vpop.f32.mrf.mxu1 }
 0x1a2   : > { %v1589_v38 = vadd.f32 %v20840_v5, %v20457_v19  ;;  %v14868_v19 = vcombine.high %v21218_v34, %v21223_v13  ;;  %v1591_v5 = vadd.f32 %v20846_v56, %v20463_v22 }
 0x1a3   : > { %v2448_v16 = vpop.f32.mrf.mxu0  ;;  %v2499_v45 = vpop.f32.mrf.mxu1  ;;  %14881 = vmatmul.mubr.msk.bf16.vlgmr.msra.gmra.mxu0 %vm637_vm1, %v21195_v43  ;;  %14883 = vmatmul.mubr.msk.bf16.vlgmr.msra.gmra.mxu1 %vm637_vm1, %v21195_v43 }
 0x1a4   : > { %v21233_v44 = vadd.f32 %v2448_v16, %v1536_v3  ;;  %v21235_v36 = vadd.f32 %v2499_v45, %v1587_v11  ;;  %4499 = vmatpush1.bf16.msra.mxu0 %v14861_v6  ;;  %4550 = vmatpush1.bf16.msra.mxu1 %v14863_v20  ;;  %v14790_v45 = vld [vmem:[%s27254_s1 + $0x628] sm:$0xff] }
 0x1a5   : > { %v2450_v35 = vpop.f32.mrf.mxu0  ;;  %v2501_v2 = vpop.f32.mrf.mxu1  ;;  %4426 = vmatprep.mubr.bf16.mxu0 %v27573_v30  ;;  %4477 = vmatprep.mubr.bf16.mxu1 %v27573_v30 }
 0x1a6   : > { %v21247_v6 = vadd.f32 %v2450_v35, %v1538_v15  ;;  %v21249_v3 = vadd.f32 %v2501_v2, %v1589_v38  ;;  %4500 = vmatprep.subr.bf16.mxu0 %v14838_v14  ;;  %4551 = vmatprep.subr.bf16.mxu1 %v14840_v10  ;;  %v1546_v2 = vadd.f32 %v20852_v17, %v20469_v26  ;;  %v14789_v15 = vld [vmem:[%s27254_s1 + $0x620] sm:$0xff] }
 0x1a7   : > { %v2452_v41 = vpop.f32.mrf.mxu0  ;;  %v2503_v28 = vpop.f32.mrf.mxu1  ;;  %v1599_v26 = vadd.f32 %v20864_v7, %v20481_v33  ;;  %v14801_v7 = vld [vmem:[%s27254_s1 + $0x680] sm:$0xff]  ;;  %v14867_v38 = vcombine.low %v21218_v34, %v21223_v13  ;;  %v21323_v34 = vld [vmem:[%s27254_s1 + $0x758] sm:$0xff] }
 0x1a8   : > { %v21255_v27 = vadd.f32 %v2452_v41, %v1540_v46  ;;  %v21257_v20 = vadd.f32 %v2503_v28, %v1591_v5  ;;  %4501 = vmatpush1.bf16.msra.mxu0 %v14837_v47  ;;  %4552 = vmatpush1.bf16.msra.mxu1 %v14839_v54  ;;  %v14802_v47 = vld [vmem:[%s27254_s1 + $0x688] sm:$0xff]  ;;  %v14865_v54 = vcombine.low %v21204_v39, %v21213_v8  ;;  %v21313_v39 = vld [vmem:[%s27254_s1 + $0x750] sm:$0xff]  ;;  %v21318_v8 = vld [vmem:[%s27254_s1 + $0x6f8] sm:$0xff] }
 0x1a9   : > { %v2454_v22 = vpop.f32.mrf.mxu0  ;;  %v2505_v56 = vpop.f32.mrf.mxu1  ;;  %4600 = vmatprep.subr.bf16.mxu0 %v14866_v4  ;;  %4651 = vmatprep.subr.bf16.mxu1 %v14868_v19  ;;  %v21304_v4 = vld [vmem:[%s27254_s1 + $0x6f0] sm:$0xff]  ;;  %v1638_v19 = vadd.f32 %v20890_v59, %v20507_v52  ;;  %v1689_v5 = vadd.f32 %v20892_v55, %v20509_v53  ;;  %v14844_v41 = vcombine.high %v14790_v45, %v14802_v47 }
 0x1aa   : > { %v21263_v37 = vadd.f32 %v2454_v22, %v1542_v21  ;;  %v21265_v10 = vadd.f32 %v2505_v56, %v1593_v12  ;;  %v14842_v21 = vcombine.high %v14789_v15, %v14801_v7  ;;  %v1640_v52 = vadd.f32 %v20898_v18, %v20515_v57 }
 0x1ab   : > { %v2458_v9 = vpop.f32.mrf.mxu0  ;;  %v2509_v14 = vpop.f32.mrf.mxu1  ;;  %14882 = vmatmul.mubr.msk.bf16.gmra.mxu0 %vm637_vm1, %v21173_v48  ;;  %14884 = vmatmul.mubr.msk.bf16.gmra.mxu1 %vm637_vm1, %v21173_v48  ;;  %v14841_v55 = vcombine.low %v14789_v15, %v14801_v7  ;;  %v14843_v13 = vcombine.low %v14790_v45, %v14802_v47  ;;  %v1691_v28 = vadd.f32 %v20900_v49, %v20517_v58  ;;  %v27649_v15 = vld [vmem:[#allocation5_spill] sm:$0xff]  ;;  %v27651_v7 = vld [vmem:[#allocation6_spill] sm:$0xff] }
 0x1ac   : > { %27646 = vst [vmem:[#allocation107_spill] sm:$0xff] %v21263_v37  ;;  %27647 = vst [vmem:[#allocation108_spill] sm:$0xff] %v21265_v10  ;;  %v21275_v17 = vadd.f32 %v2458_v9, %v1546_v2  ;;  %v21277_v31 = vadd.f32 %v2509_v14, %v1597_v23  ;;  %4518 = vmatprep.mubr.bf16.mxu0 %v27573_v30  ;;  %4569 = vmatprep.mubr.bf16.mxu1 %v27573_v30  ;;  %v27648_v14 = vld [vmem:[#allocation57_spill] sm:$0xff] }
 0x1ad   : > { %v2460_v32 = vpop.f32.mrf.mxu0  ;;  %v2511_v0 = vpop.f32.mrf.mxu1  ;;  %v1642_v57 = vadd.f32 %v20904_v42, %v20521_v61  ;;  %v14870_v2 = vcombine.high %v21304_v4, %v21313_v39  ;;  %v14872_v58 = vcombine.high %v21318_v8, %v21323_v34  ;;  %v1693_v49 = vadd.f32 %v20906_v24, %v20523_v62 }
 0x1ae   : > { %v21281_v40 = vadd.f32 %v2460_v32, %v1548_v25  ;;  %v21283_v11 = vadd.f32 %v2511_v0, %v1599_v26  ;;  %v1644_v61 = vadd.f32 %v20908_v60, %v20525_v63  ;;  %v1695_v26 = vadd.f32 %v27648_v14, %v20527_v1  ;;  %v27652_v63 = vld [vmem:[#allocation59_spill] sm:$0xff]  ;;  %v21404_v14 = vld [vmem:[%s27254_s1 + $0x700] sm:$0xff] }
 0x1af   : > { %v2462_v16 = vpop.f32.mrf.mxu0  ;;  %v2513_v33 = vpop.f32.mrf.mxu1  ;;  %v1699_v60 = vadd.f32 %v27652_v63, %v27651_v7  ;;  %v27655_v1 = vld [vmem:[#allocation7_spill] sm:$0xff] }
 0x1b0   : > { %v27650_v16 = vld [vmem:[#allocation58_spill] sm:$0xff] }
 0x1b1   : > { %v2463_v46 = vpop.f32.mrf.mxu0  ;;  %v2514_v35 = vpop.f32.mrf.mxu1  ;;  %v1648_v33 = vadd.f32 %v27650_v16, %v27649_v15  ;;  %v27661_v15 = vld [vmem:[#allocation10_spill] sm:$0xff]  ;;  %v27662_v16 = vld [vmem:[#allocation63_spill] sm:$0xff] }
 0x1b3   : > { %v2550_v53 = vpop.f32.mrf.mxu0  ;;  %v2601_v59 = vpop.f32.mrf.mxu1  ;;  %14885 = vmatmul.mubr.msk.bf16.vlgmr.msra.gmra.mxu0 %vm637_vm1, %v21195_v43  ;;  %14887 = vmatmul.mubr.msk.bf16.vlgmr.msra.gmra.mxu1 %vm637_vm1, %v21195_v43 }
 0x1b4   : > { %v21333_v12 = vadd.f32 %v2550_v53, %v1638_v19  ;;  %v21335_v22 = vadd.f32 %v2601_v59, %v1689_v5  ;;  %4601 = vmatpush1.bf16.msra.mxu0 %v14865_v54  ;;  %4652 = vmatpush1.bf16.msra.mxu1 %v14867_v38  ;;  %v27656_v54 = vld [vmem:[#allocation60_spill] sm:$0xff]  ;;  %v27658_v5 = vld [vmem:[#allocation61_spill] sm:$0xff] }
 0x1b5   : > { %v2552_v18 = vpop.f32.mrf.mxu0  ;;  %v2603_v56 = vpop.f32.mrf.mxu1  ;;  %4528 = vmatprep.mubr.bf16.mxu0 %v27573_v30  ;;  %4579 = vmatprep.mubr.bf16.mxu1 %v27573_v30  ;;  %v1650_v38 = vadd.f32 %v27656_v54, %v27655_v1  ;;  %v27657_v19 = vld [vmem:[#allocation8_spill] sm:$0xff] }
 0x1b6   : > { %v21347_v23 = vadd.f32 %v2552_v18, %v1640_v52  ;;  %v21349_v25 = vadd.f32 %v2603_v56, %v1691_v28  ;;  %4602 = vmatprep.subr.bf16.mxu0 %v14842_v21  ;;  %4653 = vmatprep.subr.bf16.mxu1 %v14844_v41  ;;  %v1701_v21 = vadd.f32 %v27658_v5, %v27657_v19  ;;  %v14791_v28 = vld [vmem:[%s27254_s1 + $0x630] sm:$0xff]  ;;  %v27665_v19 = vld [vmem:[#allocation12_spill] sm:$0xff]  ;;  %v27666_v5 = vld [vmem:[#allocation65_spill] sm:$0xff] }
 0x1b7   : > { %v2554_v42 = vpop.f32.mrf.mxu0  ;;  %v2605_v9 = vpop.f32.mrf.mxu1  ;;  %v14803_v56 = vld [vmem:[%s27254_s1 + $0x690] sm:$0xff] }
 0x1b8   : > { %v21355_v32 = vadd.f32 %v2554_v42, %v1642_v57  ;;  %v21357_v0 = vadd.f32 %v2605_v9, %v1693_v49  ;;  %4603 = vmatpush1.bf16.msra.mxu0 %v14841_v55  ;;  %4654 = vmatpush1.bf16.msra.mxu1 %v14843_v13  ;;  %v14869_v49 = vcombine.low %v21304_v4, %v21313_v39  ;;  %v21413_v4 = vld [vmem:[%s27254_s1 + $0x760] sm:$0xff]  ;;  %v21418_v39 = vld [vmem:[%s27254_s1 + $0x708] sm:$0xff] }
 0x1b9   : > { %v2556_v62 = vpop.f32.mrf.mxu0  ;;  %v2607_v24 = vpop.f32.mrf.mxu1  ;;  %4702 = vmatprep.subr.bf16.mxu0 %v14870_v2  ;;  %4753 = vmatprep.subr.bf16.mxu1 %v14872_v58  ;;  %v14792_v2 = vld [vmem:[%s27254_s1 + $0x638] sm:$0xff]  ;;  %v14846_v7 = vcombine.high %v14791_v28, %v14803_v56 }
 0x1ba   : > { %v21363_v45 = vadd.f32 %v2556_v62, %v1644_v61  ;;  %v21365_v47 = vadd.f32 %v2607_v24, %v1695_v26  ;;  %v14804_v58 = vld [vmem:[%s27254_s1 + $0x698] sm:$0xff]  ;;  %v14871_v61 = vcombine.low %v21318_v8, %v21323_v34  ;;  %v27659_v26 = vld [vmem:[#allocation9_spill] sm:$0xff]  ;;  %v27660_v62 = vld [vmem:[#allocation62_spill] sm:$0xff] }
 0x1bb   : > { %v2560_v46 = vpop.f32.mrf.mxu0  ;;  %v2611_v35 = vpop.f32.mrf.mxu1  ;;  %14886 = vmatmul.mubr.msk.bf16.gmra.mxu0 %vm637_vm1, %v21173_v48  ;;  %14888 = vmatmul.mubr.msk.bf16.gmra.mxu1 %vm637_vm1, %v21173_v48  ;;  %v1740_v24 = vadd.f32 %v27660_v62, %v27659_v26  ;;  %v14848_v63 = vcombine.high %v14792_v2, %v14804_v58  ;;  %v21423_v8 = vld [vmem:[%s27254_s1 + $0x768] sm:$0xff]  ;;  %v27663_v34 = vld [vmem:[#allocation11_spill] sm:$0xff] }
 0x1bc   : > { %27653 = vst [vmem:[#allocation57_spill] sm:$0xff] %v21363_v45  ;;  %27654 = vst [vmem:[#allocation5_spill] sm:$0xff] %v21365_v47  ;;  %v21375_v41 = vadd.f32 %v2560_v46, %v1648_v33  ;;  %v21377_v52 = vadd.f32 %v2611_v35, %v1699_v60  ;;  %4620 = vmatprep.mubr.bf16.mxu0 %v27573_v30  ;;  %4671 = vmatprep.mubr.bf16.mxu1 %v27573_v30  ;;  %v27664_v60 = vld [vmem:[#allocation64_spill] sm:$0xff] }
 0x1bd   : > { %v2562_v53 = vpop.f32.mrf.mxu0  ;;  %v2613_v59 = vpop.f32.mrf.mxu1  ;;  %v1791_v33 = vadd.f32 %v27662_v16, %v27661_v15  ;;  %v1742_v1 = vadd.f32 %v27664_v60, %v27663_v34  ;;  %v14845_v46 = vcombine.low %v14791_v28, %v14803_v56  ;;  %v14847_v35 = vcombine.low %v14792_v2, %v14804_v58  ;;  %v27669_v2 = vld [vmem:[#allocation14_spill] sm:$0xff]  ;;  %v27670_v58 = vld [vmem:[#allocation67_spill] sm:$0xff]  ;;  %v27672_v15 = vld [vmem:[#allocation68_spill] sm:$0xff] }
 0x1be   : > { %v21381_v55 = vadd.f32 %v2562_v53, %v1650_v38  ;;  %v21383_v13 = vadd.f32 %v2613_v59, %v1701_v21  ;;  %v1793_v21 = vadd.f32 %v27666_v5, %v27665_v19  ;;  %v14874_v28 = vcombine.high %v21404_v14, %v21413_v4  ;;  %v27673_v60 = vld [vmem:[#allocation16_spill] sm:$0xff] }
 0x1bf   : > { %v2564_v57 = vpop.f32.mrf.mxu0  ;;  %v2615_v18 = vpop.f32.mrf.mxu1  ;;  %v14876_v56 = vcombine.high %v21418_v39, %v21423_v8  ;;  %v1795_v62 = vadd.f32 %v27670_v58, %v27669_v2 }
 0x1c0   : > { %v27667_v57 = vld [vmem:[#allocation13_spill] sm:$0xff]  ;;  %v27668_v18 = vld [vmem:[#allocation66_spill] sm:$0xff] }
 0x1c1   : > { %v2565_v42 = vpop.f32.mrf.mxu0  ;;  %v2616_v9 = vpop.f32.mrf.mxu1 }
 0x1c2   : > { %v1744_v42 = vadd.f32 %v27668_v18, %v27667_v57  ;;  %v27677_v18 = vld [vmem:[#allocation18_spill] sm:$0xff] }
 0x1c3   : > { %v2652_v54 = vpop.f32.mrf.mxu0  ;;  %v2703_v38 = vpop.f32.mrf.mxu1  ;;  %14889 = vmatmul.mubr.msk.bf16.vlgmr.msra.gmra.mxu0 %vm637_vm1, %v21195_v43  ;;  %14891 = vmatmul.mubr.msk.bf16.vlgmr.msra.gmra.mxu1 %vm637_vm1, %v21195_v43 }
 0x1c4   : > { %v21433_v53 = vadd.f32 %v2652_v54, %v1740_v24  ;;  %v21435_v59 = vadd.f32 %v2703_v38, %v1791_v33  ;;  %4703 = vmatpush1.bf16.msra.mxu0 %v14869_v49  ;;  %4754 = vmatpush1.bf16.msra.mxu1 %v14871_v61  ;;  %v27671_v24 = vld [vmem:[#allocation15_spill] sm:$0xff]  ;;  %v27674_v54 = vld [vmem:[#allocation69_spill] sm:$0xff] }
 0x1c5   : > { %v2654_v9 = vpop.f32.mrf.mxu0  ;;  %v2705_v26 = vpop.f32.mrf.mxu1  ;;  %4630 = vmatprep.mubr.bf16.mxu0 %v27573_v30  ;;  %4681 = vmatprep.mubr.bf16.mxu1 %v27573_v30  ;;  %v1746_v16 = vadd.f32 %v27672_v15, %v27671_v24  ;;  %v1797_v38 = vadd.f32 %v27674_v54, %v27673_v60  ;;  %v27682_v24 = vld [vmem:[#allocation72_spill] sm:$0xff] }
 0x1c6   : > { %v21447_v49 = vadd.f32 %v2654_v9, %v1742_v1  ;;  %v21449_v61 = vadd.f32 %v2705_v26, %v1793_v21  ;;  %4704 = vmatprep.subr.bf16.mxu0 %v14846_v7  ;;  %4755 = vmatprep.subr.bf16.mxu1 %v14848_v63  ;;  %v27675_v7 = vld [vmem:[#allocation17_spill] sm:$0xff]  ;;  %v27676_v63 = vld [vmem:[#allocation70_spill] sm:$0xff]  ;;  %v27678_v9 = vld [vmem:[#allocation71_spill] sm:$0xff] }
 0x1c7   : > { %v2656_v33 = vpop.f32.mrf.mxu0  ;;  %v2707_v34 = vpop.f32.mrf.mxu1  ;;  %v1750_v21 = vadd.f32 %v27676_v63, %v27675_v7  ;;  %v1801_v26 = vadd.f32 %v27678_v9, %v27677_v18  ;;  %v14805_v63 = vld [vmem:[%s27254_s1 + $0x6a0] sm:$0xff]  ;;  %v14806_v18 = vld [vmem:[%s27254_s1 + $0x6a8] sm:$0xff]  ;;  %v14873_v9 = vcombine.low %v21404_v14, %v21413_v4  ;;  %v21513_v14 = vld [vmem:[%s27254_s1 + $0x770] sm:$0xff] }
 0x1c8   : > { %v21455_v19 = vadd.f32 %v2656_v33, %v1744_v42  ;;  %v21457_v5 = vadd.f32 %v2707_v34, %v1795_v62  ;;  %4705 = vmatpush1.bf16.msra.mxu0 %v14845_v46  ;;  %4756 = vmatpush1.bf16.msra.mxu1 %v14847_v35  ;;  %v27681_v42 = vld [vmem:[#allocation19_spill] sm:$0xff]  ;;  %v27683_v35 = vld [vmem:[#allocation20_spill] sm:$0xff] }
 0x1c9   : > { %v2658_v1 = vpop.f32.mrf.mxu0  ;;  %v2709_v57 = vpop.f32.mrf.mxu1  ;;  %4804 = vmatprep.subr.bf16.mxu0 %v14874_v28  ;;  %4855 = vmatprep.subr.bf16.mxu1 %v14876_v56  ;;  %v1752_v62 = vadd.f32 %v27682_v24, %v27681_v42  ;;  %v27684_v28 = vld [vmem:[#allocation73_spill] sm:$0xff]  ;;  %v21518_v4 = vld [vmem:[%s27254_s1 + $0x718] sm:$0xff] }
 0x1ca   : > { %v21463_v2 = vadd.f32 %v2658_v1, %v1746_v16  ;;  %v21465_v58 = vadd.f32 %v2709_v57, %v1797_v38  ;;  %v1803_v56 = vadd.f32 %v27684_v28, %v27683_v35  ;;  %v14793_v1 = vld [vmem:[%s27254_s1 + $0x640] sm:$0xff]  ;;  %v27689_v28 = vld [vmem:[#allocation22_spill] sm:$0xff] }
 0x1cb   : > { %v2662_v15 = vpop.f32.mrf.mxu0  ;;  %v2713_v46 = vpop.f32.mrf.mxu1  ;;  %14890 = vmatmul.mubr.msk.bf16.gmra.mxu0 %vm637_vm1, %v21173_v48  ;;  %14892 = vmatmul.mubr.msk.bf16.gmra.mxu1 %vm637_vm1, %v21173_v48 }
 0x1cc   : > { %27679 = vst [vmem:[#allocation58_spill] sm:$0xff] %v21463_v2  ;;  %27680 = vst [vmem:[#allocation6_spill] sm:$0xff] %v21465_v58  ;;  %v21475_v33 = vadd.f32 %v2662_v15, %v1750_v21  ;;  %v21477_v16 = vadd.f32 %v2713_v46, %v1801_v26  ;;  %4722 = vmatprep.mubr.bf16.mxu0 %v27573_v30  ;;  %4773 = vmatprep.mubr.bf16.mxu1 %v27573_v30  ;;  %v14794_v21 = vld [vmem:[%s27254_s1 + $0x648] sm:$0xff] }
 0x1cd   : > { %v2664_v34 = vpop.f32.mrf.mxu0  ;;  %v2715_v60 = vpop.f32.mrf.mxu1  ;;  %v14875_v26 = vcombine.low %v21418_v39, %v21423_v8  ;;  %v27687_v15 = vld [vmem:[#allocation21_spill] sm:$0xff]  ;;  %v27688_v46 = vld [vmem:[#allocation74_spill] sm:$0xff]  ;;  %v21523_v39 = vld [vmem:[%s27254_s1 + $0x778] sm:$0xff] }
 0x1ce   : > { %v21481_v54 = vadd.f32 %v2664_v34, %v1752_v62  ;;  %v21483_v38 = vadd.f32 %v2715_v60, %v1803_v56  ;;  %v21504_v62 = vld [vmem:[%s27254_s1 + $0x710] sm:$0xff]  ;;  %v1842_v35 = vadd.f32 %v27688_v46, %v27687_v15  ;;  %v14850_v60 = vcombine.high %v14793_v1, %v14805_v63  ;;  %v27694_v58 = vld [vmem:[#allocation77_spill] sm:$0xff] }
 0x1cf   : > { %v2666_v57 = vpop.f32.mrf.mxu0  ;;  %v2717_v7 = vpop.f32.mrf.mxu1  ;;  %v27690_v56 = vld [vmem:[#allocation75_spill] sm:$0xff]  ;;  %v14849_v46 = vcombine.low %v14793_v1, %v14805_v63  ;;  %v14878_v1 = vcombine.high %v21504_v62, %v21513_v14  ;;  %v27699_v63 = vld [vmem:[#allocation26_spill] sm:$0xff] }
 0x1d0   : > { %27685 = vst [vmem:[#allocation59_spill] sm:$0xff] %v21481_v54  ;;  %27686 = vst [vmem:[#allocation7_spill] sm:$0xff] %v21483_v38  ;;  %v1893_v34 = vadd.f32 %v27690_v56, %v27689_v28  ;;  %v14852_v57 = vcombine.high %v14794_v21, %v14806_v18  ;;  %v27691_v8 = vld [vmem:[#allocation23_spill] sm:$0xff]  ;;  %v27692_v7 = vld [vmem:[#allocation76_spill] sm:$0xff]  ;;  %v14851_v28 = vcombine.low %v14794_v21, %v14806_v18 }
 0x1d1   : > { %v2667_v42 = vpop.f32.mrf.mxu0  ;;  %v2718_v24 = vpop.f32.mrf.mxu1  ;;  %v27693_v56 = vld [vmem:[#allocation24_spill] sm:$0xff]  ;;  %v27700_v21 = vld [vmem:[#allocation79_spill] sm:$0xff] }
 0x1d2   : > { %v1844_v42 = vadd.f32 %v27692_v7, %v27691_v8  ;;  %v1895_v2 = vadd.f32 %v27694_v58, %v27693_v56  ;;  %v27697_v8 = vld [vmem:[#allocation25_spill] sm:$0xff]  ;;  %v27698_v7 = vld [vmem:[#allocation78_spill] sm:$0xff]  ;;  %v14880_v58 = vcombine.high %v21518_v4, %v21523_v39  ;;  %v1897_v18 = vadd.f32 %v27700_v21, %v27699_v63  ;;  %v27708_v63 = vld [vmem:[#allocation83_spill] sm:$0xff] }
 0x1d3   : > { %v2754_v24 = vpop.f32.mrf.mxu0  ;;  %v2805_v15 = vpop.f32.mrf.mxu1  ;;  %14893 = vmatmul.mubr.msk.bf16.vlgmr.msra.gmra.mxu0 %vm637_vm1, %v21195_v43  ;;  %14895 = vmatmul.mubr.msk.bf16.vlgmr.msra.gmra.mxu1 %vm637_vm1, %v21195_v43  ;;  %v1846_v10 = vadd.f32 %v27698_v7, %v27697_v8  ;;  %v27703_v8 = vld [vmem:[#allocation28_spill] sm:$0xff]  ;;  %v27704_v7 = vld [vmem:[#allocation81_spill] sm:$0xff] }
 0x1d4   : > { %v21533_v47 = vadd.f32 %v2754_v24, %v1842_v35  ;;  %v21535_v45 = vadd.f32 %v2805_v15, %v1893_v34  ;;  %4805 = vmatpush1.bf16.msra.mxu0 %v14873_v9  ;;  %4856 = vmatpush1.bf16.msra.mxu1 %v14875_v26  ;;  %v27701_v35 = vld [vmem:[#allocation27_spill] sm:$0xff]  ;;  %v27702_v34 = vld [vmem:[#allocation80_spill] sm:$0xff] }
 0x1d5   : > { %v2756_v37 = vpop.f32.mrf.mxu0  ;;  %v2807_v38 = vpop.f32.mrf.mxu1  ;;  %4732 = vmatprep.mubr.bf16.mxu0 %v27573_v30  ;;  %4783 = vmatprep.mubr.bf16.mxu1 %v27573_v30  ;;  %v1848_v24 = vadd.f32 %v27702_v34, %v27701_v35 }
 0x1d6   : > { %27695 = vst [vmem:[#allocation60_spill] sm:$0xff] %v21533_v47  ;;  %27696 = vst [vmem:[#allocation8_spill] sm:$0xff] %v21535_v45  ;;  %v21547_v9 = vadd.f32 %v2756_v37, %v1844_v42  ;;  %v21549_v26 = vadd.f32 %v2807_v38, %v1895_v2  ;;  %4806 = vmatprep.subr.bf16.mxu0 %v14850_v60  ;;  %4857 = vmatprep.subr.bf16.mxu1 %v14852_v57  ;;  %v27705_v2 = vld [vmem:[#allocation29_spill] sm:$0xff]  ;;  %v27706_v38 = vld [vmem:[#allocation82_spill] sm:$0xff] }
 0x1d7   : > { %v2758_v15 = vpop.f32.mrf.mxu0  ;;  %v2809_v56 = vpop.f32.mrf.mxu1  ;;  %v1899_v45 = vadd.f32 %v27704_v7, %v27703_v8  ;;  %v1852_v60 = vadd.f32 %v27706_v38, %v27705_v2  ;;  %v27707_v57 = vld [vmem:[#allocation30_spill] sm:$0xff] }
 0x1d8   : > { %v21555_v47 = vadd.f32 %v2758_v15, %v1846_v10  ;;  %v21557_v54 = vadd.f32 %v2809_v56, %v1897_v18  ;;  %4807 = vmatpush1.bf16.msra.mxu0 %v14849_v46  ;;  %4858 = vmatpush1.bf16.msra.mxu1 %v14851_v28  ;;  %v1903_v21 = vadd.f32 %v27708_v63, %v27707_v57  ;;  %v27711_v10 = vld [vmem:[#allocation31_spill] sm:$0xff]  ;;  %v27712_v15 = vld [vmem:[#allocation84_spill] sm:$0xff] }
 0x1d9   : > { %v2760_v37 = vpop.f32.mrf.mxu0  ;;  %v2811_v42 = vpop.f32.mrf.mxu1  ;;  %4906 = vmatprep.subr.bf16.mxu0 %v14878_v1  ;;  %4957 = vmatprep.subr.bf16.mxu1 %v14880_v58  ;;  %v1854_v18 = vadd.f32 %v27712_v15, %v27711_v10  ;;  %v27713_v28 = vld [vmem:[#allocation32_spill] sm:$0xff]  ;;  %v27714_v1 = vld [vmem:[#allocation85_spill] sm:$0xff]  ;;  %v14795_v2 = vld [vmem:[%s27254_s1 + $0x650] sm:$0xff]  ;;  %v14877_v10 = vcombine.low %v21504_v62, %v21513_v14  ;;  %v14879_v15 = vcombine.low %v21518_v4, %v21523_v39 }
 0x1da   : > { %v21563_v35 = vadd.f32 %v2760_v37, %v1848_v24  ;;  %v21565_v34 = vadd.f32 %v2811_v42, %v1899_v45  ;;  %v1905_v58 = vadd.f32 %v27714_v1, %v27713_v28  ;;  %v14796_v63 = vld [vmem:[%s27254_s1 + $0x658] sm:$0xff]  ;;  %v27718_v28 = vld [vmem:[#allocation86_spill] sm:$0xff] }
 0x1db   : > { %v2764_v56 = vpop.f32.mrf.mxu0  ;;  %v2815_v46 = vpop.f32.mrf.mxu1  ;;  %14894 = vmatmul.mubr.msk.bf16.gmra.mxu0 %vm637_vm1, %v21173_v48  ;;  %14896 = vmatmul.mubr.msk.bf16.gmra.mxu1 %vm637_vm1, %v21173_v48  ;;  %v27722_v4 = vld [vmem:[#allocation36_spill] sm:$0xff] }
 0x1dc   : > { %27709 = vst [vmem:[#allocation61_spill] sm:$0xff] %v21563_v35  ;;  %27710 = vst [vmem:[#allocation9_spill] sm:$0xff] %v21565_v34  ;;  %v21575_v8 = vadd.f32 %v2764_v56, %v1852_v60  ;;  %v21577_v24 = vadd.f32 %v2815_v46, %v1903_v21  ;;  %4824 = vmatprep.mubr.bf16.mxu0 %v27573_v30  ;;  %4875 = vmatprep.mubr.bf16.mxu1 %v27573_v30  ;;  %v14807_v60 = vld [vmem:[%s27254_s1 + $0x6b0] sm:$0xff]  ;;  %v14808_v21 = vld [vmem:[%s27254_s1 + $0x6b8] sm:$0xff] }
 0x1dd   : > { %v2766_v45 = vpop.f32.mrf.mxu0  ;;  %v2817_v7 = vpop.f32.mrf.mxu1  ;;  %v27717_v46 = vld [vmem:[#allocation33_spill] sm:$0xff]  ;;  %v27721_v34 = vld [vmem:[#allocation35_spill] sm:$0xff]  ;;  %v14853_v62 = vcombine.low %v14795_v2, %v14807_v60  ;;  %v14855_v14 = vcombine.low %v14796_v63, %v14808_v21  ;;  %v1997_v39 = vadd.f32 %v21080_v29, %v27722_v4  ;;  %v27730_v4 = vld [vmem:[#allocation92_spill] sm:$0xff] }
 0x1de   : > { %v21581_v37 = vadd.f32 %v2766_v45, %v1854_v18  ;;  %v21583_v42 = vadd.f32 %v2817_v7, %v1905_v58  ;;  %v1944_v1 = vadd.f32 %v27718_v28, %v27717_v46  ;;  %v27719_v58 = vld [vmem:[#allocation34_spill] sm:$0xff]  ;;  %v27720_v45 = vld [vmem:[#allocation87_spill] sm:$0xff]  ;;  %v1946_v35 = vadd.f32 %v21078_v51, %v27721_v34  ;;  %v27723_v51 = vld [vmem:[#allocation37_spill] sm:$0xff] }
 0x1df   : > { %v2768_v38 = vpop.f32.mrf.mxu0  ;;  %v2819_v57 = vpop.f32.mrf.mxu1  ;;  %v1995_v7 = vadd.f32 %v27720_v45, %v27719_v58  ;;  %v27724_v34 = vld [vmem:[#allocation88_spill] sm:$0xff] }
 0x1e0   : > { %27715 = vst [vmem:[#allocation62_spill] sm:$0xff] %v21581_v37  ;;  %27716 = vst [vmem:[#allocation10_spill] sm:$0xff] %v21583_v42  ;;  %v14854_v38 = vcombine.high %v14795_v2, %v14807_v60  ;;  %v14856_v57 = vcombine.high %v14796_v63, %v14808_v21  ;;  %v1948_v46 = vadd.f32 %v27724_v34, %v27723_v51  ;;  %v27725_v2 = vld [vmem:[#allocation38_spill] sm:$0xff]  ;;  %v27726_v60 = vld [vmem:[#allocation89_spill] sm:$0xff] }
 0x1e1   : > { %v2769_v18 = vpop.f32.mrf.mxu0  ;;  %v2820_v56 = vpop.f32.mrf.mxu1  ;;  %v1999_v63 = vadd.f32 %v27726_v60, %v27725_v2  ;;  %v27731_v51 = vld [vmem:[#allocation42_spill] sm:$0xff] }
 0x1e3   : > { %v2856_v42 = vpop.f32.mrf.mxu0  ;;  %v2907_v37 = vpop.f32.mrf.mxu1  ;;  %14897 = vmatmul.mubr.msk.bf16.vlgmr.msra.gmra.mxu0 %vm637_vm1, %v21195_v43  ;;  %14899 = vmatmul.mubr.msk.bf16.vlgmr.msra.gmra.mxu1 %vm637_vm1, %v21195_v43 }
 0x1e4   : > { %v21613_v18 = vadd.f32 %v2856_v42, %v1944_v1  ;;  %v21615_v56 = vadd.f32 %v2907_v37, %v1995_v7  ;;  %4907 = vmatpush1.bf16.msra.mxu0 %v14877_v10  ;;  %4958 = vmatpush1.bf16.msra.mxu1 %v14879_v15  ;;  %v27729_v7 = vld [vmem:[#allocation41_spill] sm:$0xff] }
 0x1e5   : > { %v2858_v28 = vpop.f32.mrf.mxu0  ;;  %v2909_v58 = vpop.f32.mrf.mxu1  ;;  %4834 = vmatprep.mubr.bf16.mxu0 %v27573_v30  ;;  %4885 = vmatprep.mubr.bf16.mxu1 %v27573_v30 }
 0x1e6   : > { %v21623_v21 = vadd.f32 %v2858_v28, %v1946_v35  ;;  %v21625_v29 = vadd.f32 %v2909_v58, %v1997_v39  ;;  %4908 = vmatprep.subr.bf16.mxu0 %v14854_v38  ;;  %4959 = vmatprep.subr.bf16.mxu1 %v14856_v57  ;;  %v1954_v35 = vadd.f32 %v27730_v4, %v27729_v7  ;;  %v27732_v39 = vld [vmem:[#allocation93_spill] sm:$0xff]  ;;  %v27733_v38 = vld [vmem:[#allocation43_spill] sm:$0xff]  ;;  %v27734_v57 = vld [vmem:[#allocation94_spill] sm:$0xff] }
 0x1e7   : > { %v2860_v37 = vpop.f32.mrf.mxu0  ;;  %v2911_v42 = vpop.f32.mrf.mxu1  ;;  %v2005_v34 = vadd.f32 %v27732_v39, %v27731_v51  ;;  %v1956_v28 = vadd.f32 %v27734_v57, %v27733_v38 }
 0x1e8   : > { %v21627_v10 = vadd.f32 %v2860_v37, %v1948_v46  ;;  %v21629_v15 = vadd.f32 %v2911_v42, %v1999_v63  ;;  %4909 = vmatpush1.bf16.msra.mxu0 %v14853_v62  ;;  %4960 = vmatpush1.bf16.msra.mxu1 %v14855_v14  ;;  %v27735_v62 = vld [vmem:[#allocation44_spill] sm:$0xff]  ;;  %v27736_v14 = vld [vmem:[#allocation95_spill] sm:$0xff] }
 0x1e9   : > { %v21631_v1 = vpop.f32.mrf.mxu0  ;;  %v21633_v45 = vpop.f32.mrf.mxu1  ;;  %v2007_v2 = vadd.f32 %v27736_v14, %v27735_v62  ;;  %v27741_v62 = vld [vmem:[#allocation96_spill] sm:$0xff]  ;;  %v27744_v14 = vld [vmem:[#allocation47_spill] sm:$0xff] }
 0x1ea   : > { %27727 = vst [vmem:[#allocation63_spill] sm:$0xff] %v21631_v1  ;;  %27728 = vst [vmem:[#allocation11_spill] sm:$0xff] %v21633_v45  ;;  %v27740_v45 = vld [vmem:[#allocation45_spill] sm:$0xff]  ;;  %v2048_v1 = vadd.f32 %v21146_v50, %v27744_v14 }
 0x1eb   : > { %v2866_v58 = vpop.f32.mrf.mxu0  ;;  %v2917_v46 = vpop.f32.mrf.mxu1  ;;  %14898 = vmatmul.mubr.msk.bf16.gmra.mxu0 %vm637_vm1, %v21173_v48  ;;  %14900 = vmatmul.mubr.msk.bf16.gmra.mxu1 %vm637_vm1, %v21173_v48 }
 0x1ec   : > { %v21647_v60 = vadd.f32 %v2866_v58, %v1954_v35  ;;  %v21649_v63 = vadd.f32 %v2917_v46, %v2005_v34  ;;  %4926 = vmatprep.mubr.bf16.mxu0 %v27573_v30  ;;  %4977 = vmatprep.mubr.bf16.mxu1 %v27573_v30  ;;  %v2046_v35 = vadd.f32 %v27741_v62, %v27740_v45  ;;  %v27742_v58 = vld [vmem:[#allocation46_spill] sm:$0xff]  ;;  %v27743_v34 = vld [vmem:[#allocation97_spill] sm:$0xff] }
 0x1ed   : > { %v2868_v37 = vpop.f32.mrf.mxu0  ;;  %v2919_v42 = vpop.f32.mrf.mxu1  ;;  %v2097_v46 = vadd.f32 %v27743_v34, %v27742_v58  ;;  %v27751_v62 = vld [vmem:[#allocation50_spill] sm:$0xff]  ;;  %v27752_v58 = vld [vmem:[#allocation100_spill] sm:$0xff] }
 0x1ee   : > { %27737 = vst [vmem:[#allocation64_spill] sm:$0xff] %v21647_v60  ;;  %27738 = vst [vmem:[#allocation12_spill] sm:$0xff] %v21649_v63  ;;  %v21653_v7 = vadd.f32 %v2868_v37, %v1956_v28  ;;  %v21655_v4 = vadd.f32 %v2919_v42, %v2007_v2  ;;  %v27745_v28 = vld [vmem:[#allocation48_spill] sm:$0xff]  ;;  %v27746_v2 = vld [vmem:[#allocation98_spill] sm:$0xff]  ;;  %v2101_v34 = vadd.f32 %v27752_v58, %v27751_v62 }
 0x1ef   : > { %v2870_v51 = vpop.f32.mrf.mxu0  ;;  %v2921_v39 = vpop.f32.mrf.mxu1  ;;  %v2099_v37 = vadd.f32 %v27746_v2, %v27745_v28 }
 0x1f0   : > { %27739 = vst [vmem:[#allocation65_spill] sm:$0xff] %v21655_v4  ;;  %v27749_v39 = vld [vmem:[#allocation49_spill] sm:$0xff]  ;;  %v27759_v4 = vld [vmem:[#allocation104_spill] sm:$0xff] }
 0x1f1   : > { %v2871_v38 = vpop.f32.mrf.mxu0  ;;  %v2922_v57 = vpop.f32.mrf.mxu1 }
 0x1f2   : > { %v27750_v38 = vld [vmem:[#allocation99_spill] sm:$0xff] }
 0x1f3   : > { %v2958_v63 = vpop.f32.mrf.mxu0  ;;  %v3009_v60 = vpop.f32.mrf.mxu1  ;;  %14901 = vmatmul.mubr.msk.bf16.vlgmr.msra.gmra.mxu0 %vm637_vm1, %v21195_v43  ;;  %14903 = vmatmul.mubr.msk.bf16.vlgmr.msra.gmra.mxu1 %vm637_vm1, %v21195_v43  ;;  %v2050_v57 = vadd.f32 %v27750_v38, %v27749_v39  ;;  %v27758_v38 = vld [vmem:[#allocation54_spill] sm:$0xff] }
 0x1f4   : > { %v21669_v42 = vadd.f32 %v2958_v63, %v2046_v35  ;;  %v21671_v45 = vadd.f32 %v3009_v60, %v2097_v46  ;;  %4936 = vmatprep.mubr.bf16.mxu0 %v27573_v30  ;;  %4987 = vmatprep.mubr.bf16.mxu1 %v27573_v30  ;;  %v2107_v62 = vadd.f32 %v27759_v4, %v27758_v38 }
 0x1f5   : > { %v2960_v50 = vpop.f32.mrf.mxu0  ;;  %v3011_v51 = vpop.f32.mrf.mxu1 }
 0x1f6   : > { %27747 = vst [vmem:[#allocation13_spill] sm:$0xff] %v21669_v42  ;;  %27748 = vst [vmem:[#allocation66_spill] sm:$0xff] %v21671_v45  ;;  %v21679_v43 = vadd.f32 %v2960_v50, %v2048_v1  ;;  %v21681_v14 = vadd.f32 %v3011_v51, %v2099_v37  ;;  %v27756_v45 = vld [vmem:[#allocation53_spill] sm:$0xff]  ;;  %v27757_v42 = vld [vmem:[#allocation103_spill] sm:$0xff] }
 0x1f7   : > { %v2962_v63 = vpop.f32.mrf.mxu0  ;;  %v3013_v35 = vpop.f32.mrf.mxu1  ;;  %v2056_v39 = vadd.f32 %v27757_v42, %v27756_v45  ;;  %v27760_v1 = vld [vmem:[#allocation55_spill] sm:$0xff]  ;;  %v27761_v50 = vld [vmem:[#allocation105_spill] sm:$0xff] }
 0x1f8   : > { %v21683_v60 = vadd.f32 %v2962_v63, %v2050_v57  ;;  %v21685_v46 = vadd.f32 %v3013_v35, %v2101_v34  ;;  %v2058_v37 = vadd.f32 %v27761_v50, %v27760_v1  ;;  %v27762_v57 = vld [vmem:[#allocation56_spill] sm:$0xff]  ;;  %v27763_v34 = vld [vmem:[#allocation106_spill] sm:$0xff] }
 0x1f9   : > { %v21687_v28 = vpop.f32.mrf.mxu0  ;;  %v21689_v2 = vpop.f32.mrf.mxu1  ;;  %v2109_v63 = vadd.f32 %v27763_v34, %v27762_v57 }
 0x1fa   : > { %27753 = vst [vmem:[#allocation14_spill] sm:$0xff] %v21685_v46  ;;  %27754 = vst [vmem:[#allocation67_spill] sm:$0xff] %v21687_v28 }
 0x1fb   : > { %27755 = vst [vmem:[#allocation15_spill] sm:$0xff] %v21689_v2  ;;  %v2968_v51 = vpop.f32.mrf.mxu0  ;;  %v3019_v58 = vpop.f32.mrf.mxu1  ;;  %14902 = vmatmul.mubr.msk.bf16.gmra.mxu0 %vm637_vm1, %v21173_v48  ;;  %14904 = vmatmul.mubr.msk.bf16.gmra.mxu1 %vm637_vm1, %v21173_v48 }
 0x1fc   : > { %v21703_v35 = vadd.f32 %v2968_v51, %v2056_v39  ;;  %v21705_v42 = vadd.f32 %v3019_v58, %v2107_v62  ;;  %5224 = vmatprep.mubr.bf16.mxu0 %v27573_v30  ;;  %5267 = vmatprep.mubr.bf16.mxu1 %v27573_v30 }
 0x1fd   : > { %v2970_v4 = vpop.f32.mrf.mxu0  ;;  %v3021_v45 = vpop.f32.mrf.mxu1 }
 0x1fe   : > { %v21709_v38 = vadd.f32 %v2970_v4, %v2058_v37  ;;  %v21711_v1 = vadd.f32 %v3021_v45, %v2109_v63 }
 0x1ff   : > { %v2972_v50 = vpop.f32.mrf.mxu0  ;;  %v3023_v2 = vpop.f32.mrf.mxu1 }
 0x201   : > { %v2973_v48 = vpop.f32.mrf.mxu0  ;;  %v3024_v28 = vpop.f32.mrf.mxu1 }
 0x203   : > { %v3435_v46 = vpop.f32.mrf.mxu0  ;;  %v3486_v57 = vpop.f32.mrf.mxu1 }
 0x204   : > { %v21714_v39 = vadd.f32 %v3435_v46, %v21233_v44  ;;  %v21717_v62 = vadd.f32 %v3486_v57, %v21235_v36 }
 0x205   : > { %v3437_v51 = vpop.f32.mrf.mxu0  ;;  %v3488_v58 = vpop.f32.mrf.mxu1 }
 0x206   : > { %v21720_v34 = vadd.f32 %v3437_v51, %v21247_v6  ;;  %v21723_v37 = vadd.f32 %v3488_v58, %v21249_v3 }
 0x207   : > { %v3439_v63 = vpop.f32.mrf.mxu0  ;;  %v3490_v2 = vpop.f32.mrf.mxu1 }
 0x208   : > { %v21726_v28 = vadd.f32 %v3439_v63, %v21255_v27  ;;  %v21729_v4 = vadd.f32 %v3490_v2, %v21257_v20 }
 0x209   : > { %v21731_v44 = vpop.f32.mrf.mxu0  ;;  %v21733_v36 = vpop.f32.mrf.mxu1 }
 0x20b   : > { %v3445_v46 = vpop.f32.mrf.mxu0  ;;  %v3496_v45 = vpop.f32.mrf.mxu1 }
 0x20c   : > { %v21736_v6 = vadd.f32 %v3445_v46, %v21275_v17  ;;  %v21739_v3 = vadd.f32 %v3496_v45, %v21277_v31 }
 0x20d   : > { %v3447_v50 = vpop.f32.mrf.mxu0  ;;  %v3498_v48 = vpop.f32.mrf.mxu1 }
 0x20e   : > { %v21742_v27 = vadd.f32 %v3447_v50, %v21281_v40  ;;  %v21745_v20 = vadd.f32 %v3498_v48, %v21283_v11 }
 0x20f   : > { %v3449_v57 = vpop.f32.mrf.mxu0  ;;  %v3500_v51 = vpop.f32.mrf.mxu1 }
 0x211   : > { %v3450_v58 = vpop.f32.mrf.mxu0  ;;  %v3501_v63 = vpop.f32.mrf.mxu1 }
 0x213   : > { %v3537_v2 = vpop.f32.mrf.mxu0  ;;  %v3588_v30 = vpop.f32.mrf.mxu1 }
 0x214   : > { %v21748_v17 = vadd.f32 %v3537_v2, %v21333_v12  ;;  %v21751_v31 = vadd.f32 %v3588_v30, %v21335_v22 }
 0x215   : > { %v3539_v46 = vpop.f32.mrf.mxu0  ;;  %v3590_v45 = vpop.f32.mrf.mxu1 }
 0x216   : > { %v21754_v40 = vadd.f32 %v3539_v46, %v21347_v23  ;;  %v21757_v11 = vadd.f32 %v3590_v45, %v21349_v25 }
 0x217   : > { %v3541_v50 = vpop.f32.mrf.mxu0  ;;  %v3592_v48 = vpop.f32.mrf.mxu1 }
 0x218   : > { %v21760_v57 = vadd.f32 %v3541_v50, %v21355_v32  ;;  %v21763_v51 = vadd.f32 %v3592_v48, %v21357_v0 }
 0x219   : > { %v21765_v12 = vpop.f32.mrf.mxu0  ;;  %v21767_v30 = vpop.f32.mrf.mxu1 }
 0x21a   : > { %27764 = vst [vmem:[#allocation68_spill] sm:$0xff] %v21760_v57  ;;  %27765 = vst [vmem:[#allocation16_spill] sm:$0xff] %v21763_v51 }
 0x21b   : > { %v3547_v22 = vpop.f32.mrf.mxu0  ;;  %v3598_v58 = vpop.f32.mrf.mxu1 }
 0x21c   : > { %v21770_v23 = vadd.f32 %v3547_v22, %v21375_v41  ;;  %v21773_v25 = vadd.f32 %v3598_v58, %v21377_v52 }
 0x21d   : > { %v3549_v63 = vpop.f32.mrf.mxu0  ;;  %v3600_v2 = vpop.f32.mrf.mxu1 }
 0x21e   : > { %27766 = vst [vmem:[#allocation69_spill] sm:$0xff] %v21770_v23  ;;  %27767 = vst [vmem:[#allocation17_spill] sm:$0xff] %v21773_v25  ;;  %v21776_v32 = vadd.f32 %v3549_v63, %v21381_v55  ;;  %v21779_v0 = vadd.f32 %v3600_v2, %v21383_v13  ;;  %v27801_v23 = vld [vmem:[#allocation13_spill] sm:$0xff] }
 0x21f   : > { %v3551_v46 = vpop.f32.mrf.mxu0  ;;  %v3602_v45 = vpop.f32.mrf.mxu1 }
 0x220   : > { %27768 = vst [vmem:[#allocation70_spill] sm:$0xff] %v21776_v32  ;;  %27769 = vst [vmem:[#allocation18_spill] sm:$0xff] %v21779_v0 }
 0x221   : > { %v3552_v50 = vpop.f32.mrf.mxu0  ;;  %v3603_v48 = vpop.f32.mrf.mxu1 }
 0x223   : > { %v3639_v51 = vpop.f32.mrf.mxu0  ;;  %v3690_v57 = vpop.f32.mrf.mxu1 }
 0x224   : > { %v21782_v41 = vadd.f32 %v3639_v51, %v21433_v53  ;;  %v21785_v52 = vadd.f32 %v3690_v57, %v21435_v59 }
 0x225   : > { %v3641_v22 = vpop.f32.mrf.mxu0  ;;  %v3692_v58 = vpop.f32.mrf.mxu1 }
 0x226   : > { %27770 = vst [vmem:[#allocation71_spill] sm:$0xff] %v21782_v41  ;;  %27771 = vst [vmem:[#allocation19_spill] sm:$0xff] %v21785_v52  ;;  %v21788_v55 = vadd.f32 %v3641_v22, %v21447_v49  ;;  %v21791_v13 = vadd.f32 %v3692_v58, %v21449_v61  ;;  %v27780_v22 = vld [vmem:[#allocation59_spill] sm:$0xff] }
 0x227   : > { %v3643_v63 = vpop.f32.mrf.mxu0  ;;  %v3694_v2 = vpop.f32.mrf.mxu1  ;;  %v27782_v58 = vld [vmem:[#allocation7_spill] sm:$0xff] }
 0x228   : > { %27772 = vst [vmem:[#allocation72_spill] sm:$0xff] %v21788_v55  ;;  %27773 = vst [vmem:[#allocation20_spill] sm:$0xff] %v21791_v13  ;;  %v21794_v46 = vadd.f32 %v3643_v63, %v21455_v19  ;;  %v21797_v45 = vadd.f32 %v3694_v2, %v21457_v5 }
 0x229   : > { %v21799_v53 = vpop.f32.mrf.mxu0  ;;  %v21801_v59 = vpop.f32.mrf.mxu1 }
 0x22a   : > { %27774 = vst [vmem:[#allocation73_spill] sm:$0xff] %v21794_v46  ;;  %27775 = vst [vmem:[#allocation21_spill] sm:$0xff] %v21797_v45 }
 0x22b   : > { %27776 = vst [vmem:[#allocation74_spill] sm:$0xff] %v21799_v53  ;;  %27777 = vst [vmem:[#allocation22_spill] sm:$0xff] %v21801_v59  ;;  %v3649_v57 = vpop.f32.mrf.mxu0  ;;  %v3700_v51 = vpop.f32.mrf.mxu1  ;;  %v27784_v59 = vld [vmem:[#allocation60_spill] sm:$0xff] }
 0x22c   : > { %v21804_v49 = vadd.f32 %v3649_v57, %v21475_v33  ;;  %v21807_v61 = vadd.f32 %v3700_v51, %v21477_v16  ;;  %v27785_v57 = vld [vmem:[#allocation8_spill] sm:$0xff] }
 0x22d   : > { %v3651_v50 = vpop.f32.mrf.mxu0  ;;  %v3702_v48 = vpop.f32.mrf.mxu1 }
 0x22e   : > { %27778 = vst [vmem:[#allocation75_spill] sm:$0xff] %v21804_v49  ;;  %27779 = vst [vmem:[#allocation23_spill] sm:$0xff] %v21807_v61  ;;  %v21810_v19 = vadd.f32 %v3651_v50, %v27780_v22  ;;  %v21813_v5 = vadd.f32 %v3702_v48, %v27782_v58 }
 0x22f   : > { %v3653_v63 = vpop.f32.mrf.mxu0  ;;  %v3704_v2 = vpop.f32.mrf.mxu1 }
 0x230   : > { %27781 = vst [vmem:[#allocation76_spill] sm:$0xff] %v21810_v19  ;;  %27783 = vst [vmem:[#allocation24_spill] sm:$0xff] %v21813_v5 }
 0x231   : > { %v3654_v45 = vpop.f32.mrf.mxu0  ;;  %v3705_v46 = vpop.f32.mrf.mxu1 }
 0x233   : > { %v3741_v13 = vpop.f32.mrf.mxu0  ;;  %v3792_v55 = vpop.f32.mrf.mxu1 }
 0x234   : > { %v21816_v33 = vadd.f32 %v3741_v13, %v27784_v59  ;;  %v21819_v16 = vadd.f32 %v3792_v55, %v27785_v57  ;;  %v27786_v57 = vld [vmem:[#allocation62_spill] sm:$0xff] }
 0x235   : > { %v3743_v51 = vpop.f32.mrf.mxu0  ;;  %v3794_v61 = vpop.f32.mrf.mxu1 }
 0x236   : > { %v21822_v50 = vadd.f32 %v3743_v51, %v21547_v9  ;;  %v21825_v48 = vadd.f32 %v3794_v61, %v21549_v26  ;;  %v27787_v51 = vld [vmem:[#allocation10_spill] sm:$0xff] }
 0x237   : > { %v3745_v22 = vpop.f32.mrf.mxu0  ;;  %v3796_v58 = vpop.f32.mrf.mxu1 }
 0x238   : > { %v21828_v46 = vadd.f32 %v3745_v22, %v21555_v47  ;;  %v21831_v45 = vadd.f32 %v3796_v58, %v21557_v54 }
 0x239   : > { %v21833_v13 = vpop.f32.mrf.mxu0  ;;  %v21835_v55 = vpop.f32.mrf.mxu1 }
 0x23b   : > { %v3751_v59 = vpop.f32.mrf.mxu0  ;;  %v3802_v63 = vpop.f32.mrf.mxu1 }
 0x23c   : > { %v21838_v9 = vadd.f32 %v3751_v59, %v21575_v8  ;;  %v21841_v26 = vadd.f32 %v3802_v63, %v21577_v24 }
 0x23d   : > { %v3753_v61 = vpop.f32.mrf.mxu0  ;;  %v3804_v2 = vpop.f32.mrf.mxu1 }
 0x23e   : > { %v21844_v47 = vadd.f32 %v3753_v61, %v27786_v57  ;;  %v21847_v54 = vadd.f32 %v3804_v2, %v27787_v51 }
 0x23f   : > { %v3755_v22 = vpop.f32.mrf.mxu0  ;;  %v3806_v58 = vpop.f32.mrf.mxu1 }
 0x240   : > { %v27794_v22 = vld [vmem:[#allocation64_spill] sm:$0xff] }
 0x241   : > { %v3756_v5 = vpop.f32.mrf.mxu0  ;;  %v3807_v19 = vpop.f32.mrf.mxu1  ;;  %v27796_v58 = vld [vmem:[#allocation12_spill] sm:$0xff] }
 0x243   : > { %v3843_v49 = vpop.f32.mrf.mxu0  ;;  %v3894_v52 = vpop.f32.mrf.mxu1 }
 0x244   : > { %v21850_v8 = vadd.f32 %v3843_v49, %v21613_v18  ;;  %v21853_v24 = vadd.f32 %v3894_v52, %v21615_v56 }
 0x245   : > { %v3845_v59 = vpop.f32.mrf.mxu0  ;;  %v3896_v63 = vpop.f32.mrf.mxu1 }
 0x246   : > { %v21856_v61 = vadd.f32 %v3845_v59, %v21623_v21  ;;  %v21859_v2 = vadd.f32 %v3896_v63, %v21625_v29 }
 0x247   : > { %v3847_v57 = vpop.f32.mrf.mxu0  ;;  %v3898_v51 = vpop.f32.mrf.mxu1 }
 0x248   : > { %27788 = vst [vmem:[#allocation77_spill] sm:$0xff] %v21856_v61  ;;  %27789 = vst [vmem:[#allocation25_spill] sm:$0xff] %v21859_v2  ;;  %v21862_v19 = vadd.f32 %v3847_v57, %v21627_v10  ;;  %v21865_v5 = vadd.f32 %v3898_v51, %v21629_v15  ;;  %v27799_v57 = vld [vmem:[#allocation65_spill] sm:$0xff] }
 0x249   : > { %v21867_v18 = vpop.f32.mrf.mxu0  ;;  %v21869_v56 = vpop.f32.mrf.mxu1 }
 0x24a   : > { %27790 = vst [vmem:[#allocation78_spill] sm:$0xff] %v21862_v19  ;;  %27791 = vst [vmem:[#allocation26_spill] sm:$0xff] %v21865_v5 }
 0x24b   : > { %27792 = vst [vmem:[#allocation79_spill] sm:$0xff] %v21867_v18  ;;  %27793 = vst [vmem:[#allocation27_spill] sm:$0xff] %v21869_v56  ;;  %v3853_v52 = vpop.f32.mrf.mxu0  ;;  %v3904_v49 = vpop.f32.mrf.mxu1  ;;  %v27838_v18 = vld [vmem:[#allocation108_spill] sm:$0xff] }
 0x24c   : > { %v21872_v21 = vadd.f32 %v3853_v52, %v27794_v22  ;;  %v21875_v29 = vadd.f32 %v3904_v49, %v27796_v58  ;;  %v27803_v22 = vld [vmem:[#allocation66_spill] sm:$0xff] }
 0x24d   : > { %v3855_v59 = vpop.f32.mrf.mxu0  ;;  %v3906_v63 = vpop.f32.mrf.mxu1 }
 0x24e   : > { %27795 = vst [vmem:[#allocation80_spill] sm:$0xff] %v21872_v21  ;;  %27797 = vst [vmem:[#allocation28_spill] sm:$0xff] %v21875_v29  ;;  %v21878_v10 = vadd.f32 %v3855_v59, %v21653_v7  ;;  %v21881_v15 = vadd.f32 %v3906_v63, %v27799_v57 }
 0x24f   : > { %v3857_v51 = vpop.f32.mrf.mxu0  ;;  %v3908_v41 = vpop.f32.mrf.mxu1 }
 0x250   : > { %27798 = vst [vmem:[#allocation81_spill] sm:$0xff] %v21878_v10  ;;  %27800 = vst [vmem:[#allocation29_spill] sm:$0xff] %v21881_v15 }
 0x251   : > { %v3858_v53 = vpop.f32.mrf.mxu0  ;;  %v3909_v0 = vpop.f32.mrf.mxu1 }
 0x252   : > { %v27808_v53 = vld [vmem:[#allocation14_spill] sm:$0xff] }
 0x253   : > { %v3945_v32 = vpop.f32.mrf.mxu0  ;;  %v3996_v25 = vpop.f32.mrf.mxu1 }
 0x254   : > { %v21884_v52 = vadd.f32 %v3945_v32, %v27801_v23  ;;  %v21887_v49 = vadd.f32 %v3996_v25, %v27803_v22 }
 0x255   : > { %v3947_v58 = vpop.f32.mrf.mxu0  ;;  %v3998_v29 = vpop.f32.mrf.mxu1 }
 0x256   : > { %27802 = vst [vmem:[#allocation82_spill] sm:$0xff] %v21884_v52  ;;  %27804 = vst [vmem:[#allocation30_spill] sm:$0xff] %v21887_v49  ;;  %v21890_v7 = vadd.f32 %v3947_v58, %v21679_v43  ;;  %v21893_v59 = vadd.f32 %v3998_v29, %v21681_v14 }
 0x257   : > { %v3949_v63 = vpop.f32.mrf.mxu0  ;;  %v4000_v41 = vpop.f32.mrf.mxu1 }
 0x258   : > { %27805 = vst [vmem:[#allocation83_spill] sm:$0xff] %v21890_v7  ;;  %27806 = vst [vmem:[#allocation31_spill] sm:$0xff] %v21893_v59  ;;  %v21896_v0 = vadd.f32 %v3949_v63, %v21683_v60  ;;  %v21899_v57 = vadd.f32 %v4000_v41, %v27808_v53 }
 0x259   : > { %v21901_v23 = vpop.f32.mrf.mxu0  ;;  %v21903_v25 = vpop.f32.mrf.mxu1 }
 0x25a   : > { %27807 = vst [vmem:[#allocation84_spill] sm:$0xff] %v21896_v0  ;;  %27809 = vst [vmem:[#allocation32_spill] sm:$0xff] %v21899_v57 }
 0x25b   : > { %27810 = vst [vmem:[#allocation85_spill] sm:$0xff] %v21901_v23  ;;  %27811 = vst [vmem:[#allocation33_spill] sm:$0xff] %v21903_v25  ;;  %v3955_v32 = vpop.f32.mrf.mxu0  ;;  %v4006_v51 = vpop.f32.mrf.mxu1 }
 0x25c   : > { %v21906_v43 = vadd.f32 %v3955_v32, %v21703_v35  ;;  %v21909_v14 = vadd.f32 %v4006_v51, %v21705_v42 }
 0x25d   : > { %v3957_v29 = vpop.f32.mrf.mxu0  ;;  %v4008_v22 = vpop.f32.mrf.mxu1 }
 0x25e   : > { %27812 = vst [vmem:[#allocation86_spill] sm:$0xff] %v21906_v43  ;;  %27813 = vst [vmem:[#allocation34_spill] sm:$0xff] %v21909_v14  ;;  %v21912_v60 = vadd.f32 %v3957_v29, %v21709_v38  ;;  %v21915_v58 = vadd.f32 %v4008_v22, %v21711_v1 }
 0x25f   : > { %v3959_v63 = vpop.f32.mrf.mxu0  ;;  %v4010_v41 = vpop.f32.mrf.mxu1 }
 0x260   : > { %27814 = vst [vmem:[#allocation87_spill] sm:$0xff] %v21912_v60  ;;  %27815 = vst [vmem:[#allocation35_spill] sm:$0xff] %v21915_v58 }
 0x261   : > { %v3960_v53 = vpop.f32.mrf.mxu0  ;;  %v4011_v57 = vpop.f32.mrf.mxu1 }
 0x263   : > { %v4418_v0 = vpop.f32.mrf.mxu0  ;;  %v4469_v25 = vpop.f32.mrf.mxu1 }
 0x265   : > { %v4420_v23 = vpop.f32.mrf.mxu0  ;;  %v4471_v35 = vpop.f32.mrf.mxu1 }
 0x267   : > { %v21917_v32 = vpop.f32.mrf.mxu0  ;;  %v21919_v42 = vpop.f32.mrf.mxu1 }
 0x269   : > { %v21921_v51 = vpop.f32.mrf.mxu0  ;;  %v21923_v14 = vpop.f32.mrf.mxu1 }
 0x26b   : > { %v21925_v38 = vpop.f32.mrf.mxu0  ;;  %v21927_v1 = vpop.f32.mrf.mxu1 }
 0x26d   : > { %v21929_v29 = vpop.f32.mrf.mxu0  ;;  %v21931_v22 = vpop.f32.mrf.mxu1 }
 0x26f   : > { %v4432_v57 = vpop.f32.mrf.mxu0  ;;  %v4483_v63 = vpop.f32.mrf.mxu1 }
 0x271   : > { %v4433_v41 = vpop.f32.mrf.mxu0  ;;  %v4484_v53 = vpop.f32.mrf.mxu1 }
 0x273   : > { %v21933_v58 = vpop.f32.mrf.mxu0  ;;  %v21935_v60 = vpop.f32.mrf.mxu1 }
 0x275   : > { %v21937_v43 = vpop.f32.mrf.mxu0  ;;  %v21939_v59 = vpop.f32.mrf.mxu1 }
 0x276   : > { %27816 = vst [vmem:[#allocation36_spill] sm:$0xff] %v21939_v59 }
 0x277   : > { %v21941_v7 = vpop.f32.mrf.mxu0  ;;  %v21943_v49 = vpop.f32.mrf.mxu1 }
 0x278   : > { %27817 = vst [vmem:[#allocation37_spill] sm:$0xff] %v21941_v7  ;;  %27818 = vst [vmem:[#allocation88_spill] sm:$0xff] %v21943_v49 }
 0x279   : > { %v21945_v52 = vpop.f32.mrf.mxu0  ;;  %v21947_v15 = vpop.f32.mrf.mxu1 }
 0x27a   : > { %27819 = vst [vmem:[#allocation38_spill] sm:$0xff] %v21945_v52  ;;  %27820 = vst [vmem:[#allocation89_spill] sm:$0xff] %v21947_v15 }
 0x27b   : > { %v21949_v57 = vpop.f32.mrf.mxu0  ;;  %v21951_v63 = vpop.f32.mrf.mxu1 }
 0x27c   : > { %27821 = vst [vmem:[#allocation41_spill] sm:$0xff] %v21949_v57  ;;  %27822 = vst [vmem:[#allocation92_spill] sm:$0xff] %v21951_v63 }
 0x27d   : > { %v21953_v41 = vpop.f32.mrf.mxu0  ;;  %v21955_v53 = vpop.f32.mrf.mxu1 }
 0x27e   : > { %27823 = vst [vmem:[#allocation42_spill] sm:$0xff] %v21953_v41  ;;  %27824 = vst [vmem:[#allocation93_spill] sm:$0xff] %v21955_v53 }
 0x27f   : > { %v4534_v10 = vpop.f32.mrf.mxu0  ;;  %v4585_v21 = vpop.f32.mrf.mxu1 }
 0x281   : > { %v4535_v5 = vpop.f32.mrf.mxu0  ;;  %v4586_v19 = vpop.f32.mrf.mxu1 }
 0x282   : > { %v5128_v19 = vlaneseq }
 0x283   : > { %v21957_v56 = vpop.f32.mrf.mxu0  ;;  %v21959_v7 = vpop.f32.mrf.mxu1 }
 0x284   : > { %27825 = vst [vmem:[#allocation43_spill] sm:$0xff] %v21957_v56  ;;  %27826 = vst [vmem:[#allocation94_spill] sm:$0xff] %v21959_v7 }
 0x285   : > { %v21961_v49 = vpop.f32.mrf.mxu0  ;;  %v21963_v52 = vpop.f32.mrf.mxu1 }
 0x286   : > { %27827 = vst [vmem:[#allocation44_spill] sm:$0xff] %v21961_v49  ;;  %27828 = vst [vmem:[#allocation95_spill] sm:$0xff] %v21963_v52  ;;  %v21981_v52 = vshrl.u32 %v5128_v19, 7 }
 0x287   : > { %v21965_v15 = vpop.f32.mrf.mxu0  ;;  %v21967_v57 = vpop.f32.mrf.mxu1 }
 0x288   : > { %27829 = vst [vmem:[#allocation45_spill] sm:$0xff] %v21965_v15  ;;  %27830 = vst [vmem:[#allocation96_spill] sm:$0xff] %v21967_v57  ;;  %v27837_v57 = vld [vmem:[#allocation107_spill] sm:$0xff] }
 0x289   : > { %v21969_v63 = vpop.f32.mrf.mxu0  ;;  %v21971_v41 = vpop.f32.mrf.mxu1 }
 0x28a   : > { %27831 = vst [vmem:[#allocation46_spill] sm:$0xff] %v21969_v63  ;;  %27832 = vst [vmem:[#allocation97_spill] sm:$0xff] %v21971_v41  ;;  %v4038_v63 = vadd.f32 %v21731_v44, %v27837_v57  ;;  %v4040_v41 = vadd.f32 %v21733_v36, %v27838_v18  ;;  %v4999_v44 = vadd.f32 %v4471_v35, %v21723_v37  ;;  %v21996_v36 = vand.u32 127, %v5128_v19  ;;  %v27842_v19 = vld [vmem:[#allocation90_spill] sm:$0xff] }
 0x28b   : > { %v21973_v10 = vpop.f32.mrf.mxu0  ;;  %v21975_v5 = vpop.f32.mrf.mxu1  ;;  %v5133_v18 = vmul.u32 2, %v21981_v52  ;;  %v5020_v37 = vadd.f32 %v21917_v32, %v21726_v28 }
 0x28c   : > { %27833 = vst [vmem:[#allocation47_spill] sm:$0xff] %v21973_v10  ;;  %27834 = vst [vmem:[#allocation48_spill] sm:$0xff] %v21975_v5  ;;  %v21988_v5 = vadd.s32 8, %v21981_v52  ;;  %v5023_v28 = vadd.f32 %v21923_v14, %v4040_v41  ;;  %v27853_v14 = vld [vmem:[#allocation25_spill] sm:$0xff] }
 0x28d   : > { %v21977_v21 = vpop.f32.mrf.mxu0  ;;  %v21979_v7 = vpop.f32.mrf.mxu1  ;;  %vm22025_vm5 = vcmp.eq.s32.totalorder %v21996_v36, %v5133_v18 }
 0x28e   : > { %27835 = vst [vmem:[#allocation98_spill] sm:$0xff] %v21977_v21  ;;  %27836 = vst [vmem:[#allocation49_spill] sm:$0xff] %v21979_v7  ;;  %v4996_v21 = vadd.f32 %v4418_v0, %v21714_v39  ;;  %v27839_v0 = vld [vmem:[#allocation61_spill] sm:$0xff] }
 0x28f   : > { %v4636_v49 = vpop.f32.mrf.mxu0  ;;  %v4687_v56 = vpop.f32.mrf.mxu1 }
 0x290   : > { %v4998_v49 = vadd.f32 %v4469_v25, %v21717_v62 }
 0x291   : > { %v4637_v15 = vpop.f32.mrf.mxu0  ;;  %v4688_v53 = vpop.f32.mrf.mxu1 }
 0x292   : > { %v4997_v53 = vadd.f32 %v4420_v23, %v21720_v34 }
 0x293   : > { %v4724_v10 = vpop.f32.mrf.mxu0  ;;  %v4775_v2 = vpop.f32.mrf.mxu1 }
 0x294   : > { %v5008_v56 = vadd.f32 %v4724_v10, %v21816_v33  ;;  %v5010_v15 = vadd.f32 %v4775_v2, %v21819_v16  ;;  %v4050_v33 = vadd.f32 %v21833_v13, %v27839_v0  ;;  %v27840_v16 = vld [vmem:[#allocation9_spill] sm:$0xff]  ;;  %v5022_v2 = vadd.f32 %v21919_v42, %v21729_v4 }
 0x295   : > { %v4726_v57 = vpop.f32.mrf.mxu0  ;;  %v4777_v7 = vpop.f32.mrf.mxu1  ;;  %v4052_v34 = vadd.f32 %v21835_v55, %v27840_v16 }
 0x296   : > { %v5068_v61 = vmax.f32 %v4996_v21, %v5008_v56  ;;  %v5070_v59 = vmax.f32 %v4998_v49, %v5010_v15  ;;  %v5009_v39 = vadd.f32 %v4726_v57, %v21822_v50  ;;  %v5011_v62 = vadd.f32 %v4777_v7, %v21825_v48  ;;  %v27841_v7 = vld [vmem:[#allocation39_spill] sm:$0xff]  ;;  %v27843_v21 = vld [vmem:[#allocation40_spill] sm:$0xff] }
 0x297   : > { %v4728_v23 = vpop.f32.mrf.mxu0  ;;  %v4779_v25 = vpop.f32.mrf.mxu1  ;;  %v1950_v13 = vadd.f32 %v27842_v19, %v27841_v7  ;;  %v27844_v49 = vld [vmem:[#allocation91_spill] sm:$0xff]  ;;  %v5021_v56 = vadd.f32 %v21921_v51, %v4038_v63  ;;  %v27266_v19 = vmov 0.0  }
 0x298   : > { %v5069_v35 = vmax.f32 %v4997_v53, %v5009_v39  ;;  %v5071_v10 = vmax.f32 %v4999_v44, %v5011_v62  ;;  %v5032_v50 = vadd.f32 %v4728_v23, %v21828_v46  ;;  %v5034_v48 = vadd.f32 %v4779_v25, %v21831_v45  ;;  %v27848_v25 = vld [vmem:[#allocation11_spill] sm:$0xff] }
 0x299   : > { %v2001_v55 = vadd.f32 %v27844_v49, %v27843_v21  ;;  %v4730_v32 = vpop.f32.mrf.mxu0  ;;  %v4781_v4 = vpop.f32.mrf.mxu1  ;;  %v5044_v46 = vadd.f32 %v21925_v38, %v21736_v6  ;;  %v5046_v45 = vadd.f32 %v21927_v1, %v21739_v3  ;;  %v5134_v62 = vmul.u32 2, %v21988_v5  ;;  %v27849_v49 = vld [vmem:[#allocation57_spill] sm:$0xff] }
 0x29a   : > { %v5080_v42 = vmax.f32 %v5020_v37, %v5032_v50  ;;  %v5082_v15 = vmax.f32 %v5022_v2, %v5034_v48  ;;  %v5033_v53 = vadd.f32 %v4730_v32, %v4050_v33  ;;  %v5035_v44 = vadd.f32 %v4781_v4, %v4052_v34 }
 0x29b   : > { %v4734_v57 = vpop.f32.mrf.mxu0  ;;  %v4785_v39 = vpop.f32.mrf.mxu1  ;;  %v5045_v3 = vadd.f32 %v21929_v29, %v21742_v27  ;;  %v5047_v38 = vadd.f32 %v21931_v22, %v21745_v20  ;;  %vm5136_vm6 = vcmp.eq.s32.totalorder %v21996_v36, %v5134_v62  ;;  %v27847_v20 = vld [vmem:[#allocation63_spill] sm:$0xff]  ;;  %v14905_v21 = vsel %vm22025_vm5, 1.0, %v27266_v19 }
 0x29c   : > { %v22029_v51 = vpack.c.bf16 %v5080_v42, %v5068_v61  ;;  %v22031_v63 = vpack.c.bf16 %v5082_v15, %v5070_v59  ;;  %v5081_v41 = vmax.f32 %v5021_v56, %v5033_v53  ;;  %v5083_v6 = vmax.f32 %v5023_v28, %v5035_v44 }
 0x29d   : > { %v5056_v1 = vadd.f32 %v4734_v57, %v21838_v9  ;;  %v5058_v0 = vadd.f32 %v4785_v39, %v21841_v26  ;;  %v4736_v33 = vpop.f32.mrf.mxu0  ;;  %v4787_v16 = vpop.f32.mrf.mxu1  ;;  %v3067_v9 = vadd.f32 %v27847_v20, %v1950_v13  ;;  %v14906_v13 = vsel %vm5136_vm6, 1.0, %v27266_v19  ;;  %v27852_v57 = vld [vmem:[#allocation77_spill] sm:$0xff]  ;;  %v27861_v20 = vld [vmem:[#allocation26_spill] sm:$0xff] }
 0x29e   : > { %v5057_v34 = vadd.f32 %v4736_v33, %v21844_v47  ;;  %v5059_v61 = vadd.f32 %v4787_v16, %v21847_v54  ;;  %v22041_v59 = vpack.c.bf16 %v5081_v41, %v5069_v35  ;;  %v22043_v37 = vpack.c.bf16 %v5083_v6, %v5071_v10  ;;  %v27855_v6 = vld [vmem:[#allocation27_spill] sm:$0xff]  ;;  %v27859_v33 = vld [vmem:[#allocation88_spill] sm:$0xff] }
 0x29f   : > { %v5092_v2 = vmax.f32 %v5044_v46, %v5056_v1  ;;  %v5094_v23 = vmax.f32 %v5046_v45, %v5058_v0  ;;  %v4738_v27 = vpop.f32.mrf.mxu0  ;;  %v4789_v29 = vpop.f32.mrf.mxu1  ;;  %v3069_v47 = vadd.f32 %v27848_v25, %v2001_v55  ;;  %v4042_v56 = vadd.f32 %v21765_v12, %v27849_v49  ;;  %v27850_v55 = vld [vmem:[#allocation5_spill] sm:$0xff]  ;;  %v27858_v0 = vld [vmem:[#allocation16_spill] sm:$0xff] }
 0x2a0   : > { %v5093_v26 = vmax.f32 %v5045_v3, %v5057_v34  ;;  %v5095_v22 = vmax.f32 %v5047_v38, %v5059_v61  ;;  %v4044_v28 = vadd.f32 %v21767_v30, %v27850_v55  ;;  %v5000_v32 = vadd.f32 %v21933_v58, %v21748_v17  ;;  %v27851_v30 = vld [vmem:[#allocation36_spill] sm:$0xff]  ;;  %v27857_v38 = vld [vmem:[#allocation37_spill] sm:$0xff]  ;;  %v27860_v27 = vld [vmem:[#allocation78_spill] sm:$0xff] }
 0x2a1   : > { %v5116_v50 = vpack.c.bf16 %v5092_v2, %v5092_v2  ;;  %v5118_v54 = vpack.c.bf16 %v5094_v23, %v5094_v23  ;;  %v4739_v35 = vpop.f32.mrf.mxu0  ;;  %v4790_v48 = vpop.f32.mrf.mxu1  ;;  %v5002_v4 = vadd.f32 %v21935_v60, %v21751_v31  ;;  %v5001_v31 = vadd.f32 %v21937_v43, %v21754_v40  ;;  %v27854_v40 = vld [vmem:[#allocation79_spill] sm:$0xff]  ;;  %v27856_v3 = vld [vmem:[#allocation68_spill] sm:$0xff]  ;;  %v27863_v25 = vld [vmem:[#allocation89_spill] sm:$0xff] }
 0x2a2   : > { %v22050_v10 = vpack.c.bf16 %v5093_v26, %v5093_v26  ;;  %v22052_v7 = vpack.c.bf16 %v5095_v22, %v5095_v22  ;;  %v22084_v58 = vpack.c.bf16 %v14906_v13, %v14905_v21  ;;  %v4054_v43 = vadd.f32 %v27854_v40, %v3067_v9  ;;  %v27862_v22 = vld [vmem:[#allocation38_spill] sm:$0xff]  ;;  %v27864_v49 = vld [vmem:[#allocation69_spill] sm:$0xff] }
 0x2a3   : > { %v4826_v42 = vpop.f32.mrf.mxu0  ;;  %v4877_v15 = vpop.f32.mrf.mxu1  ;;  %v22073_v12 = vsel %vm5155_vm7, %v5116_v50, 0  ;;  %v22076_v17 = vsel %vm5155_vm7, %v5118_v54, 0  ;;  %v5024_v1 = vadd.f32 %v27857_v38, %v27856_v3  ;;  %v5026_v16 = vadd.f32 %v27859_v33, %v27858_v0  ;;  %v27865_v55 = vld [vmem:[#allocation41_spill] sm:$0xff] }
 0x2a4   : > { %v5012_v53 = vadd.f32 %v4826_v42, %v21850_v8  ;;  %v5014_v44 = vadd.f32 %v4877_v15, %v21853_v24  ;;  %14909 = vmatprep.subr.msk.bf16.mxu0 %vm5155_vm7, %v22050_v10  ;;  %14911 = vmatprep.subr.msk.bf16.mxu1 %vm5155_vm7, %v22052_v7  ;;  %v5003_v8 = vadd.f32 %v27851_v30, %v21757_v11  ;;  %v27867_v42 = vld [vmem:[#allocation92_spill] sm:$0xff] }
 0x2a5   : > { %v4828_v60 = vpop.f32.mrf.mxu0  ;;  %v4879_v24 = vpop.f32.mrf.mxu1  ;;  %5205 = vmatpush1.bf16.msra.mxu0 %v22073_v12  ;;  %5248 = vmatpush1.bf16.msra.mxu1 %v22076_v17  ;;  %v4056_v11 = vadd.f32 %v27855_v6, %v3069_v47  ;;  %v5025_v9 = vadd.f32 %v27862_v22, %v4042_v56  ;;  %v5027_v47 = vadd.f32 %v27863_v25, %v4044_v28  ;;  %v27868_v56 = vld [vmem:[#allocation70_spill] sm:$0xff] }
 0x2a6   : > { %v5072_v46 = vmax.f32 %v5000_v32, %v5012_v53  ;;  %v5074_v45 = vmax.f32 %v5002_v4, %v5014_v44  ;;  %v5013_v39 = vadd.f32 %v4828_v60, %v27852_v57  ;;  %v5015_v41 = vadd.f32 %v4879_v24, %v27853_v14  ;;  %5206 = vmatprep.subr.bf16.mxu0 %v22041_v59  ;;  %v27866_v4 = vld [vmem:[#allocation17_spill] sm:$0xff]  ;;  %v27869_v53 = vld [vmem:[#allocation42_spill] sm:$0xff] }
 0x2a7   : > { %5249 = vmatprep.subr.bf16.mxu1 %v22043_v37  ;;  %v4830_v34 = vpop.f32.mrf.mxu0  ;;  %v4881_v61 = vpop.f32.mrf.mxu1  ;;  %v5048_v32 = vadd.f32 %v27865_v55, %v27864_v49  ;;  %v5050_v15 = vadd.f32 %v27867_v42, %v27866_v4  ;;  %v5049_v28 = vadd.f32 %v27869_v53, %v27868_v56  ;;  %v27870_v57 = vld [vmem:[#allocation18_spill] sm:$0xff]  ;;  %v27885_v53 = vld [vmem:[#allocation71_spill] sm:$0xff] }
 0x2a8   : > { %v5073_v2 = vmax.f32 %v5001_v31, %v5013_v39  ;;  %v5075_v23 = vmax.f32 %v5003_v8, %v5015_v41  ;;  %v5036_v29 = vadd.f32 %v4830_v34, %v27860_v27  ;;  %v5038_v26 = vadd.f32 %v4881_v61, %v27861_v20  ;;  %v27871_v39 = vld [vmem:[#allocation93_spill] sm:$0xff]  ;;  %v27872_v41 = vld [vmem:[#allocation80_spill] sm:$0xff]  ;;  %v27877_v20 = vld [vmem:[#allocation51_spill] sm:$0xff] }
 0x2a9   : > { %v4832_v50 = vpop.f32.mrf.mxu0  ;;  %v4883_v54 = vpop.f32.mrf.mxu1  ;;  %5207 = vmatpush1.bf16.msra.mxu0 %v22029_v51  ;;  %5250 = vmatpush1.bf16.msra.mxu1 %v22031_v63  ;;  %v5051_v14 = vadd.f32 %v27871_v39, %v27870_v57  ;;  %v27883_v42 = vld [vmem:[#allocation58_spill] sm:$0xff] }
 0x2aa   : > { %v5084_v35 = vmax.f32 %v5024_v1, %v5036_v29  ;;  %v5086_v48 = vmax.f32 %v5026_v16, %v5038_v26  ;;  %v5037_v21 = vadd.f32 %v4832_v50, %v4054_v43  ;;  %v5039_v13 = vadd.f32 %v4883_v54, %v4056_v11  ;;  %v27873_v43 = vld [vmem:[#allocation28_spill] sm:$0xff]  ;;  %v27876_v1 = vld [vmem:[#allocation29_spill] sm:$0xff]  ;;  %v27880_v50 = vld [vmem:[#allocation102_spill] sm:$0xff] }
 0x2ab   : > { %v4836_v44 = vpop.f32.mrf.mxu0  ;;  %v4887_v31 = vpop.f32.mrf.mxu1  ;;  %v27878_v26 = vld [vmem:[#allocation101_spill] sm:$0xff] }
 0x2ac   : > { %v22108_v30 = vpack.c.bf16 %v5084_v35, %v5072_v46  ;;  %v22110_v8 = vpack.c.bf16 %v5086_v48, %v5074_v45  ;;  %v5085_v60 = vmax.f32 %v5025_v9, %v5037_v21  ;;  %v5087_v24 = vmax.f32 %v5027_v47, %v5039_v13  ;;  %14910 = vmatmul.mubr.msk.bf16.vlgmr.msra.gmra.mxu0 %vm5151_vm8, %v22084_v58  ;;  %v27875_v45 = vld [vmem:[#allocation81_spill] sm:$0xff]  ;;  %v27879_v47 = vld [vmem:[#allocation52_spill] sm:$0xff] }
 0x2ad   : > { %v5060_v40 = vadd.f32 %v4836_v44, %v27872_v41  ;;  %v5062_v6 = vadd.f32 %v4887_v31, %v27873_v43  ;;  %v4838_v11 = vpop.f32.mrf.mxu0  ;;  %v4889_v3 = vpop.f32.mrf.mxu1  ;;  %14912 = vmatmul.mubr.msk.bf16.vlgmr.msra.gmra.mxu1 %vm5151_vm8, %v22084_v58  ;;  %v27874_v46 = vmov 0   ;;  %v2052_v22 = vadd.f32 %v27878_v26, %v27877_v20  ;;  %v27887_v31 = vld [vmem:[#allocation19_spill] sm:$0xff] }
 0x2ae   : > { %5310 = vmatprep.mubr.bf16.mxu0 %v27874_v46  ;;  %v5061_v38 = vadd.f32 %v4838_v11, %v27875_v45  ;;  %v5063_v0 = vadd.f32 %v4889_v3, %v27876_v1  ;;  %v22123_v33 = vpack.c.bf16 %v5085_v60, %v5073_v2  ;;  %v22125_v16 = vpack.c.bf16 %v5087_v24, %v5075_v23  ;;  %v27881_v23 = vld [vmem:[#allocation67_spill] sm:$0xff]  ;;  %v27888_v60 = vld [vmem:[#allocation94_spill] sm:$0xff]  ;;  %v27893_v1 = vld [vmem:[#allocation72_spill] sm:$0xff] }
 0x2af   : > { %5353 = vmatprep.mubr.bf16.mxu1 %v27874_v46  ;;  %v5096_v34 = vmax.f32 %v5048_v32, %v5060_v40  ;;  %v5098_v61 = vmax.f32 %v5050_v15, %v5062_v6  ;;  %v4840_v27 = vpop.f32.mrf.mxu0  ;;  %v4891_v29 = vpop.f32.mrf.mxu1  ;;  %v2103_v54 = vadd.f32 %v27880_v50, %v27879_v47  ;;  %v3071_v13 = vadd.f32 %v27881_v23, %v2052_v22  ;;  %v27882_v32 = vld [vmem:[#allocation15_spill] sm:$0xff]  ;;  %v27884_v15 = vld [vmem:[#allocation74_spill] sm:$0xff]  ;;  %v27901_v23 = vld [vmem:[#allocation73_spill] sm:$0xff] }
 0x2b0   : > { %v5097_v9 = vmax.f32 %v5049_v28, %v5061_v38  ;;  %v5099_v25 = vmax.f32 %v5051_v14, %v5063_v0  ;;  %v4046_v56 = vadd.f32 %v27884_v15, %v27883_v42  ;;  %v27886_v28 = vld [vmem:[#allocation43_spill] sm:$0xff]  ;;  %v5006_v24 = vadd.f32 %v27888_v60, %v27887_v31  ;;  %v27889_v14 = vld [vmem:[#allocation82_spill] sm:$0xff]  ;;  %v27894_v0 = vld [vmem:[#allocation44_spill] sm:$0xff] }
 0x2b1   : > { %v5120_v35 = vpack.c.bf16 %v5096_v34, %v5096_v34  ;;  %v5122_v48 = vpack.c.bf16 %v5098_v61, %v5098_v61  ;;  %v4841_v2 = vpop.f32.mrf.mxu0  ;;  %v4892_v21 = vpop.f32.mrf.mxu1  ;;  %v3073_v4 = vadd.f32 %v27882_v32, %v2103_v54  ;;  %v5004_v44 = vadd.f32 %v27886_v28, %v27885_v53  ;;  %v27890_v40 = vld [vmem:[#allocation30_spill] sm:$0xff]  ;;  %v27895_v61 = vld [vmem:[#allocation20_spill] sm:$0xff]  ;;  %v27896_v27 = vld [vmem:[#allocation95_spill] sm:$0xff] }
 0x2b2   : > { %v22133_v49 = vpack.c.bf16 %v5097_v9, %v5097_v9  ;;  %v22135_v55 = vpack.c.bf16 %v5099_v25, %v5099_v25  ;;  %v27891_v3 = vld [vmem:[#allocation6_spill] sm:$0xff]  ;;  %v5005_v34 = vadd.f32 %v27894_v0, %v27893_v1  ;;  %v5007_v29 = vadd.f32 %v27896_v27, %v27895_v61  ;;  %v27897_v25 = vld [vmem:[#allocation83_spill] sm:$0xff]  ;;  %v27900_v2 = vld [vmem:[#allocation33_spill] sm:$0xff] }
 0x2b3   : > { %v4928_v57 = vpop.f32.mrf.mxu0  ;;  %v4979_v39 = vpop.f32.mrf.mxu1  ;;  %v22151_v6 = vsel %vm5155_vm7, %v5120_v35, 0  ;;  %v22154_v11 = vsel %vm5155_vm7, %v5122_v48, 0  ;;  %v27892_v45 = vld [vmem:[#allocation22_spill] sm:$0xff]  ;;  %v27898_v50 = vld [vmem:[#allocation31_spill] sm:$0xff]  ;;  %v27899_v35 = vld [vmem:[#allocation85_spill] sm:$0xff]  ;;  %v4060_v21 = vadd.f32 %v27900_v2, %v3073_v4 }
 0x2b4   : > { %v5016_v41 = vadd.f32 %v4928_v57, %v27889_v14  ;;  %v5018_v43 = vadd.f32 %v4979_v39, %v27890_v40  ;;  %14913 = vmatprep.subr.msk.bf16.mxu0 %vm5155_vm7, %v22133_v49  ;;  %14915 = vmatprep.subr.msk.bf16.mxu1 %vm5155_vm7, %v22135_v55  ;;  %v4048_v38 = vadd.f32 %v27892_v45, %v27891_v3  ;;  %v27902_v32 = vld [vmem:[#allocation45_spill] sm:$0xff]  ;;  %v27904_v53 = vld [vmem:[#allocation96_spill] sm:$0xff]  ;;  %v27907_v40 = vld [vmem:[#allocation46_spill] sm:$0xff] }
 0x2b5   : > { %v4930_v20 = vpop.f32.mrf.mxu0  ;;  %v4981_v26 = vpop.f32.mrf.mxu1  ;;  %5291 = vmatpush1.bf16.msra.mxu0 %v22151_v6  ;;  %5334 = vmatpush1.bf16.msra.mxu1 %v22154_v11  ;;  %v4058_v48 = vadd.f32 %v27899_v35, %v3071_v13  ;;  %v5028_v42 = vadd.f32 %v27902_v32, %v27901_v23  ;;  %v27903_v15 = vld [vmem:[#allocation21_spill] sm:$0xff]  ;;  %v27905_v57 = vld [vmem:[#allocation84_spill] sm:$0xff]  ;;  %v5029_v13 = vadd.f32 %v27907_v40, %v4046_v56  ;;  %v27914_v56 = vld [vmem:[#allocation98_spill] sm:$0xff] }
 0x2b6   : > { %v5076_v22 = vmax.f32 %v5004_v44, %v5016_v41  ;;  %v5078_v9 = vmax.f32 %v5006_v24, %v5018_v43  ;;  %v5017_v47 = vadd.f32 %v4930_v20, %v27897_v25  ;;  %v5019_v54 = vadd.f32 %v4981_v26, %v27898_v50  ;;  %5292 = vmatprep.subr.bf16.mxu0 %v22123_v33  ;;  %v27906_v14 = vld [vmem:[#allocation32_spill] sm:$0xff]  ;;  %v27908_v43 = vld [vmem:[#allocation97_spill] sm:$0xff]  ;;  %v27911_v26 = vld [vmem:[#allocation23_spill] sm:$0xff] }
 0x2b7   : > { %v5030_v28 = vadd.f32 %v27904_v53, %v27903_v15  ;;  %5335 = vmatprep.subr.bf16.mxu1 %v22125_v16  ;;  %v4932_v44 = vpop.f32.mrf.mxu0  ;;  %v4983_v31 = vpop.f32.mrf.mxu1  ;;  %v5031_v4 = vadd.f32 %v27908_v43, %v4048_v38  ;;  %v27912_v25 = vld [vmem:[#allocation48_spill] sm:$0xff]  ;;  %v27917_v53 = vld [vmem:[#allocation86_spill] sm:$0xff] }
 0x2b8   : > { %v5077_v60 = vmax.f32 %v5005_v34, %v5017_v47  ;;  %v5079_v24 = vmax.f32 %v5007_v29, %v5019_v54  ;;  %v5040_v39 = vadd.f32 %v4932_v44, %v27905_v57  ;;  %v5042_v41 = vadd.f32 %v4983_v31, %v27906_v14  ;;  %v27909_v34 = vld [vmem:[#allocation75_spill] sm:$0xff]  ;;  %v27913_v50 = vld [vmem:[#allocation76_spill] sm:$0xff]  ;;  %v27918_v44 = vld [vmem:[#allocation34_spill] sm:$0xff] }
 0x2b9   : > { %v4934_v3 = vpop.f32.mrf.mxu0  ;;  %v4985_v45 = vpop.f32.mrf.mxu1  ;;  %5293 = vmatpush1.bf16.msra.mxu0 %v22108_v30  ;;  %5336 = vmatpush1.bf16.msra.mxu1 %v22110_v8  ;;  %v27910_v29 = vld [vmem:[#allocation47_spill] sm:$0xff]  ;;  %v5054_v47 = vadd.f32 %v27912_v25, %v27911_v26  ;;  %v5053_v54 = vadd.f32 %v27914_v56, %v27913_v50 }
 0x2ba   : > { %v5088_v1 = vmax.f32 %v5028_v42, %v5040_v39  ;;  %v5090_v0 = vmax.f32 %v5030_v28, %v5042_v41  ;;  %v5041_v61 = vadd.f32 %v4934_v3, %v4058_v48  ;;  %v5043_v27 = vadd.f32 %v4985_v45, %v4060_v21  ;;  %v27915_v48 = vld [vmem:[#allocation24_spill] sm:$0xff]  ;;  %v27916_v21 = vld [vmem:[#allocation49_spill] sm:$0xff]  ;;  %v27920_v14 = vld [vmem:[#allocation35_spill] sm:$0xff] }
 0x2bb   : > { %v5052_v20 = vadd.f32 %v27910_v29, %v27909_v34  ;;  %v4938_v38 = vpop.f32.mrf.mxu0  ;;  %v4989_v35 = vpop.f32.mrf.mxu1  ;;  %v5055_v15 = vadd.f32 %v27916_v21, %v27915_v48  ;;  %v22372_v50 = vld [vmem:[%s27256_s3 + $0x1d8] sm:$0xff]   ;;  %v22379_v56 = vld [vmem:[%s27256_s3 + $0x190] sm:$0xff]   ;;  %v5749_v48 = vsub.s32 2, %v21981_v52  ;;  %v22428_v21 = vld [vmem:[%s27256_s3 + $0x180] sm:$0xff]  }
 0x2bc   : > { %v22186_v2 = vpack.c.bf16 %v5088_v1, %v5076_v22  ;;  %v22188_v23 = vpack.c.bf16 %v5090_v0, %v5078_v9  ;;  %v5089_v32 = vmax.f32 %v5029_v13, %v5041_v61  ;;  %v5091_v42 = vmax.f32 %v5031_v4, %v5043_v27  ;;  %14914 = vmatmul.mubr.msk.bf16.vlgmr.msra.gmra.mxu0 %vm5151_vm8, %v22084_v58  ;;  %v27919_v22 = vld [vmem:[#allocation87_spill] sm:$0xff] }
 0x2bd   : > { %v5064_v28 = vadd.f32 %v4938_v38, %v27917_v53  ;;  %v5066_v31 = vadd.f32 %v4989_v35, %v27918_v44  ;;  %v4940_v57 = vpop.f32.mrf.mxu0  ;;  %v4991_v39 = vpop.f32.mrf.mxu1  ;;  %14916 = vmatmul.mubr.msk.bf16.vlgmr.msra.gmra.mxu1 %vm5151_vm8, %v22084_v58  ;;  %5396 = vmatprep.mubr.bf16.mxu0 %v27874_v46  ;;  %27937 = vst [vmem:[#allocation10_spill] sm:$0xff] %v22372_v50  ;;  %27938 = vst [vmem:[#allocation64_spill] sm:$0xff] %v22379_v56  ;;  %v22389_v38 = vld [vmem:[%s27256_s3 + $0x150] sm:$0xff]   ;;  %v22438_v53 = vld [vmem:[%s27255_s2 + $0x8] sm:$0xf] }
 0x2be   : > { %v5065_v9 = vadd.f32 %v4940_v57, %v27919_v22  ;;  %v5067_v41 = vadd.f32 %v4991_v39, %v27920_v14  ;;  %v5113_v40 = vpack.c.bf16 %v5089_v32, %v5077_v60  ;;  %v5115_v13 = vpack.c.bf16 %v5091_v42, %v5079_v24  ;;  %5439 = vmatprep.mubr.bf16.mxu1 %v27874_v46  ;;  %v22394_v35 = vld [vmem:[%s27256_s3 + $0x1d0] sm:$0xff]   ;;  %v22413_v32 = vld [vmem:[%s27256_s3 + $0x148] sm:$0xff]   ;;  %v22448_v44 = vld [vmem:[%s27256_s3 + $0x1c0] sm:$0xff]  }
 0x2bf   : > { %v5100_v43 = vmax.f32 %v5052_v20, %v5064_v28  ;;  %v5102_v4 = vmax.f32 %v5054_v47, %v5066_v31  ;;  %v4942_v3 = vpop.f32.mrf.mxu0  ;;  %v4993_v45 = vpop.f32.mrf.mxu1  ;;  %v5142_v20 = vadd.s32 1, %v5133_v18  ;;  %v5143_v47 = vadd.s32 1, %v5134_v62  ;;  %v22259_v62 = vld [vmem:[%s27256_s3 + $0x1b8] sm:$0xff]   ;;  %27940 = vst [vmem:[#allocation65_spill] sm:$0xff] %v22389_v38  ;;  %27941 = vst [vmem:[#allocation13_spill] sm:$0xff] %v22394_v35  ;;  %v22418_v42 = vld [vmem:[%s27256_s3 + $0x1c8] sm:$0xff]  }
 0x2c0   : > { %v5101_v1 = vmax.f32 %v5053_v54, %v5065_v9  ;;  %v5103_v0 = vmax.f32 %v5055_v15, %v5067_v41  ;;  %v22384_v54 = vld [vmem:[%s27256_s3 + $0x210] sm:$0xff]   ;;  %27944 = vst [vmem:[#allocation107_spill] sm:$0xff] %v22413_v32  ;;  %27945 = vst [vmem:[#allocation108_spill] sm:$0xff] %v22418_v42  ;;  %v22433_v15 = vld [vmem:[%s27256_s3 + $0x200] sm:$0xff]   ;;  %v5745_v31 = vsub.s32 1, %v21981_v52  ;;  %v5753_v57 = vsub.s32 3, %v21981_v52 }
 0x2c1   : > { %v5124_v61 = vpack.c.bf16 %v5100_v43, %v5100_v43  ;;  %v5126_v27 = vpack.c.bf16 %v5102_v4, %v5102_v4  ;;  %v4943_v34 = vpop.f32.mrf.mxu0  ;;  %v4994_v29 = vpop.f32.mrf.mxu1  ;;  %vm5144_vm9 = vcmp.eq.s32.totalorder %v21996_v36, %v5142_v20  ;;  %vm5145_vm10 = vcmp.eq.s32.totalorder %v21996_v36, %v5143_v47  ;;  %27939 = vst [vmem:[#allocation12_spill] sm:$0xff] %v22384_v54  ;;  %v22443_v28 = vld [vmem:[%s27256_s3 + $0x140] sm:$0xff]   ;;  %v22469_v14 = vld [vmem:[%s27256_s3 + $0x78] sm:$0xff]  }
 0x2c2   : > { %v5125_v26 = vpack.c.bf16 %v5101_v1, %v5101_v1  ;;  %v5127_v25 = vpack.c.bf16 %v5103_v0, %v5103_v0  ;;  %v14907_v5 = vsel %vm5144_vm9, 1.0, %v27266_v19  ;;  %v14908_v18 = vsel %vm5145_vm10, 1.0, %v27266_v19  ;;  %27946 = vst [vmem:[#allocation61_spill] sm:$0xff] %v22428_v21  ;;  %27947 = vst [vmem:[#allocation9_spill] sm:$0xff] %v22433_v15 }
 0x2c3   : > { %v5181_v60 = vsel %vm5155_vm7, %v5124_v61, 0  ;;  %v5187_v24 = vsel %vm5155_vm7, %v5126_v27, 0  ;;  %v5150_v36 = vpack.c.bf16 %v14908_v18, %v14907_v5  ;;  %27948 = vst [vmem:[#allocation39_spill] sm:$0xff] %v22443_v28  ;;  %27949 = vst [vmem:[#allocation90_spill] sm:$0xff] %v22448_v44  ;;  %v22453_v39 = vrot.slane %v22438_v53, %v5749_v48 }
 0x2c4   : > { %14917 = vmatprep.subr.msk.bf16.mxu0 %vm5155_vm7, %v5125_v26  ;;  %14919 = vmatprep.subr.msk.bf16.mxu1 %vm5155_vm7, %v5127_v25  ;;  %v22460_v22 = vrot.slane %v22438_v53, %v5745_v31  ;;  %v22463_v9 = vrot.slane %v22438_v53, %v5753_v57  ;;  %27950 = vst [vmem:[#allocation40_spill] sm:$0xff] %v22469_v14 }
 0x2c5   : > { %5377 = vmatpush1.bf16.msra.mxu0 %v5181_v60  ;;  %5420 = vmatpush1.bf16.msra.mxu1 %v5187_v24 }
 0x2c6   : > { %5378 = vmatprep.subr.bf16.mxu0 %v5113_v40  ;;  %5421 = vmatprep.subr.bf16.mxu1 %v5115_v13 }
 0x2c9   : > { %5379 = vmatpush1.bf16.msra.mxu0 %v22186_v2  ;;  %5422 = vmatpush1.bf16.msra.mxu1 %v22188_v23 }
 0x2ca   : > { %14921 = vmatprep.subr.msk.bf16.mxu0 %vm5155_vm7, %v22050_v10  ;;  %14923 = vmatprep.subr.msk.bf16.mxu1 %vm5155_vm7, %v22052_v7  ;;  %v22288_v10 = vld [vmem:[%s27256_s3 + $0x230] sm:$0xff]  }
 0x2cb   : > { %27923 = vst [vmem:[#allocation100_spill] sm:$0xff] %v22288_v10  ;;  %v22293_v7 = vld [vmem:[%s27256_s3 + $0x170] sm:$0xff]  }
 0x2cc   : > { %14918 = vmatmul.mubr.msk.bf16.vlgmr.msra.gmra.mxu0 %vm5151_vm8, %v22084_v58  ;;  %14920 = vmatmul.mubr.msk.bf16.vlgmr.msra.gmra.mxu1 %vm5151_vm8, %v22084_v58  ;;  %27924 = vst [vmem:[#allocation53_spill] sm:$0xff] %v22293_v7  ;;  %v22312_v58 = vld [vmem:[%s27256_s3 + $0x228] sm:$0xff]  }
 0x2cd   : > { %5466 = vmatpush1.bf16.msra.mxu0 %v22073_v12  ;;  %5509 = vmatpush1.bf16.msra.mxu1 %v22076_v17  ;;  %v22298_v12 = vld [vmem:[%s27256_s3 + $0x1f0] sm:$0xff]   ;;  %v22307_v17 = vld [vmem:[%s27256_s3 + $0x1a8] sm:$0xff]   ;;  %27927 = vst [vmem:[#allocation104_spill] sm:$0xff] %v22312_v58 }
 0x2ce   : > { %5467 = vmatprep.subr.bf16.mxu0 %v22041_v59  ;;  %5510 = vmatprep.subr.bf16.mxu1 %v22043_v37  ;;  %v22274_v59 = vld [vmem:[%s27256_s3 + $0x1f8] sm:$0xff]   ;;  %v22283_v37 = vld [vmem:[%s27256_s3 + $0x1b0] sm:$0xff]   ;;  %27925 = vst [vmem:[#allocation103_spill] sm:$0xff] %v22298_v12  ;;  %27926 = vst [vmem:[#allocation54_spill] sm:$0xff] %v22307_v17 }
 0x2cf   : > { %5485 = vmatprep.mubr.bf16.mxu0 %v27874_v46  ;;  %5528 = vmatprep.mubr.bf16.mxu1 %v27874_v46  ;;  %27921 = vst [vmem:[#allocation99_spill] sm:$0xff] %v22274_v59  ;;  %27922 = vst [vmem:[#allocation50_spill] sm:$0xff] %v22283_v37 }
 0x2d1   : > { %5468 = vmatpush1.bf16.msra.mxu0 %v22029_v51  ;;  %5511 = vmatpush1.bf16.msra.mxu1 %v22031_v63  ;;  %v22264_v51 = vld [vmem:[%s27256_s3 + $0x238] sm:$0xff]  }
 0x2d2   : > { %14925 = vmatprep.subr.msk.bf16.mxu0 %vm5155_vm7, %v22133_v49  ;;  %14927 = vmatprep.subr.msk.bf16.mxu1 %vm5155_vm7, %v22135_v55  ;;  %v22269_v63 = vld [vmem:[%s27256_s3 + $0x178] sm:$0xff]   ;;  %v22346_v49 = vld [vmem:[%s27256_s3 + $0x1e0] sm:$0xff]  }
 0x2d3   : > { %27933 = vst [vmem:[#allocation7_spill] sm:$0xff] %v22346_v49  ;;  %v22355_v55 = vld [vmem:[%s27256_s3 + $0x198] sm:$0xff]  }
 0x2d4   : > { %14922 = vmatmul.mubr.msk.bf16.vlgmr.msra.gmra.mxu0 %vm5151_vm8, %v5150_v36  ;;  %14924 = vmatmul.mubr.msk.bf16.vlgmr.msra.gmra.mxu1 %vm5151_vm8, %v5150_v36  ;;  %27934 = vst [vmem:[#allocation60_spill] sm:$0xff] %v22355_v55 }
 0x2d5   : > { %5552 = vmatpush1.bf16.msra.mxu0 %v22151_v6  ;;  %5595 = vmatpush1.bf16.msra.mxu1 %v22154_v11  ;;  %v22360_v6 = vld [vmem:[%s27256_s3 + $0x218] sm:$0xff]  }
 0x2d6   : > { %5553 = vmatprep.subr.bf16.mxu0 %v22123_v33  ;;  %5596 = vmatprep.subr.bf16.mxu1 %v22125_v16  ;;  %v22336_v33 = vld [vmem:[%s27256_s3 + $0x220] sm:$0xff]   ;;  %27935 = vst [vmem:[#allocation8_spill] sm:$0xff] %v22360_v6  ;;  %v22367_v11 = vld [vmem:[%s27256_s3 + $0x158] sm:$0xff]  }
 0x2d7   : > { %5571 = vmatprep.mubr.bf16.mxu0 %v27874_v46  ;;  %5614 = vmatprep.mubr.bf16.mxu1 %v27874_v46  ;;  %27931 = vst [vmem:[#allocation106_spill] sm:$0xff] %v22336_v33  ;;  %v22341_v16 = vld [vmem:[%s27256_s3 + $0x160] sm:$0xff]   ;;  %27936 = vst [vmem:[#allocation62_spill] sm:$0xff] %v22367_v11 }
 0x2d8   : > { %27932 = vst [vmem:[#allocation59_spill] sm:$0xff] %v22341_v16 }
 0x2d9   : > { %5554 = vmatpush1.bf16.msra.mxu0 %v22108_v30  ;;  %5597 = vmatpush1.bf16.msra.mxu1 %v22110_v8  ;;  %v22317_v30 = vld [vmem:[%s27256_s3 + $0x168] sm:$0xff]  }
 0x2da   : > { %14929 = vmatprep.subr.msk.bf16.mxu0 %vm5155_vm7, %v5125_v26  ;;  %14931 = vmatprep.subr.msk.bf16.mxu1 %vm5155_vm7, %v5127_v25  ;;  %27928 = vst [vmem:[#allocation55_spill] sm:$0xff] %v22317_v30  ;;  %v22322_v8 = vld [vmem:[%s27256_s3 + $0x1e8] sm:$0xff]  }
 0x2db   : > { %27929 = vst [vmem:[#allocation105_spill] sm:$0xff] %v22322_v8 }
 0x2dc   : > { %14926 = vmatmul.mubr.msk.bf16.vlgmr.msra.gmra.mxu0 %vm5151_vm8, %v5150_v36  ;;  %14928 = vmatmul.mubr.msk.bf16.vlgmr.msra.gmra.mxu1 %vm5151_vm8, %v5150_v36 }
 0x2dd   : > { %5638 = vmatpush1.bf16.msra.mxu0 %v5181_v60  ;;  %5681 = vmatpush1.bf16.msra.mxu1 %v5187_v24 }
 0x2de   : > { %5639 = vmatprep.subr.bf16.mxu0 %v5113_v40  ;;  %5682 = vmatprep.subr.bf16.mxu1 %v5115_v13 }
 0x2df   : > { %5657 = vmatprep.mubr.bf16.mxu0 %v27874_v46  ;;  %5700 = vmatprep.mubr.bf16.mxu1 %v27874_v46  ;;  %v22331_v46 = vld [vmem:[%s27256_s3 + $0x1a0] sm:$0xff]  }
 0x2e0   : > { %27930 = vst [vmem:[#allocation56_spill] sm:$0xff] %v22331_v46 }
 0x2e1   : > { %5640 = vmatpush1.bf16.msra.mxu0 %v22186_v2  ;;  %5683 = vmatpush1.bf16.msra.mxu1 %v22188_v23  ;;  %v22403_v2 = vld [vmem:[%s27256_s3 + $0x188] sm:$0xff]  }
 0x2e2   : > { %15825 = vmatprep.subr.bf16.mxu0 %v22259_v62  ;;  %15847 = vmatprep.subr.bf16.mxu1 %v22264_v51  ;;  %27942 = vst [vmem:[#allocation66_spill] sm:$0xff] %v22403_v2  ;;  %v22408_v23 = vld [vmem:[%s27256_s3 + $0x208] sm:$0xff]  }
 0x2e3   : > { %27943 = vst [vmem:[#allocation14_spill] sm:$0xff] %v22408_v23 }
 0x2e4   : > { %14930 = vmatmul.mubr.msk.bf16.vlgmr.msra.gmra.mxu0 %vm5151_vm8, %v5150_v36  ;;  %14932 = vmatmul.mubr.msk.bf16.vlgmr.msra.gmra.mxu1 %vm5151_vm8, %v5150_v36 }
 0x2e5   : > { %15826 = vmatpush3.bf16.msra.mxu0 %v22269_v63  ;;  %15848 = vmatpush3.bf16.msra.mxu1 %v22274_v59 }
 0x2e6   : > { %15827 = vmatprep.subr.bf16.mxu0 %v22283_v37  ;;  %15849 = vmatprep.subr.bf16.mxu1 %v22288_v10 }
 0x2e9   : > { %15828 = vmatpush3.bf16.msra.mxu0 %v22293_v7  ;;  %15850 = vmatpush3.bf16.msra.mxu1 %v22298_v12 }
 0x2ea   : > { %15829 = vmatprep.subr.bf16.mxu0 %v22307_v17  ;;  %15851 = vmatprep.subr.bf16.mxu1 %v22312_v58 }
 0x2ed   : > { %15830 = vmatpush3.bf16.msra.mxu0 %v22317_v30  ;;  %15852 = vmatpush3.bf16.msra.mxu1 %v22322_v8 }
 0x2ee   : > { %15831 = vmatprep.subr.bf16.mxu0 %v22331_v46  ;;  %15853 = vmatprep.subr.bf16.mxu1 %v22336_v33 }
 0x2f1   : > { %15832 = vmatpush3.bf16.msra.mxu0 %v22341_v16  ;;  %15854 = vmatpush3.bf16.msra.mxu1 %v22346_v49 }
 0x2f2   : > { %15833 = vmatprep.subr.bf16.mxu0 %v22355_v55  ;;  %15855 = vmatprep.subr.bf16.mxu1 %v22360_v6  ;;  %v5769_v6 = vsub.s32 7, %v21981_v52 }
 0x2f5   : > { %15834 = vmatpush3.bf16.msra.mxu0 %v22367_v11  ;;  %15856 = vmatpush3.bf16.msra.mxu1 %v22372_v50  ;;  %v5761_v11 = vsub.s32 5, %v21981_v52 }
 0x2f6   : > { %15835 = vmatprep.subr.bf16.mxu0 %v22379_v56  ;;  %15857 = vmatprep.subr.bf16.mxu1 %v22384_v54 }
 0x2f9   : > { %15836 = vmatpush3.bf16.msra.mxu0 %v22389_v38  ;;  %15858 = vmatpush3.bf16.msra.mxu1 %v22394_v35 }
 0x2fa   : > { %15837 = vmatprep.subr.bf16.mxu0 %v22403_v2  ;;  %15859 = vmatprep.subr.bf16.mxu1 %v22408_v23  ;;  %v5765_v23 = vsub.s32 6, %v21981_v52 }
 0x2fd   : > { %15838 = vmatpush3.bf16.msra.mxu0 %v22413_v32  ;;  %15860 = vmatpush3.bf16.msra.mxu1 %v22418_v42 }
 0x2fe   : > { %15839 = vmatprep.subr.bf16.mxu0 %v22428_v21  ;;  %15861 = vmatprep.subr.bf16.mxu1 %v22433_v15  ;;  %v5735_v21 = vld [vmem:[%s27255_s2] sm:$0xff] }
 0x2ff   : > { %v5750_v35 = vrot.slane %v5735_v21, %v5749_v48  ;;  %v5746_v50 = vrot.slane %v5735_v21, %v5745_v31  ;;  %v5754_v58 = vrot.slane %v5735_v21, %v5753_v57  ;;  %v5766_v17 = vrot.slane %v5735_v21, %v5765_v23 }
 0x300   : > { %v5762_v37 = vrot.slane %v5735_v21, %v5761_v11  ;;  %v5770_v59 = vrot.slane %v5735_v21, %v5769_v6 }
 0x301   : > { %15840 = vmatpush3.bf16.msra.mxu0 %v22443_v28  ;;  %15862 = vmatpush3.bf16.msra.mxu1 %v22448_v44  ;;  %v22503_v28 = vsub.s32 0, %v21981_v52 }
 0x302   : > { %18089 = vmatprep.subr.bf16.mxu0 %v27266_v19  ;;  %15878 = vmatprep.subr.bf16.mxu1 %v22469_v14 }
 0x303   : > { %27951 = vst [vmem:[#allocation91_spill] sm:$0xff] %v22503_v28  ;;  %v5742_v2 = vrot.slane %v5735_v21, %v22503_v28 }
 0x36c   : > { %v5226_v41 = vpop.f32.mrf.mxu0 }
 0x36d   : > { %v5269_v40 = vpop.f32.mrf.mxu1 }
 0x36e   : > { %v5228_v13 = vpop.f32.mrf.mxu0 }
 0x36f   : > { %v5271_v43 = vpop.f32.mrf.mxu1 }
 0x370   : > { %v5230_v4 = vpop.f32.mrf.mxu0 }
 0x371   : > { %v5273_v3 = vpop.f32.mrf.mxu1 }
 0x372   : > { %v22472_v45 = vpop.f32.mrf.mxu0 }
 0x373   : > { %v22474_v1 = vpop.f32.mrf.mxu1 }
 0x37c   : > { %v22476_v0 = vpop.f32.mrf.mxu0 }
 0x37d   : > { %v5355_v61 = vpop.f32.mrf.mxu1 }
 0x37e   : > { %v5314_v27 = vpop.f32.mrf.mxu0 }
 0x37f   : > { %v5357_v34 = vpop.f32.mrf.mxu1 }
 0x380   : > { %v22478_v29 = vpop.f32.mrf.mxu0 }
 0x381   : > { %v22480_v26 = vpop.f32.mrf.mxu1 }
 0x382   : > { %v22482_v25 = vpop.f32.mrf.mxu0 }
 0x383   : > { %v22484_v60 = vpop.f32.mrf.mxu1 }
 0x38c   : > { %v22486_v24 = vpop.f32.mrf.mxu0  ;;  %v22488_v20 = vpop.f32.mrf.mxu1 }
 0x38e   : > { %v22490_v47 = vpop.f32.mrf.mxu0  ;;  %v22492_v5 = vpop.f32.mrf.mxu1 }
 0x390   : > { %v22494_v18 = vpop.f32.mrf.mxu0  ;;  %v22496_v36 = vpop.f32.mrf.mxu1 }
 0x392   : > { %v22498_v19 = vpop.f32.mrf.mxu0  ;;  %v22500_v14 = vpop.f32.mrf.mxu1 }
 0x394   : > { %v5487_v44 = vpop.f32.mrf.mxu0  ;;  %v5530_v15 = vpop.f32.mrf.mxu1 }
 0x395   : > { %v5711_v56 = vmax.f32 %v5226_v41, %v5487_v44  ;;  %v5713_v55 = vmax.f32 %v5269_v40, %v5530_v15  ;;  %v5757_v44 = vsub.s32 4, %v21981_v52 }
 0x396   : > { %v5489_v42 = vpop.f32.mrf.mxu0  ;;  %v5532_v32 = vpop.f32.mrf.mxu1 }
 0x397   : > { %v5712_v49 = vmax.f32 %v5228_v13, %v5489_v42  ;;  %v5714_v30 = vmax.f32 %v5271_v43, %v5532_v32  ;;  %v5799_v41 = vadd.f32 %v5742_v2, %v5711_v56  ;;  %v5801_v15 = vadd.f32 %v5750_v35, %v5713_v55 }
 0x398   : > { %v5491_v38 = vpop.f32.mrf.mxu0  ;;  %v5534_v54 = vpop.f32.mrf.mxu1 }
 0x399   : > { %v5723_v16 = vmax.f32 %v5230_v4, %v5491_v38  ;;  %v5725_v33 = vmax.f32 %v5273_v3, %v5534_v54  ;;  %v5800_v42 = vadd.f32 %v5746_v50, %v5712_v49  ;;  %v5802_v23 = vadd.f32 %v5754_v58, %v5714_v30 }
 0x39a   : > { %v5493_v46 = vpop.f32.mrf.mxu0  ;;  %v5536_v8 = vpop.f32.mrf.mxu1  ;;  %v22517_v11 = vmax.f32 %v5799_v41, 0.0  ;;  %v22519_v55 = vmax.f32 %v5801_v15, 0.0 }
 0x39b   : > { %v5811_v12 = vadd.f32 %v5742_v2, %v5723_v16  ;;  %v5813_v7 = vadd.f32 %v5750_v35, %v5725_v33  ;;  %v5724_v54 = vmax.f32 %v22472_v45, %v5493_v46  ;;  %v5726_v38 = vmax.f32 %v22474_v1, %v5536_v8 }
 0x39c   : > { %v22512_v48 = vpop.f32.mrf.mxu0  ;;  %v5616_v31 = vpop.f32.mrf.mxu1  ;;  %v5824_v35 = vmax.f32 %v5800_v42, 0.0  ;;  %v22521_v3 = vmax.f32 %v5802_v23, 0.0 }
 0x39d   : > { %v5717_v10 = vmax.f32 %v5355_v61, %v5616_v31  ;;  %v5835_v13 = vmax.f32 %v5811_v12, 0.0  ;;  %v5837_v43 = vmax.f32 %v5813_v7, 0.0  ;;  %v5812_v49 = vadd.f32 %v5746_v50, %v5724_v54 }
 0x39e   : > { %v5575_v32 = vpop.f32.mrf.mxu0  ;;  %v5618_v57 = vpop.f32.mrf.mxu1  ;;  %v5814_v46 = vadd.f32 %v5754_v58, %v5726_v38  ;;  %v5774_v12 = vrot.slane %v22438_v53, %v22503_v28  ;;  %v5715_v45 = vmax.f32 %v22476_v0, %v22512_v48 }
 0x39f   : > { %v5805_v16 = vadd.f32 %v5766_v17, %v5717_v10  ;;  %v5716_v33 = vmax.f32 %v5314_v27, %v5575_v32  ;;  %v5718_v40 = vmax.f32 %v5357_v34, %v5618_v57  ;;  %v5758_v10 = vrot.slane %v5735_v21, %v5757_v44 }
 0x3a0   : > { %v5577_v52 = vpop.f32.mrf.mxu0  ;;  %v5620_v4 = vpop.f32.mrf.mxu1  ;;  %v22526_v7 = vpack.c.bf16 %v5835_v13, %v22517_v11  ;;  %v22529_v30 = vpack.c.bf16 %v5837_v43, %v22519_v55  ;;  %v5836_v34 = vmax.f32 %v5812_v49, 0.0  ;;  %v5838_v44 = vmax.f32 %v5814_v46, 0.0 }
 0x3a1   : > { %v5804_v56 = vadd.f32 %v5762_v37, %v5716_v33  ;;  %v5806_v2 = vadd.f32 %v5770_v59, %v5718_v40  ;;  %v5729_v58 = vmax.f32 %v22480_v26, %v5620_v4  ;;  %v22538_v31 = vmax.f32 %v5805_v16, 0.0 }
 0x3a2   : > { %v5579_v6 = vpop.f32.mrf.mxu0  ;;  %v5622_v8 = vpop.f32.mrf.mxu1  ;;  %27952 = vst [vmem:[#allocation63_spill] sm:$0xff] %v22526_v7  ;;  %27953 = vst [vmem:[#allocation11_spill] sm:$0xff] %v22529_v30  ;;  %v5727_v32 = vmax.f32 %v22478_v29, %v5577_v52  ;;  %v22548_v16 = vpack.c.bf16 %v5836_v34, %v5824_v35  ;;  %v6033_v13 = vshrl.u32 %v22526_v7, 16  ;;  %v5803_v43 = vadd.f32 %v5758_v10, %v5715_v45 }
 0x3a3   : > { %v5728_v61 = vmax.f32 %v22482_v25, %v5579_v6  ;;  %v5730_v21 = vmax.f32 %v22484_v60, %v5622_v8  ;;  %27954 = vst [vmem:[#allocation57_spill] sm:$0xff] %v22538_v31  ;;  %v5817_v41 = vadd.f32 %v5766_v17, %v5729_v58  ;;  %v22541_v38 = vmax.f32 %v5804_v56, 0.0 }
 0x3a4   : > { %v5659_v50 = vpop.f32.mrf.mxu0  ;;  %v5702_v1 = vpop.f32.mrf.mxu1  ;;  %27957 = vst [vmem:[#allocation77_spill] sm:$0xff] %v22548_v16  ;;  %v22565_v52 = vpack.c.bf16 %v5824_v35, %v5824_v35  ;;  %v6035_v4 = vshll.u32 %v22526_v7, 16  ;;  %v6047_v56 = vshrl.u32 %v22529_v30, 16  ;;  %v5815_v49 = vadd.f32 %v5758_v10, %v5727_v32  ;;  %v22967_v7 = vld [vmem:[%s27256_s3 + $0xd8] sm:$0xff]  }
 0x3a5   : > { %v5719_v27 = vmax.f32 %v22486_v24, %v5659_v50  ;;  %v5721_v53 = vmax.f32 %v22488_v20, %v5702_v1  ;;  %v5816_v0 = vadd.f32 %v5762_v37, %v5728_v61  ;;  %v5818_v48 = vadd.f32 %v5770_v59, %v5730_v21  ;;  %27955 = vst [vmem:[#allocation5_spill] sm:$0xff] %v22541_v38 }
 0x3a6   : > { %v5661_v15 = vpop.f32.mrf.mxu0  ;;  %v5704_v42 = vpop.f32.mrf.mxu1  ;;  %v5841_v25 = vmax.f32 %v5817_v41, 0.0  ;;  %v22545_v20 = vmax.f32 %v5806_v2, 0.0  ;;  %v6049_v2 = vshll.u32 %v22529_v30, 16  ;;  %v6042_v50 = vshll.u32 %v22548_v16, 16  ;;  %v22962_v30 = vld [vmem:[%s27256_s3 + $0x120] sm:$0xff]  }
 0x3a7   : > { %v5807_v26 = vadd.f32 %v5774_v12, %v5719_v27  ;;  %v5809_v54 = vadd.f32 %v22453_v39, %v5721_v53  ;;  %v5720_v60 = vmax.f32 %v22490_v47, %v5661_v15  ;;  %v5722_v24 = vmax.f32 %v22492_v5, %v5704_v42 }
 0x3a8   : > { %27956 = vst [vmem:[#allocation36_spill] sm:$0xff] %v22545_v20  ;;  %v5840_v57 = vmax.f32 %v5816_v0, 0.0  ;;  %v5842_v17 = vmax.f32 %v5818_v48, 0.0  ;;  %v5663_v23 = vpop.f32.mrf.mxu0  ;;  %v22551_v59 = vpack.c.bf16 %v5841_v25, %v22538_v31  ;;  %v5706_v40 = vpop.f32.mrf.mxu1  ;;  %v22556_v47 = vpack.c.bf16 %v5838_v44, %v22521_v3 }
 0x3a9   : > { %v5808_v37 = vadd.f32 %v22460_v22, %v5720_v60  ;;  %v5810_v33 = vadd.f32 %v22463_v9, %v5722_v24  ;;  %v22570_v6 = vmax.f32 %v5807_v26, 0.0  ;;  %v5731_v8 = vmax.f32 %v22494_v18, %v5663_v23  ;;  %v22627_v24 = vld [vmem:[%s27256_s3 + $0x70] sm:$0xff]  }
 0x3aa   : > { %27958 = vst [vmem:[#allocation25_spill] sm:$0xff] %v22551_v59  ;;  %27959 = vst [vmem:[#allocation79_spill] sm:$0xff] %v22556_v47  ;;  %v22559_v5 = vpack.c.bf16 %v5840_v57, %v22541_v38  ;;  %v22562_v29 = vpack.c.bf16 %v5842_v17, %v22545_v20  ;;  %v5665_v46 = vpop.f32.mrf.mxu0  ;;  %v5733_v58 = vmax.f32 %v22496_v36, %v5706_v40  ;;  %v5708_v1 = vpop.f32.mrf.mxu1  ;;  %v22575_v45 = vmax.f32 %v5809_v54, 0.0  ;;  %v22611_v54 = vld [vmem:[%s27256_s3 + $0x38] sm:$0xff]   ;;  %v22641_v40 = vld [vmem:[%s27256_s3 + $0x270] sm:$0xff]  }
 0x3ab   : > { %27962 = vst [vmem:[#allocation37_spill] sm:$0xff] %v22570_v6  ;;  %v6040_v35 = vshrl.u32 %v22548_v16, 16  ;;  %v6054_v61 = vshrl.u32 %v22556_v47, 16  ;;  %v6056_v21 = vshll.u32 %v22556_v47, 16  ;;  %v5819_v27 = vadd.f32 %v5774_v12, %v5731_v8  ;;  %v22664_v8 = vld [vmem:[%s27256_s3 + $0x68] sm:$0xff]   ;;  %v22974_v47 = vld [vmem:[%s27256_s3 + $0x98] sm:$0xff]  }
 0x3ac   : > { %27960 = vst [vmem:[#allocation27_spill] sm:$0xff] %v22559_v5  ;;  %27961 = vst [vmem:[#allocation68_spill] sm:$0xff] %v22562_v29  ;;  %v5821_v10 = vadd.f32 %v22453_v39, %v5733_v58  ;;  %v6044_v53 = vrot.slane %v6042_v50, 1  ;;  %v5732_v18 = vmax.f32 %v22498_v19, %v5665_v46  ;;  %v5734_v34 = vmax.f32 %v22500_v14, %v5708_v1  ;;  %v22599_v19 = vld [vmem:[%s27256_s3 + $0x278] sm:$0xff]   ;;  %v22672_v58 = vld [vmem:[%s27256_s3 + $0x268] sm:$0xff]  }
 0x3ad   : > { %27963 = vst [vmem:[#allocation16_spill] sm:$0xff] %v22575_v45  ;;  %v6058_v36 = vrot.slane %v6056_v21, 1  ;;  %v6037_v44 = vrot.slane %v6035_v4, 1  ;;  %v6051_v41 = vrot.slane %v6049_v2, 1  ;;  %v5843_v15 = vmax.f32 %v5819_v27, 0.0  ;;  %v22981_v16 = vld [vmem:[%s27256_s3 + $0x118] sm:$0xff]  }
 0x3ae   : > { %v5845_v12 = vmax.f32 %v5821_v10, 0.0  ;;  %v22593_v39 = vor.u32 %v6044_v53, %v6040_v35  ;;  %v5820_v42 = vadd.f32 %v22460_v22, %v5732_v18  ;;  %v5839_v14 = vmax.f32 %v5815_v49, 0.0  ;;  %v22657_v49 = vld [vmem:[%s27256_s3 + $0x30] sm:$0xff]   ;;  %v22683_v18 = vld [vmem:[%s27256_s3 + $0x28] sm:$0xff]   ;;  %v23038_v20 = vld [vmem:[%s27256_s3 + $0x100] sm:$0xff]  }
 0x3af   : > { %v22603_v0 = vor.u32 %v6058_v36, %v6054_v61  ;;  %v5822_v48 = vadd.f32 %v22463_v9, %v5734_v34  ;;  %v6038_v26 = vor.u32 %v6037_v44, %v6033_v13  ;;  %v22614_v22 = vpack.c.bf16 %v5843_v15, %v22570_v6  ;;  %v22728_v44 = vld [vmem:[%s27256_s3 + $0x58] sm:$0xff]   ;;  %v23024_v6 = vld [vmem:[%s27256_s3 + $0xc0] sm:$0xff]   ;;  %28012 = vst [vmem:[#allocation44_spill] sm:$0xff] %v23038_v20 }
 0x3b0   : > { %v22617_v25 = vpack.c.bf16 %v5845_v12, %v22575_v45  ;;  %6344 = vmatprep.mubr.bf16.mxu0 %v22593_v39  ;;  %v5844_v60 = vmax.f32 %v5820_v42, 0.0  ;;  %v22622_v9 = vor.u32 %v6051_v41, %v6047_v56  ;;  %v22629_v32 = vmax.f32 %v5803_v43, 0.0  ;;  %v22692_v41 = vld [vmem:[%s27256_s3 + $0x60] sm:$0xff]   ;;  %v23000_v45 = vld [vmem:[%s27256_s3 + $0x110] sm:$0xff]   ;;  %28010 = vst [vmem:[#allocation22_spill] sm:$0xff] %v23024_v6 }
 0x3b1   : > { %27964 = vst [vmem:[#allocation88_spill] sm:$0xff] %v22603_v0  ;;  %27965 = vst [vmem:[#allocation78_spill] sm:$0xff] %v22614_v22  ;;  %v22631_v57 = vmax.f32 %v5808_v37, 0.0  ;;  %v22633_v17 = vmax.f32 %v5810_v33, 0.0  ;;  %6384 = vmatprep.mubr.bf16.mxu1 %v22603_v0  ;;  %v5846_v23 = vmax.f32 %v5822_v48, 0.0  ;;  %6345 = vmatmul.mubr.bf16.vlgmr.msra.gmra.mxu0 %v6038_v26  ;;  %v27973_v46 = vmov 0.0  }
 0x3b2   : > { %27966 = vst [vmem:[#allocation26_spill] sm:$0xff] %v22617_v25  ;;  %27967 = vst [vmem:[#allocation38_spill] sm:$0xff] %v22622_v9  ;;  %6385 = vmatmul.mubr.bf16.vlgmr.msra.gmra.mxu1 %v22622_v9  ;;  %18090 = vmatpush3.bf16.msra.mxu0 %v22599_v19  ;;  %v22644_v43 = vpack.c.bf16 %v5839_v14, %v22629_v32  ;;  %v27315_v10 = vshrl.u32 %v22551_v59, 16  ;;  %v27312_v36 = vshll.u32 %v22559_v5, 16  ;;  %v27311_v15 = vshrl.u32 %v22559_v5, 16  ;;  %v22714_v14 = vld [vmem:[%s27256_s3 + $0x20] sm:$0xff]  }
 0x3b3   : > { %27968 = vst [vmem:[#allocation89_spill] sm:$0xff] %v22631_v57  ;;  %27969 = vst [vmem:[#allocation69_spill] sm:$0xff] %v22633_v17  ;;  %v22647_v37 = vpack.c.bf16 %v5844_v60, %v22631_v57  ;;  %v22650_v33 = vpack.c.bf16 %v5846_v23, %v22633_v17  ;;  %15879 = vmatpush3.bf16.msra.mxu1 %v22611_v54  ;;  %6704 = vmatprep.mubr.bf16.mxu1 %v22565_v52  ;;  %v22705_v23 = vld [vmem:[%s27256_s3 + $0x260] sm:$0xff]   ;;  %v9937_v60 = vrot.slane %v6040_v35, 1  ;;  %v22986_v17 = vld [vmem:[%s27256_s3 + $0xd0] sm:$0xff]  }
 0x3b4   : > { %27970 = vst [vmem:[#allocation41_spill] sm:$0xff] %v22644_v43  ;;  %18091 = vmatprep.subr.bf16.mxu0 %v27973_v46  ;;  %15880 = vmatprep.subr.bf16.mxu1 %v22627_v24  ;;  %v27313_v1 = vshrl.u32 %v22644_v43, 16  ;;  %v27314_v27 = vshll.u32 %v22644_v43, 16  ;;  %v9938_v42 = vrot.slane %v6042_v50, 2  ;;  %v9943_v26 = vrot.slane %v6054_v61, 1  ;;  %28006 = vst [vmem:[#allocation94_spill] sm:$0xff] %v23000_v45 }
 0x3b5   : > { %27971 = vst [vmem:[#allocation17_spill] sm:$0xff] %v22647_v37  ;;  %27972 = vst [vmem:[#allocation92_spill] sm:$0xff] %v22650_v33  ;;  %18105 = vmatprep.mubr.msk.bf16.mxu0 %vm19824_vm11, %v27973_v46  ;;  %v9944_v12 = vrot.slane %v6056_v21, 2  ;;  %v22732_v34 = vrot.slane %v6033_v13, 1  ;;  %v22736_v50 = vrot.slane %v6035_v4, 2  ;;  %v9940_v35 = vrot.slane %v6047_v56, 1 }
 0x3b6   : > { %18092 = vmatpush3.bf16.msra.mxu0 %v22641_v40  ;;  %v9941_v61 = vrot.slane %v6049_v2, 2  ;;  %v22742_v21 = vor.u32 %v9938_v42, %v9937_v60  ;;  %v9946_v53 = vrot.slane %v27313_v1, 1  ;;  %v9947_v13 = vrot.slane %v27314_v27, 2  ;;  %v22754_v4 = vld [vmem:[%s27256_s3 + $0x258] sm:$0xff]   ;;  %v22783_v1 = vld [vmem:[%s27256_s3 + $0x50] sm:$0xff]   ;;  %v23012_v57 = vld [vmem:[%s27256_s3 + $0x88] sm:$0xff]  }
 0x3b7   : > { %15881 = vmatpush3.bf16.msra.mxu1 %v22657_v49  ;;  %18093 = vmatprep.subr.bf16.mxu0 %v27973_v46  ;;  %27974 = vst [vmem:[#allocation70_spill] sm:$0xff] %v22732_v34  ;;  %27975 = vst [vmem:[#allocation42_spill] sm:$0xff] %v22736_v50  ;;  %v22744_v48 = vor.u32 %v9944_v12, %v9943_v26  ;;  %v10315_v12 = vrot.slane %v27311_v15, 1  ;;  %v10316_v42 = vrot.slane %v27312_v36, 2  ;;  %v22769_v26 = vld [vmem:[%s27256_s3 + $0x18] sm:$0xff]   ;;  %v27981_v15 = vshrl.u32 %v22562_v29, 16 }
 0x3b8   : > { %15882 = vmatprep.subr.bf16.mxu1 %v22664_v8  ;;  %27976 = vst [vmem:[#allocation18_spill] sm:$0xff] %v22742_v21  ;;  %v22758_v2 = vor.u32 %v9941_v61, %v9940_v35  ;;  %v22771_v60 = vor.u32 %v9947_v13, %v9946_v53  ;;  %v10440_v35 = vrot.slane %v27315_v10, 1  ;;  %v27980_v61 = vshll.u32 %v22551_v59, 16  ;;  %v22948_v21 = vld [vmem:[%s27256_s3 + $0xe0] sm:$0xff]   ;;  %28008 = vst [vmem:[#allocation30_spill] sm:$0xff] %v23012_v57  ;;  %v28016_v59 = vld [vmem:[#allocation50_spill] sm:$0xff] }
 0x3b9   : > { %27977 = vst [vmem:[#allocation93_spill] sm:$0xff] %v22744_v48  ;;  %v10565_v36 = vrot.slane %v27981_v15, 1  ;;  %v22785_v27 = vor.u32 %v10316_v42, %v10315_v12  ;;  %v27983_v53 = vshll.u32 %v22562_v29, 16  ;;  %v27984_v10 = vshrl.u32 %v22614_v22, 16  ;;  %v28021_v38 = vld [vmem:[#allocation104_spill] sm:$0xff] }
 0x3ba   : > { %18094 = vmatpush3.bf16.msra.mxu0 %v22672_v58  ;;  %27978 = vst [vmem:[#allocation80_spill] sm:$0xff] %v22758_v2  ;;  %27979 = vst [vmem:[#allocation28_spill] sm:$0xff] %v22771_v60  ;;  %v10441_v56 = vrot.slane %v27980_v61, 2  ;;  %v27985_v61 = vshll.u32 %v22614_v22, 16  ;;  %v27987_v15 = vshrl.u32 %v22647_v37, 16  ;;  %v27988_v50 = vshll.u32 %v22647_v37, 16 }
 0x3bb   : > { %15883 = vmatpush3.bf16.msra.mxu1 %v22683_v18  ;;  %18095 = vmatprep.subr.bf16.mxu0 %v27973_v46  ;;  %27982 = vst [vmem:[#allocation81_spill] sm:$0xff] %v22785_v27  ;;  %v10566_v13 = vrot.slane %v27983_v53, 2  ;;  %v10690_v28 = vrot.slane %v27984_v10, 1  ;;  %v27989_v12 = vshrl.u32 %v22617_v25, 16  ;;  %v22805_v10 = vld [vmem:[%s27256_s3 + $0x250] sm:$0xff]   ;;  %v22943_v27 = vld [vmem:[%s27256_s3 + $0x128] sm:$0xff]   ;;  %v23044_v29 = vpack.c.bf16 %v22519_v55, %v22519_v55 }
 0x3bc   : > { %15884 = vmatprep.subr.bf16.mxu1 %v22692_v41  ;;  %v10691_v60 = vrot.slane %v27985_v61, 2  ;;  %v22793_v2 = vor.u32 %v10441_v56, %v10440_v35  ;;  %v10815_v34 = vrot.slane %v27987_v15, 1  ;;  %v10816_v48 = vrot.slane %v27988_v50, 2  ;;  %27990 = vst [vmem:[#allocation51_spill] sm:$0xff] %v22805_v10  ;;  %v23019_v37 = vld [vmem:[%s27256_s3 + $0x108] sm:$0xff]   ;;  %v23031_v22 = vld [vmem:[%s27256_s3 + $0x80] sm:$0xff]  }
 0x3bd   : > { %v10940_v42 = vrot.slane %v27989_v12, 1  ;;  %v22807_v53 = vor.u32 %v10566_v13, %v10565_v36  ;;  %v27993_v35 = vshll.u32 %v22617_v25, 16  ;;  %v27994_v15 = vshrl.u32 %v22650_v33, 16  ;;  %v22822_v12 = vld [vmem:[%s27256_s3 + $0x10] sm:$0xff]   ;;  %v22834_v13 = vld [vmem:[%s27256_s3 + $0x48] sm:$0xff]   ;;  %28009 = vst [vmem:[#allocation6_spill] sm:$0xff] %v23019_v37 }
 0x3be   : > { %18096 = vmatpush3.bf16.msra.mxu0 %v22705_v23  ;;  %27986 = vst [vmem:[#allocation29_spill] sm:$0xff] %v22793_v2  ;;  %v22809_v56 = vor.u32 %v10691_v60, %v10690_v28  ;;  %27996 = vst [vmem:[#allocation67_spill] sm:$0xff] %v22822_v12  ;;  %v22824_v36 = vor.u32 %v10816_v48, %v10815_v34  ;;  %v27998_v28 = vshll.u32 %v22650_v33, 16  ;;  %v22844_v34 = vld [vmem:[%s27256_s3 + $0x248] sm:$0xff]   ;;  %v22903_v2 = vld [vmem:[%s27256_s3 + $0xf0] sm:$0xff]  }
 0x3bf   : > { %15885 = vmatpush3.bf16.msra.mxu1 %v22714_v14  ;;  %18097 = vmatprep.subr.bf16.mxu0 %v27973_v46  ;;  %27991 = vst [vmem:[#allocation101_spill] sm:$0xff] %v22807_v53  ;;  %v10941_v61 = vrot.slane %v27993_v35, 2  ;;  %v22815_v50 = vrot.slane %v27994_v15, 1  ;;  %v22851_v48 = vld [vmem:[%s27256_s3 + $0x8] sm:$0xff]   ;;  %v28001_v15 = vshll.u32 %v22644_v43, 16  ;;  %v5847_v53 = vpack.c.bf16 %v22517_v11, %v22517_v11  ;;  %v22914_v11 = vld [vmem:[%s27256_s3 + $0xb0] sm:$0xff]  }
 0x3c0   : > { %15886 = vmatprep.subr.bf16.mxu1 %v22728_v44  ;;  %27992 = vst [vmem:[#allocation52_spill] sm:$0xff] %v22809_v56  ;;  %27997 = vst [vmem:[#allocation15_spill] sm:$0xff] %v22824_v36  ;;  %v22828_v60 = vrot.slane %v27998_v28, 2  ;;  %v22870_v28 = vld [vmem:[%s27256_s3] sm:$0xff]   ;;  %v28002_v36 = vshrl.u32 %v22644_v43, 16  ;;  %v22993_v33 = vld [vmem:[%s27256_s3 + $0x90] sm:$0xff]   ;;  %v23050_v31 = vpack.c.bf16 %v22629_v32, %v22629_v32 }
 0x3c1   : > { %27995 = vst [vmem:[#allocation102_spill] sm:$0xff] %v22815_v50  ;;  %v22836_v35 = vor.u32 %v10941_v61, %v10940_v42  ;;  %v22857_v42 = vld [vmem:[%s27256_s3 + $0x40] sm:$0xff]   ;;  %v6065_v50 = vrot.slane %v28001_v15, 1  ;;  %v22895_v15 = vld [vmem:[%s27256_s3 + $0x138] sm:$0xff]   ;;  %28005 = vst [vmem:[#allocation19_spill] sm:$0xff] %v22993_v33 }
 0x3c2   : > { %18098 = vmatpush3.bf16.msra.mxu0 %v22754_v4  ;;  %27999 = vst [vmem:[#allocation58_spill] sm:$0xff] %v22828_v60  ;;  %v22863_v61 = vld [vmem:[%s27256_s3 + $0x240] sm:$0xff]   ;;  %v22877_v60 = vld [vmem:[%s27256_s3 + $0xf8] sm:$0xff]   ;;  %v23005_v25 = vld [vmem:[%s27256_s3 + $0xc8] sm:$0xff]  }
 0x3c3   : > { %15887 = vmatpush3.bf16.msra.mxu1 %v22769_v26  ;;  %18099 = vmatprep.subr.bf16.mxu0 %v27973_v46  ;;  %28000 = vst [vmem:[#allocation74_spill] sm:$0xff] %v22836_v35  ;;  %v22884_v35 = vld [vmem:[%s27256_s3 + $0xb8] sm:$0xff]   ;;  %v22889_v56 = vor.u32 %v6065_v50, %v28002_v36  ;;  %v22907_v50 = vpack.c.bf16 %v22521_v3, %v22521_v3  ;;  %v22921_v36 = vld [vmem:[%s27256_s3 + $0x130] sm:$0xff]   ;;  %v22926_v3 = vld [vmem:[%s27256_s3 + $0xe8] sm:$0xff]  }
 0x3c4   : > { %15888 = vmatprep.subr.bf16.mxu1 %v22783_v1  ;;  %v22955_v43 = vld [vmem:[%s27256_s3 + $0xa0] sm:$0xff]   ;;  %28007 = vst [vmem:[#allocation82_spill] sm:$0xff] %v23005_v25  ;;  %28011 = vst [vmem:[#allocation72_spill] sm:$0xff] %v23031_v22  ;;  %v28015_v55 = vld [vmem:[#allocation99_spill] sm:$0xff] }
 0x3c5   : > { %28003 = vst [vmem:[#allocation71_spill] sm:$0xff] %v22889_v56  ;;  %28004 = vst [vmem:[#allocation43_spill] sm:$0xff] %v22907_v50  ;;  %v28018_v32 = vld [vmem:[#allocation53_spill] sm:$0xff] }
 0x3c6   : > { %18100 = vmatpush3.bf16.msra.mxu0 %v22805_v10  ;;  %28013 = vst [vmem:[#allocation20_spill] sm:$0xff] %v23044_v29  ;;  %28014 = vst [vmem:[#allocation95_spill] sm:$0xff] %v23050_v31 }
 0x3c7   : > { %15889 = vmatpush3.bf16.msra.mxu1 %v22822_v12  ;;  %18101 = vmatprep.subr.bf16.mxu0 %v27973_v46 }
 0x3c8   : > { %15890 = vmatprep.subr.bf16.mxu1 %v22834_v13 }
 0x3ca   : > { %18102 = vmatpush3.bf16.msra.mxu0 %v22844_v34 }
 0x3cb   : > { %15891 = vmatpush3.bf16.msra.mxu1 %v22851_v48  ;;  %18103 = vmatprep.subr.bf16.mxu0 %v27973_v46 }
 0x3cc   : > { %15892 = vmatprep.subr.bf16.mxu1 %v22857_v42 }
 0x3ce   : > { %18104 = vmatpush3.bf16.msra.mxu0 %v22863_v61 }
 0x3cf   : > { %15893 = vmatpush3.bf16.msra.mxu1 %v22870_v28  ;;  %15900 = vmatprep.subr.bf16.mxu0 %v22877_v60 }
 0x3d0   : > { %18109 = vmatprep.subr.bf16.mxu1 %v27973_v46 }
 0x3d1   : > { %18106 = vmatmul.mubr.bf16.vlgmr.msra.gmra.mxu0 %v22889_v56 }
 0x3d2   : > { %6705 = vmatmul.mubr.bf16.vlgmr.msra.gmra.mxu1 %v5847_v53  ;;  %15901 = vmatpush3.bf16.msra.mxu0 %v22884_v35  ;;  %v22936_v53 = vld [vmem:[%s27256_s3 + $0xa8] sm:$0xff]  }
 0x3d3   : > { %6744 = vmatprep.mubr.bf16.mxu0 %v22907_v50  ;;  %18110 = vmatpush3.bf16.msra.mxu1 %v22895_v15  ;;  %v28019_v50 = vld [vmem:[#allocation103_spill] sm:$0xff] }
 0x3d4   : > { %15902 = vmatprep.subr.bf16.mxu0 %v22903_v2  ;;  %18111 = vmatprep.subr.bf16.mxu1 %v27973_v46 }
 0x3d5   : > { %18125 = vmatprep.mubr.msk.bf16.mxu1 %vm19824_vm11, %v27973_v46 }
 0x3d6   : > { %15903 = vmatpush3.bf16.msra.mxu0 %v22914_v11 }
 0x3d7   : > { %18112 = vmatpush3.bf16.msra.mxu1 %v22921_v36  ;;  %15904 = vmatprep.subr.bf16.mxu0 %v22926_v3 }
 0x3d8   : > { %18113 = vmatprep.subr.bf16.mxu1 %v27973_v46 }
 0x3da   : > { %15905 = vmatpush3.bf16.msra.mxu0 %v22936_v53 }
 0x3db   : > { %18114 = vmatpush3.bf16.msra.mxu1 %v22943_v27  ;;  %15906 = vmatprep.subr.bf16.mxu0 %v22948_v21 }
 0x3dc   : > { %18115 = vmatprep.subr.bf16.mxu1 %v27973_v46 }
 0x3de   : > { %15907 = vmatpush3.bf16.msra.mxu0 %v22955_v43 }
 0x3df   : > { %18116 = vmatpush3.bf16.msra.mxu1 %v22962_v30  ;;  %15908 = vmatprep.subr.bf16.mxu0 %v22967_v7 }
 0x3e0   : > { %18117 = vmatprep.subr.bf16.mxu1 %v27973_v46 }
 0x3e2   : > { %15909 = vmatpush3.bf16.msra.mxu0 %v22974_v47 }
 0x3e3   : > { %18118 = vmatpush3.bf16.msra.mxu1 %v22981_v16  ;;  %15910 = vmatprep.subr.bf16.mxu0 %v22986_v17 }
 0x3e4   : > { %18119 = vmatprep.subr.bf16.mxu1 %v27973_v46 }
 0x3e6   : > { %15911 = vmatpush3.bf16.msra.mxu0 %v22993_v33 }
 0x3e7   : > { %18120 = vmatpush3.bf16.msra.mxu1 %v23000_v45  ;;  %15912 = vmatprep.subr.bf16.mxu0 %v23005_v25 }
 0x3e8   : > { %18121 = vmatprep.subr.bf16.mxu1 %v27973_v46 }
 0x3ea   : > { %15913 = vmatpush3.bf16.msra.mxu0 %v23012_v57 }
 0x3eb   : > { %18122 = vmatpush3.bf16.msra.mxu1 %v23019_v37  ;;  %15914 = vmatprep.subr.bf16.mxu0 %v23024_v6 }
 0x3ec   : > { %18123 = vmatprep.subr.bf16.mxu1 %v27973_v46 }
 0x3ee   : > { %15915 = vmatpush3.bf16.msra.mxu0 %v23031_v22 }
 0x3ef   : > { %18124 = vmatpush3.bf16.msra.mxu1 %v23038_v20  ;;  %15931 = vmatprep.subr.bf16.mxu0 %v22259_v62  ;;  %v28017_v62 = vld [vmem:[#allocation100_spill] sm:$0xff]  ;;  %v28022_v20 = vld [vmem:[#allocation55_spill] sm:$0xff] }
 0x3f0   : > { %15953 = vmatprep.subr.bf16.mxu1 %v22264_v51  ;;  %v28020_v51 = vld [vmem:[#allocation54_spill] sm:$0xff] }
 0x3f1   : > { %6745 = vmatmul.mubr.bf16.vlgmr.msra.gmra.mxu0 %v23044_v29 }
 0x3f2   : > { %18126 = vmatmul.mubr.bf16.vlgmr.msra.gmra.mxu1 %v23050_v31  ;;  %15932 = vmatpush3.bf16.msra.mxu0 %v22269_v63  ;;  %v28023_v63 = vld [vmem:[#allocation105_spill] sm:$0xff] }
 0x3f3   : > { %6832 = vmatprep.mubr.bf16.mxu0 %v22622_v9  ;;  %15954 = vmatpush3.bf16.msra.mxu1 %v28015_v55  ;;  %v28024_v9 = vld [vmem:[#allocation56_spill] sm:$0xff]  ;;  %v28025_v55 = vld [vmem:[#allocation106_spill] sm:$0xff] }
 0x3f4   : > { %6872 = vmatprep.mubr.bf16.mxu1 %v22889_v56  ;;  %15933 = vmatprep.subr.bf16.mxu0 %v28016_v59  ;;  %v28026_v56 = vld [vmem:[#allocation59_spill] sm:$0xff] }
 0x3f5   : > { %15955 = vmatprep.subr.bf16.mxu1 %v28017_v62  ;;  %v28027_v59 = vld [vmem:[#allocation7_spill] sm:$0xff]  ;;  %v28028_v62 = vld [vmem:[#allocation60_spill] sm:$0xff] }
 0x3f6   : > { %15934 = vmatpush3.bf16.msra.mxu0 %v28018_v32  ;;  %v28029_v32 = vld [vmem:[#allocation8_spill] sm:$0xff] }
 0x3f7   : > { %15956 = vmatpush3.bf16.msra.mxu1 %v28019_v50  ;;  %15935 = vmatprep.subr.bf16.mxu0 %v28020_v51  ;;  %v28030_v50 = vld [vmem:[#allocation62_spill] sm:$0xff] }
 0x3f8   : > { %15957 = vmatprep.subr.bf16.mxu1 %v28021_v38  ;;  %v28031_v51 = vld [vmem:[#allocation10_spill] sm:$0xff]  ;;  %v28032_v38 = vld [vmem:[#allocation64_spill] sm:$0xff] }
 0x3fa   : > { %15936 = vmatpush3.bf16.msra.mxu0 %v28022_v20  ;;  %v28033_v20 = vld [vmem:[#allocation12_spill] sm:$0xff] }
 0x3fb   : > { %15958 = vmatpush3.bf16.msra.mxu1 %v28023_v63  ;;  %15937 = vmatprep.subr.bf16.mxu0 %v28024_v9  ;;  %v28034_v63 = vld [vmem:[#allocation65_spill] sm:$0xff] }
 0x3fc   : > { %15959 = vmatprep.subr.bf16.mxu1 %v28025_v55  ;;  %v28035_v9 = vld [vmem:[#allocation13_spill] sm:$0xff]  ;;  %v28036_v55 = vld [vmem:[#allocation66_spill] sm:$0xff] }
 0x3fe   : > { %15938 = vmatpush3.bf16.msra.mxu0 %v28026_v56  ;;  %v28037_v56 = vld [vmem:[#allocation14_spill] sm:$0xff] }
 0x3ff   : > { %15960 = vmatpush3.bf16.msra.mxu1 %v28027_v59  ;;  %15939 = vmatprep.subr.bf16.mxu0 %v28028_v62  ;;  %v28038_v59 = vld [vmem:[#allocation107_spill] sm:$0xff]  ;;  %v28039_v62 = vld [vmem:[#allocation108_spill] sm:$0xff] }
 0x400   : > { %15961 = vmatprep.subr.bf16.mxu1 %v28029_v32  ;;  %v28040_v32 = vld [vmem:[#allocation61_spill] sm:$0xff] }
 0x402   : > { %15940 = vmatpush3.bf16.msra.mxu0 %v28030_v50  ;;  %v28041_v50 = vld [vmem:[#allocation9_spill] sm:$0xff] }
 0x403   : > { %15962 = vmatpush3.bf16.msra.mxu1 %v28031_v51  ;;  %15941 = vmatprep.subr.bf16.mxu0 %v28032_v38  ;;  %v28042_v51 = vld [vmem:[#allocation39_spill] sm:$0xff]  ;;  %v28043_v38 = vld [vmem:[#allocation90_spill] sm:$0xff] }
 0x404   : > { %15963 = vmatprep.subr.bf16.mxu1 %v28033_v20 }
 0x406   : > { %15942 = vmatpush3.bf16.msra.mxu0 %v28034_v63  ;;  %v28044_v63 = vld [vmem:[#allocation40_spill] sm:$0xff] }
 0x407   : > { %15964 = vmatpush3.bf16.msra.mxu1 %v28035_v9  ;;  %15943 = vmatprep.subr.bf16.mxu0 %v28036_v55 }
 0x408   : > { %15965 = vmatprep.subr.bf16.mxu1 %v28037_v56 }
 0x40a   : > { %15944 = vmatpush3.bf16.msra.mxu0 %v28038_v59 }
 0x40b   : > { %15966 = vmatpush3.bf16.msra.mxu1 %v28039_v62  ;;  %15945 = vmatprep.subr.bf16.mxu0 %v28040_v32 }
 0x40c   : > { %15967 = vmatprep.subr.bf16.mxu1 %v28041_v50 }
 0x40e   : > { %15946 = vmatpush3.bf16.msra.mxu0 %v28042_v51 }
 0x40f   : > { %15968 = vmatpush3.bf16.msra.mxu1 %v28043_v38  ;;  %18129 = vmatprep.subr.bf16.mxu0 %v27973_v46 }
 0x410   : > { %15984 = vmatprep.subr.bf16.mxu1 %v28044_v63 }
 0x411   : > { %6833 = vmatmul.mubr.bf16.vlgmr.msra.gmra.mxu0 %v22593_v39  ;;  %v28045_v39 = vshll.u32 %v22559_v5, 16 }
 0x412   : > { %6873 = vmatmul.mubr.bf16.vlgmr.msra.gmra.mxu1 %v22603_v0  ;;  %18130 = vmatpush3.bf16.msra.mxu0 %v22599_v19 }
 0x413   : > { %15985 = vmatpush3.bf16.msra.mxu1 %v22611_v54  ;;  %6952 = vmatprep.mubr.bf16.mxu1 %v23044_v29  ;;  %v6797_v29 = vrot.slane %v28045_v39, 1 }
 0x414   : > { %18131 = vmatprep.subr.bf16.mxu0 %v27973_v46  ;;  %15986 = vmatprep.subr.bf16.mxu1 %v22627_v24 }
 0x415   : > { %18145 = vmatprep.mubr.msk.bf16.mxu0 %vm19824_vm11, %v27973_v46 }
 0x416   : > { %18132 = vmatpush3.bf16.msra.mxu0 %v22641_v40 }
 0x417   : > { %15987 = vmatpush3.bf16.msra.mxu1 %v22657_v49  ;;  %18133 = vmatprep.subr.bf16.mxu0 %v27973_v46 }
 0x418   : > { %15988 = vmatprep.subr.bf16.mxu1 %v22664_v8 }
 0x41a   : > { %18134 = vmatpush3.bf16.msra.mxu0 %v22672_v58 }
 0x41b   : > { %15989 = vmatpush3.bf16.msra.mxu1 %v22683_v18  ;;  %18135 = vmatprep.subr.bf16.mxu0 %v27973_v46 }
 0x41c   : > { %15990 = vmatprep.subr.bf16.mxu1 %v22692_v41 }
 0x41e   : > { %18136 = vmatpush3.bf16.msra.mxu0 %v22705_v23 }
 0x41f   : > { %15991 = vmatpush3.bf16.msra.mxu1 %v22714_v14  ;;  %18137 = vmatprep.subr.bf16.mxu0 %v27973_v46 }
 0x420   : > { %15992 = vmatprep.subr.bf16.mxu1 %v22728_v44 }
 0x422   : > { %18138 = vmatpush3.bf16.msra.mxu0 %v22754_v4 }
 0x423   : > { %15993 = vmatpush3.bf16.msra.mxu1 %v22769_v26  ;;  %18139 = vmatprep.subr.bf16.mxu0 %v27973_v46 }
 0x424   : > { %15994 = vmatprep.subr.bf16.mxu1 %v22783_v1 }
 0x426   : > { %18140 = vmatpush3.bf16.msra.mxu0 %v22805_v10 }
 0x427   : > { %15995 = vmatpush3.bf16.msra.mxu1 %v22822_v12  ;;  %18141 = vmatprep.subr.bf16.mxu0 %v27973_v46  ;;  %v28046_v12 = vshrl.u32 %v22559_v5, 16  ;;  %v23180_v5 = vld [vmem:[%s27256_s3 + $0x238] sm:$0xff]  }
 0x428   : > { %15996 = vmatprep.subr.bf16.mxu1 %v22834_v13  ;;  %28052 = vst [vmem:[#allocation33_spill] sm:$0xff] %v23180_v5 }
 0x429   : > { %v23128_v10 = vor.u32 %v6797_v29, %v28046_v12  ;;  %v28048_v29 = vld [vmem:[#allocation44_spill] sm:$0xff]  ;;  %v28050_v12 = vld [vmem:[#allocation5_spill] sm:$0xff] }
 0x42a   : > { %18142 = vmatpush3.bf16.msra.mxu0 %v22844_v34  ;;  %v23175_v39 = vpack.c.bf16 %v28050_v12, %v28050_v12  ;;  %v23195_v12 = vld [vmem:[%s27256_s3 + $0x1f8] sm:$0xff]  }
 0x42b   : > { %15997 = vmatpush3.bf16.msra.mxu1 %v22851_v48  ;;  %18143 = vmatprep.subr.bf16.mxu0 %v27973_v46  ;;  %28047 = vst [vmem:[#allocation83_spill] sm:$0xff] %v23128_v10  ;;  %28055 = vst [vmem:[#allocation45_spill] sm:$0xff] %v23195_v12 }
 0x42c   : > { %15998 = vmatprep.subr.bf16.mxu1 %v22857_v42  ;;  %28051 = vst [vmem:[#allocation85_spill] sm:$0xff] %v23175_v39 }
 0x42e   : > { %18144 = vmatpush3.bf16.msra.mxu0 %v22863_v61 }
 0x42f   : > { %15999 = vmatpush3.bf16.msra.mxu1 %v22870_v28  ;;  %16006 = vmatprep.subr.bf16.mxu0 %v22877_v60 }
 0x430   : > { %18149 = vmatprep.subr.bf16.mxu1 %v27973_v46 }
 0x431   : > { %18146 = vmatmul.mubr.bf16.vlgmr.msra.gmra.mxu0 %v23128_v10 }
 0x432   : > { %6953 = vmatmul.mubr.bf16.vlgmr.msra.gmra.mxu1 %v22565_v52  ;;  %16007 = vmatpush3.bf16.msra.mxu0 %v22884_v35  ;;  %v23170_v52 = vld [vmem:[%s27256_s3 + $0x1b8] sm:$0xff]  }
 0x433   : > { %6992 = vmatprep.mubr.bf16.mxu0 %v23050_v31  ;;  %18150 = vmatpush3.bf16.msra.mxu1 %v22895_v15  ;;  %28049 = vst [vmem:[#allocation31_spill] sm:$0xff] %v23170_v52  ;;  %v28053_v31 = vld [vmem:[#allocation43_spill] sm:$0xff] }
 0x434   : > { %16008 = vmatprep.subr.bf16.mxu0 %v22903_v2  ;;  %18151 = vmatprep.subr.bf16.mxu1 %v27973_v46 }
 0x435   : > { %18165 = vmatprep.mubr.msk.bf16.mxu1 %vm19824_vm11, %v27973_v46 }
 0x436   : > { %16009 = vmatpush3.bf16.msra.mxu0 %v22914_v11 }
 0x437   : > { %18152 = vmatpush3.bf16.msra.mxu1 %v22921_v36  ;;  %16010 = vmatprep.subr.bf16.mxu0 %v22926_v3 }
 0x438   : > { %18153 = vmatprep.subr.bf16.mxu1 %v27973_v46 }
 0x43a   : > { %16011 = vmatpush3.bf16.msra.mxu0 %v22936_v53 }
 0x43b   : > { %18154 = vmatpush3.bf16.msra.mxu1 %v22943_v27  ;;  %16012 = vmatprep.subr.bf16.mxu0 %v22948_v21 }
 0x43c   : > { %18155 = vmatprep.subr.bf16.mxu1 %v27973_v46 }
 0x43e   : > { %16013 = vmatpush3.bf16.msra.mxu0 %v22955_v43 }
 0x43f   : > { %18156 = vmatpush3.bf16.msra.mxu1 %v22962_v30  ;;  %16014 = vmatprep.subr.bf16.mxu0 %v22967_v7 }
 0x440   : > { %18157 = vmatprep.subr.bf16.mxu1 %v27973_v46 }
 0x442   : > { %16015 = vmatpush3.bf16.msra.mxu0 %v22974_v47 }
 0x443   : > { %18158 = vmatpush3.bf16.msra.mxu1 %v22981_v16  ;;  %16016 = vmatprep.subr.bf16.mxu0 %v22986_v17 }
 0x444   : > { %18159 = vmatprep.subr.bf16.mxu1 %v27973_v46 }
 0x446   : > { %16017 = vmatpush3.bf16.msra.mxu0 %v22993_v33 }
 0x447   : > { %18160 = vmatpush3.bf16.msra.mxu1 %v23000_v45  ;;  %16018 = vmatprep.subr.bf16.mxu0 %v23005_v25 }
 0x448   : > { %18161 = vmatprep.subr.bf16.mxu1 %v27973_v46 }
 0x44a   : > { %16019 = vmatpush3.bf16.msra.mxu0 %v23012_v57 }
 0x44b   : > { %18162 = vmatpush3.bf16.msra.mxu1 %v23019_v37  ;;  %16020 = vmatprep.subr.bf16.mxu0 %v23024_v6 }
 0x44c   : > { %18163 = vmatprep.subr.bf16.mxu1 %v27973_v46 }
 0x44e   : > { %16021 = vmatpush3.bf16.msra.mxu0 %v23031_v22 }
 0x44f   : > { %18164 = vmatpush3.bf16.msra.mxu1 %v28048_v29  ;;  %16037 = vmatprep.subr.bf16.mxu0 %v23170_v52  ;;  %v23188_v29 = vld [vmem:[%s27256_s3 + $0x178] sm:$0xff]  }
 0x450   : > { %16059 = vmatprep.subr.bf16.mxu1 %v23180_v5  ;;  %28054 = vst [vmem:[#allocation73_spill] sm:$0xff] %v23188_v29  ;;  %v23202_v5 = vld [vmem:[%s27256_s3 + $0x1b0] sm:$0xff]  }
 0x451   : > { %6993 = vmatmul.mubr.bf16.vlgmr.msra.gmra.mxu0 %v28053_v31  ;;  %28056 = vst [vmem:[#allocation21_spill] sm:$0xff] %v23202_v5 }
 0x452   : > { %18166 = vmatmul.mubr.bf16.vlgmr.msra.gmra.mxu1 %v23175_v39  ;;  %16038 = vmatpush3.bf16.msra.mxu0 %v23188_v29  ;;  %v28073_v29 = vld [vmem:[#allocation65_spill] sm:$0xff] }
 0x453   : > { %7080 = vmatprep.mubr.bf16.mxu0 %v22603_v0  ;;  %16060 = vmatpush3.bf16.msra.mxu1 %v23195_v12  ;;  %v23208_v0 = vld [vmem:[%s27256_s3 + $0x230] sm:$0xff]  }
 0x454   : > { %7120 = vmatprep.mubr.bf16.mxu1 %v23128_v10  ;;  %16039 = vmatprep.subr.bf16.mxu0 %v23202_v5  ;;  %28057 = vst [vmem:[#allocation96_spill] sm:$0xff] %v23208_v0  ;;  %v23214_v12 = vld [vmem:[%s27256_s3 + $0x170] sm:$0xff]   ;;  %v23226_v5 = vld [vmem:[%s27256_s3 + $0x1a8] sm:$0xff]  }
 0x455   : > { %16061 = vmatprep.subr.bf16.mxu1 %v23208_v0  ;;  %28058 = vst [vmem:[#allocation84_spill] sm:$0xff] %v23214_v12  ;;  %v23220_v10 = vld [vmem:[%s27256_s3 + $0x1f0] sm:$0xff]   ;;  %28060 = vst [vmem:[#allocation46_spill] sm:$0xff] %v23226_v5  ;;  %v23232_v0 = vld [vmem:[%s27256_s3 + $0x228] sm:$0xff]  }
 0x456   : > { %16040 = vmatpush3.bf16.msra.mxu0 %v23214_v12  ;;  %28059 = vst [vmem:[#allocation32_spill] sm:$0xff] %v23220_v10  ;;  %28061 = vst [vmem:[#allocation97_spill] sm:$0xff] %v23232_v0  ;;  %v23238_v12 = vld [vmem:[%s27256_s3 + $0x168] sm:$0xff]  }
 0x457   : > { %16062 = vmatpush3.bf16.msra.mxu1 %v23220_v10  ;;  %16041 = vmatprep.subr.bf16.mxu0 %v23226_v5  ;;  %28062 = vst [vmem:[#allocation75_spill] sm:$0xff] %v23238_v12  ;;  %v23244_v10 = vld [vmem:[%s27256_s3 + $0x1e8] sm:$0xff]   ;;  %v23250_v5 = vld [vmem:[%s27256_s3 + $0x1a0] sm:$0xff]  }
 0x458   : > { %16063 = vmatprep.subr.bf16.mxu1 %v23232_v0  ;;  %28063 = vst [vmem:[#allocation47_spill] sm:$0xff] %v23244_v10  ;;  %28064 = vst [vmem:[#allocation23_spill] sm:$0xff] %v23250_v5  ;;  %v23256_v0 = vld [vmem:[%s27256_s3 + $0x220] sm:$0xff]  }
 0x459   : > { %28065 = vst [vmem:[#allocation48_spill] sm:$0xff] %v23256_v0 }
 0x45a   : > { %16042 = vmatpush3.bf16.msra.mxu0 %v23238_v12  ;;  %v23262_v12 = vld [vmem:[%s27256_s3 + $0x160] sm:$0xff]  }
 0x45b   : > { %16064 = vmatpush3.bf16.msra.mxu1 %v23244_v10  ;;  %16043 = vmatprep.subr.bf16.mxu0 %v23250_v5  ;;  %28066 = vst [vmem:[#allocation76_spill] sm:$0xff] %v23262_v12  ;;  %v23268_v10 = vld [vmem:[%s27256_s3 + $0x1e0] sm:$0xff]   ;;  %v23274_v5 = vld [vmem:[%s27256_s3 + $0x198] sm:$0xff]  }
 0x45c   : > { %16065 = vmatprep.subr.bf16.mxu1 %v23256_v0  ;;  %28067 = vst [vmem:[#allocation98_spill] sm:$0xff] %v23268_v10  ;;  %28068 = vst [vmem:[#allocation24_spill] sm:$0xff] %v23274_v5  ;;  %v23280_v0 = vld [vmem:[%s27256_s3 + $0x218] sm:$0xff]  }
 0x45d   : > { %28069 = vst [vmem:[#allocation49_spill] sm:$0xff] %v23280_v0 }
 0x45e   : > { %16044 = vmatpush3.bf16.msra.mxu0 %v23262_v12  ;;  %v23286_v12 = vld [vmem:[%s27256_s3 + $0x158] sm:$0xff]  }
 0x45f   : > { %16066 = vmatpush3.bf16.msra.mxu1 %v23268_v10  ;;  %16045 = vmatprep.subr.bf16.mxu0 %v23274_v5  ;;  %28070 = vst [vmem:[#allocation86_spill] sm:$0xff] %v23286_v12  ;;  %v23292_v10 = vld [vmem:[%s27256_s3 + $0x1d8] sm:$0xff]  }
 0x460   : > { %16067 = vmatprep.subr.bf16.mxu1 %v23280_v0  ;;  %28071 = vst [vmem:[#allocation34_spill] sm:$0xff] %v23292_v10  ;;  %v28072_v5 = vld [vmem:[#allocation64_spill] sm:$0xff] }
 0x462   : > { %16046 = vmatpush3.bf16.msra.mxu0 %v23286_v12 }
 0x463   : > { %16068 = vmatpush3.bf16.msra.mxu1 %v23292_v10  ;;  %16047 = vmatprep.subr.bf16.mxu0 %v28072_v5  ;;  %v28074_v5 = vld [vmem:[#allocation38_spill] sm:$0xff] }
 0x464   : > { %16069 = vmatprep.subr.bf16.mxu1 %v28033_v20 }
 0x466   : > { %16048 = vmatpush3.bf16.msra.mxu0 %v28073_v29 }
 0x467   : > { %16070 = vmatpush3.bf16.msra.mxu1 %v28035_v9  ;;  %16049 = vmatprep.subr.bf16.mxu0 %v28036_v55  ;;  %v28075_v9 = vld [vmem:[#allocation71_spill] sm:$0xff] }
 0x468   : > { %16071 = vmatprep.subr.bf16.mxu1 %v28037_v56 }
 0x46a   : > { %16050 = vmatpush3.bf16.msra.mxu0 %v28038_v59 }
 0x46b   : > { %16072 = vmatpush3.bf16.msra.mxu1 %v28039_v62  ;;  %16051 = vmatprep.subr.bf16.mxu0 %v28040_v32 }
 0x46c   : > { %16073 = vmatprep.subr.bf16.mxu1 %v28041_v50 }
 0x46e   : > { %16052 = vmatpush3.bf16.msra.mxu0 %v28042_v51 }
 0x46f   : > { %16074 = vmatpush3.bf16.msra.mxu1 %v28043_v38  ;;  %18169 = vmatprep.subr.bf16.mxu0 %v27973_v46 }
 0x470   : > { %16090 = vmatprep.subr.bf16.mxu1 %v28044_v63 }
 0x471   : > { %7081 = vmatmul.mubr.bf16.vlgmr.msra.gmra.mxu0 %v28074_v5  ;;  %v15841_v20 = vpop.f32.mrf.mxu0  ;;  %v28076_v5 = vld [vmem:[#allocation51_spill] sm:$0xff] }
 0x472   : > { %7121 = vmatmul.mubr.bf16.vlgmr.msra.gmra.mxu1 %v28075_v9  ;;  %v15863_v55 = vpop.f32.mrf.mxu1  ;;  %18170 = vmatpush3.bf16.msra.mxu0 %v22599_v19 }
 0x473   : > { %16091 = vmatpush3.bf16.msra.mxu1 %v22611_v54  ;;  %7200 = vmatprep.mubr.bf16.mxu1 %v28053_v31  ;;  %v15842_v56 = vpop.f32.mrf.mxu0 }
 0x474   : > { %v15843_v59 = vadd.f32 %v15842_v56, %v15841_v20  ;;  %v15864_v62 = vpop.f32.mrf.mxu1  ;;  %18171 = vmatprep.subr.bf16.mxu0 %v27973_v46  ;;  %16092 = vmatprep.subr.bf16.mxu1 %v22627_v24  ;;  %v28077_v20 = vld [vmem:[#allocation67_spill] sm:$0xff] }
 0x475   : > { %v15865_v38 = vadd.f32 %v15864_v62, %v15863_v55  ;;  %v15844_v63 = vpop.f32.mrf.mxu0  ;;  %18185 = vmatprep.mubr.msk.bf16.mxu0 %vm19824_vm11, %v27973_v46  ;;  %v28078_v55 = vld [vmem:[#allocation25_spill] sm:$0xff] }
 0x476   : > { %v15866_v32 = vpop.f32.mrf.mxu1  ;;  %18172 = vmatpush3.bf16.msra.mxu0 %v22641_v40  ;;  %v28079_v56 = vshll.u32 %v28078_v55, 16  ;;  %v28080_v62 = vshrl.u32 %v28078_v55, 16 }
 0x477   : > { %16093 = vmatpush3.bf16.msra.mxu1 %v22657_v49  ;;  %v15845_v50 = vpop.f32.mrf.mxu0  ;;  %18173 = vmatprep.subr.bf16.mxu0 %v27973_v46  ;;  %v6387_v51 = vadd.f32 %v15865_v38, %v15843_v59 }
 0x478   : > { %v15867_v29 = vpop.f32.mrf.mxu1  ;;  %16094 = vmatprep.subr.bf16.mxu1 %v22664_v8  ;;  %v7045_v59 = vrot.slane %v28079_v56, 1 }
 0x479   : > { %v28082_v29 = vld [vmem:[#allocation20_spill] sm:$0xff] }
 0x47a   : > { %18174 = vmatpush3.bf16.msra.mxu0 %v22672_v58  ;;  %v23348_v38 = vor.u32 %v7045_v59, %v28080_v62 }
 0x47b   : > { %16095 = vmatpush3.bf16.msra.mxu1 %v22683_v18  ;;  %18175 = vmatprep.subr.bf16.mxu0 %v27973_v46 }
 0x47c   : > { %16096 = vmatprep.subr.bf16.mxu1 %v22692_v41  ;;  %28081 = vst [vmem:[#allocation87_spill] sm:$0xff] %v23348_v38 }
 0x47e   : > { %18176 = vmatpush3.bf16.msra.mxu0 %v22705_v23 }
 0x47f   : > { %16097 = vmatpush3.bf16.msra.mxu1 %v22714_v14  ;;  %18177 = vmatprep.subr.bf16.mxu0 %v27973_v46 }
 0x480   : > { %16098 = vmatprep.subr.bf16.mxu1 %v22728_v44 }
 0x482   : > { %18178 = vmatpush3.bf16.msra.mxu0 %v22754_v4 }
 0x483   : > { %16099 = vmatpush3.bf16.msra.mxu1 %v22769_v26  ;;  %18179 = vmatprep.subr.bf16.mxu0 %v27973_v46 }
 0x484   : > { %16100 = vmatprep.subr.bf16.mxu1 %v22783_v1 }
 0x486   : > { %18180 = vmatpush3.bf16.msra.mxu0 %v28076_v5 }
 0x487   : > { %16101 = vmatpush3.bf16.msra.mxu1 %v28077_v20  ;;  %18181 = vmatprep.subr.bf16.mxu0 %v27973_v46 }
 0x488   : > { %16102 = vmatprep.subr.bf16.mxu1 %v22834_v13 }
 0x48a   : > { %18182 = vmatpush3.bf16.msra.mxu0 %v22844_v34 }
 0x48b   : > { %16103 = vmatpush3.bf16.msra.mxu1 %v22851_v48  ;;  %18183 = vmatprep.subr.bf16.mxu0 %v27973_v46 }
 0x48c   : > { %16104 = vmatprep.subr.bf16.mxu1 %v22857_v42 }
 0x48e   : > { %18184 = vmatpush3.bf16.msra.mxu0 %v22863_v61 }
 0x48f   : > { %16105 = vmatpush3.bf16.msra.mxu1 %v22870_v28  ;;  %16112 = vmatprep.subr.bf16.mxu0 %v22877_v60 }
 0x490   : > { %18189 = vmatprep.subr.bf16.mxu1 %v27973_v46 }
 0x491   : > { %v6426_v63 = vpop.f32.mrf.mxu0  ;;  %18186 = vmatmul.mubr.bf16.vlgmr.msra.gmra.mxu0 %v23348_v38 }
 0x492   : > { %v6427_v32 = vadd.f32 %v6426_v63, %v6387_v51  ;;  %v15894_v50 = vpop.f32.mrf.mxu1  ;;  %7201 = vmatmul.mubr.bf16.vlgmr.msra.gmra.mxu1 %v28082_v29  ;;  %16113 = vmatpush3.bf16.msra.mxu0 %v22884_v35 }
 0x493   : > { %7240 = vmatprep.mubr.bf16.mxu0 %v23175_v39  ;;  %18190 = vmatpush3.bf16.msra.mxu1 %v22895_v15  ;;  %v18107_v56 = vpop.f32.mrf.mxu0  ;;  %v28088_v39 = vld [vmem:[#allocation45_spill] sm:$0xff] }
 0x494   : > { %v15895_v59 = vpop.f32.mrf.mxu1  ;;  %16114 = vmatprep.subr.bf16.mxu0 %v22903_v2  ;;  %18191 = vmatprep.subr.bf16.mxu1 %v27973_v46 }
 0x495   : > { %v15896_v62 = vadd.f32 %v15895_v59, %v15894_v50  ;;  %v6429_v55 = vpop.f32.mrf.mxu0  ;;  %18205 = vmatprep.mubr.msk.bf16.mxu1 %vm19824_vm11, %v27973_v46  ;;  %v28085_v59 = vld [vmem:[#allocation33_spill] sm:$0xff] }
 0x496   : > { %v15897_v51 = vpop.f32.mrf.mxu1  ;;  %16115 = vmatpush3.bf16.msra.mxu0 %v22914_v11  ;;  %v28083_v55 = vld [vmem:[#allocation44_spill] sm:$0xff] }
 0x497   : > { %v6707_v63 = vadd.f32 %v15896_v62, %v6427_v32  ;;  %18192 = vmatpush3.bf16.msra.mxu1 %v22921_v36  ;;  %v18108_v29 = vpop.f32.mrf.mxu0  ;;  %16116 = vmatprep.subr.bf16.mxu0 %v22926_v3  ;;  %v28084_v32 = vld [vmem:[#allocation57_spill] sm:$0xff]  ;;  %v28086_v51 = vld [vmem:[#allocation95_spill] sm:$0xff] }
 0x498   : > { %v15898_v56 = vpop.f32.mrf.mxu1  ;;  %18193 = vmatprep.subr.bf16.mxu1 %v27973_v46  ;;  %v23390_v50 = vpack.c.bf16 %v28084_v32, %v28084_v32 }
 0x499   : > { %v28087_v56 = vld [vmem:[#allocation73_spill] sm:$0xff] }
 0x49a   : > { %16117 = vmatpush3.bf16.msra.mxu0 %v22936_v53 }
 0x49b   : > { %18194 = vmatpush3.bf16.msra.mxu1 %v22943_v27  ;;  %16118 = vmatprep.subr.bf16.mxu0 %v22948_v21 }
 0x49c   : > { %18195 = vmatprep.subr.bf16.mxu1 %v27973_v46 }
 0x49e   : > { %16119 = vmatpush3.bf16.msra.mxu0 %v22955_v43 }
 0x49f   : > { %18196 = vmatpush3.bf16.msra.mxu1 %v22962_v30  ;;  %16120 = vmatprep.subr.bf16.mxu0 %v22967_v7 }
 0x4a0   : > { %18197 = vmatprep.subr.bf16.mxu1 %v27973_v46 }
 0x4a2   : > { %16121 = vmatpush3.bf16.msra.mxu0 %v22974_v47 }
 0x4a3   : > { %18198 = vmatpush3.bf16.msra.mxu1 %v22981_v16  ;;  %16122 = vmatprep.subr.bf16.mxu0 %v22986_v17 }
 0x4a4   : > { %18199 = vmatprep.subr.bf16.mxu1 %v27973_v46 }
 0x4a6   : > { %16123 = vmatpush3.bf16.msra.mxu0 %v22993_v33  ;;  %v28094_v33 = vld [vmem:[#allocation97_spill] sm:$0xff] }
 0x4a7   : > { %18200 = vmatpush3.bf16.msra.mxu1 %v23000_v45  ;;  %16124 = vmatprep.subr.bf16.mxu0 %v23005_v25  ;;  %v28091_v25 = vld [vmem:[#allocation84_spill] sm:$0xff] }
 0x4a8   : > { %18201 = vmatprep.subr.bf16.mxu1 %v27973_v46  ;;  %v28092_v45 = vld [vmem:[#allocation32_spill] sm:$0xff] }
 0x4aa   : > { %16125 = vmatpush3.bf16.msra.mxu0 %v23012_v57 }
 0x4ab   : > { %18202 = vmatpush3.bf16.msra.mxu1 %v23019_v37  ;;  %16126 = vmatprep.subr.bf16.mxu0 %v23024_v6  ;;  %v28090_v6 = vld [vmem:[#allocation96_spill] sm:$0xff] }
 0x4ac   : > { %18203 = vmatprep.subr.bf16.mxu1 %v27973_v46 }
 0x4ae   : > { %16127 = vmatpush3.bf16.msra.mxu0 %v23031_v22  ;;  %v28089_v22 = vld [vmem:[#allocation21_spill] sm:$0xff] }
 0x4af   : > { %18204 = vmatpush3.bf16.msra.mxu1 %v28083_v55  ;;  %16143 = vmatprep.subr.bf16.mxu0 %v23170_v52 }
 0x4b0   : > { %16165 = vmatprep.subr.bf16.mxu1 %v28085_v59 }
 0x4b1   : > { %v15916_v62 = vpop.f32.mrf.mxu0  ;;  %7241 = vmatmul.mubr.bf16.vlgmr.msra.gmra.mxu0 %v28086_v51 }
 0x4b2   : > { %v6786_v29 = vpop.f32.mrf.mxu1  ;;  %18206 = vmatmul.mubr.bf16.vlgmr.msra.gmra.mxu1 %v23390_v50  ;;  %16144 = vmatpush3.bf16.msra.mxu0 %v28087_v56 }
 0x4b3   : > { %7328 = vmatprep.mubr.bf16.mxu0 %v28075_v9  ;;  %16166 = vmatpush3.bf16.msra.mxu1 %v28088_v39  ;;  %v15917_v55 = vpop.f32.mrf.mxu0  ;;  %v28093_v9 = vld [vmem:[#allocation46_spill] sm:$0xff] }
 0x4b4   : > { %7368 = vmatprep.mubr.bf16.mxu1 %v23348_v38  ;;  %v15918_v52 = vadd.f32 %v15917_v55, %v15916_v62  ;;  %v18127_v32 = vpop.f32.mrf.mxu1  ;;  %16145 = vmatprep.subr.bf16.mxu0 %v28089_v22  ;;  %v28096_v55 = vld [vmem:[#allocation75_spill] sm:$0xff] }
 0x4b5   : > { %v15919_v59 = vpop.f32.mrf.mxu0  ;;  %16167 = vmatprep.subr.bf16.mxu1 %v28090_v6  ;;  %v28097_v62 = vld [vmem:[#allocation47_spill] sm:$0xff] }
 0x4b6   : > { %v6747_v37 = vadd.f32 %v15918_v52, %v6707_v63  ;;  %v6789_v57 = vpop.f32.mrf.mxu1  ;;  %16146 = vmatpush3.bf16.msra.mxu0 %v28091_v25  ;;  %v28098_v59 = vld [vmem:[#allocation23_spill] sm:$0xff]  ;;  %v28099_v52 = vld [vmem:[#allocation48_spill] sm:$0xff]  ;;  %v28101_v63 = vld [vmem:[#allocation98_spill] sm:$0xff] }
 0x4b7   : > { %16168 = vmatpush3.bf16.msra.mxu1 %v28092_v45  ;;  %v15920_v56 = vpop.f32.mrf.mxu0  ;;  %16147 = vmatprep.subr.bf16.mxu0 %v28093_v9  ;;  %v28100_v57 = vld [vmem:[#allocation76_spill] sm:$0xff]  ;;  %v23438_v32 = vld [vmem:[%s27256_s3 + $0x1d0] sm:$0xff]  }
 0x4b8   : > { %v18128_v39 = vpop.f32.mrf.mxu1  ;;  %16169 = vmatprep.subr.bf16.mxu1 %v28094_v33  ;;  %v23405_v38 = vadd.f32 %v6786_v29, %v6747_v37  ;;  %v28102_v56 = vld [vmem:[#allocation24_spill] sm:$0xff]  ;;  %v23420_v37 = vld [vmem:[%s27256_s3 + $0x190] sm:$0xff]   ;;  %28106 = vst [vmem:[#allocation53_spill] sm:$0xff] %v23438_v32 }
 0x4b9   : > { %28103 = vst [vmem:[#allocation99_spill] sm:$0xff] %v23420_v37  ;;  %v23426_v39 = vld [vmem:[%s27256_s3 + $0x210] sm:$0xff]  }
 0x4ba   : > { %28095 = vst [vmem:[#allocation35_spill] sm:$0xff] %v23405_v38  ;;  %16148 = vmatpush3.bf16.msra.mxu0 %v28096_v55  ;;  %28104 = vst [vmem:[#allocation50_spill] sm:$0xff] %v23426_v39  ;;  %v23432_v29 = vld [vmem:[%s27256_s3 + $0x150] sm:$0xff]   ;;  %v23444_v38 = vld [vmem:[%s27256_s3 + $0x188] sm:$0xff]  }
 0x4bb   : > { %16170 = vmatpush3.bf16.msra.mxu1 %v28097_v62  ;;  %16149 = vmatprep.subr.bf16.mxu0 %v28098_v59  ;;  %28105 = vst [vmem:[#allocation100_spill] sm:$0xff] %v23432_v29  ;;  %28107 = vst [vmem:[#allocation103_spill] sm:$0xff] %v23444_v38 }
 0x4bc   : > { %16171 = vmatprep.subr.bf16.mxu1 %v28099_v52 }
 0x4be   : > { %16150 = vmatpush3.bf16.msra.mxu0 %v28100_v57 }
 0x4bf   : > { %16172 = vmatpush3.bf16.msra.mxu1 %v28101_v63  ;;  %16151 = vmatprep.subr.bf16.mxu0 %v28102_v56 }
 0x4c0   : > { %16173 = vmatprep.subr.bf16.mxu1 %v23280_v0 }
 0x4c2   : > { %16152 = vmatpush3.bf16.msra.mxu0 %v23286_v12 }
 0x4c3   : > { %16174 = vmatpush3.bf16.msra.mxu1 %v23292_v10  ;;  %16153 = vmatprep.subr.bf16.mxu0 %v23420_v37  ;;  %v28116_v37 = vld [vmem:[#allocation88_spill] sm:$0xff]  ;;  %v28117_v10 = vld [vmem:[#allocation83_spill] sm:$0xff] }
 0x4c4   : > { %16175 = vmatprep.subr.bf16.mxu1 %v23426_v39  ;;  %v23450_v39 = vld [vmem:[%s27256_s3 + $0x208] sm:$0xff]  }
 0x4c5   : > { %28108 = vst [vmem:[#allocation54_spill] sm:$0xff] %v23450_v39 }
 0x4c6   : > { %16154 = vmatpush3.bf16.msra.mxu0 %v23432_v29  ;;  %v23456_v29 = vld [vmem:[%s27256_s3 + $0x148] sm:$0xff]  }
 0x4c7   : > { %16176 = vmatpush3.bf16.msra.mxu1 %v23438_v32  ;;  %16155 = vmatprep.subr.bf16.mxu0 %v23444_v38  ;;  %28109 = vst [vmem:[#allocation104_spill] sm:$0xff] %v23456_v29  ;;  %v23462_v32 = vld [vmem:[%s27256_s3 + $0x1c8] sm:$0xff]   ;;  %v23468_v38 = vld [vmem:[%s27256_s3 + $0x180] sm:$0xff]  }
 0x4c8   : > { %16177 = vmatprep.subr.bf16.mxu1 %v23450_v39  ;;  %28110 = vst [vmem:[#allocation55_spill] sm:$0xff] %v23462_v32  ;;  %28111 = vst [vmem:[#allocation105_spill] sm:$0xff] %v23468_v38  ;;  %v23474_v39 = vld [vmem:[%s27256_s3 + $0x200] sm:$0xff]  }
 0x4c9   : > { %28112 = vst [vmem:[#allocation56_spill] sm:$0xff] %v23474_v39 }
 0x4ca   : > { %16156 = vmatpush3.bf16.msra.mxu0 %v23456_v29  ;;  %v23480_v29 = vld [vmem:[%s27256_s3 + $0x140] sm:$0xff]  }
 0x4cb   : > { %16178 = vmatpush3.bf16.msra.mxu1 %v23462_v32  ;;  %16157 = vmatprep.subr.bf16.mxu0 %v23468_v38  ;;  %28113 = vst [vmem:[#allocation106_spill] sm:$0xff] %v23480_v29  ;;  %v23486_v32 = vld [vmem:[%s27256_s3 + $0x1c0] sm:$0xff]  }
 0x4cc   : > { %16179 = vmatprep.subr.bf16.mxu1 %v23474_v39  ;;  %28114 = vst [vmem:[#allocation59_spill] sm:$0xff] %v23486_v32  ;;  %v23493_v39 = vld [vmem:[%s27256_s3 + $0x78] sm:$0xff]  }
 0x4cd   : > { %28115 = vst [vmem:[#allocation7_spill] sm:$0xff] %v23493_v39 }
 0x4ce   : > { %16158 = vmatpush3.bf16.msra.mxu0 %v23480_v29 }
 0x4cf   : > { %16180 = vmatpush3.bf16.msra.mxu1 %v23486_v32  ;;  %18209 = vmatprep.subr.bf16.mxu0 %v27973_v46 }
 0x4d0   : > { %16196 = vmatprep.subr.bf16.mxu1 %v23493_v39 }
 0x4d1   : > { %v15947_v38 = vpop.f32.mrf.mxu0  ;;  %7329 = vmatmul.mubr.bf16.vlgmr.msra.gmra.mxu0 %v28116_v37 }
 0x4d2   : > { %v15969_v29 = vpop.f32.mrf.mxu1  ;;  %7369 = vmatmul.mubr.bf16.vlgmr.msra.gmra.mxu1 %v28117_v10  ;;  %18210 = vmatpush3.bf16.msra.mxu0 %v22599_v19 }
 0x4d3   : > { %16197 = vmatpush3.bf16.msra.mxu1 %v22611_v54  ;;  %7448 = vmatprep.mubr.bf16.mxu1 %v28086_v51  ;;  %v15948_v32 = vpop.f32.mrf.mxu0 }
 0x4d4   : > { %v15949_v12 = vadd.f32 %v15948_v32, %v15947_v38  ;;  %v15970_v0 = vpop.f32.mrf.mxu1  ;;  %18211 = vmatprep.subr.bf16.mxu0 %v27973_v46  ;;  %16198 = vmatprep.subr.bf16.mxu1 %v22627_v24  ;;  %v28139_v32 = vld [vmem:[#allocation49_spill] sm:$0xff] }
 0x4d5   : > { %v15971_v39 = vadd.f32 %v15970_v0, %v15969_v29  ;;  %v15950_v56 = vpop.f32.mrf.mxu0  ;;  %18225 = vmatprep.mubr.msk.bf16.mxu0 %vm19824_vm11, %v27973_v46  ;;  %v28118_v0 = vld [vmem:[#allocation68_spill] sm:$0xff] }
 0x4d6   : > { %v15972_v37 = vpop.f32.mrf.mxu1  ;;  %18212 = vmatpush3.bf16.msra.mxu0 %v22641_v40  ;;  %v28119_v24 = vshll.u32 %v28118_v0, 16  ;;  %v28138_v29 = vld [vmem:[#allocation24_spill] sm:$0xff] }
 0x4d7   : > { %16199 = vmatpush3.bf16.msra.mxu1 %v22657_v49  ;;  %v15951_v19 = vpop.f32.mrf.mxu0  ;;  %18213 = vmatprep.subr.bf16.mxu0 %v27973_v46  ;;  %v6875_v54 = vadd.f32 %v15971_v39, %v15949_v12  ;;  %v28120_v49 = vshrl.u32 %v28118_v0, 16  ;;  %v28140_v37 = vld [vmem:[#allocation86_spill] sm:$0xff] }
 0x4d8   : > { %v15973_v38 = vpop.f32.mrf.mxu1  ;;  %16200 = vmatprep.subr.bf16.mxu1 %v22664_v8  ;;  %v7293_v40 = vrot.slane %v28119_v24, 1  ;;  %v28141_v19 = vld [vmem:[#allocation34_spill] sm:$0xff]  ;;  %v28144_v24 = vld [vmem:[#allocation100_spill] sm:$0xff] }
 0x4d9   : > { %v28143_v38 = vld [vmem:[#allocation50_spill] sm:$0xff] }
 0x4da   : > { %18214 = vmatpush3.bf16.msra.mxu0 %v22672_v58  ;;  %v23535_v8 = vor.u32 %v7293_v40, %v28120_v49  ;;  %v28145_v40 = vld [vmem:[#allocation53_spill] sm:$0xff]  ;;  %v28146_v49 = vld [vmem:[#allocation103_spill] sm:$0xff] }
 0x4db   : > { %16201 = vmatpush3.bf16.msra.mxu1 %v22683_v18  ;;  %18215 = vmatprep.subr.bf16.mxu0 %v27973_v46 }
 0x4dc   : > { %16202 = vmatprep.subr.bf16.mxu1 %v22692_v41  ;;  %28121 = vst [vmem:[#allocation60_spill] sm:$0xff] %v23535_v8 }
 0x4de   : > { %18216 = vmatpush3.bf16.msra.mxu0 %v22705_v23 }
 0x4df   : > { %16203 = vmatpush3.bf16.msra.mxu1 %v22714_v14  ;;  %18217 = vmatprep.subr.bf16.mxu0 %v27973_v46 }
 0x4e0   : > { %16204 = vmatprep.subr.bf16.mxu1 %v22728_v44 }
 0x4e2   : > { %18218 = vmatpush3.bf16.msra.mxu0 %v22754_v4 }
 0x4e3   : > { %16205 = vmatpush3.bf16.msra.mxu1 %v22769_v26  ;;  %18219 = vmatprep.subr.bf16.mxu0 %v27973_v46 }
 0x4e4   : > { %16206 = vmatprep.subr.bf16.mxu1 %v22783_v1 }
 0x4e6   : > { %18220 = vmatpush3.bf16.msra.mxu0 %v28076_v5 }
 0x4e7   : > { %16207 = vmatpush3.bf16.msra.mxu1 %v28077_v20  ;;  %18221 = vmatprep.subr.bf16.mxu0 %v27973_v46 }
 0x4e8   : > { %16208 = vmatprep.subr.bf16.mxu1 %v22834_v13  ;;  %v28131_v13 = vld [vmem:[#allocation36_spill] sm:$0xff] }
 0x4ea   : > { %18222 = vmatpush3.bf16.msra.mxu0 %v22844_v34  ;;  %v28133_v34 = vld [vmem:[#allocation33_spill] sm:$0xff] }
 0x4eb   : > { %16209 = vmatpush3.bf16.msra.mxu1 %v22851_v48  ;;  %18223 = vmatprep.subr.bf16.mxu0 %v27973_v46 }
 0x4ec   : > { %16210 = vmatprep.subr.bf16.mxu1 %v22857_v42  ;;  %v28134_v42 = vld [vmem:[#allocation85_spill] sm:$0xff] }
 0x4ee   : > { %18224 = vmatpush3.bf16.msra.mxu0 %v22863_v61 }
 0x4ef   : > { %16211 = vmatpush3.bf16.msra.mxu1 %v22870_v28  ;;  %16218 = vmatprep.subr.bf16.mxu0 %v22877_v60  ;;  %v28135_v28 = vld [vmem:[#allocation73_spill] sm:$0xff] }
 0x4f0   : > { %18229 = vmatprep.subr.bf16.mxu1 %v27973_v46 }
 0x4f1   : > { %v6914_v58 = vpop.f32.mrf.mxu0  ;;  %18226 = vmatmul.mubr.bf16.vlgmr.msra.gmra.mxu0 %v23535_v8 }
 0x4f2   : > { %v6915_v1 = vadd.f32 %v6914_v58, %v6875_v54  ;;  %v16000_v18 = vpop.f32.mrf.mxu1  ;;  %7449 = vmatmul.mubr.bf16.vlgmr.msra.gmra.mxu1 %v28053_v31  ;;  %16219 = vmatpush3.bf16.msra.mxu0 %v22884_v35  ;;  %v23577_v35 = vpack.c.bf16 %v28131_v13, %v28131_v13  ;;  %v28142_v54 = vld [vmem:[#allocation99_spill] sm:$0xff]  ;;  %v28147_v58 = vld [vmem:[#allocation54_spill] sm:$0xff] }
 0x4f3   : > { %7488 = vmatprep.mubr.bf16.mxu0 %v23390_v50  ;;  %18230 = vmatpush3.bf16.msra.mxu1 %v22895_v15  ;;  %v18147_v44 = vpop.f32.mrf.mxu0  ;;  %v28136_v15 = vld [vmem:[#allocation45_spill] sm:$0xff] }
 0x4f4   : > { %v16001_v41 = vpop.f32.mrf.mxu1  ;;  %16220 = vmatprep.subr.bf16.mxu0 %v22903_v2  ;;  %18231 = vmatprep.subr.bf16.mxu1 %v27973_v46  ;;  %v28124_v2 = vld [vmem:[#allocation82_spill] sm:$0xff]  ;;  %28132 = vst [vmem:[#allocation8_spill] sm:$0xff] %v23577_v35  ;;  %v28150_v44 = vld [vmem:[#allocation105_spill] sm:$0xff] }
 0x4f5   : > { %v16002_v14 = vadd.f32 %v16001_v41, %v16000_v18  ;;  %v6917_v23 = vpop.f32.mrf.mxu0  ;;  %18245 = vmatprep.mubr.msk.bf16.mxu1 %vm19824_vm11, %v27973_v46  ;;  %v28149_v18 = vld [vmem:[#allocation55_spill] sm:$0xff]  ;;  %v28151_v41 = vld [vmem:[#allocation56_spill] sm:$0xff] }
 0x4f6   : > { %v16003_v4 = vpop.f32.mrf.mxu1  ;;  %16221 = vmatpush3.bf16.msra.mxu0 %v22914_v11  ;;  %v28153_v23 = vld [vmem:[#allocation59_spill] sm:$0xff] }
 0x4f7   : > { %v6955_v31 = vadd.f32 %v16002_v14, %v6915_v1  ;;  %18232 = vmatpush3.bf16.msra.mxu1 %v22921_v36  ;;  %v18148_v26 = vpop.f32.mrf.mxu0  ;;  %16222 = vmatprep.subr.bf16.mxu0 %v22926_v3  ;;  %v28148_v1 = vld [vmem:[#allocation104_spill] sm:$0xff]  ;;  %v28152_v14 = vld [vmem:[#allocation106_spill] sm:$0xff]  ;;  %v28154_v4 = vld [vmem:[#allocation7_spill] sm:$0xff] }
 0x4f8   : > { %v16004_v60 = vpop.f32.mrf.mxu1  ;;  %18233 = vmatprep.subr.bf16.mxu1 %v27973_v46  ;;  %v28155_v26 = vld [vmem:[#allocation71_spill] sm:$0xff] }
 0x4fa   : > { %16223 = vmatpush3.bf16.msra.mxu0 %v22936_v53 }
 0x4fb   : > { %18234 = vmatpush3.bf16.msra.mxu1 %v22943_v27  ;;  %16224 = vmatprep.subr.bf16.mxu0 %v22948_v21  ;;  %v28122_v27 = vld [vmem:[#allocation19_spill] sm:$0xff]  ;;  %v28123_v21 = vld [vmem:[#allocation94_spill] sm:$0xff] }
 0x4fc   : > { %18235 = vmatprep.subr.bf16.mxu1 %v27973_v46 }
 0x4fe   : > { %16225 = vmatpush3.bf16.msra.mxu0 %v22955_v43  ;;  %v28127_v43 = vld [vmem:[#allocation22_spill] sm:$0xff] }
 0x4ff   : > { %18236 = vmatpush3.bf16.msra.mxu1 %v22962_v30  ;;  %16226 = vmatprep.subr.bf16.mxu0 %v22967_v7  ;;  %v28125_v30 = vld [vmem:[#allocation30_spill] sm:$0xff] }
 0x500   : > { %18237 = vmatprep.subr.bf16.mxu1 %v27973_v46  ;;  %v28126_v7 = vld [vmem:[#allocation6_spill] sm:$0xff] }
 0x502   : > { %16227 = vmatpush3.bf16.msra.mxu0 %v22974_v47  ;;  %v28129_v47 = vld [vmem:[#allocation44_spill] sm:$0xff] }
 0x503   : > { %18238 = vmatpush3.bf16.msra.mxu1 %v22981_v16  ;;  %16228 = vmatprep.subr.bf16.mxu0 %v22986_v17  ;;  %v28128_v16 = vld [vmem:[#allocation72_spill] sm:$0xff]  ;;  %v28130_v17 = vld [vmem:[#allocation31_spill] sm:$0xff] }
 0x504   : > { %18239 = vmatprep.subr.bf16.mxu1 %v27973_v46 }
 0x506   : > { %16229 = vmatpush3.bf16.msra.mxu0 %v28122_v27  ;;  %v28156_v27 = vld [vmem:[#allocation87_spill] sm:$0xff] }
 0x507   : > { %18240 = vmatpush3.bf16.msra.mxu1 %v28123_v21  ;;  %16230 = vmatprep.subr.bf16.mxu0 %v28124_v2  ;;  %v23623_v21 = vld [vmem:[%s27256_s3 + $0x278] sm:$0xff]  }
 0x508   : > { %18241 = vmatprep.subr.bf16.mxu1 %v27973_v46  ;;  %v23629_v2 = vld [vmem:[%s27256_s3 + $0x38] sm:$0xff]  }
 0x50a   : > { %16231 = vmatpush3.bf16.msra.mxu0 %v28125_v30 }
 0x50b   : > { %18242 = vmatpush3.bf16.msra.mxu1 %v28126_v7  ;;  %16232 = vmatprep.subr.bf16.mxu0 %v28127_v43 }
 0x50c   : > { %18243 = vmatprep.subr.bf16.mxu1 %v27973_v46 }
 0x50e   : > { %16233 = vmatpush3.bf16.msra.mxu0 %v28128_v16  ;;  %v23637_v16 = vld [vmem:[%s27256_s3 + $0x70] sm:$0xff]  }
 0x50f   : > { %18244 = vmatpush3.bf16.msra.mxu1 %v28129_v47  ;;  %16249 = vmatprep.subr.bf16.mxu0 %v28130_v17 }
 0x510   : > { %16271 = vmatprep.subr.bf16.mxu1 %v28133_v34 }
 0x511   : > { %v16022_v48 = vpop.f32.mrf.mxu0  ;;  %7489 = vmatmul.mubr.bf16.vlgmr.msra.gmra.mxu0 %v28134_v42 }
 0x512   : > { %v7034_v61 = vpop.f32.mrf.mxu1  ;;  %18246 = vmatmul.mubr.bf16.vlgmr.msra.gmra.mxu1 %v23577_v35  ;;  %16250 = vmatpush3.bf16.msra.mxu0 %v28135_v28 }
 0x513   : > { %7576 = vmatprep.mubr.bf16.mxu0 %v28117_v10  ;;  %16272 = vmatpush3.bf16.msra.mxu1 %v28136_v15  ;;  %v16023_v11 = vpop.f32.mrf.mxu0 }
 0x514   : > { %7616 = vmatprep.mubr.bf16.mxu1 %v23535_v8  ;;  %v16024_v36 = vadd.f32 %v16023_v11, %v16022_v48  ;;  %v18167_v3 = vpop.f32.mrf.mxu1  ;;  %16251 = vmatprep.subr.bf16.mxu0 %v28089_v22  ;;  %v23651_v11 = vld [vmem:[%s27256_s3 + $0x30] sm:$0xff]  }
 0x515   : > { %v16025_v53 = vpop.f32.mrf.mxu0  ;;  %16273 = vmatprep.subr.bf16.mxu1 %v28090_v6 }
 0x516   : > { %v6995_v12 = vadd.f32 %v16024_v36, %v6955_v31  ;;  %v7037_v5 = vpop.f32.mrf.mxu1  ;;  %16252 = vmatpush3.bf16.msra.mxu0 %v28091_v25 }
 0x517   : > { %16274 = vmatpush3.bf16.msra.mxu1 %v28092_v45  ;;  %v16026_v20 = vpop.f32.mrf.mxu0  ;;  %16253 = vmatprep.subr.bf16.mxu0 %v28093_v9  ;;  %v23664_v5 = vld [vmem:[%s27256_s3 + $0x268] sm:$0xff]  }
 0x518   : > { %v23591_v56 = vadd.f32 %v7034_v61, %v6995_v12  ;;  %v18168_v39 = vpop.f32.mrf.mxu1  ;;  %16275 = vmatprep.subr.bf16.mxu1 %v28094_v33  ;;  %v23645_v61 = vld [vmem:[%s27256_s3 + $0x270] sm:$0xff]   ;;  %v23658_v12 = vld [vmem:[%s27256_s3 + $0x68] sm:$0xff]  }
 0x519   : > { %v23670_v20 = vld [vmem:[%s27256_s3 + $0x28] sm:$0xff]   ;;  %v23677_v39 = vld [vmem:[%s27256_s3 + $0x60] sm:$0xff]  }
 0x51a   : > { %28137 = vst [vmem:[#allocation62_spill] sm:$0xff] %v23591_v56  ;;  %16254 = vmatpush3.bf16.msra.mxu0 %v28096_v55  ;;  %v28163_v56 = vld [vmem:[#allocation78_spill] sm:$0xff] }
 0x51b   : > { %16276 = vmatpush3.bf16.msra.mxu1 %v28097_v62  ;;  %16255 = vmatprep.subr.bf16.mxu0 %v28098_v59  ;;  %v28164_v0 = vshll.u32 %v28163_v56, 16 }
 0x51c   : > { %16277 = vmatprep.subr.bf16.mxu1 %v28099_v52 }
 0x51e   : > { %16256 = vmatpush3.bf16.msra.mxu0 %v28100_v57 }
 0x51f   : > { %16278 = vmatpush3.bf16.msra.mxu1 %v28101_v63  ;;  %16257 = vmatprep.subr.bf16.mxu0 %v28138_v29 }
 0x520   : > { %16279 = vmatprep.subr.bf16.mxu1 %v28139_v32 }
 0x522   : > { %16258 = vmatpush3.bf16.msra.mxu0 %v28140_v37 }
 0x523   : > { %16280 = vmatpush3.bf16.msra.mxu1 %v28141_v19  ;;  %16259 = vmatprep.subr.bf16.mxu0 %v28142_v54 }
 0x524   : > { %16281 = vmatprep.subr.bf16.mxu1 %v28143_v38 }
 0x526   : > { %16260 = vmatpush3.bf16.msra.mxu0 %v28144_v24 }
 0x527   : > { %16282 = vmatpush3.bf16.msra.mxu1 %v28145_v40  ;;  %16261 = vmatprep.subr.bf16.mxu0 %v28146_v49 }
 0x528   : > { %16283 = vmatprep.subr.bf16.mxu1 %v28147_v58 }
 0x52a   : > { %16262 = vmatpush3.bf16.msra.mxu0 %v28148_v1 }
 0x52b   : > { %16284 = vmatpush3.bf16.msra.mxu1 %v28149_v18  ;;  %16263 = vmatprep.subr.bf16.mxu0 %v28150_v44 }
 0x52c   : > { %16285 = vmatprep.subr.bf16.mxu1 %v28151_v41 }
 0x52e   : > { %16264 = vmatpush3.bf16.msra.mxu0 %v28152_v14 }
 0x52f   : > { %16286 = vmatpush3.bf16.msra.mxu1 %v28153_v23  ;;  %18249 = vmatprep.subr.bf16.mxu0 %v27973_v46 }
 0x530   : > { %16302 = vmatprep.subr.bf16.mxu1 %v28154_v4 }
 0x531   : > { %v16053_v31 = vpop.f32.mrf.mxu0  ;;  %7577 = vmatmul.mubr.bf16.vlgmr.msra.gmra.mxu0 %v28155_v26  ;;  %v23689_v26 = vld [vmem:[%s27256_s3 + $0x20] sm:$0xff]  }
 0x532   : > { %v16075_v60 = vpop.f32.mrf.mxu1  ;;  %7617 = vmatmul.mubr.bf16.vlgmr.msra.gmra.mxu1 %v28156_v27  ;;  %18250 = vmatpush3.bf16.msra.mxu0 %v23623_v21 }
 0x533   : > { %16303 = vmatpush3.bf16.msra.mxu1 %v23629_v2  ;;  %7696 = vmatprep.mubr.bf16.mxu1 %v28134_v42  ;;  %v16054_v30 = vpop.f32.mrf.mxu0  ;;  %v7541_v42 = vrot.slane %v28164_v0, 1  ;;  %v28167_v0 = vshrl.u32 %v28163_v56, 16 }
 0x534   : > { %v16055_v7 = vadd.f32 %v16054_v30, %v16053_v31  ;;  %v16076_v43 = vpop.f32.mrf.mxu1  ;;  %18251 = vmatprep.subr.bf16.mxu0 %v27973_v46  ;;  %16304 = vmatprep.subr.bf16.mxu1 %v23637_v16  ;;  %v23683_v31 = vld [vmem:[%s27256_s3 + $0x260] sm:$0xff]   ;;  %v23702_v30 = vld [vmem:[%s27256_s3 + $0x258] sm:$0xff]  }
 0x535   : > { %v16077_v47 = vadd.f32 %v16076_v43, %v16075_v60  ;;  %v16056_v13 = vpop.f32.mrf.mxu0  ;;  %18265 = vmatprep.mubr.msk.bf16.mxu0 %vm19824_vm11, %v27973_v46  ;;  %v23696_v60 = vld [vmem:[%s27256_s3 + $0x58] sm:$0xff]   ;;  %v23715_v43 = vld [vmem:[%s27256_s3 + $0x50] sm:$0xff]  }
 0x536   : > { %v16078_v48 = vpop.f32.mrf.mxu1  ;;  %18252 = vmatpush3.bf16.msra.mxu0 %v23645_v61  ;;  %28157 = vst [vmem:[#allocation10_spill] sm:$0xff] %v23715_v43  ;;  %v23727_v13 = vld [vmem:[%s27256_s3 + $0x10] sm:$0xff]  }
 0x537   : > { %16305 = vmatpush3.bf16.msra.mxu1 %v23651_v11  ;;  %v16057_v36 = vpop.f32.mrf.mxu0  ;;  %18253 = vmatprep.subr.bf16.mxu0 %v27973_v46  ;;  %v7123_v3 = vadd.f32 %v16077_v47, %v16055_v7  ;;  %v23708_v7 = vld [vmem:[%s27256_s3 + $0x18] sm:$0xff]   ;;  %v23721_v47 = vld [vmem:[%s27256_s3 + $0x250] sm:$0xff]   ;;  %28159 = vst [vmem:[#allocation13_spill] sm:$0xff] %v23727_v13  ;;  %v23734_v48 = vld [vmem:[%s27256_s3 + $0x48] sm:$0xff]  }
 0x538   : > { %v16079_v53 = vpop.f32.mrf.mxu1  ;;  %16306 = vmatprep.subr.bf16.mxu1 %v23658_v12  ;;  %28158 = vst [vmem:[#allocation12_spill] sm:$0xff] %v23721_v47  ;;  %28160 = vst [vmem:[#allocation66_spill] sm:$0xff] %v23734_v48  ;;  %v23740_v36 = vld [vmem:[%s27256_s3 + $0x248] sm:$0xff]  }
 0x539   : > { %28161 = vst [vmem:[#allocation14_spill] sm:$0xff] %v23740_v36  ;;  %v23746_v53 = vld [vmem:[%s27256_s3 + $0x8] sm:$0xff]  }
 0x53a   : > { %18254 = vmatpush3.bf16.msra.mxu0 %v23664_v5  ;;  %28162 = vst [vmem:[#allocation107_spill] sm:$0xff] %v23746_v53 }
 0x53b   : > { %16307 = vmatpush3.bf16.msra.mxu1 %v23670_v20  ;;  %18255 = vmatprep.subr.bf16.mxu0 %v27973_v46 }
 0x53c   : > { %16308 = vmatprep.subr.bf16.mxu1 %v23677_v39 }
 0x53e   : > { %18256 = vmatpush3.bf16.msra.mxu0 %v23683_v31 }
 0x53f   : > { %16309 = vmatpush3.bf16.msra.mxu1 %v23689_v26  ;;  %18257 = vmatprep.subr.bf16.mxu0 %v27973_v46 }
 0x540   : > { %16310 = vmatprep.subr.bf16.mxu1 %v23696_v60 }
 0x542   : > { %18258 = vmatpush3.bf16.msra.mxu0 %v23702_v30 }
 0x543   : > { %16311 = vmatpush3.bf16.msra.mxu1 %v23708_v7  ;;  %18259 = vmatprep.subr.bf16.mxu0 %v27973_v46 }
 0x544   : > { %16312 = vmatprep.subr.bf16.mxu1 %v23715_v43 }
 0x546   : > { %18260 = vmatpush3.bf16.msra.mxu0 %v23721_v47 }
 0x547   : > { %16313 = vmatpush3.bf16.msra.mxu1 %v23727_v13  ;;  %18261 = vmatprep.subr.bf16.mxu0 %v27973_v46  ;;  %v23772_v13 = vor.u32 %v7541_v42, %v28167_v0  ;;  %v23786_v42 = vld [vmem:[%s27256_s3 + $0xb8] sm:$0xff]  }
 0x548   : > { %16314 = vmatprep.subr.bf16.mxu1 %v23734_v48  ;;  %v23755_v48 = vld [vmem:[%s27256_s3 + $0x40] sm:$0xff]   ;;  %28168 = vst [vmem:[#allocation9_spill] sm:$0xff] %v23786_v42  ;;  %v23793_v0 = vld [vmem:[%s27256_s3 + $0x138] sm:$0xff]  }
 0x549   : > { %28165 = vst [vmem:[#allocation108_spill] sm:$0xff] %v23755_v48  ;;  %28169 = vst [vmem:[#allocation39_spill] sm:$0xff] %v23793_v0 }
 0x54a   : > { %18262 = vmatpush3.bf16.msra.mxu0 %v23740_v36  ;;  %v23761_v36 = vld [vmem:[%s27256_s3 + $0x240] sm:$0xff]  }
 0x54b   : > { %16315 = vmatpush3.bf16.msra.mxu1 %v23746_v53  ;;  %18263 = vmatprep.subr.bf16.mxu0 %v27973_v46  ;;  %28166 = vst [vmem:[#allocation61_spill] sm:$0xff] %v23761_v36  ;;  %v23767_v53 = vld [vmem:[%s27256_s3] sm:$0xff]  }
 0x54c   : > { %16316 = vmatprep.subr.bf16.mxu1 %v23755_v48  ;;  %v23777_v48 = vld [vmem:[%s27256_s3 + $0xf8] sm:$0xff]  }
 0x54e   : > { %18264 = vmatpush3.bf16.msra.mxu0 %v23761_v36 }
 0x54f   : > { %16317 = vmatpush3.bf16.msra.mxu1 %v23767_v53  ;;  %16324 = vmatprep.subr.bf16.mxu0 %v23777_v48 }
 0x550   : > { %18269 = vmatprep.subr.bf16.mxu1 %v27973_v46 }
 0x551   : > { %v7162_v36 = vpop.f32.mrf.mxu0  ;;  %18266 = vmatmul.mubr.bf16.vlgmr.msra.gmra.mxu0 %v23772_v13 }
 0x552   : > { %v7163_v47 = vadd.f32 %v7162_v36, %v7123_v3  ;;  %v16106_v43 = vpop.f32.mrf.mxu1  ;;  %7697 = vmatmul.mubr.bf16.vlgmr.msra.gmra.mxu1 %v28086_v51  ;;  %16325 = vmatpush3.bf16.msra.mxu0 %v23786_v42  ;;  %v23799_v51 = vld [vmem:[%s27256_s3 + $0xf0] sm:$0xff]  }
 0x553   : > { %7736 = vmatprep.mubr.bf16.mxu0 %v23577_v35  ;;  %18270 = vmatpush3.bf16.msra.mxu1 %v23793_v0  ;;  %v18187_v3 = vpop.f32.mrf.mxu0  ;;  %28170 = vst [vmem:[#allocation90_spill] sm:$0xff] %v23799_v51 }
 0x554   : > { %v16107_v36 = vpop.f32.mrf.mxu1  ;;  %16326 = vmatprep.subr.bf16.mxu0 %v23799_v51  ;;  %18271 = vmatprep.subr.bf16.mxu1 %v27973_v46  ;;  %v23808_v3 = vld [vmem:[%s27256_s3 + $0xb0] sm:$0xff]  }
 0x555   : > { %v16108_v56 = vadd.f32 %v16107_v36, %v16106_v43  ;;  %v7165_v35 = vpop.f32.mrf.mxu0  ;;  %18285 = vmatprep.mubr.msk.bf16.mxu1 %vm19824_vm11, %v27973_v46  ;;  %v23816_v51 = vld [vmem:[%s27256_s3 + $0x130] sm:$0xff]   ;;  %v23822_v43 = vld [vmem:[%s27256_s3 + $0xe8] sm:$0xff]   ;;  %v23841_v36 = vld [vmem:[%s27256_s3 + $0xe0] sm:$0xff]  }
 0x556   : > { %v16109_v42 = vpop.f32.mrf.mxu1  ;;  %16327 = vmatpush3.bf16.msra.mxu0 %v23808_v3  ;;  %28171 = vst [vmem:[#allocation40_spill] sm:$0xff] %v23816_v51  ;;  %28172 = vst [vmem:[#allocation5_spill] sm:$0xff] %v23822_v43 }
 0x557   : > { %v23811_v0 = vadd.f32 %v16108_v56, %v7163_v47  ;;  %18272 = vmatpush3.bf16.msra.mxu1 %v23816_v51  ;;  %v18188_v35 = vpop.f32.mrf.mxu0  ;;  %16328 = vmatprep.subr.bf16.mxu0 %v23822_v43  ;;  %v23829_v56 = vld [vmem:[%s27256_s3 + $0xa8] sm:$0xff]   ;;  %28175 = vst [vmem:[#allocation65_spill] sm:$0xff] %v23841_v36 }
 0x558   : > { %v16110_v42 = vpop.f32.mrf.mxu1  ;;  %18273 = vmatprep.subr.bf16.mxu1 %v27973_v46  ;;  %28173 = vst [vmem:[#allocation43_spill] sm:$0xff] %v23829_v56  ;;  %v23835_v47 = vld [vmem:[%s27256_s3 + $0x128] sm:$0xff]   ;;  %v23848_v35 = vld [vmem:[%s27256_s3 + $0xa0] sm:$0xff]  }
 0x559   : > { %28174 = vst [vmem:[#allocation64_spill] sm:$0xff] %v23835_v47  ;;  %28176 = vst [vmem:[#allocation38_spill] sm:$0xff] %v23848_v35  ;;  %v23854_v42 = vld [vmem:[%s27256_s3 + $0x120] sm:$0xff]  }
 0x55a   : > { %16329 = vmatpush3.bf16.msra.mxu0 %v23829_v56  ;;  %28177 = vst [vmem:[#allocation51_spill] sm:$0xff] %v23854_v42 }
 0x55b   : > { %18274 = vmatpush3.bf16.msra.mxu1 %v23835_v47  ;;  %16330 = vmatprep.subr.bf16.mxu0 %v23841_v36  ;;  %v23860_v36 = vld [vmem:[%s27256_s3 + $0xd8] sm:$0xff]   ;;  %v28190_v47 = vld [vmem:[#allocation37_spill] sm:$0xff] }
 0x55c   : > { %18275 = vmatprep.subr.bf16.mxu1 %v27973_v46  ;;  %28178 = vst [vmem:[#allocation67_spill] sm:$0xff] %v23860_v36 }
 0x55e   : > { %16331 = vmatpush3.bf16.msra.mxu0 %v23848_v35  ;;  %v23867_v35 = vld [vmem:[%s27256_s3 + $0x98] sm:$0xff]  }
 0x55f   : > { %18276 = vmatpush3.bf16.msra.mxu1 %v23854_v42  ;;  %16332 = vmatprep.subr.bf16.mxu0 %v23860_v36  ;;  %28179 = vst [vmem:[#allocation20_spill] sm:$0xff] %v23867_v35  ;;  %v23873_v42 = vld [vmem:[%s27256_s3 + $0x118] sm:$0xff]   ;;  %v23879_v36 = vld [vmem:[%s27256_s3 + $0xd0] sm:$0xff]  }
 0x560   : > { %18277 = vmatprep.subr.bf16.mxu1 %v27973_v46  ;;  %28180 = vst [vmem:[#allocation57_spill] sm:$0xff] %v23873_v42  ;;  %28181 = vst [vmem:[#allocation95_spill] sm:$0xff] %v23879_v36 }
 0x562   : > { %16333 = vmatpush3.bf16.msra.mxu0 %v23867_v35  ;;  %v23886_v35 = vld [vmem:[%s27256_s3 + $0x90] sm:$0xff]  }
 0x563   : > { %18278 = vmatpush3.bf16.msra.mxu1 %v23873_v42  ;;  %16334 = vmatprep.subr.bf16.mxu0 %v23879_v36  ;;  %28182 = vst [vmem:[#allocation21_spill] sm:$0xff] %v23886_v35  ;;  %v23892_v42 = vld [vmem:[%s27256_s3 + $0x110] sm:$0xff]   ;;  %v23898_v36 = vld [vmem:[%s27256_s3 + $0xc8] sm:$0xff]  }
 0x564   : > { %18279 = vmatprep.subr.bf16.mxu1 %v27973_v46  ;;  %28183 = vst [vmem:[#allocation96_spill] sm:$0xff] %v23892_v42  ;;  %28184 = vst [vmem:[#allocation84_spill] sm:$0xff] %v23898_v36 }
 0x566   : > { %16335 = vmatpush3.bf16.msra.mxu0 %v23886_v35  ;;  %v23905_v35 = vld [vmem:[%s27256_s3 + $0x88] sm:$0xff]  }
 0x567   : > { %18280 = vmatpush3.bf16.msra.mxu1 %v23892_v42  ;;  %16336 = vmatprep.subr.bf16.mxu0 %v23898_v36  ;;  %28185 = vst [vmem:[#allocation32_spill] sm:$0xff] %v23905_v35  ;;  %v23911_v42 = vld [vmem:[%s27256_s3 + $0x108] sm:$0xff]   ;;  %v23917_v36 = vld [vmem:[%s27256_s3 + $0xc0] sm:$0xff]  }
 0x568   : > { %18281 = vmatprep.subr.bf16.mxu1 %v27973_v46  ;;  %28186 = vst [vmem:[#allocation46_spill] sm:$0xff] %v23911_v42  ;;  %28187 = vst [vmem:[#allocation97_spill] sm:$0xff] %v23917_v36 }
 0x56a   : > { %16337 = vmatpush3.bf16.msra.mxu0 %v23905_v35  ;;  %v23924_v35 = vld [vmem:[%s27256_s3 + $0x80] sm:$0xff]  }
 0x56b   : > { %18282 = vmatpush3.bf16.msra.mxu1 %v23911_v42  ;;  %16338 = vmatprep.subr.bf16.mxu0 %v23917_v36  ;;  %28188 = vst [vmem:[#allocation75_spill] sm:$0xff] %v23924_v35  ;;  %v23930_v42 = vld [vmem:[%s27256_s3 + $0x100] sm:$0xff]   ;;  %v23936_v36 = vpack.c.bf16 %v28190_v47, %v28190_v47 }
 0x56c   : > { %18283 = vmatprep.subr.bf16.mxu1 %v27973_v46  ;;  %28189 = vst [vmem:[#allocation47_spill] sm:$0xff] %v23930_v42 }
 0x56d   : > { %28191 = vst [vmem:[#allocation23_spill] sm:$0xff] %v23936_v36 }
 0x56e   : > { %16339 = vmatpush3.bf16.msra.mxu0 %v23924_v35 }
 0x56f   : > { %18284 = vmatpush3.bf16.msra.mxu1 %v23930_v42  ;;  %16355 = vmatprep.subr.bf16.mxu0 %v28130_v17 }
 0x570   : > { %16377 = vmatprep.subr.bf16.mxu1 %v28133_v34 }
 0x571   : > { %v16128_v56 = vpop.f32.mrf.mxu0  ;;  %7737 = vmatmul.mubr.bf16.vlgmr.msra.gmra.mxu0 %v23390_v50 }
 0x572   : > { %v7282_v43 = vpop.f32.mrf.mxu1  ;;  %18286 = vmatmul.mubr.bf16.vlgmr.msra.gmra.mxu1 %v23936_v36  ;;  %16356 = vmatpush3.bf16.msra.mxu0 %v28135_v28 }
 0x573   : > { %7824 = vmatprep.mubr.bf16.mxu0 %v28156_v27  ;;  %16378 = vmatpush3.bf16.msra.mxu1 %v28136_v15  ;;  %v16129_v42 = vpop.f32.mrf.mxu0 }
 0x574   : > { %7864 = vmatprep.mubr.bf16.mxu1 %v23772_v13  ;;  %v16130_v17 = vadd.f32 %v16129_v42, %v16128_v56  ;;  %v18207_v47 = vpop.f32.mrf.mxu1  ;;  %16357 = vmatprep.subr.bf16.mxu0 %v28089_v22  ;;  %v28202_v42 = vld [vmem:[#allocation61_spill] sm:$0xff] }
 0x575   : > { %v16131_v34 = vpop.f32.mrf.mxu0  ;;  %16379 = vmatprep.subr.bf16.mxu1 %v28090_v6 }
 0x576   : > { %v7243_v35 = vadd.f32 %v16130_v17, %v23811_v0  ;;  %v7285_v51 = vpop.f32.mrf.mxu1  ;;  %16358 = vmatpush3.bf16.msra.mxu0 %v28091_v25  ;;  %v28199_v0 = vld [vmem:[#allocation17_spill] sm:$0xff] }
 0x577   : > { %16380 = vmatpush3.bf16.msra.mxu1 %v28092_v45  ;;  %v16132_v28 = vpop.f32.mrf.mxu0  ;;  %16359 = vmatprep.subr.bf16.mxu0 %v28093_v9  ;;  %v28200_v51 = vshll.u32 %v28199_v0, 16  ;;  %v28203_v17 = vshrl.u32 %v28199_v0, 16  ;;  %v28223_v0 = vld [vmem:[#allocation32_spill] sm:$0xff] }
 0x578   : > { %v18208_v15 = vpop.f32.mrf.mxu1  ;;  %16381 = vmatprep.subr.bf16.mxu1 %v28094_v33  ;;  %v23952_v56 = vadd.f32 %v7282_v43, %v7243_v35  ;;  %v28201_v35 = vld [vmem:[#allocation108_spill] sm:$0xff] }
 0x579   : > { %v7789_v43 = vrot.slane %v28200_v51, 1 }
 0x57a   : > { %28192 = vst [vmem:[#allocation48_spill] sm:$0xff] %v23952_v56  ;;  %16360 = vmatpush3.bf16.msra.mxu0 %v28096_v55  ;;  %v28222_v56 = vld [vmem:[#allocation84_spill] sm:$0xff] }
 0x57b   : > { %16382 = vmatpush3.bf16.msra.mxu1 %v28097_v62  ;;  %16361 = vmatprep.subr.bf16.mxu0 %v28098_v59  ;;  %v24017_v47 = vor.u32 %v7789_v43, %v28203_v17  ;;  %v28210_v43 = vld [vmem:[#allocation5_spill] sm:$0xff] }
 0x57c   : > { %16383 = vmatprep.subr.bf16.mxu1 %v28099_v52 }
 0x57d   : > { %28204 = vst [vmem:[#allocation76_spill] sm:$0xff] %v24017_v47 }
 0x57e   : > { %16362 = vmatpush3.bf16.msra.mxu0 %v28100_v57  ;;  %v28193_v57 = vld [vmem:[#allocation10_spill] sm:$0xff] }
 0x57f   : > { %16384 = vmatpush3.bf16.msra.mxu1 %v28101_v63  ;;  %16363 = vmatprep.subr.bf16.mxu0 %v28138_v29  ;;  %v28194_v63 = vld [vmem:[#allocation12_spill] sm:$0xff]  ;;  %v28195_v29 = vld [vmem:[#allocation13_spill] sm:$0xff] }
 0x580   : > { %16385 = vmatprep.subr.bf16.mxu1 %v28139_v32  ;;  %v28196_v32 = vld [vmem:[#allocation66_spill] sm:$0xff] }
 0x582   : > { %16364 = vmatpush3.bf16.msra.mxu0 %v28140_v37  ;;  %v28197_v37 = vld [vmem:[#allocation14_spill] sm:$0xff] }
 0x583   : > { %16386 = vmatpush3.bf16.msra.mxu1 %v28141_v19  ;;  %16365 = vmatprep.subr.bf16.mxu0 %v28142_v54  ;;  %v28198_v19 = vld [vmem:[#allocation107_spill] sm:$0xff] }
 0x584   : > { %16387 = vmatprep.subr.bf16.mxu1 %v28143_v38 }
 0x586   : > { %16366 = vmatpush3.bf16.msra.mxu0 %v28144_v24 }
 0x587   : > { %16388 = vmatpush3.bf16.msra.mxu1 %v28145_v40  ;;  %16367 = vmatprep.subr.bf16.mxu0 %v28146_v49 }
 0x588   : > { %16389 = vmatprep.subr.bf16.mxu1 %v28147_v58 }
 0x58a   : > { %16368 = vmatpush3.bf16.msra.mxu0 %v28148_v1 }
 0x58b   : > { %16390 = vmatpush3.bf16.msra.mxu1 %v28149_v18  ;;  %16369 = vmatprep.subr.bf16.mxu0 %v28150_v44 }
 0x58c   : > { %16391 = vmatprep.subr.bf16.mxu1 %v28151_v41 }
 0x58e   : > { %16370 = vmatpush3.bf16.msra.mxu0 %v28152_v14 }
 0x58f   : > { %16392 = vmatpush3.bf16.msra.mxu1 %v28153_v23  ;;  %18289 = vmatprep.subr.bf16.mxu0 %v27973_v46 }
 0x590   : > { %16408 = vmatprep.subr.bf16.mxu1 %v28154_v4 }
 0x591   : > { %v16159_v6 = vpop.f32.mrf.mxu0  ;;  %7825 = vmatmul.mubr.bf16.vlgmr.msra.gmra.mxu0 %v28117_v10 }
 0x592   : > { %v16181_v45 = vpop.f32.mrf.mxu1  ;;  %7865 = vmatmul.mubr.bf16.vlgmr.msra.gmra.mxu1 %v23535_v8  ;;  %18290 = vmatpush3.bf16.msra.mxu0 %v23623_v21 }
 0x593   : > { %16409 = vmatpush3.bf16.msra.mxu1 %v23629_v2  ;;  %7944 = vmatprep.mubr.bf16.mxu1 %v23390_v50  ;;  %v16160_v22 = vpop.f32.mrf.mxu0 }
 0x594   : > { %v16161_v25 = vadd.f32 %v16160_v22, %v16159_v6  ;;  %v16182_v33 = vpop.f32.mrf.mxu1  ;;  %18291 = vmatprep.subr.bf16.mxu0 %v27973_v46  ;;  %16410 = vmatprep.subr.bf16.mxu1 %v23637_v16  ;;  %v28205_v6 = vld [vmem:[#allocation85_spill] sm:$0xff]  ;;  %v28207_v22 = vld [vmem:[#allocation39_spill] sm:$0xff] }
 0x595   : > { %v16183_v9 = vadd.f32 %v16182_v33, %v16181_v45  ;;  %v16162_v55 = vpop.f32.mrf.mxu0  ;;  %18305 = vmatprep.mubr.msk.bf16.mxu0 %vm19824_vm11, %v27973_v46  ;;  %v28206_v45 = vld [vmem:[#allocation9_spill] sm:$0xff] }
 0x596   : > { %v16184_v10 = vpop.f32.mrf.mxu1  ;;  %18292 = vmatpush3.bf16.msra.mxu0 %v23645_v61 }
 0x597   : > { %16411 = vmatpush3.bf16.msra.mxu1 %v23651_v11  ;;  %v16163_v62 = vpop.f32.mrf.mxu0  ;;  %18293 = vmatprep.subr.bf16.mxu0 %v27973_v46  ;;  %v7371_v59 = vadd.f32 %v16183_v9, %v16161_v25  ;;  %v28208_v9 = vld [vmem:[#allocation90_spill] sm:$0xff] }
 0x598   : > { %v16185_v52 = vpop.f32.mrf.mxu1  ;;  %16412 = vmatprep.subr.bf16.mxu1 %v23658_v12 }
 0x599   : > { %v28209_v52 = vld [vmem:[#allocation40_spill] sm:$0xff] }
 0x59a   : > { %18294 = vmatpush3.bf16.msra.mxu0 %v23664_v5 }
 0x59b   : > { %16413 = vmatpush3.bf16.msra.mxu1 %v23670_v20  ;;  %18295 = vmatprep.subr.bf16.mxu0 %v27973_v46 }
 0x59c   : > { %16414 = vmatprep.subr.bf16.mxu1 %v23677_v39 }
 0x59e   : > { %18296 = vmatpush3.bf16.msra.mxu0 %v23683_v31 }
 0x59f   : > { %16415 = vmatpush3.bf16.msra.mxu1 %v23689_v26  ;;  %18297 = vmatprep.subr.bf16.mxu0 %v27973_v46 }
 0x5a0   : > { %16416 = vmatprep.subr.bf16.mxu1 %v23696_v60 }
 0x5a2   : > { %18298 = vmatpush3.bf16.msra.mxu0 %v23702_v30 }
 0x5a3   : > { %16417 = vmatpush3.bf16.msra.mxu1 %v23708_v7  ;;  %18299 = vmatprep.subr.bf16.mxu0 %v27973_v46 }
 0x5a4   : > { %16418 = vmatprep.subr.bf16.mxu1 %v28193_v57 }
 0x5a6   : > { %18300 = vmatpush3.bf16.msra.mxu0 %v28194_v63 }
 0x5a7   : > { %16419 = vmatpush3.bf16.msra.mxu1 %v28195_v29  ;;  %18301 = vmatprep.subr.bf16.mxu0 %v27973_v46 }
 0x5a8   : > { %16420 = vmatprep.subr.bf16.mxu1 %v28196_v32 }
 0x5aa   : > { %18302 = vmatpush3.bf16.msra.mxu0 %v28197_v37 }
 0x5ab   : > { %16421 = vmatpush3.bf16.msra.mxu1 %v28198_v19  ;;  %18303 = vmatprep.subr.bf16.mxu0 %v27973_v46 }
 0x5ac   : > { %16422 = vmatprep.subr.bf16.mxu1 %v28201_v35 }
 0x5ae   : > { %18304 = vmatpush3.bf16.msra.mxu0 %v28202_v42 }
 0x5af   : > { %16423 = vmatpush3.bf16.msra.mxu1 %v23767_v53  ;;  %16430 = vmatprep.subr.bf16.mxu0 %v23777_v48 }
 0x5b0   : > { %18309 = vmatprep.subr.bf16.mxu1 %v27973_v46 }
 0x5b1   : > { %v7410_v34 = vpop.f32.mrf.mxu0  ;;  %18306 = vmatmul.mubr.bf16.vlgmr.msra.gmra.mxu0 %v24017_v47 }
 0x5b2   : > { %v7411_v28 = vadd.f32 %v7410_v34, %v7371_v59  ;;  %v16212_v15 = vpop.f32.mrf.mxu1  ;;  %7945 = vmatmul.mubr.bf16.vlgmr.msra.gmra.mxu1 %v28205_v6  ;;  %16431 = vmatpush3.bf16.msra.mxu0 %v28206_v45  ;;  %v28211_v34 = vld [vmem:[#allocation43_spill] sm:$0xff]  ;;  %v28212_v6 = vld [vmem:[#allocation64_spill] sm:$0xff] }
 0x5b3   : > { %7984 = vmatprep.mubr.bf16.mxu0 %v23936_v36  ;;  %18310 = vmatpush3.bf16.msra.mxu1 %v28207_v22  ;;  %v18227_v25 = vpop.f32.mrf.mxu0  ;;  %v28224_v36 = vld [vmem:[#allocation46_spill] sm:$0xff] }
 0x5b4   : > { %v16213_v33 = vpop.f32.mrf.mxu1  ;;  %16432 = vmatprep.subr.bf16.mxu0 %v28208_v9  ;;  %18311 = vmatprep.subr.bf16.mxu1 %v27973_v46  ;;  %v28214_v25 = vld [vmem:[#allocation38_spill] sm:$0xff] }
 0x5b5   : > { %v16214_v55 = vadd.f32 %v16213_v33, %v16212_v15  ;;  %v7413_v10 = vpop.f32.mrf.mxu0  ;;  %18325 = vmatprep.mubr.msk.bf16.mxu1 %vm19824_vm11, %v27973_v46  ;;  %v28213_v15 = vld [vmem:[#allocation65_spill] sm:$0xff]  ;;  %v28215_v33 = vld [vmem:[#allocation51_spill] sm:$0xff] }
 0x5b6   : > { %v16215_v62 = vpop.f32.mrf.mxu1  ;;  %16433 = vmatpush3.bf16.msra.mxu0 %v23808_v3  ;;  %v28218_v10 = vld [vmem:[#allocation57_spill] sm:$0xff] }
 0x5b7   : > { %v7451_v59 = vadd.f32 %v16214_v55, %v7411_v28  ;;  %18312 = vmatpush3.bf16.msra.mxu1 %v28209_v52  ;;  %v18228_v51 = vpop.f32.mrf.mxu0  ;;  %16434 = vmatprep.subr.bf16.mxu0 %v28210_v43  ;;  %v28216_v28 = vld [vmem:[#allocation67_spill] sm:$0xff]  ;;  %v28217_v55 = vld [vmem:[#allocation20_spill] sm:$0xff] }
 0x5b8   : > { %v16216_v17 = vpop.f32.mrf.mxu1  ;;  %18313 = vmatprep.subr.bf16.mxu1 %v27973_v46  ;;  %v28219_v62 = vld [vmem:[#allocation95_spill] sm:$0xff]  ;;  %v28220_v51 = vld [vmem:[#allocation21_spill] sm:$0xff] }
 0x5b9   : > { %v28221_v17 = vld [vmem:[#allocation96_spill] sm:$0xff] }
 0x5ba   : > { %16435 = vmatpush3.bf16.msra.mxu0 %v28211_v34 }
 0x5bb   : > { %18314 = vmatpush3.bf16.msra.mxu1 %v28212_v6  ;;  %16436 = vmatprep.subr.bf16.mxu0 %v28213_v15 }
 0x5bc   : > { %18315 = vmatprep.subr.bf16.mxu1 %v27973_v46 }
 0x5be   : > { %16437 = vmatpush3.bf16.msra.mxu0 %v28214_v25 }
 0x5bf   : > { %18316 = vmatpush3.bf16.msra.mxu1 %v28215_v33  ;;  %16438 = vmatprep.subr.bf16.mxu0 %v28216_v28  ;;  %v28225_v28 = vld [vmem:[#allocation97_spill] sm:$0xff]  ;;  %v24091_v33 = vld [vmem:[%s27256_s3 + $0x1b0] sm:$0xff]  }
 0x5c0   : > { %18317 = vmatprep.subr.bf16.mxu1 %v27973_v46 }
 0x5c2   : > { %16439 = vmatpush3.bf16.msra.mxu0 %v28217_v55 }
 0x5c3   : > { %18318 = vmatpush3.bf16.msra.mxu1 %v28218_v10  ;;  %16440 = vmatprep.subr.bf16.mxu0 %v28219_v62  ;;  %v28226_v10 = vld [vmem:[#allocation75_spill] sm:$0xff] }
 0x5c4   : > { %18319 = vmatprep.subr.bf16.mxu1 %v27973_v46  ;;  %v28227_v62 = vld [vmem:[#allocation47_spill] sm:$0xff] }
 0x5c6   : > { %16441 = vmatpush3.bf16.msra.mxu0 %v28220_v51 }
 0x5c7   : > { %18320 = vmatpush3.bf16.msra.mxu1 %v28221_v17  ;;  %16442 = vmatprep.subr.bf16.mxu0 %v28222_v56  ;;  %v24059_v17 = vld [vmem:[%s27256_s3 + $0x1b8] sm:$0xff]   ;;  %v28229_v56 = vld [vmem:[#allocation89_spill] sm:$0xff] }
 0x5c8   : > { %18321 = vmatprep.subr.bf16.mxu1 %v27973_v46  ;;  %28228 = vst [vmem:[#allocation98_spill] sm:$0xff] %v24059_v17 }
 0x5ca   : > { %16443 = vmatpush3.bf16.msra.mxu0 %v28223_v0  ;;  %v24064_v0 = vpack.c.bf16 %v28229_v56, %v28229_v56  ;;  %v24084_v56 = vld [vmem:[%s27256_s3 + $0x1f8] sm:$0xff]  }
 0x5cb   : > { %18322 = vmatpush3.bf16.msra.mxu1 %v28224_v36  ;;  %16444 = vmatprep.subr.bf16.mxu0 %v28225_v28  ;;  %v24069_v28 = vld [vmem:[%s27256_s3 + $0x238] sm:$0xff]   ;;  %28234 = vst [vmem:[#allocation94_spill] sm:$0xff] %v24084_v56 }
 0x5cc   : > { %18323 = vmatprep.subr.bf16.mxu1 %v27973_v46  ;;  %28230 = vst [vmem:[#allocation88_spill] sm:$0xff] %v24064_v0  ;;  %28231 = vst [vmem:[#allocation83_spill] sm:$0xff] %v24069_v28 }
 0x5ce   : > { %16445 = vmatpush3.bf16.msra.mxu0 %v28226_v10 }
 0x5cf   : > { %18324 = vmatpush3.bf16.msra.mxu1 %v28227_v62  ;;  %16461 = vmatprep.subr.bf16.mxu0 %v24059_v17  ;;  %v28232_v62 = vld [vmem:[#allocation8_spill] sm:$0xff] }
 0x5d0   : > { %16483 = vmatprep.subr.bf16.mxu1 %v24069_v28  ;;  %v24077_v17 = vld [vmem:[%s27256_s3 + $0x178] sm:$0xff]  }
 0x5d1   : > { %v16234_v10 = vpop.f32.mrf.mxu0  ;;  %7985 = vmatmul.mubr.bf16.vlgmr.msra.gmra.mxu0 %v28232_v62  ;;  %28233 = vst [vmem:[#allocation19_spill] sm:$0xff] %v24077_v17 }
 0x5d2   : > { %v7530_v36 = vpop.f32.mrf.mxu1  ;;  %18326 = vmatmul.mubr.bf16.vlgmr.msra.gmra.mxu1 %v24064_v0  ;;  %16462 = vmatpush3.bf16.msra.mxu0 %v24077_v17  ;;  %v24097_v17 = vld [vmem:[%s27256_s3 + $0x230] sm:$0xff]  }
 0x5d3   : > { %8072 = vmatprep.mubr.bf16.mxu0 %v23535_v8  ;;  %16484 = vmatpush3.bf16.msra.mxu1 %v24084_v56  ;;  %v16235_v28 = vpop.f32.mrf.mxu0 }
 0x5d4   : > { %8112 = vmatprep.mubr.bf16.mxu1 %v24017_v47  ;;  %v16236_v51 = vadd.f32 %v16235_v28, %v16234_v10  ;;  %v18247_v55 = vpop.f32.mrf.mxu1  ;;  %16463 = vmatprep.subr.bf16.mxu0 %v24091_v33  ;;  %v24103_v28 = vld [vmem:[%s27256_s3 + $0x170] sm:$0xff]   ;;  %v24159_v47 = vld [vmem:[%s27256_s3 + $0x1e0] sm:$0xff]  }
 0x5d5   : > { %v16237_v8 = vpop.f32.mrf.mxu0  ;;  %16485 = vmatprep.subr.bf16.mxu1 %v24097_v17  ;;  %28239 = vst [vmem:[#allocation72_spill] sm:$0xff] %v24159_v47 }
 0x5d6   : > { %v7491_v56 = vadd.f32 %v16236_v51, %v7451_v59  ;;  %v7533_v25 = vpop.f32.mrf.mxu1  ;;  %16464 = vmatpush3.bf16.msra.mxu0 %v24103_v28  ;;  %v24109_v8 = vld [vmem:[%s27256_s3 + $0x1f0] sm:$0xff]   ;;  %v24115_v59 = vld [vmem:[%s27256_s3 + $0x1a8] sm:$0xff]  }
 0x5d7   : > { %16486 = vmatpush3.bf16.msra.mxu1 %v24109_v8  ;;  %v16238_v55 = vpop.f32.mrf.mxu0  ;;  %16465 = vmatprep.subr.bf16.mxu0 %v24115_v59  ;;  %v24123_v51 = vld [vmem:[%s27256_s3 + $0x228] sm:$0xff]  }
 0x5d8   : > { %v24118_v25 = vadd.f32 %v7530_v36, %v7491_v56  ;;  %v18248_v10 = vpop.f32.mrf.mxu1  ;;  %16487 = vmatprep.subr.bf16.mxu1 %v24123_v51  ;;  %v24129_v55 = vld [vmem:[%s27256_s3 + $0x168] sm:$0xff]   ;;  %v24141_v56 = vld [vmem:[%s27256_s3 + $0x1a0] sm:$0xff]  }
 0x5d9   : > { %v24135_v36 = vld [vmem:[%s27256_s3 + $0x1e8] sm:$0xff]   ;;  %28236 = vst [vmem:[#allocation30_spill] sm:$0xff] %v24141_v56  ;;  %v24147_v10 = vld [vmem:[%s27256_s3 + $0x220] sm:$0xff]  }
 0x5da   : > { %28235 = vst [vmem:[#allocation82_spill] sm:$0xff] %v24118_v25  ;;  %16466 = vmatpush3.bf16.msra.mxu0 %v24129_v55  ;;  %28237 = vst [vmem:[#allocation6_spill] sm:$0xff] %v24147_v10  ;;  %v24153_v25 = vld [vmem:[%s27256_s3 + $0x160] sm:$0xff]  }
 0x5db   : > { %16488 = vmatpush3.bf16.msra.mxu1 %v24135_v36  ;;  %16467 = vmatprep.subr.bf16.mxu0 %v24141_v56  ;;  %28238 = vst [vmem:[#allocation22_spill] sm:$0xff] %v24153_v25  ;;  %v24165_v56 = vld [vmem:[%s27256_s3 + $0x198] sm:$0xff]  }
 0x5dc   : > { %16489 = vmatprep.subr.bf16.mxu1 %v24147_v10  ;;  %v24171_v10 = vld [vmem:[%s27256_s3 + $0x218] sm:$0xff]  }
 0x5de   : > { %16468 = vmatpush3.bf16.msra.mxu0 %v24153_v25  ;;  %v24177_v25 = vld [vmem:[%s27256_s3 + $0x158] sm:$0xff]  }
 0x5df   : > { %16490 = vmatpush3.bf16.msra.mxu1 %v24159_v47  ;;  %16469 = vmatprep.subr.bf16.mxu0 %v24165_v56  ;;  %v24183_v47 = vld [vmem:[%s27256_s3 + $0x1d8] sm:$0xff]  }
 0x5e0   : > { %16491 = vmatprep.subr.bf16.mxu1 %v24171_v10 }
 0x5e2   : > { %16470 = vmatpush3.bf16.msra.mxu0 %v24177_v25 }
 0x5e3   : > { %16492 = vmatpush3.bf16.msra.mxu1 %v24183_v47  ;;  %16471 = vmatprep.subr.bf16.mxu0 %v28142_v54 }
 0x5e4   : > { %16493 = vmatprep.subr.bf16.mxu1 %v28143_v38 }
 0x5e6   : > { %16472 = vmatpush3.bf16.msra.mxu0 %v28144_v24 }
 0x5e7   : > { %16494 = vmatpush3.bf16.msra.mxu1 %v28145_v40  ;;  %16473 = vmatprep.subr.bf16.mxu0 %v28146_v49 }
 0x5e8   : > { %16495 = vmatprep.subr.bf16.mxu1 %v28147_v58 }
 0x5ea   : > { %16474 = vmatpush3.bf16.msra.mxu0 %v28148_v1 }
 0x5eb   : > { %16496 = vmatpush3.bf16.msra.mxu1 %v28149_v18  ;;  %16475 = vmatprep.subr.bf16.mxu0 %v28150_v44 }
 0x5ec   : > { %16497 = vmatprep.subr.bf16.mxu1 %v28151_v41 }
 0x5ee   : > { %16476 = vmatpush3.bf16.msra.mxu0 %v28152_v14 }
 0x5ef   : > { %16498 = vmatpush3.bf16.msra.mxu1 %v28153_v23  ;;  %18329 = vmatprep.subr.bf16.mxu0 %v27973_v46  ;;  %v28240_v23 = vld [vmem:[#allocation26_spill] sm:$0xff] }
 0x5f0   : > { %16514 = vmatprep.subr.bf16.mxu1 %v28154_v4  ;;  %v28241_v4 = vshll.u32 %v28240_v23, 16 }
 0x5f1   : > { %v16265_v54 = vpop.f32.mrf.mxu0  ;;  %8073 = vmatmul.mubr.bf16.vlgmr.msra.gmra.mxu0 %v28156_v27 }
 0x5f2   : > { %v16287_v38 = vpop.f32.mrf.mxu1  ;;  %8113 = vmatmul.mubr.bf16.vlgmr.msra.gmra.mxu1 %v23772_v13  ;;  %18330 = vmatpush3.bf16.msra.mxu0 %v23623_v21  ;;  %v8037_v27 = vrot.slane %v28241_v4, 1 }
 0x5f3   : > { %16515 = vmatpush3.bf16.msra.mxu1 %v23629_v2  ;;  %8192 = vmatprep.mubr.bf16.mxu1 %v28232_v62  ;;  %v16266_v24 = vpop.f32.mrf.mxu0 }
 0x5f4   : > { %v16267_v40 = vadd.f32 %v16266_v24, %v16265_v54  ;;  %v16288_v49 = vpop.f32.mrf.mxu1  ;;  %18331 = vmatprep.subr.bf16.mxu0 %v27973_v46  ;;  %16516 = vmatprep.subr.bf16.mxu1 %v23637_v16  ;;  %v28242_v54 = vshrl.u32 %v28240_v23, 16  ;;  %v28255_v23 = vld [vmem:[#allocation75_spill] sm:$0xff] }
 0x5f5   : > { %v16289_v58 = vadd.f32 %v16288_v49, %v16287_v38  ;;  %v16268_v1 = vpop.f32.mrf.mxu0  ;;  %18345 = vmatprep.mubr.msk.bf16.mxu0 %vm19824_vm11, %v27973_v46 }
 0x5f6   : > { %v16290_v18 = vpop.f32.mrf.mxu1  ;;  %18332 = vmatpush3.bf16.msra.mxu0 %v23645_v61  ;;  %v8038_v38 = vor.u32 %v8037_v27, %v28242_v54  ;;  %v28243_v27 = vld [vmem:[#allocation38_spill] sm:$0xff]  ;;  %v28244_v54 = vld [vmem:[#allocation51_spill] sm:$0xff] }
 0x5f7   : > { %16517 = vmatpush3.bf16.msra.mxu1 %v23651_v11  ;;  %v16269_v44 = vpop.f32.mrf.mxu0  ;;  %18333 = vmatprep.subr.bf16.mxu0 %v27973_v46  ;;  %v7619_v41 = vadd.f32 %v16289_v58, %v16267_v40 }
 0x5f8   : > { %v16291_v14 = vpop.f32.mrf.mxu1  ;;  %16518 = vmatprep.subr.bf16.mxu1 %v23658_v12 }
 0x5fa   : > { %18334 = vmatpush3.bf16.msra.mxu0 %v23664_v5 }
 0x5fb   : > { %16519 = vmatpush3.bf16.msra.mxu1 %v23670_v20  ;;  %18335 = vmatprep.subr.bf16.mxu0 %v27973_v46 }
 0x5fc   : > { %16520 = vmatprep.subr.bf16.mxu1 %v23677_v39 }
 0x5fe   : > { %18336 = vmatpush3.bf16.msra.mxu0 %v23683_v31 }
 0x5ff   : > { %16521 = vmatpush3.bf16.msra.mxu1 %v23689_v26  ;;  %18337 = vmatprep.subr.bf16.mxu0 %v27973_v46 }
 0x600   : > { %16522 = vmatprep.subr.bf16.mxu1 %v23696_v60 }
 0x602   : > { %18338 = vmatpush3.bf16.msra.mxu0 %v23702_v30 }
 0x603   : > { %16523 = vmatpush3.bf16.msra.mxu1 %v23708_v7  ;;  %18339 = vmatprep.subr.bf16.mxu0 %v27973_v46 }
 0x604   : > { %16524 = vmatprep.subr.bf16.mxu1 %v28193_v57 }
 0x606   : > { %18340 = vmatpush3.bf16.msra.mxu0 %v28194_v63 }
 0x607   : > { %16525 = vmatpush3.bf16.msra.mxu1 %v28195_v29  ;;  %18341 = vmatprep.subr.bf16.mxu0 %v27973_v46 }
 0x608   : > { %16526 = vmatprep.subr.bf16.mxu1 %v28196_v32 }
 0x60a   : > { %18342 = vmatpush3.bf16.msra.mxu0 %v28197_v37 }
 0x60b   : > { %16527 = vmatpush3.bf16.msra.mxu1 %v28198_v19  ;;  %18343 = vmatprep.subr.bf16.mxu0 %v27973_v46 }
 0x60c   : > { %16528 = vmatprep.subr.bf16.mxu1 %v28201_v35 }
 0x60e   : > { %18344 = vmatpush3.bf16.msra.mxu0 %v28202_v42 }
 0x60f   : > { %16529 = vmatpush3.bf16.msra.mxu1 %v23767_v53  ;;  %16536 = vmatprep.subr.bf16.mxu0 %v23777_v48 }
 0x610   : > { %18349 = vmatprep.subr.bf16.mxu1 %v27973_v46 }
 0x611   : > { %v7658_v24 = vpop.f32.mrf.mxu0  ;;  %18346 = vmatmul.mubr.bf16.vlgmr.msra.gmra.mxu0 %v8038_v38 }
 0x612   : > { %v7659_v40 = vadd.f32 %v7658_v24, %v7619_v41  ;;  %v16318_v49 = vpop.f32.mrf.mxu1  ;;  %8193 = vmatmul.mubr.bf16.vlgmr.msra.gmra.mxu1 %v23390_v50  ;;  %16537 = vmatpush3.bf16.msra.mxu0 %v28206_v45  ;;  %v28245_v24 = vld [vmem:[#allocation67_spill] sm:$0xff] }
 0x613   : > { %8232 = vmatprep.mubr.bf16.mxu0 %v24064_v0  ;;  %18350 = vmatpush3.bf16.msra.mxu1 %v28207_v22  ;;  %v18267_v58 = vpop.f32.mrf.mxu0  ;;  %v28256_v0 = vld [vmem:[#allocation47_spill] sm:$0xff] }
 0x614   : > { %v16319_v1 = vpop.f32.mrf.mxu1  ;;  %16538 = vmatprep.subr.bf16.mxu0 %v28208_v9  ;;  %18351 = vmatprep.subr.bf16.mxu1 %v27973_v46  ;;  %v28248_v58 = vld [vmem:[#allocation95_spill] sm:$0xff] }
 0x615   : > { %v16320_v18 = vadd.f32 %v16319_v1, %v16318_v49  ;;  %v7661_v44 = vpop.f32.mrf.mxu0  ;;  %18365 = vmatprep.mubr.msk.bf16.mxu1 %vm19824_vm11, %v27973_v46  ;;  %v28247_v49 = vld [vmem:[#allocation57_spill] sm:$0xff] }
 0x616   : > { %v16321_v41 = vpop.f32.mrf.mxu1  ;;  %16539 = vmatpush3.bf16.msra.mxu0 %v23808_v3  ;;  %v28249_v1 = vld [vmem:[#allocation21_spill] sm:$0xff]  ;;  %v28251_v44 = vld [vmem:[#allocation84_spill] sm:$0xff] }
 0x617   : > { %v7699_v50 = vadd.f32 %v16320_v18, %v7659_v40  ;;  %18352 = vmatpush3.bf16.msra.mxu1 %v28209_v52  ;;  %v18268_v14 = vpop.f32.mrf.mxu0  ;;  %16540 = vmatprep.subr.bf16.mxu0 %v28210_v43  ;;  %v28246_v40 = vld [vmem:[#allocation20_spill] sm:$0xff] }
 0x618   : > { %v16322_v4 = vpop.f32.mrf.mxu1  ;;  %18353 = vmatprep.subr.bf16.mxu1 %v27973_v46  ;;  %v28250_v18 = vld [vmem:[#allocation96_spill] sm:$0xff]  ;;  %v28253_v14 = vld [vmem:[#allocation46_spill] sm:$0xff] }
 0x619   : > { %v28252_v41 = vld [vmem:[#allocation32_spill] sm:$0xff]  ;;  %v28254_v4 = vld [vmem:[#allocation97_spill] sm:$0xff] }
 0x61a   : > { %16541 = vmatpush3.bf16.msra.mxu0 %v28211_v34 }
 0x61b   : > { %18354 = vmatpush3.bf16.msra.mxu1 %v28212_v6  ;;  %16542 = vmatprep.subr.bf16.mxu0 %v28213_v15 }
 0x61c   : > { %18355 = vmatprep.subr.bf16.mxu1 %v27973_v46 }
 0x61e   : > { %16543 = vmatpush3.bf16.msra.mxu0 %v28243_v27 }
 0x61f   : > { %18356 = vmatpush3.bf16.msra.mxu1 %v28244_v54  ;;  %16544 = vmatprep.subr.bf16.mxu0 %v28245_v24 }
 0x620   : > { %18357 = vmatprep.subr.bf16.mxu1 %v27973_v46 }
 0x622   : > { %16545 = vmatpush3.bf16.msra.mxu0 %v28246_v40 }
 0x623   : > { %18358 = vmatpush3.bf16.msra.mxu1 %v28247_v49  ;;  %16546 = vmatprep.subr.bf16.mxu0 %v28248_v58  ;;  %v28257_v58 = vld [vmem:[#allocation98_spill] sm:$0xff] }
 0x624   : > { %18359 = vmatprep.subr.bf16.mxu1 %v27973_v46 }
 0x626   : > { %16547 = vmatpush3.bf16.msra.mxu0 %v28249_v1  ;;  %v28258_v1 = vld [vmem:[#allocation16_spill] sm:$0xff] }
 0x627   : > { %18360 = vmatpush3.bf16.msra.mxu1 %v28250_v18  ;;  %16548 = vmatprep.subr.bf16.mxu0 %v28251_v44  ;;  %v24278_v18 = vpack.c.bf16 %v28258_v1, %v28258_v1  ;;  %v28259_v44 = vld [vmem:[#allocation83_spill] sm:$0xff] }
 0x628   : > { %18361 = vmatprep.subr.bf16.mxu1 %v27973_v46 }
 0x62a   : > { %16549 = vmatpush3.bf16.msra.mxu0 %v28252_v41  ;;  %v28260_v41 = vld [vmem:[#allocation23_spill] sm:$0xff] }
 0x62b   : > { %18362 = vmatpush3.bf16.msra.mxu1 %v28253_v14  ;;  %16550 = vmatprep.subr.bf16.mxu0 %v28254_v4  ;;  %v28261_v4 = vld [vmem:[#allocation19_spill] sm:$0xff] }
 0x62c   : > { %18363 = vmatprep.subr.bf16.mxu1 %v27973_v46 }
 0x62e   : > { %16551 = vmatpush3.bf16.msra.mxu0 %v28255_v23  ;;  %v28262_v23 = vld [vmem:[#allocation94_spill] sm:$0xff] }
 0x62f   : > { %18364 = vmatpush3.bf16.msra.mxu1 %v28256_v0  ;;  %16567 = vmatprep.subr.bf16.mxu0 %v28257_v58 }
 0x630   : > { %16589 = vmatprep.subr.bf16.mxu1 %v28259_v44 }
 0x631   : > { %v16340_v49 = vpop.f32.mrf.mxu0  ;;  %8233 = vmatmul.mubr.bf16.vlgmr.msra.gmra.mxu0 %v28260_v41 }
 0x632   : > { %v7778_v14 = vpop.f32.mrf.mxu1  ;;  %18366 = vmatmul.mubr.bf16.vlgmr.msra.gmra.mxu1 %v24278_v18  ;;  %16568 = vmatpush3.bf16.msra.mxu0 %v28261_v4 }
 0x633   : > { %8320 = vmatprep.mubr.bf16.mxu0 %v23772_v13  ;;  %16590 = vmatpush3.bf16.msra.mxu1 %v28262_v23  ;;  %v16341_v0 = vpop.f32.mrf.mxu0 }
 0x634   : > { %8360 = vmatprep.mubr.bf16.mxu1 %v8038_v38  ;;  %v16342_v58 = vadd.f32 %v16341_v0, %v16340_v49  ;;  %v18287_v40 = vpop.f32.mrf.mxu1  ;;  %16569 = vmatprep.subr.bf16.mxu0 %v24091_v33  ;;  %v28263_v0 = vld [vmem:[#allocation30_spill] sm:$0xff]  ;;  %v19688_v38 = vld [vmem:[%s27256_s3 + $0x200] sm:$0xff]  }
 0x635   : > { %v16343_v1 = vpop.f32.mrf.mxu0  ;;  %16591 = vmatprep.subr.bf16.mxu1 %v24097_v17  ;;  %v28264_v33 = vld [vmem:[#allocation6_spill] sm:$0xff]  ;;  %v19691_v40 = vld [vmem:[%s27256_s3 + $0x78] sm:$0xff]  }
 0x636   : > { %v7739_v44 = vadd.f32 %v16342_v58, %v7699_v50  ;;  %v7781_v24 = vpop.f32.mrf.mxu1  ;;  %16570 = vmatpush3.bf16.msra.mxu0 %v24103_v28  ;;  %v28265_v17 = vld [vmem:[#allocation22_spill] sm:$0xff]  ;;  %v28266_v28 = vld [vmem:[#allocation72_spill] sm:$0xff] }
 0x637   : > { %16592 = vmatpush3.bf16.msra.mxu1 %v24109_v8  ;;  %v16344_v4 = vpop.f32.mrf.mxu0  ;;  %16571 = vmatprep.subr.bf16.mxu0 %v24115_v59  ;;  %v19679_v8 = vld [vmem:[%s27256_s3 + $0x190] sm:$0xff]   ;;  %v19689_v50 = vld [vmem:[%s27256_s3 + $0x140] sm:$0xff]  }
 0x638   : > { %v18288_v13 = vpop.f32.mrf.mxu1  ;;  %16593 = vmatprep.subr.bf16.mxu1 %v24123_v51  ;;  %v24292_v23 = vadd.f32 %v7778_v14, %v7739_v44  ;;  %v19680_v59 = vld [vmem:[%s27256_s3 + $0x210] sm:$0xff]   ;;  %v19690_v24 = vld [vmem:[%s27256_s3 + $0x1c0] sm:$0xff]  }
 0x639   : > { %v19681_v51 = vld [vmem:[%s27256_s3 + $0x150] sm:$0xff]   ;;  %v28267_v14 = vld [vmem:[#allocation60_spill] sm:$0xff] }
 0x63a   : > { %16572 = vmatpush3.bf16.msra.mxu0 %v24129_v55  ;;  %v19684_v55 = vld [vmem:[%s27256_s3 + $0x208] sm:$0xff]   ;;  %v28268_v1 = vld [vmem:[#allocation76_spill] sm:$0xff] }
 0x63b   : > { %16594 = vmatpush3.bf16.msra.mxu1 %v24135_v36  ;;  %16573 = vmatprep.subr.bf16.mxu0 %v28263_v0  ;;  %v19685_v36 = vld [vmem:[%s27256_s3 + $0x148] sm:$0xff]  }
 0x63c   : > { %16595 = vmatprep.subr.bf16.mxu1 %v28264_v33 }
 0x63e   : > { %16574 = vmatpush3.bf16.msra.mxu0 %v28265_v17 }
 0x63f   : > { %16596 = vmatpush3.bf16.msra.mxu1 %v28266_v28  ;;  %16575 = vmatprep.subr.bf16.mxu0 %v24165_v56  ;;  %v19686_v56 = vld [vmem:[%s27256_s3 + $0x1c8] sm:$0xff]  }
 0x640   : > { %16597 = vmatprep.subr.bf16.mxu1 %v24171_v10  ;;  %v19687_v10 = vld [vmem:[%s27256_s3 + $0x180] sm:$0xff]  }
 0x642   : > { %16576 = vmatpush3.bf16.msra.mxu0 %v24177_v25  ;;  %v19682_v25 = vld [vmem:[%s27256_s3 + $0x1d0] sm:$0xff]  }
 0x643   : > { %16598 = vmatpush3.bf16.msra.mxu1 %v24183_v47  ;;  %16577 = vmatprep.subr.bf16.mxu0 %v19679_v8  ;;  %v19683_v47 = vld [vmem:[%s27256_s3 + $0x188] sm:$0xff]   ;;  %v28285_v8 = vld [vmem:[#allocation88_spill] sm:$0xff] }
 0x644   : > { %16599 = vmatprep.subr.bf16.mxu1 %v19680_v59  ;;  %v28286_v59 = vld [vmem:[#allocation77_spill] sm:$0xff] }
 0x646   : > { %16578 = vmatpush3.bf16.msra.mxu0 %v19681_v51  ;;  %v8615_v51 = vrot.slane %v28286_v59, 1 }
 0x647   : > { %16600 = vmatpush3.bf16.msra.mxu1 %v19682_v25  ;;  %16579 = vmatprep.subr.bf16.mxu0 %v19683_v47  ;;  %v24453_v25 = vld [vmem:[%s27256_s3 + $0x370] sm:$0xff]  }
 0x648   : > { %16601 = vmatprep.subr.bf16.mxu1 %v19684_v55  ;;  %v28287_v55 = vld [vmem:[#allocation79_spill] sm:$0xff] }
 0x64a   : > { %16580 = vmatpush3.bf16.msra.mxu0 %v19685_v36  ;;  %v24457_v36 = vrot.slane %v28287_v55, 1 }
 0x64b   : > { %16602 = vmatpush3.bf16.msra.mxu1 %v19686_v56  ;;  %16581 = vmatprep.subr.bf16.mxu0 %v19687_v10  ;;  %v24462_v56 = vld [vmem:[%s27256_s3 + $0x2b0] sm:$0xff]  }
 0x64c   : > { %16603 = vmatprep.subr.bf16.mxu1 %v19688_v38  ;;  %v24470_v38 = vld [vmem:[%s27256_s3 + $0x330] sm:$0xff]  }
 0x64e   : > { %16582 = vmatpush3.bf16.msra.mxu0 %v19689_v50  ;;  %v24475_v50 = vld [vmem:[%s27256_s3 + $0x2e8] sm:$0xff]  }
 0x64f   : > { %16604 = vmatpush3.bf16.msra.mxu1 %v19690_v24  ;;  %18369 = vmatprep.subr.bf16.mxu0 %v27973_v46 }
 0x650   : > { %16620 = vmatprep.subr.bf16.mxu1 %v19691_v40 }
 0x651   : > { %v16371_v49 = vpop.f32.mrf.mxu0  ;;  %8321 = vmatmul.mubr.bf16.vlgmr.msra.gmra.mxu0 %v28267_v14 }
 0x652   : > { %v16393_v58 = vpop.f32.mrf.mxu1  ;;  %8361 = vmatmul.mubr.bf16.vlgmr.msra.gmra.mxu1 %v28268_v1  ;;  %18370 = vmatpush3.bf16.msra.mxu0 %v23623_v21 }
 0x653   : > { %16621 = vmatpush3.bf16.msra.mxu1 %v23629_v2  ;;  %8440 = vmatprep.mubr.bf16.mxu1 %v28260_v41  ;;  %v16372_v44 = vpop.f32.mrf.mxu0 }
 0x654   : > { %v16373_v4 = vadd.f32 %v16372_v44, %v16371_v49  ;;  %v16394_v13 = vpop.f32.mrf.mxu1  ;;  %18371 = vmatprep.subr.bf16.mxu0 %v27973_v46  ;;  %16622 = vmatprep.subr.bf16.mxu1 %v23637_v16  ;;  %v28269_v16 = vld [vmem:[#allocation92_spill] sm:$0xff]  ;;  %v24482_v49 = vld [vmem:[%s27256_s3 + $0x368] sm:$0xff]  }
 0x655   : > { %v16395_v0 = vadd.f32 %v16394_v13, %v16393_v58  ;;  %v16374_v33 = vpop.f32.mrf.mxu0  ;;  %18385 = vmatprep.mubr.msk.bf16.mxu0 %vm19824_vm11, %v27973_v46  ;;  %v24489_v44 = vld [vmem:[%s27256_s3 + $0x2a8] sm:$0xff]  }
 0x656   : > { %v16396_v17 = vpop.f32.mrf.mxu1  ;;  %18372 = vmatpush3.bf16.msra.mxu0 %v23645_v61  ;;  %v28270_v61 = vshll.u32 %v28269_v16, 16  ;;  %v24496_v13 = vld [vmem:[%s27256_s3 + $0x328] sm:$0xff]  }
 0x657   : > { %16623 = vmatpush3.bf16.msra.mxu1 %v23651_v11  ;;  %v16375_v21 = vpop.f32.mrf.mxu0  ;;  %18373 = vmatprep.subr.bf16.mxu0 %v27973_v46  ;;  %v7867_v2 = vadd.f32 %v16395_v0, %v16373_v4  ;;  %v24501_v0 = vld [vmem:[%s27256_s3 + $0x2e0] sm:$0xff]  }
 0x658   : > { %v16397_v41 = vpop.f32.mrf.mxu1  ;;  %16624 = vmatprep.subr.bf16.mxu1 %v23658_v12  ;;  %v8285_v11 = vrot.slane %v28270_v61, 1  ;;  %v28271_v12 = vshrl.u32 %v28269_v16, 16  ;;  %v24509_v21 = vld [vmem:[%s27256_s3 + $0x360] sm:$0xff]   ;;  %v24527_v61 = vld [vmem:[%s27256_s3 + $0x2d8] sm:$0xff]  }
 0x659   : > { %v24522_v41 = vld [vmem:[%s27256_s3 + $0x320] sm:$0xff]  }
 0x65a   : > { %18374 = vmatpush3.bf16.msra.mxu0 %v23664_v5  ;;  %v8286_v5 = vor.u32 %v8285_v11, %v28271_v12  ;;  %v24533_v11 = vld [vmem:[%s27256_s3 + $0x358] sm:$0xff]  }
 0x65b   : > { %16625 = vmatpush3.bf16.msra.mxu1 %v23670_v20  ;;  %18375 = vmatprep.subr.bf16.mxu0 %v27973_v46  ;;  %v24539_v12 = vld [vmem:[%s27256_s3 + $0x298] sm:$0xff]  }
 0x65c   : > { %16626 = vmatprep.subr.bf16.mxu1 %v23677_v39 }
 0x65e   : > { %18376 = vmatpush3.bf16.msra.mxu0 %v23683_v31 }
 0x65f   : > { %16627 = vmatpush3.bf16.msra.mxu1 %v23689_v26  ;;  %18377 = vmatprep.subr.bf16.mxu0 %v27973_v46 }
 0x660   : > { %16628 = vmatprep.subr.bf16.mxu1 %v23696_v60 }
 0x662   : > { %18378 = vmatpush3.bf16.msra.mxu0 %v23702_v30 }
 0x663   : > { %16629 = vmatpush3.bf16.msra.mxu1 %v23708_v7  ;;  %18379 = vmatprep.subr.bf16.mxu0 %v27973_v46 }
 0x664   : > { %16630 = vmatprep.subr.bf16.mxu1 %v28193_v57 }
 0x666   : > { %18380 = vmatpush3.bf16.msra.mxu0 %v28194_v63 }
 0x667   : > { %16631 = vmatpush3.bf16.msra.mxu1 %v28195_v29  ;;  %18381 = vmatprep.subr.bf16.mxu0 %v27973_v46  ;;  %v28273_v29 = vld [vmem:[#allocation20_spill] sm:$0xff] }
 0x668   : > { %16632 = vmatprep.subr.bf16.mxu1 %v28196_v32  ;;  %v28274_v32 = vld [vmem:[#allocation57_spill] sm:$0xff] }
 0x66a   : > { %18382 = vmatpush3.bf16.msra.mxu0 %v28197_v37  ;;  %v28275_v37 = vld [vmem:[#allocation95_spill] sm:$0xff] }
 0x66b   : > { %16633 = vmatpush3.bf16.msra.mxu1 %v28198_v19  ;;  %18383 = vmatprep.subr.bf16.mxu0 %v27973_v46  ;;  %v28276_v19 = vld [vmem:[#allocation21_spill] sm:$0xff] }
 0x66c   : > { %16634 = vmatprep.subr.bf16.mxu1 %v28201_v35  ;;  %v28277_v35 = vld [vmem:[#allocation96_spill] sm:$0xff] }
 0x66e   : > { %18384 = vmatpush3.bf16.msra.mxu0 %v28202_v42  ;;  %v28278_v42 = vld [vmem:[#allocation84_spill] sm:$0xff] }
 0x66f   : > { %16635 = vmatpush3.bf16.msra.mxu1 %v23767_v53  ;;  %16642 = vmatprep.subr.bf16.mxu0 %v23777_v48 }
 0x670   : > { %18389 = vmatprep.subr.bf16.mxu1 %v27973_v46 }
 0x671   : > { %v7906_v20 = vpop.f32.mrf.mxu0  ;;  %18386 = vmatmul.mubr.bf16.vlgmr.msra.gmra.mxu0 %v8286_v5  ;;  %v24546_v5 = vld [vmem:[%s27256_s3 + $0x318] sm:$0xff]  }
 0x672   : > { %v7907_v39 = vadd.f32 %v7906_v20, %v7867_v2  ;;  %v16424_v31 = vpop.f32.mrf.mxu1  ;;  %8441 = vmatmul.mubr.bf16.vlgmr.msra.gmra.mxu1 %v28232_v62  ;;  %16643 = vmatpush3.bf16.msra.mxu0 %v28206_v45  ;;  %v28279_v45 = vld [vmem:[#allocation32_spill] sm:$0xff]  ;;  %v24551_v20 = vld [vmem:[%s27256_s3 + $0x2d0] sm:$0xff]  }
 0x673   : > { %8480 = vmatprep.mubr.bf16.mxu0 %v24278_v18  ;;  %18390 = vmatpush3.bf16.msra.mxu1 %v28207_v22  ;;  %v18307_v26 = vpop.f32.mrf.mxu0  ;;  %v28280_v22 = vld [vmem:[#allocation46_spill] sm:$0xff]  ;;  %v24438_v62 = vld [vmem:[%s27256_s3 + $0x338] sm:$0xff]   ;;  %v24515_v2 = vld [vmem:[%s27256_s3 + $0x2a0] sm:$0xff]  }
 0x674   : > { %v16425_v60 = vpop.f32.mrf.mxu1  ;;  %16644 = vmatprep.subr.bf16.mxu0 %v28208_v9  ;;  %18391 = vmatprep.subr.bf16.mxu1 %v27973_v46  ;;  %v28281_v9 = vld [vmem:[#allocation97_spill] sm:$0xff]  ;;  %v24446_v18 = vld [vmem:[%s27256_s3 + $0x2f0] sm:$0xff]  }
 0x675   : > { %v16426_v30 = vadd.f32 %v16425_v60, %v16424_v31  ;;  %v7909_v7 = vpop.f32.mrf.mxu0  ;;  %18405 = vmatprep.mubr.msk.bf16.mxu1 %vm19824_vm11, %v27973_v46  ;;  %v24563_v31 = vld [vmem:[%s27256_s3 + $0x290] sm:$0xff]   ;;  %v24575_v60 = vld [vmem:[%s27256_s3 + $0x2c8] sm:$0xff]  }
 0x676   : > { %v16427_v48 = vpop.f32.mrf.mxu1  ;;  %16645 = vmatpush3.bf16.msra.mxu0 %v23808_v3  ;;  %v28272_v3 = vld [vmem:[#allocation67_spill] sm:$0xff]  ;;  %v24587_v7 = vld [vmem:[%s27256_s3 + $0x288] sm:$0xff]  }
 0x677   : > { %v7947_v53 = vadd.f32 %v16426_v30, %v7907_v39  ;;  %18392 = vmatpush3.bf16.msra.mxu1 %v28209_v52  ;;  %v18308_v57 = vpop.f32.mrf.mxu0  ;;  %16646 = vmatprep.subr.bf16.mxu0 %v28210_v43  ;;  %v24419_v52 = vld [vmem:[%s27256_s3 + $0x2f8] sm:$0xff]   ;;  %v24557_v39 = vld [vmem:[%s27256_s3 + $0x350] sm:$0xff]   ;;  %v24581_v30 = vld [vmem:[%s27256_s3 + $0x348] sm:$0xff]  }
 0x678   : > { %v16428_v63 = vpop.f32.mrf.mxu1  ;;  %18393 = vmatprep.subr.bf16.mxu1 %v27973_v46  ;;  %v24425_v43 = vld [vmem:[%s27256_s3 + $0x378] sm:$0xff]   ;;  %v24570_v26 = vld [vmem:[%s27256_s3 + $0x310] sm:$0xff]   ;;  %v24594_v48 = vld [vmem:[%s27256_s3 + $0x308] sm:$0xff]  }
 0x679   : > { %v24605_v57 = vld [vmem:[%s27256_s3 + $0x340] sm:$0xff]  }
 0x67a   : > { %16647 = vmatpush3.bf16.msra.mxu0 %v28211_v34  ;;  %v28282_v34 = vld [vmem:[#allocation75_spill] sm:$0xff]  ;;  %v24611_v63 = vld [vmem:[%s27256_s3 + $0x280] sm:$0xff]  }
 0x67b   : > { %18394 = vmatpush3.bf16.msra.mxu1 %v28212_v6  ;;  %16648 = vmatprep.subr.bf16.mxu0 %v28213_v15  ;;  %v24431_v6 = vld [vmem:[%s27256_s3 + $0x2b8] sm:$0xff]  }
 0x67c   : > { %18395 = vmatprep.subr.bf16.mxu1 %v27973_v46  ;;  %v28283_v15 = vld [vmem:[#allocation47_spill] sm:$0xff] }
 0x67e   : > { %16649 = vmatpush3.bf16.msra.mxu0 %v28243_v27  ;;  %v28284_v27 = vld [vmem:[#allocation69_spill] sm:$0xff] }
 0x67f   : > { %18396 = vmatpush3.bf16.msra.mxu1 %v28244_v54  ;;  %16650 = vmatprep.subr.bf16.mxu0 %v28272_v3  ;;  %v5858_v54 = vpack.c.bf16 %v28284_v27, %v28284_v27  ;;  %v24618_v3 = vld [vmem:[%s27256_s3 + $0x300] sm:$0xff]  }
 0x680   : > { %18397 = vmatprep.subr.bf16.mxu1 %v27973_v46 }
 0x682   : > { %16651 = vmatpush3.bf16.msra.mxu0 %v28273_v29  ;;  %v24625_v29 = vld [vmem:[%s27256_s3 + $0x3b8] sm:$0xff]  }
 0x683   : > { %18398 = vmatpush3.bf16.msra.mxu1 %v28274_v32  ;;  %16652 = vmatprep.subr.bf16.mxu0 %v28275_v37  ;;  %v28288_v32 = vld [vmem:[#allocation63_spill] sm:$0xff] }
 0x684   : > { %18399 = vmatprep.subr.bf16.mxu1 %v27973_v46  ;;  %v8614_v37 = vrot.slane %v28288_v32, 1 }
 0x686   : > { %16653 = vmatpush3.bf16.msra.mxu0 %v28276_v19  ;;  %v28289_v19 = vld [vmem:[#allocation11_spill] sm:$0xff] }
 0x687   : > { %18400 = vmatpush3.bf16.msra.mxu1 %v28277_v35  ;;  %16654 = vmatprep.subr.bf16.mxu0 %v28278_v42  ;;  %v24631_v35 = vrot.slane %v28289_v19, 1 }
 0x688   : > { %18401 = vmatprep.subr.bf16.mxu1 %v27973_v46 }
 0x68a   : > { %16655 = vmatpush3.bf16.msra.mxu0 %v28279_v45 }
 0x68b   : > { %18402 = vmatpush3.bf16.msra.mxu1 %v28280_v22  ;;  %16656 = vmatprep.subr.bf16.mxu0 %v28281_v9  ;;  %v24639_v22 = vld [vmem:[%s27256_s3 + $0x3b0] sm:$0xff]  }
 0x68c   : > { %18403 = vmatprep.subr.bf16.mxu1 %v27973_v46 }
 0x68e   : > { %16657 = vmatpush3.bf16.msra.mxu0 %v28282_v34 }
 0x68f   : > { %18404 = vmatpush3.bf16.msra.mxu1 %v28283_v15  ;;  %16673 = vmatprep.subr.bf16.mxu0 %v24419_v52 }
 0x690   : > { %16695 = vmatprep.subr.bf16.mxu1 %v24425_v43 }
 0x691   : > { %v16446_v28 = vpop.f32.mrf.mxu0  ;;  %8481 = vmatmul.mubr.bf16.vlgmr.msra.gmra.mxu0 %v28285_v8  ;;  %v24651_v8 = vld [vmem:[%s27256_s3 + $0x3a8] sm:$0xff]  }
 0x692   : > { %v8026_v47 = vpop.f32.mrf.mxu1  ;;  %18406 = vmatmul.mubr.bf16.vlgmr.msra.gmra.mxu1 %v5858_v54  ;;  %16674 = vmatpush3.bf16.msra.mxu0 %v24431_v6 }
 0x693   : > { %8896 = vmatprep.mubr.bf16.mxu0 %v8615_v51  ;;  %16696 = vmatpush3.bf16.msra.mxu1 %v24438_v62  ;;  %v16447_v10 = vpop.f32.mrf.mxu0 }
 0x694   : > { %8936 = vmatprep.mubr.bf16.mxu1 %v24457_v36  ;;  %v16448_v24 = vadd.f32 %v16447_v10, %v16446_v28  ;;  %v18327_v40 = vpop.f32.mrf.mxu1  ;;  %16675 = vmatprep.subr.bf16.mxu0 %v24446_v18 }
 0x695   : > { %v16449_v14 = vpop.f32.mrf.mxu0  ;;  %16697 = vmatprep.subr.bf16.mxu1 %v24453_v25  ;;  %v24660_v40 = vld [vmem:[%s27256_s3 + $0x3a0] sm:$0xff]  }
 0x696   : > { %v7987_v58 = vadd.f32 %v16448_v24, %v7947_v53  ;;  %v8029_v1 = vpop.f32.mrf.mxu1  ;;  %16676 = vmatpush3.bf16.msra.mxu0 %v24462_v56  ;;  %v24599_v53 = vld [vmem:[%s27256_s3 + $0x2c0] sm:$0xff]   ;;  %v24669_v14 = vld [vmem:[%s27256_s3 + $0x398] sm:$0xff]  }
 0x697   : > { %16698 = vmatpush3.bf16.msra.mxu1 %v24470_v38  ;;  %v16450_v4 = vpop.f32.mrf.mxu0  ;;  %16677 = vmatprep.subr.bf16.mxu0 %v24475_v50  ;;  %v24687_v1 = vld [vmem:[%s27256_s3 + $0x388] sm:$0xff]  }
 0x698   : > { %v24503_v33 = vadd.f32 %v8026_v47, %v7987_v58  ;;  %v18328_v17 = vpop.f32.mrf.mxu1  ;;  %16699 = vmatprep.subr.bf16.mxu1 %v24482_v49  ;;  %v24678_v58 = vld [vmem:[%s27256_s3 + $0x390] sm:$0xff]   ;;  %v24696_v4 = vld [vmem:[%s27256_s3 + $0x380] sm:$0xff]  }
 0x699   : > { %v28290_v17 = vld [vmem:[#allocation41_spill] sm:$0xff] }
 0x69a   : > { %16678 = vmatpush3.bf16.msra.mxu0 %v24489_v44 }
 0x69b   : > { %16700 = vmatpush3.bf16.msra.mxu1 %v24496_v13  ;;  %16679 = vmatprep.subr.bf16.mxu0 %v24501_v0 }
 0x69c   : > { %16701 = vmatprep.subr.bf16.mxu1 %v24509_v21 }
 0x69e   : > { %16680 = vmatpush3.bf16.msra.mxu0 %v24515_v2 }
 0x69f   : > { %16702 = vmatpush3.bf16.msra.mxu1 %v24522_v41  ;;  %16681 = vmatprep.subr.bf16.mxu0 %v24527_v61 }
 0x6a0   : > { %16703 = vmatprep.subr.bf16.mxu1 %v24533_v11 }
 0x6a2   : > { %16682 = vmatpush3.bf16.msra.mxu0 %v24539_v12 }
 0x6a3   : > { %16704 = vmatpush3.bf16.msra.mxu1 %v24546_v5  ;;  %16683 = vmatprep.subr.bf16.mxu0 %v24551_v20 }
 0x6a4   : > { %16705 = vmatprep.subr.bf16.mxu1 %v24557_v39 }
 0x6a6   : > { %16684 = vmatpush3.bf16.msra.mxu0 %v24563_v31 }
 0x6a7   : > { %16706 = vmatpush3.bf16.msra.mxu1 %v24570_v26  ;;  %16685 = vmatprep.subr.bf16.mxu0 %v24575_v60 }
 0x6a8   : > { %16707 = vmatprep.subr.bf16.mxu1 %v24581_v30 }
 0x6aa   : > { %16686 = vmatpush3.bf16.msra.mxu0 %v24587_v7 }
 0x6ab   : > { %16708 = vmatpush3.bf16.msra.mxu1 %v24594_v48  ;;  %16687 = vmatprep.subr.bf16.mxu0 %v24599_v53 }
 0x6ac   : > { %16709 = vmatprep.subr.bf16.mxu1 %v24605_v57 }
 0x6ae   : > { %16688 = vmatpush3.bf16.msra.mxu0 %v24611_v63 }
 0x6af   : > { %16710 = vmatpush3.bf16.msra.mxu1 %v24618_v3  ;;  %18409 = vmatprep.subr.bf16.mxu0 %v27973_v46 }
 0x6b0   : > { %16726 = vmatprep.subr.bf16.mxu1 %v24419_v52 }
 0x6b1   : > { %v16477_v42 = vpop.f32.mrf.mxu0  ;;  %8897 = vmatmul.mubr.bf16.vlgmr.msra.gmra.mxu0 %v8614_v37  ;;  %v24704_v37 = vrot.slane %v28290_v17, 1 }
 0x6b2   : > { %v16499_v45 = vpop.f32.mrf.mxu1  ;;  %8937 = vmatmul.mubr.bf16.vlgmr.msra.gmra.mxu1 %v24631_v35  ;;  %18410 = vmatpush3.bf16.msra.mxu0 %v24625_v29 }
 0x6b3   : > { %16727 = vmatpush3.bf16.msra.mxu1 %v24431_v6  ;;  %9020 = vmatprep.mubr.bf16.mxu1 %v24631_v35  ;;  %v16478_v9 = vpop.f32.mrf.mxu0 }
 0x6b4   : > { %v16479_v34 = vadd.f32 %v16478_v9, %v16477_v42  ;;  %v16500_v15 = vpop.f32.mrf.mxu1  ;;  %18411 = vmatprep.subr.bf16.mxu0 %v27973_v46  ;;  %16728 = vmatprep.subr.bf16.mxu1 %v24446_v18 }
 0x6b5   : > { %v16501_v27 = vadd.f32 %v16500_v15, %v16499_v45  ;;  %v16480_v54 = vpop.f32.mrf.mxu0  ;;  %18425 = vmatprep.mubr.msk.bf16.mxu0 %vm19824_vm11, %v27973_v46 }
 0x6b6   : > { %v16502_v28 = vpop.f32.mrf.mxu1  ;;  %18412 = vmatpush3.bf16.msra.mxu0 %v24639_v22 }
 0x6b7   : > { %16729 = vmatpush3.bf16.msra.mxu1 %v24462_v56  ;;  %v16481_v47 = vpop.f32.mrf.mxu0  ;;  %18413 = vmatprep.subr.bf16.mxu0 %v27973_v46  ;;  %v8115_v10 = vadd.f32 %v16501_v27, %v16479_v34 }
 0x6b8   : > { %v16503_v24 = vpop.f32.mrf.mxu1  ;;  %16730 = vmatprep.subr.bf16.mxu1 %v24475_v50 }
 0x6b9   : > { %v28291_v24 = vld [vmem:[#allocation27_spill] sm:$0xff] }
 0x6ba   : > { %18414 = vmatpush3.bf16.msra.mxu0 %v24651_v8 }
 0x6bb   : > { %16731 = vmatpush3.bf16.msra.mxu1 %v24489_v44  ;;  %18415 = vmatprep.subr.bf16.mxu0 %v27973_v46 }
 0x6bc   : > { %16732 = vmatprep.subr.bf16.mxu1 %v24501_v0 }
 0x6be   : > { %18416 = vmatpush3.bf16.msra.mxu0 %v24660_v40 }
 0x6bf   : > { %16733 = vmatpush3.bf16.msra.mxu1 %v24515_v2  ;;  %18417 = vmatprep.subr.bf16.mxu0 %v27973_v46 }
 0x6c0   : > { %16734 = vmatprep.subr.bf16.mxu1 %v24527_v61 }
 0x6c2   : > { %18418 = vmatpush3.bf16.msra.mxu0 %v24669_v14 }
 0x6c3   : > { %16735 = vmatpush3.bf16.msra.mxu1 %v24539_v12  ;;  %18419 = vmatprep.subr.bf16.mxu0 %v27973_v46 }
 0x6c4   : > { %16736 = vmatprep.subr.bf16.mxu1 %v24551_v20 }
 0x6c6   : > { %18420 = vmatpush3.bf16.msra.mxu0 %v24678_v58 }
 0x6c7   : > { %16737 = vmatpush3.bf16.msra.mxu1 %v24563_v31  ;;  %18421 = vmatprep.subr.bf16.mxu0 %v27973_v46 }
 0x6c8   : > { %16738 = vmatprep.subr.bf16.mxu1 %v24575_v60 }
 0x6ca   : > { %18422 = vmatpush3.bf16.msra.mxu0 %v24687_v1 }
 0x6cb   : > { %16739 = vmatpush3.bf16.msra.mxu1 %v24587_v7  ;;  %18423 = vmatprep.subr.bf16.mxu0 %v27973_v46 }
 0x6cc   : > { %16740 = vmatprep.subr.bf16.mxu1 %v24599_v53 }
 0x6ce   : > { %18424 = vmatpush3.bf16.msra.mxu0 %v24696_v4 }
 0x6cf   : > { %16741 = vmatpush3.bf16.msra.mxu1 %v24611_v63  ;;  %16748 = vmatprep.subr.bf16.mxu0 %v24425_v43 }
 0x6d0   : > { %18429 = vmatprep.subr.bf16.mxu1 %v27973_v46 }
 0x6d1   : > { %v8154_v42 = vpop.f32.mrf.mxu0  ;;  %18426 = vmatmul.mubr.bf16.vlgmr.msra.gmra.mxu0 %v24704_v37 }
 0x6d2   : > { %v8155_v45 = vadd.f32 %v8154_v42, %v8115_v10  ;;  %v16530_v9 = vpop.f32.mrf.mxu1  ;;  %9021 = vmatmul.mubr.bf16.vlgmr.msra.gmra.mxu1 %v8615_v51  ;;  %16749 = vmatpush3.bf16.msra.mxu0 %v24438_v62  ;;  %v24746_v42 = vrot.slane %v28291_v24, 1 }
 0x6d3   : > { %9060 = vmatprep.mubr.bf16.mxu0 %v24704_v37  ;;  %18430 = vmatpush3.bf16.msra.mxu1 %v24625_v29  ;;  %v18347_v34 = vpop.f32.mrf.mxu0 }
 0x6d4   : > { %v16531_v15 = vpop.f32.mrf.mxu1  ;;  %16750 = vmatprep.subr.bf16.mxu0 %v24453_v25  ;;  %18431 = vmatprep.subr.bf16.mxu1 %v27973_v46 }
 0x6d5   : > { %v16532_v27 = vadd.f32 %v16531_v15, %v16530_v9  ;;  %v8157_v54 = vpop.f32.mrf.mxu0  ;;  %18445 = vmatprep.mubr.msk.bf16.mxu1 %vm19824_vm11, %v27973_v46 }
 0x6d6   : > { %v16533_v28 = vpop.f32.mrf.mxu1  ;;  %16751 = vmatpush3.bf16.msra.mxu0 %v24470_v38 }
 0x6d7   : > { %v8195_v51 = vadd.f32 %v16532_v27, %v8155_v45  ;;  %18432 = vmatpush3.bf16.msra.mxu1 %v24639_v22  ;;  %v18348_v47 = vpop.f32.mrf.mxu0  ;;  %16752 = vmatprep.subr.bf16.mxu0 %v24482_v49 }
 0x6d8   : > { %v16534_v10 = vpop.f32.mrf.mxu1  ;;  %18433 = vmatprep.subr.bf16.mxu1 %v27973_v46 }
 0x6da   : > { %16753 = vmatpush3.bf16.msra.mxu0 %v24496_v13 }
 0x6db   : > { %18434 = vmatpush3.bf16.msra.mxu1 %v24651_v8  ;;  %16754 = vmatprep.subr.bf16.mxu0 %v24509_v21 }
 0x6dc   : > { %18435 = vmatprep.subr.bf16.mxu1 %v27973_v46 }
 0x6de   : > { %16755 = vmatpush3.bf16.msra.mxu0 %v24522_v41 }
 0x6df   : > { %18436 = vmatpush3.bf16.msra.mxu1 %v24660_v40  ;;  %16756 = vmatprep.subr.bf16.mxu0 %v24533_v11 }
 0x6e0   : > { %18437 = vmatprep.subr.bf16.mxu1 %v27973_v46 }
 0x6e2   : > { %16757 = vmatpush3.bf16.msra.mxu0 %v24546_v5 }
 0x6e3   : > { %18438 = vmatpush3.bf16.msra.mxu1 %v24669_v14  ;;  %16758 = vmatprep.subr.bf16.mxu0 %v24557_v39 }
 0x6e4   : > { %18439 = vmatprep.subr.bf16.mxu1 %v27973_v46 }
 0x6e6   : > { %16759 = vmatpush3.bf16.msra.mxu0 %v24570_v26 }
 0x6e7   : > { %18440 = vmatpush3.bf16.msra.mxu1 %v24678_v58  ;;  %16760 = vmatprep.subr.bf16.mxu0 %v24581_v30 }
 0x6e8   : > { %18441 = vmatprep.subr.bf16.mxu1 %v27973_v46 }
 0x6ea   : > { %16761 = vmatpush3.bf16.msra.mxu0 %v24594_v48 }
 0x6eb   : > { %18442 = vmatpush3.bf16.msra.mxu1 %v24687_v1  ;;  %16762 = vmatprep.subr.bf16.mxu0 %v24605_v57 }
 0x6ec   : > { %18443 = vmatprep.subr.bf16.mxu1 %v27973_v46 }
 0x6ee   : > { %16763 = vmatpush3.bf16.msra.mxu0 %v24618_v3 }
 0x6ef   : > { %18444 = vmatpush3.bf16.msra.mxu1 %v24696_v4  ;;  %16779 = vmatprep.subr.bf16.mxu0 %v24419_v52 }
 0x6f0   : > { %16801 = vmatprep.subr.bf16.mxu1 %v24425_v43 }
 0x6f1   : > { %v16552_v45 = vpop.f32.mrf.mxu0  ;;  %9061 = vmatmul.mubr.bf16.vlgmr.msra.gmra.mxu0 %v24457_v36 }
 0x6f2   : > { %v8274_v9 = vpop.f32.mrf.mxu1  ;;  %18446 = vmatmul.mubr.bf16.vlgmr.msra.gmra.mxu1 %v24746_v42  ;;  %16780 = vmatpush3.bf16.msra.mxu0 %v24431_v6 }
 0x6f3   : > { %9144 = vmatprep.mubr.bf16.mxu0 %v24457_v36  ;;  %16802 = vmatpush3.bf16.msra.mxu1 %v24438_v62  ;;  %v16553_v34 = vpop.f32.mrf.mxu0 }
 0x6f4   : > { %9184 = vmatprep.mubr.bf16.mxu1 %v24746_v42  ;;  %v16554_v15 = vadd.f32 %v16553_v34, %v16552_v45  ;;  %v18367_v27 = vpop.f32.mrf.mxu1  ;;  %16781 = vmatprep.subr.bf16.mxu0 %v24446_v18 }
 0x6f5   : > { %v16555_v54 = vpop.f32.mrf.mxu0  ;;  %16803 = vmatprep.subr.bf16.mxu1 %v24453_v25 }
 0x6f6   : > { %v8235_v28 = vadd.f32 %v16554_v15, %v8195_v51  ;;  %v8277_v47 = vpop.f32.mrf.mxu1  ;;  %16782 = vmatpush3.bf16.msra.mxu0 %v24462_v56 }
 0x6f7   : > { %16804 = vmatpush3.bf16.msra.mxu1 %v24470_v38  ;;  %v16556_v10 = vpop.f32.mrf.mxu0  ;;  %16783 = vmatprep.subr.bf16.mxu0 %v24475_v50 }
 0x6f8   : > { %v18368_v24 = vpop.f32.mrf.mxu1  ;;  %16805 = vmatprep.subr.bf16.mxu1 %v24482_v49  ;;  %v24761_v17 = vadd.f32 %v8274_v9, %v8235_v28  ;;  %v28292_v10 = vld [vmem:[#allocation25_spill] sm:$0xff] }
 0x6fa   : > { %16784 = vmatpush3.bf16.msra.mxu0 %v24489_v44 }
 0x6fb   : > { %16806 = vmatpush3.bf16.msra.mxu1 %v24496_v13  ;;  %16785 = vmatprep.subr.bf16.mxu0 %v24501_v0 }
 0x6fc   : > { %16807 = vmatprep.subr.bf16.mxu1 %v24509_v21 }
 0x6fe   : > { %16786 = vmatpush3.bf16.msra.mxu0 %v24515_v2 }
 0x6ff   : > { %16808 = vmatpush3.bf16.msra.mxu1 %v24522_v41  ;;  %16787 = vmatprep.subr.bf16.mxu0 %v24527_v61 }
 0x700   : > { %16809 = vmatprep.subr.bf16.mxu1 %v24533_v11 }
 0x702   : > { %16788 = vmatpush3.bf16.msra.mxu0 %v24539_v12 }
 0x703   : > { %16810 = vmatpush3.bf16.msra.mxu1 %v24546_v5  ;;  %16789 = vmatprep.subr.bf16.mxu0 %v24551_v20 }
 0x704   : > { %16811 = vmatprep.subr.bf16.mxu1 %v24557_v39 }
 0x706   : > { %16790 = vmatpush3.bf16.msra.mxu0 %v24563_v31 }
 0x707   : > { %16812 = vmatpush3.bf16.msra.mxu1 %v24570_v26  ;;  %16791 = vmatprep.subr.bf16.mxu0 %v24575_v60 }
 0x708   : > { %16813 = vmatprep.subr.bf16.mxu1 %v24581_v30 }
 0x70a   : > { %16792 = vmatpush3.bf16.msra.mxu0 %v24587_v7 }
 0x70b   : > { %16814 = vmatpush3.bf16.msra.mxu1 %v24594_v48  ;;  %16793 = vmatprep.subr.bf16.mxu0 %v24599_v53 }
 0x70c   : > { %16815 = vmatprep.subr.bf16.mxu1 %v24605_v57 }
 0x70e   : > { %16794 = vmatpush3.bf16.msra.mxu0 %v24611_v63 }
 0x70f   : > { %16816 = vmatpush3.bf16.msra.mxu1 %v24618_v3  ;;  %18449 = vmatprep.subr.bf16.mxu0 %v27973_v46 }
 0x710   : > { %16832 = vmatprep.subr.bf16.mxu1 %v24419_v52 }
 0x711   : > { %v16583_v51 = vpop.f32.mrf.mxu0  ;;  %9145 = vmatmul.mubr.bf16.vlgmr.msra.gmra.mxu0 %v24631_v35 }
 0x712   : > { %v16605_v24 = vpop.f32.mrf.mxu1  ;;  %9185 = vmatmul.mubr.bf16.vlgmr.msra.gmra.mxu1 %v24704_v37  ;;  %18450 = vmatpush3.bf16.msra.mxu0 %v24625_v29 }
 0x713   : > { %16833 = vmatpush3.bf16.msra.mxu1 %v24431_v6  ;;  %9268 = vmatprep.mubr.bf16.mxu1 %v24704_v37  ;;  %v16584_v45 = vpop.f32.mrf.mxu0 }
 0x714   : > { %v16585_v9 = vadd.f32 %v16584_v45, %v16583_v51  ;;  %v16606_v34 = vpop.f32.mrf.mxu1  ;;  %18451 = vmatprep.subr.bf16.mxu0 %v27973_v46  ;;  %16834 = vmatprep.subr.bf16.mxu1 %v24446_v18  ;;  %v24823_v51 = vrot.slane %v28292_v10, 1 }
 0x715   : > { %v16607_v15 = vadd.f32 %v16606_v34, %v16605_v24  ;;  %v16586_v27 = vpop.f32.mrf.mxu0  ;;  %18465 = vmatprep.mubr.msk.bf16.mxu0 %vm19824_vm11, %v27973_v46 }
 0x716   : > { %v16608_v35 = vpop.f32.mrf.mxu1  ;;  %18452 = vmatpush3.bf16.msra.mxu0 %v24639_v22 }
 0x717   : > { %16835 = vmatpush3.bf16.msra.mxu1 %v24462_v56  ;;  %v16587_v54 = vpop.f32.mrf.mxu0  ;;  %18453 = vmatprep.subr.bf16.mxu0 %v27973_v46  ;;  %v8363_v28 = vadd.f32 %v16607_v15, %v16585_v9 }
 0x718   : > { %v16609_v47 = vpop.f32.mrf.mxu1  ;;  %16836 = vmatprep.subr.bf16.mxu1 %v24475_v50 }
 0x71a   : > { %18454 = vmatpush3.bf16.msra.mxu0 %v24651_v8 }
 0x71b   : > { %16837 = vmatpush3.bf16.msra.mxu1 %v24489_v44  ;;  %18455 = vmatprep.subr.bf16.mxu0 %v27973_v46 }
 0x71c   : > { %16838 = vmatprep.subr.bf16.mxu1 %v24501_v0 }
 0x71e   : > { %18456 = vmatpush3.bf16.msra.mxu0 %v24660_v40 }
 0x71f   : > { %16839 = vmatpush3.bf16.msra.mxu1 %v24515_v2  ;;  %18457 = vmatprep.subr.bf16.mxu0 %v27973_v46 }
 0x720   : > { %16840 = vmatprep.subr.bf16.mxu1 %v24527_v61 }
 0x722   : > { %18458 = vmatpush3.bf16.msra.mxu0 %v24669_v14 }
 0x723   : > { %16841 = vmatpush3.bf16.msra.mxu1 %v24539_v12  ;;  %18459 = vmatprep.subr.bf16.mxu0 %v27973_v46 }
 0x724   : > { %16842 = vmatprep.subr.bf16.mxu1 %v24551_v20 }
 0x726   : > { %18460 = vmatpush3.bf16.msra.mxu0 %v24678_v58 }
 0x727   : > { %16843 = vmatpush3.bf16.msra.mxu1 %v24563_v31  ;;  %18461 = vmatprep.subr.bf16.mxu0 %v27973_v46 }
 0x728   : > { %16844 = vmatprep.subr.bf16.mxu1 %v24575_v60 }
 0x72a   : > { %18462 = vmatpush3.bf16.msra.mxu0 %v24687_v1 }
 0x72b   : > { %16845 = vmatpush3.bf16.msra.mxu1 %v24587_v7  ;;  %18463 = vmatprep.subr.bf16.mxu0 %v27973_v46 }
 0x72c   : > { %16846 = vmatprep.subr.bf16.mxu1 %v24599_v53 }
 0x72e   : > { %18464 = vmatpush3.bf16.msra.mxu0 %v24696_v4 }
 0x72f   : > { %16847 = vmatpush3.bf16.msra.mxu1 %v24611_v63  ;;  %16854 = vmatprep.subr.bf16.mxu0 %v24425_v43 }
 0x730   : > { %18469 = vmatprep.subr.bf16.mxu1 %v27973_v46 }
 0x731   : > { %v8402_v24 = vpop.f32.mrf.mxu0  ;;  %18466 = vmatmul.mubr.bf16.vlgmr.msra.gmra.mxu0 %v24823_v51 }
 0x732   : > { %v8403_v45 = vadd.f32 %v8402_v24, %v8363_v28  ;;  %v16636_v9 = vpop.f32.mrf.mxu1  ;;  %9269 = vmatmul.mubr.bf16.vlgmr.msra.gmra.mxu1 %v24457_v36  ;;  %16855 = vmatpush3.bf16.msra.mxu0 %v24438_v62  ;;  %v28293_v24 = vld [vmem:[#allocation68_spill] sm:$0xff] }
 0x733   : > { %9308 = vmatprep.mubr.bf16.mxu0 %v24823_v51  ;;  %18470 = vmatpush3.bf16.msra.mxu1 %v24625_v29  ;;  %v18387_v34 = vpop.f32.mrf.mxu0 }
 0x734   : > { %v16637_v15 = vpop.f32.mrf.mxu1  ;;  %16856 = vmatprep.subr.bf16.mxu0 %v24453_v25  ;;  %18471 = vmatprep.subr.bf16.mxu1 %v27973_v46 }
 0x735   : > { %v16638_v27 = vadd.f32 %v16637_v15, %v16636_v9  ;;  %v8405_v35 = vpop.f32.mrf.mxu0  ;;  %18485 = vmatprep.mubr.msk.bf16.mxu1 %vm19824_vm11, %v27973_v46 }
 0x736   : > { %v16639_v54 = vpop.f32.mrf.mxu1  ;;  %16857 = vmatpush3.bf16.msra.mxu0 %v24470_v38 }
 0x737   : > { %v8443_v36 = vadd.f32 %v16638_v27, %v8403_v45  ;;  %18472 = vmatpush3.bf16.msra.mxu1 %v24639_v22  ;;  %v18388_v28 = vpop.f32.mrf.mxu0  ;;  %16858 = vmatprep.subr.bf16.mxu0 %v24482_v49  ;;  %v24864_v45 = vrot.slane %v28293_v24, 1 }
 0x738   : > { %v16640_v47 = vpop.f32.mrf.mxu1  ;;  %18473 = vmatprep.subr.bf16.mxu1 %v27973_v46 }
 0x73a   : > { %16859 = vmatpush3.bf16.msra.mxu0 %v24496_v13 }
 0x73b   : > { %18474 = vmatpush3.bf16.msra.mxu1 %v24651_v8  ;;  %16860 = vmatprep.subr.bf16.mxu0 %v24509_v21 }
 0x73c   : > { %18475 = vmatprep.subr.bf16.mxu1 %v27973_v46 }
 0x73e   : > { %16861 = vmatpush3.bf16.msra.mxu0 %v24522_v41 }
 0x73f   : > { %18476 = vmatpush3.bf16.msra.mxu1 %v24660_v40  ;;  %16862 = vmatprep.subr.bf16.mxu0 %v24533_v11 }
 0x740   : > { %18477 = vmatprep.subr.bf16.mxu1 %v27973_v46 }
 0x742   : > { %16863 = vmatpush3.bf16.msra.mxu0 %v24546_v5 }
 0x743   : > { %18478 = vmatpush3.bf16.msra.mxu1 %v24669_v14  ;;  %16864 = vmatprep.subr.bf16.mxu0 %v24557_v39 }
 0x744   : > { %18479 = vmatprep.subr.bf16.mxu1 %v27973_v46 }
 0x746   : > { %16865 = vmatpush3.bf16.msra.mxu0 %v24570_v26 }
 0x747   : > { %18480 = vmatpush3.bf16.msra.mxu1 %v24678_v58  ;;  %16866 = vmatprep.subr.bf16.mxu0 %v24581_v30 }
 0x748   : > { %18481 = vmatprep.subr.bf16.mxu1 %v27973_v46 }
 0x74a   : > { %16867 = vmatpush3.bf16.msra.mxu0 %v24594_v48 }
 0x74b   : > { %18482 = vmatpush3.bf16.msra.mxu1 %v24687_v1  ;;  %16868 = vmatprep.subr.bf16.mxu0 %v24605_v57 }
 0x74c   : > { %18483 = vmatprep.subr.bf16.mxu1 %v27973_v46 }
 0x74e   : > { %16869 = vmatpush3.bf16.msra.mxu0 %v24618_v3 }
 0x74f   : > { %18484 = vmatpush3.bf16.msra.mxu1 %v24696_v4  ;;  %16885 = vmatprep.subr.bf16.mxu0 %v24419_v52 }
 0x750   : > { %16907 = vmatprep.subr.bf16.mxu1 %v24425_v43 }
 0x751   : > { %v16658_v9 = vpop.f32.mrf.mxu0  ;;  %9309 = vmatmul.mubr.bf16.vlgmr.msra.gmra.mxu0 %v24746_v42 }
 0x752   : > { %v8522_v34 = vpop.f32.mrf.mxu1  ;;  %18486 = vmatmul.mubr.bf16.vlgmr.msra.gmra.mxu1 %v24864_v45  ;;  %16886 = vmatpush3.bf16.msra.mxu0 %v24431_v6 }
 0x753   : > { %9392 = vmatprep.mubr.bf16.mxu0 %v24746_v42  ;;  %16908 = vmatpush3.bf16.msra.mxu1 %v24438_v62  ;;  %v16659_v15 = vpop.f32.mrf.mxu0 }
 0x754   : > { %9432 = vmatprep.mubr.bf16.mxu1 %v24864_v45  ;;  %v16660_v27 = vadd.f32 %v16659_v15, %v16658_v9  ;;  %v18407_v35 = vpop.f32.mrf.mxu1  ;;  %16887 = vmatprep.subr.bf16.mxu0 %v24446_v18 }
 0x755   : > { %v16661_v54 = vpop.f32.mrf.mxu0  ;;  %16909 = vmatprep.subr.bf16.mxu1 %v24453_v25 }
 0x756   : > { %v8483_v28 = vadd.f32 %v16660_v27, %v8443_v36  ;;  %v8525_v47 = vpop.f32.mrf.mxu1  ;;  %16888 = vmatpush3.bf16.msra.mxu0 %v24462_v56 }
 0x757   : > { %16910 = vmatpush3.bf16.msra.mxu1 %v24470_v38  ;;  %v16662_v24 = vpop.f32.mrf.mxu0  ;;  %16889 = vmatprep.subr.bf16.mxu0 %v24475_v50  ;;  %v28294_v47 = vld [vmem:[#allocation78_spill] sm:$0xff] }
 0x758   : > { %v24878_v10 = vadd.f32 %v8522_v34, %v8483_v28  ;;  %v18408_v19 = vpop.f32.mrf.mxu1  ;;  %16911 = vmatprep.subr.bf16.mxu1 %v24482_v49 }
 0x75a   : > { %16890 = vmatpush3.bf16.msra.mxu0 %v24489_v44 }
 0x75b   : > { %16912 = vmatpush3.bf16.msra.mxu1 %v24496_v13  ;;  %16891 = vmatprep.subr.bf16.mxu0 %v24501_v0 }
 0x75c   : > { %16913 = vmatprep.subr.bf16.mxu1 %v24509_v21 }
 0x75e   : > { %16892 = vmatpush3.bf16.msra.mxu0 %v24515_v2 }
 0x75f   : > { %16914 = vmatpush3.bf16.msra.mxu1 %v24522_v41  ;;  %16893 = vmatprep.subr.bf16.mxu0 %v24527_v61 }
 0x760   : > { %16915 = vmatprep.subr.bf16.mxu1 %v24533_v11 }
 0x762   : > { %16894 = vmatpush3.bf16.msra.mxu0 %v24539_v12 }
 0x763   : > { %16916 = vmatpush3.bf16.msra.mxu1 %v24546_v5  ;;  %16895 = vmatprep.subr.bf16.mxu0 %v24551_v20 }
 0x764   : > { %16917 = vmatprep.subr.bf16.mxu1 %v24557_v39 }
 0x766   : > { %16896 = vmatpush3.bf16.msra.mxu0 %v24563_v31 }
 0x767   : > { %16918 = vmatpush3.bf16.msra.mxu1 %v24570_v26  ;;  %16897 = vmatprep.subr.bf16.mxu0 %v24575_v60 }
 0x768   : > { %16919 = vmatprep.subr.bf16.mxu1 %v24581_v30 }
 0x76a   : > { %16898 = vmatpush3.bf16.msra.mxu0 %v24587_v7 }
 0x76b   : > { %16920 = vmatpush3.bf16.msra.mxu1 %v24594_v48  ;;  %16899 = vmatprep.subr.bf16.mxu0 %v24599_v53 }
 0x76c   : > { %16921 = vmatprep.subr.bf16.mxu1 %v24605_v57 }
 0x76e   : > { %16900 = vmatpush3.bf16.msra.mxu0 %v24611_v63 }
 0x76f   : > { %16922 = vmatpush3.bf16.msra.mxu1 %v24618_v3  ;;  %18489 = vmatprep.subr.bf16.mxu0 %v27973_v46 }
 0x770   : > { %16938 = vmatprep.subr.bf16.mxu1 %v24419_v52 }
 0x771   : > { %v16689_v19 = vpop.f32.mrf.mxu0  ;;  %9393 = vmatmul.mubr.bf16.vlgmr.msra.gmra.mxu0 %v24704_v37 }
 0x772   : > { %v16711_v36 = vpop.f32.mrf.mxu1  ;;  %9433 = vmatmul.mubr.bf16.vlgmr.msra.gmra.mxu1 %v24823_v51  ;;  %18490 = vmatpush3.bf16.msra.mxu0 %v24625_v29 }
 0x773   : > { %16939 = vmatpush3.bf16.msra.mxu1 %v24431_v6  ;;  %9516 = vmatprep.mubr.bf16.mxu1 %v24823_v51  ;;  %v16690_v24 = vpop.f32.mrf.mxu0 }
 0x774   : > { %v16691_v9 = vadd.f32 %v16690_v24, %v16689_v19  ;;  %v16712_v34 = vpop.f32.mrf.mxu1  ;;  %18491 = vmatprep.subr.bf16.mxu0 %v27973_v46  ;;  %16940 = vmatprep.subr.bf16.mxu1 %v24446_v18  ;;  %v24941_v19 = vrot.slane %v28294_v47, 1 }
 0x775   : > { %v16713_v15 = vadd.f32 %v16712_v34, %v16711_v36  ;;  %v16692_v27 = vpop.f32.mrf.mxu0  ;;  %18505 = vmatprep.mubr.msk.bf16.mxu0 %vm19824_vm11, %v27973_v46 }
 0x776   : > { %v16714_v37 = vpop.f32.mrf.mxu1  ;;  %18492 = vmatpush3.bf16.msra.mxu0 %v24639_v22 }
 0x777   : > { %16941 = vmatpush3.bf16.msra.mxu1 %v24462_v56  ;;  %v16693_v35 = vpop.f32.mrf.mxu0  ;;  %18493 = vmatprep.subr.bf16.mxu0 %v27973_v46  ;;  %v8939_v54 = vadd.f32 %v16713_v15, %v16691_v9  ;;  %v28295_v15 = vld [vmem:[#allocation35_spill] sm:$0xff] }
 0x778   : > { %v16715_v28 = vpop.f32.mrf.mxu1  ;;  %16942 = vmatprep.subr.bf16.mxu1 %v24475_v50 }
 0x77a   : > { %18494 = vmatpush3.bf16.msra.mxu0 %v24651_v8 }
 0x77b   : > { %16943 = vmatpush3.bf16.msra.mxu1 %v24489_v44  ;;  %18495 = vmatprep.subr.bf16.mxu0 %v27973_v46 }
 0x77c   : > { %16944 = vmatprep.subr.bf16.mxu1 %v24501_v0 }
 0x77e   : > { %18496 = vmatpush3.bf16.msra.mxu0 %v24660_v40 }
 0x77f   : > { %16945 = vmatpush3.bf16.msra.mxu1 %v24515_v2  ;;  %18497 = vmatprep.subr.bf16.mxu0 %v27973_v46 }
 0x780   : > { %16946 = vmatprep.subr.bf16.mxu1 %v24527_v61 }
 0x782   : > { %18498 = vmatpush3.bf16.msra.mxu0 %v24669_v14 }
 0x783   : > { %16947 = vmatpush3.bf16.msra.mxu1 %v24539_v12  ;;  %18499 = vmatprep.subr.bf16.mxu0 %v27973_v46 }
 0x784   : > { %16948 = vmatprep.subr.bf16.mxu1 %v24551_v20 }
 0x786   : > { %18500 = vmatpush3.bf16.msra.mxu0 %v24678_v58 }
 0x787   : > { %16949 = vmatpush3.bf16.msra.mxu1 %v24563_v31  ;;  %18501 = vmatprep.subr.bf16.mxu0 %v27973_v46 }
 0x788   : > { %16950 = vmatprep.subr.bf16.mxu1 %v24575_v60 }
 0x78a   : > { %18502 = vmatpush3.bf16.msra.mxu0 %v24687_v1 }
 0x78b   : > { %16951 = vmatpush3.bf16.msra.mxu1 %v24587_v7  ;;  %18503 = vmatprep.subr.bf16.mxu0 %v27973_v46 }
 0x78c   : > { %16952 = vmatprep.subr.bf16.mxu1 %v24599_v53 }
 0x78e   : > { %18504 = vmatpush3.bf16.msra.mxu0 %v24696_v4 }
 0x78f   : > { %16953 = vmatpush3.bf16.msra.mxu1 %v24611_v63  ;;  %16960 = vmatprep.subr.bf16.mxu0 %v24425_v43 }
 0x790   : > { %18509 = vmatprep.subr.bf16.mxu1 %v27973_v46 }
 0x791   : > { %v8978_v36 = vpop.f32.mrf.mxu0  ;;  %18506 = vmatmul.mubr.bf16.vlgmr.msra.gmra.mxu0 %v24941_v19 }
 0x792   : > { %v8979_v24 = vadd.f32 %v8978_v36, %v8939_v54  ;;  %v16742_v9 = vpop.f32.mrf.mxu1  ;;  %9517 = vmatmul.mubr.bf16.vlgmr.msra.gmra.mxu1 %v24746_v42  ;;  %16961 = vmatpush3.bf16.msra.mxu0 %v24438_v62 }
 0x793   : > { %9556 = vmatprep.mubr.bf16.mxu0 %v24941_v19  ;;  %18510 = vmatpush3.bf16.msra.mxu1 %v24625_v29  ;;  %v18427_v34 = vpop.f32.mrf.mxu0 }
 0x794   : > { %v24951_v27 = vadd.f32 %v8979_v24, %v28295_v15  ;;  %v16743_v37 = vpop.f32.mrf.mxu1  ;;  %16962 = vmatprep.subr.bf16.mxu0 %v24453_v25  ;;  %18511 = vmatprep.subr.bf16.mxu1 %v27973_v46  ;;  %v28296_v24 = vld [vmem:[#allocation17_spill] sm:$0xff] }
 0x795   : > { %v16744_v35 = vadd.f32 %v16743_v37, %v16742_v9  ;;  %v8981_v54 = vpop.f32.mrf.mxu0  ;;  %18525 = vmatprep.mubr.msk.bf16.mxu1 %vm19824_vm11, %v27973_v46  ;;  %v24985_v9 = vrot.slane %v28296_v24, 1 }
 0x796   : > { %v16745_v42 = vpop.f32.mrf.mxu1  ;;  %16963 = vmatpush3.bf16.msra.mxu0 %v24470_v38 }
 0x797   : > { %18512 = vmatpush3.bf16.msra.mxu1 %v24639_v22  ;;  %v18428_v28 = vpop.f32.mrf.mxu0  ;;  %16964 = vmatprep.subr.bf16.mxu0 %v24482_v49 }
 0x798   : > { %v16746_v36 = vpop.f32.mrf.mxu1  ;;  %18513 = vmatprep.subr.bf16.mxu1 %v27973_v46 }
 0x79a   : > { %16965 = vmatpush3.bf16.msra.mxu0 %v24496_v13 }
 0x79b   : > { %18514 = vmatpush3.bf16.msra.mxu1 %v24651_v8  ;;  %16966 = vmatprep.subr.bf16.mxu0 %v24509_v21 }
 0x79c   : > { %18515 = vmatprep.subr.bf16.mxu1 %v27973_v46 }
 0x79e   : > { %16967 = vmatpush3.bf16.msra.mxu0 %v24522_v41 }
 0x79f   : > { %18516 = vmatpush3.bf16.msra.mxu1 %v24660_v40  ;;  %16968 = vmatprep.subr.bf16.mxu0 %v24533_v11 }
 0x7a0   : > { %18517 = vmatprep.subr.bf16.mxu1 %v27973_v46 }
 0x7a2   : > { %16969 = vmatpush3.bf16.msra.mxu0 %v24546_v5 }
 0x7a3   : > { %18518 = vmatpush3.bf16.msra.mxu1 %v24669_v14  ;;  %16970 = vmatprep.subr.bf16.mxu0 %v24557_v39 }
 0x7a4   : > { %18519 = vmatprep.subr.bf16.mxu1 %v27973_v46 }
 0x7a6   : > { %16971 = vmatpush3.bf16.msra.mxu0 %v24570_v26 }
 0x7a7   : > { %18520 = vmatpush3.bf16.msra.mxu1 %v24678_v58  ;;  %16972 = vmatprep.subr.bf16.mxu0 %v24581_v30 }
 0x7a8   : > { %18521 = vmatprep.subr.bf16.mxu1 %v27973_v46 }
 0x7aa   : > { %16973 = vmatpush3.bf16.msra.mxu0 %v24594_v48 }
 0x7ab   : > { %18522 = vmatpush3.bf16.msra.mxu1 %v24687_v1  ;;  %16974 = vmatprep.subr.bf16.mxu0 %v24605_v57 }
 0x7ac   : > { %18523 = vmatprep.subr.bf16.mxu1 %v27973_v46 }
 0x7ae   : > { %16975 = vmatpush3.bf16.msra.mxu0 %v24618_v3 }
 0x7af   : > { %18524 = vmatpush3.bf16.msra.mxu1 %v24696_v4  ;;  %16991 = vmatprep.subr.bf16.mxu0 %v24419_v52 }
 0x7b0   : > { %17013 = vmatprep.subr.bf16.mxu1 %v24425_v43 }
 0x7b1   : > { %v16764_v34 = vpop.f32.mrf.mxu0  ;;  %9557 = vmatmul.mubr.bf16.vlgmr.msra.gmra.mxu0 %v24864_v45 }
 0x7b2   : > { %v9102_v15 = vpop.f32.mrf.mxu1  ;;  %18526 = vmatmul.mubr.bf16.vlgmr.msra.gmra.mxu1 %v24985_v9  ;;  %16992 = vmatpush3.bf16.msra.mxu0 %v24431_v6 }
 0x7b3   : > { %9640 = vmatprep.mubr.bf16.mxu0 %v24864_v45  ;;  %17014 = vmatpush3.bf16.msra.mxu1 %v24438_v62  ;;  %v16765_v37 = vpop.f32.mrf.mxu0 }
 0x7b4   : > { %9680 = vmatprep.mubr.bf16.mxu1 %v24985_v9  ;;  %v16766_v52 = vadd.f32 %v16765_v37, %v16764_v34  ;;  %v18447_v54 = vpop.f32.mrf.mxu1  ;;  %16993 = vmatprep.subr.bf16.mxu0 %v24446_v18  ;;  %v28297_v34 = vld [vmem:[#allocation62_spill] sm:$0xff]  ;;  %v19692_v18 = vld [vmem:[%s27256_s3 + $0x2f8] sm:$0xff]  }
 0x7b5   : > { %v16767_v43 = vpop.f32.mrf.mxu0  ;;  %17015 = vmatprep.subr.bf16.mxu1 %v24453_v25  ;;  %v19703_v54 = vld [vmem:[%s27256_s3 + $0x368] sm:$0xff]  }
 0x7b6   : > { %v9063_v42 = vadd.f32 %v16766_v52, %v16744_v35  ;;  %v9105_v28 = vpop.f32.mrf.mxu1  ;;  %16994 = vmatpush3.bf16.msra.mxu0 %v24462_v56 }
 0x7b7   : > { %17016 = vmatpush3.bf16.msra.mxu1 %v24470_v38  ;;  %v16768_v6 = vpop.f32.mrf.mxu0  ;;  %16995 = vmatprep.subr.bf16.mxu0 %v24475_v50  ;;  %v19693_v38 = vld [vmem:[%s27256_s3 + $0x2b8] sm:$0xff]   ;;  %v19706_v28 = vld [vmem:[%s27256_s3 + $0x320] sm:$0xff]  }
 0x7b8   : > { %v9103_v62 = vadd.f32 %v9102_v15, %v9063_v42  ;;  %v18448_v36 = vpop.f32.mrf.mxu1  ;;  %17017 = vmatprep.subr.bf16.mxu1 %v24482_v49  ;;  %v19704_v42 = vld [vmem:[%s27256_s3 + $0x328] sm:$0xff]   ;;  %v19707_v6 = vld [vmem:[%s27256_s3 + $0x358] sm:$0xff]  }
 0x7b9   : > { %v19711_v36 = vld [vmem:[%s27256_s3 + $0x348] sm:$0xff]  }
 0x7ba   : > { %v25001_v37 = vadd.f32 %v9103_v62, %v28297_v34  ;;  %16996 = vmatpush3.bf16.msra.mxu0 %v24489_v44  ;;  %v19709_v62 = vld [vmem:[%s27256_s3 + $0x350] sm:$0xff]   ;;  %v19713_v34 = vld [vmem:[%s27256_s3 + $0x340] sm:$0xff]  }
 0x7bb   : > { %17018 = vmatpush3.bf16.msra.mxu1 %v24496_v13  ;;  %16997 = vmatprep.subr.bf16.mxu0 %v24501_v0  ;;  %v19694_v13 = vld [vmem:[%s27256_s3 + $0x2f0] sm:$0xff]  }
 0x7bc   : > { %17019 = vmatprep.subr.bf16.mxu1 %v24509_v21 }
 0x7be   : > { %16998 = vmatpush3.bf16.msra.mxu0 %v24515_v2 }
 0x7bf   : > { %17020 = vmatpush3.bf16.msra.mxu1 %v24522_v41  ;;  %16999 = vmatprep.subr.bf16.mxu0 %v24527_v61 }
 0x7c0   : > { %17021 = vmatprep.subr.bf16.mxu1 %v24533_v11  ;;  %v19695_v11 = vld [vmem:[%s27256_s3 + $0x2b0] sm:$0xff]  }
 0x7c2   : > { %17000 = vmatpush3.bf16.msra.mxu0 %v24539_v12 }
 0x7c3   : > { %17022 = vmatpush3.bf16.msra.mxu1 %v24546_v5  ;;  %17001 = vmatprep.subr.bf16.mxu0 %v24551_v20 }
 0x7c4   : > { %17023 = vmatprep.subr.bf16.mxu1 %v24557_v39 }
 0x7c6   : > { %17002 = vmatpush3.bf16.msra.mxu0 %v24563_v31 }
 0x7c7   : > { %17024 = vmatpush3.bf16.msra.mxu1 %v24570_v26  ;;  %17003 = vmatprep.subr.bf16.mxu0 %v24575_v60 }
 0x7c8   : > { %17025 = vmatprep.subr.bf16.mxu1 %v24581_v30  ;;  %v19696_v30 = vld [vmem:[%s27256_s3 + $0x2e8] sm:$0xff]  }
 0x7ca   : > { %17004 = vmatpush3.bf16.msra.mxu0 %v24587_v7 }
 0x7cb   : > { %17026 = vmatpush3.bf16.msra.mxu1 %v24594_v48  ;;  %17005 = vmatprep.subr.bf16.mxu0 %v24599_v53  ;;  %v19697_v48 = vld [vmem:[%s27256_s3 + $0x2a8] sm:$0xff]  }
 0x7cc   : > { %17027 = vmatprep.subr.bf16.mxu1 %v24605_v57  ;;  %v19698_v57 = vld [vmem:[%s27256_s3 + $0x2e0] sm:$0xff]  }
 0x7ce   : > { %17006 = vmatpush3.bf16.msra.mxu0 %v24611_v63 }
 0x7cf   : > { %17028 = vmatpush3.bf16.msra.mxu1 %v24618_v3  ;;  %18529 = vmatprep.subr.bf16.mxu0 %v27973_v46 }
 0x7d0   : > { %17044 = vmatprep.subr.bf16.mxu1 %v19692_v18  ;;  %v25153_v18 = vld [vmem:[%s27256_s3 + $0x4b8] sm:$0xff]  }
 0x7d1   : > { %v16795_v25 = vpop.f32.mrf.mxu0  ;;  %9641 = vmatmul.mubr.bf16.vlgmr.msra.gmra.mxu0 %v24823_v51 }
 0x7d2   : > { %v16817_v56 = vpop.f32.mrf.mxu1  ;;  %9681 = vmatmul.mubr.bf16.vlgmr.msra.gmra.mxu1 %v24941_v19  ;;  %18530 = vmatpush3.bf16.msra.mxu0 %v24625_v29 }
 0x7d3   : > { %17045 = vmatpush3.bf16.msra.mxu1 %v19693_v38  ;;  %9764 = vmatprep.mubr.bf16.mxu1 %v24941_v19  ;;  %v16796_v50 = vpop.f32.mrf.mxu0  ;;  %v19701_v19 = vld [vmem:[%s27256_s3 + $0x370] sm:$0xff]   ;;  %v9730_v38 = vrot.slane %v28269_v16, 1 }
 0x7d4   : > { %v16797_v49 = vadd.f32 %v16796_v50, %v16795_v25  ;;  %v16818_v44 = vpop.f32.mrf.mxu1  ;;  %18531 = vmatprep.subr.bf16.mxu0 %v27973_v46  ;;  %17046 = vmatprep.subr.bf16.mxu1 %v19694_v13  ;;  %v25161_v25 = vld [vmem:[%s27256_s3 + $0x3f8] sm:$0xff]   ;;  %v25175_v50 = vld [vmem:[%s27256_s3 + $0x430] sm:$0xff]  }
 0x7d5   : > { %v16819_v0 = vadd.f32 %v16818_v44, %v16817_v56  ;;  %v16798_v21 = vpop.f32.mrf.mxu0  ;;  %18545 = vmatprep.mubr.msk.bf16.mxu0 %vm19824_vm11, %v27973_v46  ;;  %v25168_v56 = vld [vmem:[%s27256_s3 + $0x478] sm:$0xff]   ;;  %v25187_v13 = vld [vmem:[%s27256_s3 + $0x3f0] sm:$0xff]  }
 0x7d6   : > { %v16820_v41 = vpop.f32.mrf.mxu1  ;;  %18532 = vmatpush3.bf16.msra.mxu0 %v24639_v22 }
 0x7d7   : > { %17047 = vmatpush3.bf16.msra.mxu1 %v19695_v11  ;;  %v16799_v5 = vpop.f32.mrf.mxu0  ;;  %18533 = vmatprep.subr.bf16.mxu0 %v27973_v46  ;;  %v9187_v39 = vadd.f32 %v16819_v0, %v16797_v49  ;;  %v28300_v0 = vld [vmem:[#allocation18_spill] sm:$0xff]  ;;  %v28301_v11 = vld [vmem:[#allocation93_spill] sm:$0xff] }
 0x7d8   : > { %v16821_v26 = vpop.f32.mrf.mxu1  ;;  %17048 = vmatprep.subr.bf16.mxu1 %v19696_v30  ;;  %v25199_v41 = vld [vmem:[%s27256_s3 + $0x428] sm:$0xff]  }
 0x7d9   : > { %v25206_v26 = vld [vmem:[%s27256_s3 + $0x4a8] sm:$0xff]  }
 0x7da   : > { %18534 = vmatpush3.bf16.msra.mxu0 %v24651_v8 }
 0x7db   : > { %17049 = vmatpush3.bf16.msra.mxu1 %v19697_v48  ;;  %18535 = vmatprep.subr.bf16.mxu0 %v27973_v46 }
 0x7dc   : > { %17050 = vmatprep.subr.bf16.mxu1 %v19698_v57 }
 0x7de   : > { %18536 = vmatpush3.bf16.msra.mxu0 %v24660_v40 }
 0x7df   : > { %17051 = vmatpush3.bf16.msra.mxu1 %v24515_v2  ;;  %18537 = vmatprep.subr.bf16.mxu0 %v27973_v46  ;;  %v28298_v2 = vld [vmem:[#allocation26_spill] sm:$0xff] }
 0x7e0   : > { %17052 = vmatprep.subr.bf16.mxu1 %v24527_v61  ;;  %v9606_v61 = vrot.slane %v28298_v2, 1 }
 0x7e2   : > { %18538 = vmatpush3.bf16.msra.mxu0 %v24669_v14 }
 0x7e3   : > { %17053 = vmatpush3.bf16.msra.mxu1 %v24539_v12  ;;  %18539 = vmatprep.subr.bf16.mxu0 %v27973_v46  ;;  %v19699_v12 = vld [vmem:[%s27256_s3 + $0x378] sm:$0xff]  }
 0x7e4   : > { %17054 = vmatprep.subr.bf16.mxu1 %v24551_v20 }
 0x7e6   : > { %18540 = vmatpush3.bf16.msra.mxu0 %v24678_v58 }
 0x7e7   : > { %17055 = vmatpush3.bf16.msra.mxu1 %v24563_v31  ;;  %18541 = vmatprep.subr.bf16.mxu0 %v27973_v46 }
 0x7e8   : > { %17056 = vmatprep.subr.bf16.mxu1 %v24575_v60 }
 0x7ea   : > { %18542 = vmatpush3.bf16.msra.mxu0 %v24687_v1 }
 0x7eb   : > { %17057 = vmatpush3.bf16.msra.mxu1 %v24587_v7  ;;  %18543 = vmatprep.subr.bf16.mxu0 %v27973_v46  ;;  %v19700_v7 = vld [vmem:[%s27256_s3 + $0x338] sm:$0xff]  }
 0x7ec   : > { %17058 = vmatprep.subr.bf16.mxu1 %v24599_v53 }
 0x7ee   : > { %18544 = vmatpush3.bf16.msra.mxu0 %v24696_v4 }
 0x7ef   : > { %17059 = vmatpush3.bf16.msra.mxu1 %v24611_v63  ;;  %17066 = vmatprep.subr.bf16.mxu0 %v19699_v12  ;;  %v28299_v63 = vld [vmem:[#allocation48_spill] sm:$0xff] }
 0x7f0   : > { %18549 = vmatprep.subr.bf16.mxu1 %v27973_v46 }
 0x7f1   : > { %v9226_v20 = vpop.f32.mrf.mxu0  ;;  %18546 = vmatmul.mubr.bf16.vlgmr.msra.gmra.mxu0 %v9606_v61 }
 0x7f2   : > { %v9227_v31 = vadd.f32 %v9226_v20, %v9187_v39  ;;  %v16848_v60 = vpop.f32.mrf.mxu1  ;;  %9765 = vmatmul.mubr.bf16.vlgmr.msra.gmra.mxu1 %v24864_v45  ;;  %17067 = vmatpush3.bf16.msra.mxu0 %v19700_v7  ;;  %v25221_v20 = vld [vmem:[%s27256_s3 + $0x468] sm:$0xff]  }
 0x7f3   : > { %9804 = vmatprep.mubr.bf16.mxu0 %v9606_v61  ;;  %18550 = vmatpush3.bf16.msra.mxu1 %v24625_v29  ;;  %v18467_v53 = vpop.f32.mrf.mxu0  ;;  %v19702_v29 = vld [vmem:[%s27256_s3 + $0x330] sm:$0xff]   ;;  %v25214_v61 = vld [vmem:[%s27256_s3 + $0x3e8] sm:$0xff]  }
 0x7f4   : > { %v25087_v3 = vadd.f32 %v9227_v31, %v28299_v63  ;;  %v16849_v51 = vpop.f32.mrf.mxu1  ;;  %17068 = vmatprep.subr.bf16.mxu0 %v19701_v19  ;;  %18551 = vmatprep.subr.bf16.mxu1 %v27973_v46  ;;  %v25226_v31 = vld [vmem:[%s27256_s3 + $0x420] sm:$0xff]   ;;  %v28302_v63 = vld [vmem:[#allocation82_spill] sm:$0xff] }
 0x7f5   : > { %v25093_v45 = vadd.f32 %v16849_v51, %v16848_v60  ;;  %v9229_v35 = vpop.f32.mrf.mxu0  ;;  %18565 = vmatprep.mubr.msk.bf16.mxu1 %vm19824_vm11, %v27973_v46  ;;  %v25232_v53 = vld [vmem:[%s27256_s3 + $0x4a0] sm:$0xff]  }
 0x7f6   : > { %v16851_v15 = vpop.f32.mrf.mxu1  ;;  %17069 = vmatpush3.bf16.msra.mxu0 %v19702_v29  ;;  %v25241_v19 = vld [vmem:[%s27256_s3 + $0x3e0] sm:$0xff]   ;;  %v25253_v35 = vld [vmem:[%s27256_s3 + $0x418] sm:$0xff]  }
 0x7f7   : > { %18552 = vmatpush3.bf16.msra.mxu1 %v24639_v22  ;;  %v18468_v52 = vpop.f32.mrf.mxu0  ;;  %17070 = vmatprep.subr.bf16.mxu0 %v19703_v54  ;;  %v19705_v22 = vld [vmem:[%s27256_s3 + $0x360] sm:$0xff]   ;;  %v25259_v15 = vld [vmem:[%s27256_s3 + $0x498] sm:$0xff]   ;;  %v25277_v54 = vld [vmem:[%s27256_s3 + $0x410] sm:$0xff]  }
 0x7f8   : > { %v16852_v43 = vpop.f32.mrf.mxu1  ;;  %18553 = vmatprep.subr.bf16.mxu1 %v27973_v46  ;;  %v25265_v29 = vld [vmem:[%s27256_s3 + $0x3d8] sm:$0xff]  }
 0x7f9   : > { %v25272_v52 = vld [vmem:[%s27256_s3 + $0x458] sm:$0xff]   ;;  %v25283_v43 = vld [vmem:[%s27256_s3 + $0x490] sm:$0xff]  }
 0x7fa   : > { %17071 = vmatpush3.bf16.msra.mxu0 %v19704_v42  ;;  %v25289_v42 = vld [vmem:[%s27256_s3 + $0x3d0] sm:$0xff]  }
 0x7fb   : > { %18554 = vmatpush3.bf16.msra.mxu1 %v24651_v8  ;;  %17072 = vmatprep.subr.bf16.mxu0 %v19705_v22  ;;  %v19708_v8 = vld [vmem:[%s27256_s3 + $0x318] sm:$0xff]   ;;  %v25296_v22 = vld [vmem:[%s27256_s3 + $0x450] sm:$0xff]  }
 0x7fc   : > { %18555 = vmatprep.subr.bf16.mxu1 %v27973_v46 }
 0x7fe   : > { %17073 = vmatpush3.bf16.msra.mxu0 %v19706_v28  ;;  %v25301_v28 = vld [vmem:[%s27256_s3 + $0x408] sm:$0xff]  }
 0x7ff   : > { %18556 = vmatpush3.bf16.msra.mxu1 %v24660_v40  ;;  %17074 = vmatprep.subr.bf16.mxu0 %v19707_v6  ;;  %v19710_v40 = vld [vmem:[%s27256_s3 + $0x310] sm:$0xff]   ;;  %v25307_v6 = vld [vmem:[%s27256_s3 + $0x488] sm:$0xff]  }
 0x800   : > { %18557 = vmatprep.subr.bf16.mxu1 %v27973_v46 }
 0x802   : > { %17075 = vmatpush3.bf16.msra.mxu0 %v19708_v8  ;;  %v25313_v8 = vld [vmem:[%s27256_s3 + $0x3c8] sm:$0xff]  }
 0x803   : > { %18558 = vmatpush3.bf16.msra.mxu1 %v24669_v14  ;;  %17076 = vmatprep.subr.bf16.mxu0 %v19709_v62  ;;  %v19712_v14 = vld [vmem:[%s27256_s3 + $0x308] sm:$0xff]  }
 0x804   : > { %18559 = vmatprep.subr.bf16.mxu1 %v27973_v46  ;;  %v25320_v62 = vld [vmem:[%s27256_s3 + $0x448] sm:$0xff]  }
 0x806   : > { %17077 = vmatpush3.bf16.msra.mxu0 %v19710_v40  ;;  %v25325_v40 = vld [vmem:[%s27256_s3 + $0x400] sm:$0xff]  }
 0x807   : > { %18560 = vmatpush3.bf16.msra.mxu1 %v24678_v58  ;;  %17078 = vmatprep.subr.bf16.mxu0 %v19711_v36  ;;  %v25147_v58 = vld [vmem:[%s27256_s3 + $0x438] sm:$0xff]   ;;  %v25331_v36 = vld [vmem:[%s27256_s3 + $0x480] sm:$0xff]  }
 0x808   : > { %18561 = vmatprep.subr.bf16.mxu1 %v27973_v46 }
 0x80a   : > { %17079 = vmatpush3.bf16.msra.mxu0 %v19712_v14  ;;  %v25337_v14 = vld [vmem:[%s27256_s3 + $0x3c0] sm:$0xff]  }
 0x80b   : > { %18562 = vmatpush3.bf16.msra.mxu1 %v24687_v1  ;;  %17080 = vmatprep.subr.bf16.mxu0 %v19713_v34  ;;  %v19714_v1 = vld [vmem:[%s27256_s3 + $0x300] sm:$0xff]  }
 0x80c   : > { %18563 = vmatprep.subr.bf16.mxu1 %v27973_v46  ;;  %v25344_v34 = vld [vmem:[%s27256_s3 + $0x440] sm:$0xff]  }
 0x80e   : > { %17081 = vmatpush3.bf16.msra.mxu0 %v19714_v1  ;;  %v25351_v1 = vld [vmem:[%s27256_s3 + $0x4f8] sm:$0xff]  }
 0x80f   : > { %18564 = vmatpush3.bf16.msra.mxu1 %v24696_v4  ;;  %17097 = vmatprep.subr.bf16.mxu0 %v25147_v58  ;;  %v25181_v4 = vld [vmem:[%s27256_s3 + $0x4b0] sm:$0xff]  }
 0x810   : > { %17119 = vmatprep.subr.bf16.mxu1 %v25153_v18 }
 0x811   : > { %v16870_v49 = vpop.f32.mrf.mxu0  ;;  %9805 = vmatmul.mubr.bf16.vlgmr.msra.gmra.mxu0 %v24985_v9  ;;  %v25194_v9 = vld [vmem:[%s27256_s3 + $0x470] sm:$0xff]  }
 0x812   : > { %v9350_v44 = vpop.f32.mrf.mxu1  ;;  %18566 = vmatmul.mubr.bf16.vlgmr.msra.gmra.mxu1 %v9730_v38  ;;  %17098 = vmatpush3.bf16.msra.mxu0 %v25161_v25 }
 0x813   : > { %10226 = vmatprep.mubr.bf16.mxu0 %v28300_v0  ;;  %17120 = vmatpush3.bf16.msra.mxu1 %v25168_v56  ;;  %v16871_v21 = vpop.f32.mrf.mxu0 }
 0x814   : > { %10266 = vmatprep.mubr.bf16.mxu1 %v28301_v11  ;;  %v16872_v5 = vadd.f32 %v16871_v21, %v16870_v49  ;;  %v18487_v39 = vpop.f32.mrf.mxu1  ;;  %17099 = vmatprep.subr.bf16.mxu0 %v25175_v50  ;;  %v28304_v49 = vld [vmem:[#allocation42_spill] sm:$0xff] }
 0x815   : > { %v16873_v30 = vpop.f32.mrf.mxu0  ;;  %17121 = vmatprep.subr.bf16.mxu1 %v25181_v4  ;;  %v28307_v39 = vld [vmem:[#allocation80_spill] sm:$0xff] }
 0x816   : > { %v9311_v48 = vadd.f32 %v16872_v5, %v25093_v45  ;;  %v9353_v57 = vpop.f32.mrf.mxu1  ;;  %17100 = vmatpush3.bf16.msra.mxu0 %v25187_v13  ;;  %v25248_v45 = vld [vmem:[%s27256_s3 + $0x460] sm:$0xff]   ;;  %v25364_v30 = vld [vmem:[%s27256_s3 + $0x4f0] sm:$0xff]  }
 0x817   : > { %17122 = vmatpush3.bf16.msra.mxu1 %v25194_v9  ;;  %v16874_v12 = vpop.f32.mrf.mxu0  ;;  %17101 = vmatprep.subr.bf16.mxu0 %v25199_v41 }
 0x818   : > { %v9351_v60 = vadd.f32 %v9350_v44, %v9311_v48  ;;  %v18488_v7 = vpop.f32.mrf.mxu1  ;;  %17123 = vmatprep.subr.bf16.mxu1 %v25206_v26  ;;  %v28305_v44 = vld [vmem:[#allocation70_spill] sm:$0xff] }
 0x819   : > { %v28306_v21 = vor.u32 %v28304_v49, %v28305_v44  ;;  %v25376_v49 = vld [vmem:[%s27256_s3 + $0x4e8] sm:$0xff]  }
 0x81a   : > { %v25235_v51 = vadd.f32 %v9351_v60, %v28302_v63  ;;  %17102 = vmatpush3.bf16.msra.mxu0 %v25214_v61 }
 0x81b   : > { %17124 = vmatpush3.bf16.msra.mxu1 %v25221_v20  ;;  %17103 = vmatprep.subr.bf16.mxu0 %v25226_v31 }
 0x81c   : > { %28303 = vst [vmem:[#allocation44_spill] sm:$0xff] %v25235_v51  ;;  %17125 = vmatprep.subr.bf16.mxu1 %v25232_v53 }
 0x81e   : > { %17104 = vmatpush3.bf16.msra.mxu0 %v25241_v19 }
 0x81f   : > { %17126 = vmatpush3.bf16.msra.mxu1 %v25248_v45  ;;  %17105 = vmatprep.subr.bf16.mxu0 %v25253_v35 }
 0x820   : > { %17127 = vmatprep.subr.bf16.mxu1 %v25259_v15 }
 0x822   : > { %17106 = vmatpush3.bf16.msra.mxu0 %v25265_v29 }
 0x823   : > { %17128 = vmatpush3.bf16.msra.mxu1 %v25272_v52  ;;  %17107 = vmatprep.subr.bf16.mxu0 %v25277_v54 }
 0x824   : > { %17129 = vmatprep.subr.bf16.mxu1 %v25283_v43 }
 0x826   : > { %17108 = vmatpush3.bf16.msra.mxu0 %v25289_v42 }
 0x827   : > { %17130 = vmatpush3.bf16.msra.mxu1 %v25296_v22  ;;  %17109 = vmatprep.subr.bf16.mxu0 %v25301_v28 }
 0x828   : > { %17131 = vmatprep.subr.bf16.mxu1 %v25307_v6 }
 0x82a   : > { %17110 = vmatpush3.bf16.msra.mxu0 %v25313_v8 }
 0x82b   : > { %17132 = vmatpush3.bf16.msra.mxu1 %v25320_v62  ;;  %17111 = vmatprep.subr.bf16.mxu0 %v25325_v40 }
 0x82c   : > { %17133 = vmatprep.subr.bf16.mxu1 %v25331_v36 }
 0x82e   : > { %17112 = vmatpush3.bf16.msra.mxu0 %v25337_v14 }
 0x82f   : > { %17134 = vmatpush3.bf16.msra.mxu1 %v25344_v34  ;;  %18569 = vmatprep.subr.bf16.mxu0 %v27973_v46 }
 0x830   : > { %17150 = vmatprep.subr.bf16.mxu1 %v25147_v58 }
 0x831   : > { %v16901_v38 = vpop.f32.mrf.mxu0  ;;  %10227 = vmatmul.mubr.bf16.vlgmr.msra.gmra.mxu0 %v28306_v21 }
 0x832   : > { %v16923_v5 = vpop.f32.mrf.mxu1  ;;  %10267 = vmatmul.mubr.bf16.vlgmr.msra.gmra.mxu1 %v28307_v39  ;;  %18570 = vmatpush3.bf16.msra.mxu0 %v25351_v1 }
 0x833   : > { %17151 = vmatpush3.bf16.msra.mxu1 %v25161_v25  ;;  %10351 = vmatprep.mubr.bf16.mxu1 %v28307_v39  ;;  %v16902_v48 = vpop.f32.mrf.mxu0 }
 0x834   : > { %v16903_v57 = vadd.f32 %v16902_v48, %v16901_v38  ;;  %v16924_v12 = vpop.f32.mrf.mxu1  ;;  %18571 = vmatprep.subr.bf16.mxu0 %v27973_v46  ;;  %17152 = vmatprep.subr.bf16.mxu1 %v25175_v50  ;;  %v25394_v48 = vld [vmem:[%s27256_s3 + $0x4d8] sm:$0xff]  }
 0x835   : > { %v16925_v60 = vadd.f32 %v16924_v12, %v16923_v5  ;;  %v16904_v7 = vpop.f32.mrf.mxu0  ;;  %18585 = vmatprep.mubr.msk.bf16.mxu0 %vm19824_vm11, %v27973_v46  ;;  %v25385_v5 = vld [vmem:[%s27256_s3 + $0x4e0] sm:$0xff]   ;;  %v25412_v12 = vld [vmem:[%s27256_s3 + $0x4c8] sm:$0xff]  }
 0x836   : > { %v16926_v63 = vpop.f32.mrf.mxu1  ;;  %18572 = vmatpush3.bf16.msra.mxu0 %v25364_v30 }
 0x837   : > { %17153 = vmatpush3.bf16.msra.mxu1 %v25187_v13  ;;  %v16905_v38 = vpop.f32.mrf.mxu0  ;;  %18573 = vmatprep.subr.bf16.mxu0 %v27973_v46  ;;  %v9435_v44 = vadd.f32 %v16925_v60, %v16903_v57  ;;  %v25403_v57 = vld [vmem:[%s27256_s3 + $0x4d0] sm:$0xff]   ;;  %v25421_v60 = vld [vmem:[%s27256_s3 + $0x4c0] sm:$0xff]  }
 0x838   : > { %v16927_v21 = vpop.f32.mrf.mxu1  ;;  %17154 = vmatprep.subr.bf16.mxu1 %v25199_v41  ;;  %v28308_v63 = vld [vmem:[#allocation28_spill] sm:$0xff] }
 0x83a   : > { %18574 = vmatpush3.bf16.msra.mxu0 %v25376_v49 }
 0x83b   : > { %17155 = vmatpush3.bf16.msra.mxu1 %v25214_v61  ;;  %18575 = vmatprep.subr.bf16.mxu0 %v27973_v46 }
 0x83c   : > { %17156 = vmatprep.subr.bf16.mxu1 %v25226_v31 }
 0x83e   : > { %18576 = vmatpush3.bf16.msra.mxu0 %v25385_v5 }
 0x83f   : > { %17157 = vmatpush3.bf16.msra.mxu1 %v25241_v19  ;;  %18577 = vmatprep.subr.bf16.mxu0 %v27973_v46 }
 0x840   : > { %17158 = vmatprep.subr.bf16.mxu1 %v25253_v35 }
 0x842   : > { %18578 = vmatpush3.bf16.msra.mxu0 %v25394_v48 }
 0x843   : > { %17159 = vmatpush3.bf16.msra.mxu1 %v25265_v29  ;;  %18579 = vmatprep.subr.bf16.mxu0 %v27973_v46 }
 0x844   : > { %17160 = vmatprep.subr.bf16.mxu1 %v25277_v54 }
 0x846   : > { %18580 = vmatpush3.bf16.msra.mxu0 %v25403_v57 }
 0x847   : > { %17161 = vmatpush3.bf16.msra.mxu1 %v25289_v42  ;;  %18581 = vmatprep.subr.bf16.mxu0 %v27973_v46 }
 0x848   : > { %17162 = vmatprep.subr.bf16.mxu1 %v25301_v28 }
 0x84a   : > { %18582 = vmatpush3.bf16.msra.mxu0 %v25412_v12 }
 0x84b   : > { %17163 = vmatpush3.bf16.msra.mxu1 %v25313_v8  ;;  %18583 = vmatprep.subr.bf16.mxu0 %v27973_v46 }
 0x84c   : > { %17164 = vmatprep.subr.bf16.mxu1 %v25325_v40 }
 0x84e   : > { %18584 = vmatpush3.bf16.msra.mxu0 %v25421_v60 }
 0x84f   : > { %17165 = vmatpush3.bf16.msra.mxu1 %v25337_v14  ;;  %17172 = vmatprep.subr.bf16.mxu0 %v25153_v18 }
 0x850   : > { %18589 = vmatprep.subr.bf16.mxu1 %v27973_v46 }
 0x851   : > { %v9474_v7 = vpop.f32.mrf.mxu0  ;;  %18586 = vmatmul.mubr.bf16.vlgmr.msra.gmra.mxu0 %v28308_v63 }
 0x852   : > { %v9475_v38 = vadd.f32 %v9474_v7, %v9435_v44  ;;  %v16954_v21 = vpop.f32.mrf.mxu1  ;;  %10352 = vmatmul.mubr.bf16.vlgmr.msra.gmra.mxu1 %v28300_v0  ;;  %17173 = vmatpush3.bf16.msra.mxu0 %v25168_v56 }
 0x853   : > { %10391 = vmatprep.mubr.bf16.mxu0 %v28308_v63  ;;  %18590 = vmatpush3.bf16.msra.mxu1 %v25351_v1  ;;  %v18507_v16 = vpop.f32.mrf.mxu0 }
 0x854   : > { %v25436_v2 = vadd.f32 %v9475_v38, %v24292_v23  ;;  %v16955_v24 = vpop.f32.mrf.mxu1  ;;  %17174 = vmatprep.subr.bf16.mxu0 %v25181_v4  ;;  %18591 = vmatprep.subr.bf16.mxu1 %v27973_v46  ;;  %v28310_v38 = vld [vmem:[#allocation81_spill] sm:$0xff] }
 0x855   : > { %v16956_v47 = vadd.f32 %v16955_v24, %v16954_v21  ;;  %v9477_v44 = vpop.f32.mrf.mxu0  ;;  %18605 = vmatprep.mubr.msk.bf16.mxu1 %vm19824_vm11, %v27973_v46 }
 0x856   : > { %28309 = vst [vmem:[#allocation31_spill] sm:$0xff] %v25436_v2  ;;  %v16957_v0 = vpop.f32.mrf.mxu1  ;;  %17175 = vmatpush3.bf16.msra.mxu0 %v25194_v9 }
 0x857   : > { %18592 = vmatpush3.bf16.msra.mxu1 %v25364_v30  ;;  %v18508_v7 = vpop.f32.mrf.mxu0  ;;  %17176 = vmatprep.subr.bf16.mxu0 %v25206_v26 }
 0x858   : > { %v16958_v23 = vpop.f32.mrf.mxu1  ;;  %18593 = vmatprep.subr.bf16.mxu1 %v27973_v46 }
 0x85a   : > { %17177 = vmatpush3.bf16.msra.mxu0 %v25221_v20 }
 0x85b   : > { %18594 = vmatpush3.bf16.msra.mxu1 %v25376_v49  ;;  %17178 = vmatprep.subr.bf16.mxu0 %v25232_v53 }
 0x85c   : > { %18595 = vmatprep.subr.bf16.mxu1 %v27973_v46 }
 0x85e   : > { %17179 = vmatpush3.bf16.msra.mxu0 %v25248_v45 }
 0x85f   : > { %18596 = vmatpush3.bf16.msra.mxu1 %v25385_v5  ;;  %17180 = vmatprep.subr.bf16.mxu0 %v25259_v15 }
 0x860   : > { %18597 = vmatprep.subr.bf16.mxu1 %v27973_v46 }
 0x862   : > { %17181 = vmatpush3.bf16.msra.mxu0 %v25272_v52 }
 0x863   : > { %18598 = vmatpush3.bf16.msra.mxu1 %v25394_v48  ;;  %17182 = vmatprep.subr.bf16.mxu0 %v25283_v43 }
 0x864   : > { %18599 = vmatprep.subr.bf16.mxu1 %v27973_v46 }
 0x866   : > { %17183 = vmatpush3.bf16.msra.mxu0 %v25296_v22 }
 0x867   : > { %18600 = vmatpush3.bf16.msra.mxu1 %v25403_v57  ;;  %17184 = vmatprep.subr.bf16.mxu0 %v25307_v6 }
 0x868   : > { %18601 = vmatprep.subr.bf16.mxu1 %v27973_v46 }
 0x86a   : > { %17185 = vmatpush3.bf16.msra.mxu0 %v25320_v62 }
 0x86b   : > { %18602 = vmatpush3.bf16.msra.mxu1 %v25412_v12  ;;  %17186 = vmatprep.subr.bf16.mxu0 %v25331_v36 }
 0x86c   : > { %18603 = vmatprep.subr.bf16.mxu1 %v27973_v46 }
 0x86e   : > { %17187 = vmatpush3.bf16.msra.mxu0 %v25344_v34 }
 0x86f   : > { %18604 = vmatpush3.bf16.msra.mxu1 %v25421_v60  ;;  %17203 = vmatprep.subr.bf16.mxu0 %v25147_v58 }
 0x870   : > { %17225 = vmatprep.subr.bf16.mxu1 %v25153_v18 }
 0x871   : > { %v16976_v16 = vpop.f32.mrf.mxu0  ;;  %10392 = vmatmul.mubr.bf16.vlgmr.msra.gmra.mxu0 %v28301_v11 }
 0x872   : > { %v9598_v24 = vpop.f32.mrf.mxu1  ;;  %18606 = vmatmul.mubr.bf16.vlgmr.msra.gmra.mxu1 %v28310_v38  ;;  %17204 = vmatpush3.bf16.msra.mxu0 %v25161_v25 }
 0x873   : > { %10476 = vmatprep.mubr.bf16.mxu0 %v28301_v11  ;;  %17226 = vmatpush3.bf16.msra.mxu1 %v25168_v56  ;;  %v16977_v21 = vpop.f32.mrf.mxu0 }
 0x874   : > { %10516 = vmatprep.mubr.bf16.mxu1 %v28310_v38  ;;  %v16978_v44 = vadd.f32 %v16977_v21, %v16976_v16  ;;  %v18527_v0 = vpop.f32.mrf.mxu1  ;;  %17205 = vmatprep.subr.bf16.mxu0 %v25175_v50 }
 0x875   : > { %v16979_v7 = vpop.f32.mrf.mxu0  ;;  %17227 = vmatprep.subr.bf16.mxu1 %v25181_v4 }
 0x876   : > { %v9559_v23 = vadd.f32 %v16978_v44, %v16956_v47  ;;  %v9601_v2 = vpop.f32.mrf.mxu1  ;;  %17206 = vmatpush3.bf16.msra.mxu0 %v25187_v13 }
 0x877   : > { %17228 = vmatpush3.bf16.msra.mxu1 %v25194_v9  ;;  %v16980_v32 = vpop.f32.mrf.mxu0  ;;  %17207 = vmatprep.subr.bf16.mxu0 %v25199_v41 }
 0x878   : > { %v9599_v51 = vadd.f32 %v9598_v24, %v9559_v23  ;;  %v18528_v55 = vpop.f32.mrf.mxu1  ;;  %17229 = vmatprep.subr.bf16.mxu1 %v25206_v26  ;;  %v28311_v23 = vld [vmem:[#allocation29_spill] sm:$0xff] }
 0x87a   : > { %v25483_v16 = vadd.f32 %v9599_v51, %v24503_v33  ;;  %17208 = vmatpush3.bf16.msra.mxu0 %v25214_v61 }
 0x87b   : > { %17230 = vmatpush3.bf16.msra.mxu1 %v25221_v20  ;;  %17209 = vmatprep.subr.bf16.mxu0 %v25226_v31 }
 0x87c   : > { %17231 = vmatprep.subr.bf16.mxu1 %v25232_v53 }
 0x87e   : > { %17210 = vmatpush3.bf16.msra.mxu0 %v25241_v19 }
 0x87f   : > { %17232 = vmatpush3.bf16.msra.mxu1 %v25248_v45  ;;  %17211 = vmatprep.subr.bf16.mxu0 %v25253_v35 }
 0x880   : > { %17233 = vmatprep.subr.bf16.mxu1 %v25259_v15 }
 0x882   : > { %17212 = vmatpush3.bf16.msra.mxu0 %v25265_v29 }
 0x883   : > { %17234 = vmatpush3.bf16.msra.mxu1 %v25272_v52  ;;  %17213 = vmatprep.subr.bf16.mxu0 %v25277_v54 }
 0x884   : > { %17235 = vmatprep.subr.bf16.mxu1 %v25283_v43 }
 0x886   : > { %17214 = vmatpush3.bf16.msra.mxu0 %v25289_v42 }
 0x887   : > { %17236 = vmatpush3.bf16.msra.mxu1 %v25296_v22  ;;  %17215 = vmatprep.subr.bf16.mxu0 %v25301_v28 }
 0x888   : > { %17237 = vmatprep.subr.bf16.mxu1 %v25307_v6 }
 0x88a   : > { %17216 = vmatpush3.bf16.msra.mxu0 %v25313_v8 }
 0x88b   : > { %17238 = vmatpush3.bf16.msra.mxu1 %v25320_v62  ;;  %17217 = vmatprep.subr.bf16.mxu0 %v25325_v40 }
 0x88c   : > { %17239 = vmatprep.subr.bf16.mxu1 %v25331_v36 }
 0x88e   : > { %17218 = vmatpush3.bf16.msra.mxu0 %v25337_v14 }
 0x88f   : > { %17240 = vmatpush3.bf16.msra.mxu1 %v25344_v34  ;;  %18609 = vmatprep.subr.bf16.mxu0 %v27973_v46 }
 0x890   : > { %17256 = vmatprep.subr.bf16.mxu1 %v25147_v58 }
 0x891   : > { %v17007_v55 = vpop.f32.mrf.mxu0  ;;  %10477 = vmatmul.mubr.bf16.vlgmr.msra.gmra.mxu0 %v28307_v39 }
 0x892   : > { %v17029_v33 = vpop.f32.mrf.mxu1  ;;  %10517 = vmatmul.mubr.bf16.vlgmr.msra.gmra.mxu1 %v28308_v63  ;;  %18610 = vmatpush3.bf16.msra.mxu0 %v25351_v1 }
 0x893   : > { %17257 = vmatpush3.bf16.msra.mxu1 %v25161_v25  ;;  %10601 = vmatprep.mubr.bf16.mxu1 %v28308_v63  ;;  %v17008_v32 = vpop.f32.mrf.mxu0 }
 0x894   : > { %v17009_v47 = vadd.f32 %v17008_v32, %v17007_v55  ;;  %v17030_v2 = vpop.f32.mrf.mxu1  ;;  %18611 = vmatprep.subr.bf16.mxu0 %v27973_v46  ;;  %17258 = vmatprep.subr.bf16.mxu1 %v25175_v50 }
 0x895   : > { %v17031_v51 = vadd.f32 %v17030_v2, %v17029_v33  ;;  %v17010_v24 = vpop.f32.mrf.mxu0  ;;  %18625 = vmatprep.mubr.msk.bf16.mxu0 %vm19824_vm11, %v27973_v46 }
 0x896   : > { %v17032_v39 = vpop.f32.mrf.mxu1  ;;  %18612 = vmatpush3.bf16.msra.mxu0 %v25364_v30 }
 0x897   : > { %17259 = vmatpush3.bf16.msra.mxu1 %v25187_v13  ;;  %v17011_v21 = vpop.f32.mrf.mxu0  ;;  %18613 = vmatprep.subr.bf16.mxu0 %v27973_v46  ;;  %v9683_v44 = vadd.f32 %v17031_v51, %v17009_v47 }
 0x898   : > { %v17033_v0 = vpop.f32.mrf.mxu1  ;;  %17260 = vmatprep.subr.bf16.mxu1 %v25199_v41 }
 0x899   : > { %v28312_v0 = vld [vmem:[#allocation101_spill] sm:$0xff] }
 0x89a   : > { %18614 = vmatpush3.bf16.msra.mxu0 %v25376_v49 }
 0x89b   : > { %17261 = vmatpush3.bf16.msra.mxu1 %v25214_v61  ;;  %18615 = vmatprep.subr.bf16.mxu0 %v27973_v46 }
 0x89c   : > { %17262 = vmatprep.subr.bf16.mxu1 %v25226_v31 }
 0x89e   : > { %18616 = vmatpush3.bf16.msra.mxu0 %v25385_v5 }
 0x89f   : > { %17263 = vmatpush3.bf16.msra.mxu1 %v25241_v19  ;;  %18617 = vmatprep.subr.bf16.mxu0 %v27973_v46 }
 0x8a0   : > { %17264 = vmatprep.subr.bf16.mxu1 %v25253_v35 }
 0x8a2   : > { %18618 = vmatpush3.bf16.msra.mxu0 %v25394_v48 }
 0x8a3   : > { %17265 = vmatpush3.bf16.msra.mxu1 %v25265_v29  ;;  %18619 = vmatprep.subr.bf16.mxu0 %v27973_v46 }
 0x8a4   : > { %17266 = vmatprep.subr.bf16.mxu1 %v25277_v54 }
 0x8a6   : > { %18620 = vmatpush3.bf16.msra.mxu0 %v25403_v57 }
 0x8a7   : > { %17267 = vmatpush3.bf16.msra.mxu1 %v25289_v42  ;;  %18621 = vmatprep.subr.bf16.mxu0 %v27973_v46 }
 0x8a8   : > { %17268 = vmatprep.subr.bf16.mxu1 %v25301_v28 }
 0x8aa   : > { %18622 = vmatpush3.bf16.msra.mxu0 %v25412_v12 }
 0x8ab   : > { %17269 = vmatpush3.bf16.msra.mxu1 %v25313_v8  ;;  %18623 = vmatprep.subr.bf16.mxu0 %v27973_v46 }
 0x8ac   : > { %17270 = vmatprep.subr.bf16.mxu1 %v25325_v40 }
 0x8ae   : > { %18624 = vmatpush3.bf16.msra.mxu0 %v25421_v60 }
 0x8af   : > { %17271 = vmatpush3.bf16.msra.mxu1 %v25337_v14  ;;  %17278 = vmatprep.subr.bf16.mxu0 %v25153_v18 }
 0x8b0   : > { %18629 = vmatprep.subr.bf16.mxu1 %v27973_v46 }
 0x8b1   : > { %v9722_v7 = vpop.f32.mrf.mxu0  ;;  %18626 = vmatmul.mubr.bf16.vlgmr.msra.gmra.mxu0 %v28311_v23 }
 0x8b2   : > { %v9723_v55 = vadd.f32 %v9722_v7, %v9683_v44  ;;  %v17060_v33 = vpop.f32.mrf.mxu1  ;;  %10602 = vmatmul.mubr.bf16.vlgmr.msra.gmra.mxu1 %v28301_v11  ;;  %17279 = vmatpush3.bf16.msra.mxu0 %v25168_v56 }
 0x8b3   : > { %10641 = vmatprep.mubr.bf16.mxu0 %v28311_v23  ;;  %18630 = vmatpush3.bf16.msra.mxu1 %v25351_v1  ;;  %v18547_v32 = vpop.f32.mrf.mxu0 }
 0x8b4   : > { %v25552_v47 = vadd.f32 %v9723_v55, %v24761_v17  ;;  %v17061_v2 = vpop.f32.mrf.mxu1  ;;  %17280 = vmatprep.subr.bf16.mxu0 %v25181_v4  ;;  %18631 = vmatprep.subr.bf16.mxu1 %v27973_v46 }
 0x8b5   : > { %v17062_v51 = vadd.f32 %v17061_v2, %v17060_v33  ;;  %v9725_v24 = vpop.f32.mrf.mxu0  ;;  %18645 = vmatprep.mubr.msk.bf16.mxu1 %vm19824_vm11, %v27973_v46 }
 0x8b6   : > { %v17063_v11 = vpop.f32.mrf.mxu1  ;;  %17281 = vmatpush3.bf16.msra.mxu0 %v25194_v9 }
 0x8b7   : > { %18632 = vmatpush3.bf16.msra.mxu1 %v25364_v30  ;;  %v18548_v39 = vpop.f32.mrf.mxu0  ;;  %17282 = vmatprep.subr.bf16.mxu0 %v25206_v26 }
 0x8b8   : > { %v17064_v17 = vpop.f32.mrf.mxu1  ;;  %18633 = vmatprep.subr.bf16.mxu1 %v27973_v46 }
 0x8ba   : > { %17283 = vmatpush3.bf16.msra.mxu0 %v25221_v20 }
 0x8bb   : > { %18634 = vmatpush3.bf16.msra.mxu1 %v25376_v49  ;;  %17284 = vmatprep.subr.bf16.mxu0 %v25232_v53 }
 0x8bc   : > { %18635 = vmatprep.subr.bf16.mxu1 %v27973_v46 }
 0x8be   : > { %17285 = vmatpush3.bf16.msra.mxu0 %v25248_v45 }
 0x8bf   : > { %18636 = vmatpush3.bf16.msra.mxu1 %v25385_v5  ;;  %17286 = vmatprep.subr.bf16.mxu0 %v25259_v15 }
 0x8c0   : > { %18637 = vmatprep.subr.bf16.mxu1 %v27973_v46 }
 0x8c2   : > { %17287 = vmatpush3.bf16.msra.mxu0 %v25272_v52 }
 0x8c3   : > { %18638 = vmatpush3.bf16.msra.mxu1 %v25394_v48  ;;  %17288 = vmatprep.subr.bf16.mxu0 %v25283_v43 }
 0x8c4   : > { %18639 = vmatprep.subr.bf16.mxu1 %v27973_v46 }
 0x8c6   : > { %17289 = vmatpush3.bf16.msra.mxu0 %v25296_v22 }
 0x8c7   : > { %18640 = vmatpush3.bf16.msra.mxu1 %v25403_v57  ;;  %17290 = vmatprep.subr.bf16.mxu0 %v25307_v6 }
 0x8c8   : > { %18641 = vmatprep.subr.bf16.mxu1 %v27973_v46 }
 0x8ca   : > { %17291 = vmatpush3.bf16.msra.mxu0 %v25320_v62 }
 0x8cb   : > { %18642 = vmatpush3.bf16.msra.mxu1 %v25412_v12  ;;  %17292 = vmatprep.subr.bf16.mxu0 %v25331_v36 }
 0x8cc   : > { %18643 = vmatprep.subr.bf16.mxu1 %v27973_v46 }
 0x8ce   : > { %17293 = vmatpush3.bf16.msra.mxu0 %v25344_v34 }
 0x8cf   : > { %18644 = vmatpush3.bf16.msra.mxu1 %v25421_v60  ;;  %17309 = vmatprep.subr.bf16.mxu0 %v25147_v58 }
 0x8d0   : > { %17331 = vmatprep.subr.bf16.mxu1 %v25153_v18 }
 0x8d1   : > { %v17082_v21 = vpop.f32.mrf.mxu0  ;;  %10642 = vmatmul.mubr.bf16.vlgmr.msra.gmra.mxu0 %v28310_v38 }
 0x8d2   : > { %v9846_v44 = vpop.f32.mrf.mxu1  ;;  %18646 = vmatmul.mubr.bf16.vlgmr.msra.gmra.mxu1 %v28312_v0  ;;  %17310 = vmatpush3.bf16.msra.mxu0 %v25161_v25 }
 0x8d3   : > { %10726 = vmatprep.mubr.bf16.mxu0 %v28310_v38  ;;  %17332 = vmatpush3.bf16.msra.mxu1 %v25168_v56  ;;  %v17083_v7 = vpop.f32.mrf.mxu0 }
 0x8d4   : > { %10766 = vmatprep.mubr.bf16.mxu1 %v28312_v0  ;;  %v17084_v55 = vadd.f32 %v17083_v7, %v17082_v21  ;;  %v18567_v33 = vpop.f32.mrf.mxu1  ;;  %17311 = vmatprep.subr.bf16.mxu0 %v25175_v50 }
 0x8d5   : > { %v17085_v32 = vpop.f32.mrf.mxu0  ;;  %17333 = vmatprep.subr.bf16.mxu1 %v25181_v4 }
 0x8d6   : > { %v9807_v2 = vadd.f32 %v17084_v55, %v17062_v51  ;;  %v9849_v24 = vpop.f32.mrf.mxu1  ;;  %17312 = vmatpush3.bf16.msra.mxu0 %v25187_v13 }
 0x8d7   : > { %17334 = vmatpush3.bf16.msra.mxu1 %v25194_v9  ;;  %v17086_v11 = vpop.f32.mrf.mxu0  ;;  %17313 = vmatprep.subr.bf16.mxu0 %v25199_v41 }
 0x8d8   : > { %v9847_v39 = vadd.f32 %v9846_v44, %v9807_v2  ;;  %v18568_v17 = vpop.f32.mrf.mxu1  ;;  %17335 = vmatprep.subr.bf16.mxu1 %v25206_v26 }
 0x8d9   : > { %v28313_v17 = vld [vmem:[#allocation52_spill] sm:$0xff] }
 0x8da   : > { %v25599_v21 = vadd.f32 %v9847_v39, %v24878_v10  ;;  %17314 = vmatpush3.bf16.msra.mxu0 %v25214_v61 }
 0x8db   : > { %17336 = vmatpush3.bf16.msra.mxu1 %v25221_v20  ;;  %17315 = vmatprep.subr.bf16.mxu0 %v25226_v31 }
 0x8dc   : > { %17337 = vmatprep.subr.bf16.mxu1 %v25232_v53 }
 0x8de   : > { %17316 = vmatpush3.bf16.msra.mxu0 %v25241_v19 }
 0x8df   : > { %17338 = vmatpush3.bf16.msra.mxu1 %v25248_v45  ;;  %17317 = vmatprep.subr.bf16.mxu0 %v25253_v35 }
 0x8e0   : > { %17339 = vmatprep.subr.bf16.mxu1 %v25259_v15 }
 0x8e2   : > { %17318 = vmatpush3.bf16.msra.mxu0 %v25265_v29 }
 0x8e3   : > { %17340 = vmatpush3.bf16.msra.mxu1 %v25272_v52  ;;  %17319 = vmatprep.subr.bf16.mxu0 %v25277_v54 }
 0x8e4   : > { %17341 = vmatprep.subr.bf16.mxu1 %v25283_v43 }
 0x8e6   : > { %17320 = vmatpush3.bf16.msra.mxu0 %v25289_v42 }
 0x8e7   : > { %17342 = vmatpush3.bf16.msra.mxu1 %v25296_v22  ;;  %17321 = vmatprep.subr.bf16.mxu0 %v25301_v28 }
 0x8e8   : > { %17343 = vmatprep.subr.bf16.mxu1 %v25307_v6 }
 0x8ea   : > { %17322 = vmatpush3.bf16.msra.mxu0 %v25313_v8 }
 0x8eb   : > { %17344 = vmatpush3.bf16.msra.mxu1 %v25320_v62  ;;  %17323 = vmatprep.subr.bf16.mxu0 %v25325_v40 }
 0x8ec   : > { %17345 = vmatprep.subr.bf16.mxu1 %v25331_v36 }
 0x8ee   : > { %17324 = vmatpush3.bf16.msra.mxu0 %v25337_v14 }
 0x8ef   : > { %17346 = vmatpush3.bf16.msra.mxu1 %v25344_v34  ;;  %18649 = vmatprep.subr.bf16.mxu0 %v27973_v46 }
 0x8f0   : > { %17362 = vmatprep.subr.bf16.mxu1 %v25147_v58 }
 0x8f1   : > { %v17113_v10 = vpop.f32.mrf.mxu0  ;;  %10727 = vmatmul.mubr.bf16.vlgmr.msra.gmra.mxu0 %v28308_v63 }
 0x8f2   : > { %v17135_v51 = vpop.f32.mrf.mxu1  ;;  %10767 = vmatmul.mubr.bf16.vlgmr.msra.gmra.mxu1 %v28311_v23  ;;  %18650 = vmatpush3.bf16.msra.mxu0 %v25351_v1 }
 0x8f3   : > { %17363 = vmatpush3.bf16.msra.mxu1 %v25161_v25  ;;  %10851 = vmatprep.mubr.bf16.mxu1 %v28311_v23  ;;  %v17114_v44 = vpop.f32.mrf.mxu0 }
 0x8f4   : > { %v17115_v7 = vadd.f32 %v17114_v44, %v17113_v10  ;;  %v17136_v55 = vpop.f32.mrf.mxu1  ;;  %18651 = vmatprep.subr.bf16.mxu0 %v27973_v46  ;;  %17364 = vmatprep.subr.bf16.mxu1 %v25175_v50 }
 0x8f5   : > { %v17137_v33 = vadd.f32 %v17136_v55, %v17135_v51  ;;  %v17116_v32 = vpop.f32.mrf.mxu0  ;;  %18665 = vmatprep.mubr.msk.bf16.mxu0 %vm19824_vm11, %v27973_v46 }
 0x8f6   : > { %v17138_v63 = vpop.f32.mrf.mxu1  ;;  %18652 = vmatpush3.bf16.msra.mxu0 %v25364_v30 }
 0x8f7   : > { %17365 = vmatpush3.bf16.msra.mxu1 %v25187_v13  ;;  %v17117_v2 = vpop.f32.mrf.mxu0  ;;  %18653 = vmatprep.subr.bf16.mxu0 %v27973_v46  ;;  %v10269_v24 = vadd.f32 %v17137_v33, %v17115_v7 }
 0x8f8   : > { %v17139_v11 = vpop.f32.mrf.mxu1  ;;  %17366 = vmatprep.subr.bf16.mxu1 %v25199_v41 }
 0x8f9   : > { %v28314_v11 = vld [vmem:[#allocation15_spill] sm:$0xff] }
 0x8fa   : > { %18654 = vmatpush3.bf16.msra.mxu0 %v25376_v49 }
 0x8fb   : > { %17367 = vmatpush3.bf16.msra.mxu1 %v25214_v61  ;;  %18655 = vmatprep.subr.bf16.mxu0 %v27973_v46 }
 0x8fc   : > { %17368 = vmatprep.subr.bf16.mxu1 %v25226_v31 }
 0x8fe   : > { %18656 = vmatpush3.bf16.msra.mxu0 %v25385_v5 }
 0x8ff   : > { %17369 = vmatpush3.bf16.msra.mxu1 %v25241_v19  ;;  %18657 = vmatprep.subr.bf16.mxu0 %v27973_v46 }
 0x900   : > { %17370 = vmatprep.subr.bf16.mxu1 %v25253_v35 }
 0x902   : > { %18658 = vmatpush3.bf16.msra.mxu0 %v25394_v48 }
 0x903   : > { %17371 = vmatpush3.bf16.msra.mxu1 %v25265_v29  ;;  %18659 = vmatprep.subr.bf16.mxu0 %v27973_v46 }
 0x904   : > { %17372 = vmatprep.subr.bf16.mxu1 %v25277_v54 }
 0x906   : > { %18660 = vmatpush3.bf16.msra.mxu0 %v25403_v57 }
 0x907   : > { %17373 = vmatpush3.bf16.msra.mxu1 %v25289_v42  ;;  %18661 = vmatprep.subr.bf16.mxu0 %v27973_v46 }
 0x908   : > { %17374 = vmatprep.subr.bf16.mxu1 %v25301_v28 }
 0x90a   : > { %18662 = vmatpush3.bf16.msra.mxu0 %v25412_v12 }
 0x90b   : > { %17375 = vmatpush3.bf16.msra.mxu1 %v25313_v8  ;;  %18663 = vmatprep.subr.bf16.mxu0 %v27973_v46 }
 0x90c   : > { %17376 = vmatprep.subr.bf16.mxu1 %v25325_v40 }
 0x90e   : > { %18664 = vmatpush3.bf16.msra.mxu0 %v25421_v60 }
 0x90f   : > { %17377 = vmatpush3.bf16.msra.mxu1 %v25337_v14  ;;  %17384 = vmatprep.subr.bf16.mxu0 %v25153_v18 }
 0x910   : > { %18669 = vmatprep.subr.bf16.mxu1 %v27973_v46 }
 0x911   : > { %v10308_v39 = vpop.f32.mrf.mxu0  ;;  %18666 = vmatmul.mubr.bf16.vlgmr.msra.gmra.mxu0 %v28313_v17 }
 0x912   : > { %v10309_v10 = vadd.f32 %v10308_v39, %v10269_v24  ;;  %v17166_v51 = vpop.f32.mrf.mxu1  ;;  %10852 = vmatmul.mubr.bf16.vlgmr.msra.gmra.mxu1 %v28310_v38  ;;  %17385 = vmatpush3.bf16.msra.mxu0 %v25168_v56 }
 0x913   : > { %10891 = vmatprep.mubr.bf16.mxu0 %v28313_v17  ;;  %18670 = vmatpush3.bf16.msra.mxu1 %v25351_v1  ;;  %v18587_v44 = vpop.f32.mrf.mxu0 }
 0x914   : > { %v25668_v7 = vadd.f32 %v10309_v10, %v24951_v27  ;;  %v17167_v55 = vpop.f32.mrf.mxu1  ;;  %17386 = vmatprep.subr.bf16.mxu0 %v25181_v4  ;;  %18671 = vmatprep.subr.bf16.mxu1 %v27973_v46 }
 0x915   : > { %v17168_v33 = vadd.f32 %v17167_v55, %v17166_v51  ;;  %v10311_v32 = vpop.f32.mrf.mxu0  ;;  %18685 = vmatprep.mubr.msk.bf16.mxu1 %vm19824_vm11, %v27973_v46 }
 0x916   : > { %v17169_v38 = vpop.f32.mrf.mxu1  ;;  %17387 = vmatpush3.bf16.msra.mxu0 %v25194_v9 }
 0x917   : > { %18672 = vmatpush3.bf16.msra.mxu1 %v25364_v30  ;;  %v18588_v63 = vpop.f32.mrf.mxu0  ;;  %17388 = vmatprep.subr.bf16.mxu0 %v25206_v26  ;;  %v19728_v38 = vld [vmem:[%s27256_s3 + $0x498] sm:$0xff]  }
 0x918   : > { %v17170_v27 = vpop.f32.mrf.mxu1  ;;  %18673 = vmatprep.subr.bf16.mxu1 %v27973_v46  ;;  %v19730_v63 = vld [vmem:[%s27256_s3 + $0x490] sm:$0xff]  }
 0x919   : > { %v19732_v27 = vld [vmem:[%s27256_s3 + $0x488] sm:$0xff]  }
 0x91a   : > { %17389 = vmatpush3.bf16.msra.mxu0 %v25221_v20 }
 0x91b   : > { %18674 = vmatpush3.bf16.msra.mxu1 %v25376_v49  ;;  %17390 = vmatprep.subr.bf16.mxu0 %v25232_v53 }
 0x91c   : > { %18675 = vmatprep.subr.bf16.mxu1 %v27973_v46 }
 0x91e   : > { %17391 = vmatpush3.bf16.msra.mxu0 %v25248_v45 }
 0x91f   : > { %18676 = vmatpush3.bf16.msra.mxu1 %v25385_v5  ;;  %17392 = vmatprep.subr.bf16.mxu0 %v25259_v15 }
 0x920   : > { %18677 = vmatprep.subr.bf16.mxu1 %v27973_v46 }
 0x922   : > { %17393 = vmatpush3.bf16.msra.mxu0 %v25272_v52 }
 0x923   : > { %18678 = vmatpush3.bf16.msra.mxu1 %v25394_v48  ;;  %17394 = vmatprep.subr.bf16.mxu0 %v25283_v43 }
 0x924   : > { %18679 = vmatprep.subr.bf16.mxu1 %v27973_v46 }
 0x926   : > { %17395 = vmatpush3.bf16.msra.mxu0 %v25296_v22 }
 0x927   : > { %18680 = vmatpush3.bf16.msra.mxu1 %v25403_v57  ;;  %17396 = vmatprep.subr.bf16.mxu0 %v25307_v6 }
 0x928   : > { %18681 = vmatprep.subr.bf16.mxu1 %v27973_v46 }
 0x92a   : > { %17397 = vmatpush3.bf16.msra.mxu0 %v25320_v62 }
 0x92b   : > { %18682 = vmatpush3.bf16.msra.mxu1 %v25412_v12  ;;  %17398 = vmatprep.subr.bf16.mxu0 %v25331_v36 }
 0x92c   : > { %18683 = vmatprep.subr.bf16.mxu1 %v27973_v46 }
 0x92e   : > { %17399 = vmatpush3.bf16.msra.mxu0 %v25344_v34 }
 0x92f   : > { %18684 = vmatpush3.bf16.msra.mxu1 %v25421_v60  ;;  %17415 = vmatprep.subr.bf16.mxu0 %v25147_v58 }
 0x930   : > { %17437 = vmatprep.subr.bf16.mxu1 %v25153_v18 }
 0x931   : > { %v17188_v2 = vpop.f32.mrf.mxu0  ;;  %10892 = vmatmul.mubr.bf16.vlgmr.msra.gmra.mxu0 %v28312_v0 }
 0x932   : > { %v10433_v24 = vpop.f32.mrf.mxu1  ;;  %18686 = vmatmul.mubr.bf16.vlgmr.msra.gmra.mxu1 %v28314_v11  ;;  %17416 = vmatpush3.bf16.msra.mxu0 %v25161_v25 }
 0x933   : > { %10976 = vmatprep.mubr.bf16.mxu0 %v28312_v0  ;;  %17438 = vmatpush3.bf16.msra.mxu1 %v25168_v56  ;;  %v17189_v39 = vpop.f32.mrf.mxu0 }
 0x934   : > { %11016 = vmatprep.mubr.bf16.mxu1 %v28314_v11  ;;  %v17190_v10 = vadd.f32 %v17189_v39, %v17188_v2  ;;  %v18607_v51 = vpop.f32.mrf.mxu1  ;;  %17417 = vmatprep.subr.bf16.mxu0 %v25175_v50  ;;  %v19734_v2 = vld [vmem:[%s27256_s3 + $0x480] sm:$0xff]   ;;  %v25872_v39 = vld [vmem:[%s27256_s3 + $0x538] sm:$0xff]  }
 0x935   : > { %v17191_v58 = vpop.f32.mrf.mxu0  ;;  %17439 = vmatprep.subr.bf16.mxu1 %v25181_v4  ;;  %v25885_v51 = vld [vmem:[%s27256_s3 + $0x570] sm:$0xff]  }
 0x936   : > { %v10394_v18 = vadd.f32 %v17190_v10, %v17168_v33  ;;  %v10436_v44 = vpop.f32.mrf.mxu1  ;;  %17418 = vmatpush3.bf16.msra.mxu0 %v25187_v13  ;;  %v19716_v13 = vld [vmem:[%s27256_s3 + $0x3f8] sm:$0xff]   ;;  %v19727_v33 = vld [vmem:[%s27256_s3 + $0x460] sm:$0xff]  }
 0x937   : > { %17440 = vmatpush3.bf16.msra.mxu1 %v25194_v9  ;;  %v17192_v25 = vpop.f32.mrf.mxu0  ;;  %17419 = vmatprep.subr.bf16.mxu0 %v25199_v41  ;;  %v25879_v10 = vld [vmem:[%s27256_s3 + $0x5b8] sm:$0xff]  }
 0x938   : > { %v10434_v56 = vadd.f32 %v10433_v24, %v10394_v18  ;;  %v18608_v55 = vpop.f32.mrf.mxu1  ;;  %17441 = vmatprep.subr.bf16.mxu1 %v25206_v26  ;;  %v25864_v24 = vld [vmem:[%s27256_s3 + $0x5f8] sm:$0xff]   ;;  %v11272_v18 = vrot.slane %v28286_v59, 2  ;;  %v28316_v25 = vld [vmem:[#allocation58_spill] sm:$0xff] }
 0x93a   : > { %v25715_v32 = vadd.f32 %v10434_v56, %v25001_v37  ;;  %17420 = vmatpush3.bf16.msra.mxu0 %v25214_v61  ;;  %v19715_v37 = vld [vmem:[%s27256_s3 + $0x438] sm:$0xff]   ;;  %v28317_v56 = vld [vmem:[#allocation102_spill] sm:$0xff] }
 0x93b   : > { %17442 = vmatpush3.bf16.msra.mxu1 %v25221_v20  ;;  %17421 = vmatprep.subr.bf16.mxu0 %v25226_v31  ;;  %v19717_v20 = vld [vmem:[%s27256_s3 + $0x430] sm:$0xff]   ;;  %v28318_v55 = vor.u32 %v28316_v25, %v28317_v56 }
 0x93c   : > { %17443 = vmatprep.subr.bf16.mxu1 %v25232_v53  ;;  %v26083_v25 = vld [vmem:[%s27256_s3 + $0x630] sm:$0xff]  }
 0x93e   : > { %17422 = vmatpush3.bf16.msra.mxu0 %v25241_v19 }
 0x93f   : > { %17444 = vmatpush3.bf16.msra.mxu1 %v25248_v45  ;;  %17423 = vmatprep.subr.bf16.mxu0 %v25253_v35 }
 0x940   : > { %17445 = vmatprep.subr.bf16.mxu1 %v25259_v15 }
 0x942   : > { %17424 = vmatpush3.bf16.msra.mxu0 %v25265_v29 }
 0x943   : > { %17446 = vmatpush3.bf16.msra.mxu1 %v25272_v52  ;;  %17425 = vmatprep.subr.bf16.mxu0 %v25277_v54  ;;  %v19718_v52 = vld [vmem:[%s27256_s3 + $0x3f0] sm:$0xff]  }
 0x944   : > { %17447 = vmatprep.subr.bf16.mxu1 %v25283_v43 }
 0x946   : > { %17426 = vmatpush3.bf16.msra.mxu0 %v25289_v42 }
 0x947   : > { %17448 = vmatpush3.bf16.msra.mxu1 %v25296_v22  ;;  %17427 = vmatprep.subr.bf16.mxu0 %v25301_v28 }
 0x948   : > { %17449 = vmatprep.subr.bf16.mxu1 %v25307_v6 }
 0x94a   : > { %17428 = vmatpush3.bf16.msra.mxu0 %v25313_v8 }
 0x94b   : > { %17450 = vmatpush3.bf16.msra.mxu1 %v25320_v62  ;;  %17429 = vmatprep.subr.bf16.mxu0 %v25325_v40  ;;  %v19719_v62 = vld [vmem:[%s27256_s3 + $0x428] sm:$0xff]  }
 0x94c   : > { %17451 = vmatprep.subr.bf16.mxu1 %v25331_v36 }
 0x94e   : > { %17430 = vmatpush3.bf16.msra.mxu0 %v25337_v14 }
 0x94f   : > { %17452 = vmatpush3.bf16.msra.mxu1 %v25344_v34  ;;  %18689 = vmatprep.subr.bf16.mxu0 %v27973_v46 }
 0x950   : > { %17468 = vmatprep.subr.bf16.mxu1 %v19715_v37  ;;  %v28319_v37 = vld [vmem:[#allocation79_spill] sm:$0xff] }
 0x951   : > { %v17219_v50 = vpop.f32.mrf.mxu0  ;;  %10977 = vmatmul.mubr.bf16.vlgmr.msra.gmra.mxu0 %v28311_v23  ;;  %v19724_v23 = vld [vmem:[%s27256_s3 + $0x4a8] sm:$0xff]  }
 0x952   : > { %v17241_v4 = vpop.f32.mrf.mxu1  ;;  %11017 = vmatmul.mubr.bf16.vlgmr.msra.gmra.mxu1 %v28313_v17  ;;  %18690 = vmatpush3.bf16.msra.mxu0 %v25351_v1 }
 0x953   : > { %17469 = vmatpush3.bf16.msra.mxu1 %v19716_v13  ;;  %11101 = vmatprep.mubr.bf16.mxu1 %v28313_v17  ;;  %v17220_v9 = vpop.f32.mrf.mxu0  ;;  %v19725_v17 = vld [vmem:[%s27256_s3 + $0x468] sm:$0xff]   ;;  %v25912_v13 = vld [vmem:[%s27256_s3 + $0x5b0] sm:$0xff]  }
 0x954   : > { %v17221_v41 = vadd.f32 %v17220_v9, %v17219_v50  ;;  %v17242_v26 = vpop.f32.mrf.mxu1  ;;  %18691 = vmatprep.subr.bf16.mxu0 %v27973_v46  ;;  %17470 = vmatprep.subr.bf16.mxu1 %v19717_v20  ;;  %v25899_v50 = vrot.slane %v28319_v37, 2  ;;  %v25917_v9 = vld [vmem:[%s27256_s3 + $0x568] sm:$0xff]  }
 0x955   : > { %v17243_v53 = vadd.f32 %v17242_v26, %v17241_v4  ;;  %v17222_v45 = vpop.f32.mrf.mxu0  ;;  %18705 = vmatprep.mubr.msk.bf16.mxu0 %vm19824_vm11, %v27973_v46  ;;  %v25924_v20 = vld [vmem:[%s27256_s3 + $0x5e8] sm:$0xff]  }
 0x956   : > { %v17244_v15 = vpop.f32.mrf.mxu1  ;;  %18692 = vmatpush3.bf16.msra.mxu0 %v25364_v30 }
 0x957   : > { %17471 = vmatpush3.bf16.msra.mxu1 %v19718_v52  ;;  %v17223_v43 = vpop.f32.mrf.mxu0  ;;  %18693 = vmatprep.subr.bf16.mxu0 %v27973_v46  ;;  %v10519_v22 = vadd.f32 %v17243_v53, %v17221_v41  ;;  %v25932_v52 = vld [vmem:[%s27256_s3 + $0x528] sm:$0xff]  }
 0x958   : > { %v17245_v6 = vpop.f32.mrf.mxu1  ;;  %17472 = vmatprep.subr.bf16.mxu1 %v19719_v62 }
 0x959   : > { %v25944_v6 = vld [vmem:[%s27256_s3 + $0x560] sm:$0xff]  }
 0x95a   : > { %18694 = vmatpush3.bf16.msra.mxu0 %v25376_v49 }
 0x95b   : > { %17473 = vmatpush3.bf16.msra.mxu1 %v25214_v61  ;;  %18695 = vmatprep.subr.bf16.mxu0 %v27973_v46  ;;  %v19720_v61 = vld [vmem:[%s27256_s3 + $0x4b8] sm:$0xff]  }
 0x95c   : > { %17474 = vmatprep.subr.bf16.mxu1 %v25226_v31 }
 0x95e   : > { %18696 = vmatpush3.bf16.msra.mxu0 %v25385_v5 }
 0x95f   : > { %17475 = vmatpush3.bf16.msra.mxu1 %v25241_v19  ;;  %18697 = vmatprep.subr.bf16.mxu0 %v27973_v46  ;;  %v28315_v19 = vld [vmem:[#allocation74_spill] sm:$0xff] }
 0x960   : > { %17476 = vmatprep.subr.bf16.mxu1 %v25253_v35 }
 0x962   : > { %18698 = vmatpush3.bf16.msra.mxu0 %v25394_v48 }
 0x963   : > { %17477 = vmatpush3.bf16.msra.mxu1 %v25265_v29  ;;  %18699 = vmatprep.subr.bf16.mxu0 %v27973_v46 }
 0x964   : > { %17478 = vmatprep.subr.bf16.mxu1 %v25277_v54  ;;  %v19721_v54 = vld [vmem:[%s27256_s3 + $0x478] sm:$0xff]  }
 0x966   : > { %18700 = vmatpush3.bf16.msra.mxu0 %v25403_v57 }
 0x967   : > { %17479 = vmatpush3.bf16.msra.mxu1 %v25289_v42  ;;  %18701 = vmatprep.subr.bf16.mxu0 %v27973_v46 }
 0x968   : > { %17480 = vmatprep.subr.bf16.mxu1 %v25301_v28 }
 0x96a   : > { %18702 = vmatpush3.bf16.msra.mxu0 %v25412_v12 }
 0x96b   : > { %17481 = vmatpush3.bf16.msra.mxu1 %v25313_v8  ;;  %18703 = vmatprep.subr.bf16.mxu0 %v27973_v46 }
 0x96c   : > { %17482 = vmatprep.subr.bf16.mxu1 %v25325_v40  ;;  %v19722_v40 = vld [vmem:[%s27256_s3 + $0x4b0] sm:$0xff]  }
 0x96e   : > { %18704 = vmatpush3.bf16.msra.mxu0 %v25421_v60 }
 0x96f   : > { %17483 = vmatpush3.bf16.msra.mxu1 %v25337_v14  ;;  %17490 = vmatprep.subr.bf16.mxu0 %v19720_v61 }
 0x970   : > { %18709 = vmatprep.subr.bf16.mxu1 %v27973_v46 }
 0x971   : > { %v10558_v31 = vpop.f32.mrf.mxu0  ;;  %18706 = vmatmul.mubr.bf16.vlgmr.msra.gmra.mxu0 %v28315_v19 }
 0x972   : > { %v10559_v35 = vadd.f32 %v10558_v31, %v10519_v22  ;;  %v17272_v29 = vpop.f32.mrf.mxu1  ;;  %11102 = vmatmul.mubr.bf16.vlgmr.msra.gmra.mxu1 %v28312_v0  ;;  %17491 = vmatpush3.bf16.msra.mxu0 %v19721_v54  ;;  %v25939_v22 = vld [vmem:[%s27256_s3 + $0x5a8] sm:$0xff]   ;;  %v25950_v31 = vld [vmem:[%s27256_s3 + $0x5e0] sm:$0xff]  }
 0x973   : > { %11141 = vmatprep.mubr.bf16.mxu0 %v28315_v19  ;;  %18710 = vmatpush3.bf16.msra.mxu1 %v25351_v1  ;;  %v18627_v42 = vpop.f32.mrf.mxu0  ;;  %v28320_v19 = vld [vmem:[#allocation44_spill] sm:$0xff] }
 0x974   : > { %v25798_v28 = vadd.f32 %v10559_v35, %v25087_v3  ;;  %v17273_v8 = vpop.f32.mrf.mxu1  ;;  %17492 = vmatprep.subr.bf16.mxu0 %v19722_v40  ;;  %18711 = vmatprep.subr.bf16.mxu1 %v27973_v46  ;;  %v19723_v3 = vld [vmem:[%s27256_s3 + $0x470] sm:$0xff]   ;;  %v25966_v54 = vld [vmem:[%s27256_s3 + $0x5a0] sm:$0xff]   ;;  %v25971_v42 = vld [vmem:[%s27256_s3 + $0x558] sm:$0xff]  }
 0x975   : > { %v25804_v36 = vadd.f32 %v17273_v8, %v17272_v29  ;;  %v10561_v14 = vpop.f32.mrf.mxu0  ;;  %18725 = vmatprep.mubr.msk.bf16.mxu1 %vm19824_vm11, %v27973_v46  ;;  %v25959_v29 = vld [vmem:[%s27256_s3 + $0x520] sm:$0xff]   ;;  %v25977_v8 = vld [vmem:[%s27256_s3 + $0x5d8] sm:$0xff]  }
 0x976   : > { %v17275_v34 = vpop.f32.mrf.mxu1  ;;  %17493 = vmatpush3.bf16.msra.mxu0 %v19723_v3  ;;  %v25983_v40 = vld [vmem:[%s27256_s3 + $0x518] sm:$0xff]   ;;  %v25995_v14 = vld [vmem:[%s27256_s3 + $0x550] sm:$0xff]  }
 0x977   : > { %18712 = vmatpush3.bf16.msra.mxu1 %v25364_v30  ;;  %v18628_v1 = vpop.f32.mrf.mxu0  ;;  %17494 = vmatprep.subr.bf16.mxu0 %v19724_v23  ;;  %v19726_v30 = vld [vmem:[%s27256_s3 + $0x4a0] sm:$0xff]   ;;  %v26001_v34 = vld [vmem:[%s27256_s3 + $0x5d0] sm:$0xff]   ;;  %v26019_v23 = vld [vmem:[%s27256_s3 + $0x548] sm:$0xff]  }
 0x978   : > { %v17276_v0 = vpop.f32.mrf.mxu1  ;;  %18713 = vmatprep.subr.bf16.mxu1 %v27973_v46  ;;  %v26007_v3 = vld [vmem:[%s27256_s3 + $0x510] sm:$0xff]  }
 0x979   : > { %v26014_v1 = vld [vmem:[%s27256_s3 + $0x590] sm:$0xff]   ;;  %v26025_v0 = vld [vmem:[%s27256_s3 + $0x5c8] sm:$0xff]  }
 0x97a   : > { %17495 = vmatpush3.bf16.msra.mxu0 %v19725_v17  ;;  %v26031_v17 = vld [vmem:[%s27256_s3 + $0x508] sm:$0xff]  }
 0x97b   : > { %18714 = vmatpush3.bf16.msra.mxu1 %v25376_v49  ;;  %17496 = vmatprep.subr.bf16.mxu0 %v19726_v30  ;;  %v19729_v49 = vld [vmem:[%s27256_s3 + $0x458] sm:$0xff]   ;;  %v26038_v30 = vld [vmem:[%s27256_s3 + $0x588] sm:$0xff]  }
 0x97c   : > { %18715 = vmatprep.subr.bf16.mxu1 %v27973_v46 }
 0x97e   : > { %17497 = vmatpush3.bf16.msra.mxu0 %v19727_v33  ;;  %v26043_v33 = vld [vmem:[%s27256_s3 + $0x540] sm:$0xff]  }
 0x97f   : > { %18716 = vmatpush3.bf16.msra.mxu1 %v25385_v5  ;;  %17498 = vmatprep.subr.bf16.mxu0 %v19728_v38  ;;  %v19731_v5 = vld [vmem:[%s27256_s3 + $0x450] sm:$0xff]   ;;  %v26049_v38 = vld [vmem:[%s27256_s3 + $0x5c0] sm:$0xff]  }
 0x980   : > { %18717 = vmatprep.subr.bf16.mxu1 %v27973_v46 }
 0x982   : > { %17499 = vmatpush3.bf16.msra.mxu0 %v19729_v49  ;;  %v26055_v49 = vld [vmem:[%s27256_s3 + $0x500] sm:$0xff]  }
 0x983   : > { %18718 = vmatpush3.bf16.msra.mxu1 %v25394_v48  ;;  %17500 = vmatprep.subr.bf16.mxu0 %v19730_v63  ;;  %v19733_v48 = vld [vmem:[%s27256_s3 + $0x448] sm:$0xff]   ;;  %v26062_v63 = vld [vmem:[%s27256_s3 + $0x580] sm:$0xff]  }
 0x984   : > { %18719 = vmatprep.subr.bf16.mxu1 %v27973_v46 }
 0x986   : > { %17501 = vmatpush3.bf16.msra.mxu0 %v19731_v5  ;;  %v26069_v5 = vld [vmem:[%s27256_s3 + $0x638] sm:$0xff]  }
 0x987   : > { %18720 = vmatpush3.bf16.msra.mxu1 %v25403_v57  ;;  %17502 = vmatprep.subr.bf16.mxu0 %v19732_v27  ;;  %v25858_v57 = vld [vmem:[%s27256_s3 + $0x578] sm:$0xff]  }
 0x988   : > { %18721 = vmatprep.subr.bf16.mxu1 %v27973_v46  ;;  %v28321_v27 = vld [vmem:[#allocation63_spill] sm:$0xff] }
 0x98a   : > { %17503 = vmatpush3.bf16.msra.mxu0 %v19733_v48  ;;  %v11271_v48 = vrot.slane %v28321_v27, 2  ;;  %v26131_v27 = vld [vmem:[%s27256_s3 + $0x608] sm:$0xff]  }
 0x98b   : > { %18722 = vmatpush3.bf16.msra.mxu1 %v25412_v12  ;;  %17504 = vmatprep.subr.bf16.mxu0 %v19734_v2  ;;  %v19735_v12 = vld [vmem:[%s27256_s3 + $0x440] sm:$0xff]   ;;  %v28322_v2 = vld [vmem:[#allocation11_spill] sm:$0xff] }
 0x98c   : > { %18723 = vmatprep.subr.bf16.mxu1 %v27973_v46 }
 0x98e   : > { %17505 = vmatpush3.bf16.msra.mxu0 %v19735_v12  ;;  %v26075_v12 = vrot.slane %v28322_v2, 2  ;;  %v28323_v2 = vld [vmem:[#allocation41_spill] sm:$0xff] }
 0x98f   : > { %18724 = vmatpush3.bf16.msra.mxu1 %v25421_v60  ;;  %17521 = vmatprep.subr.bf16.mxu0 %v25858_v57  ;;  %v25892_v60 = vld [vmem:[%s27256_s3 + $0x5f0] sm:$0xff]  }
 0x990   : > { %17543 = vmatprep.subr.bf16.mxu1 %v25864_v24 }
 0x991   : > { %v17294_v58 = vpop.f32.mrf.mxu0  ;;  %11142 = vmatmul.mubr.bf16.vlgmr.msra.gmra.mxu0 %v28314_v11  ;;  %v25904_v11 = vld [vmem:[%s27256_s3 + $0x530] sm:$0xff]  }
 0x992   : > { %v10683_v44 = vpop.f32.mrf.mxu1  ;;  %18726 = vmatmul.mubr.bf16.vlgmr.msra.gmra.mxu1 %v28318_v55  ;;  %17522 = vmatpush3.bf16.msra.mxu0 %v25872_v39 }
 0x993   : > { %11553 = vmatprep.mubr.bf16.mxu0 %v11272_v18  ;;  %17544 = vmatpush3.bf16.msra.mxu1 %v25879_v10  ;;  %v17295_v4 = vpop.f32.mrf.mxu0 }
 0x994   : > { %11593 = vmatprep.mubr.bf16.mxu1 %v25899_v50  ;;  %v17296_v41 = vadd.f32 %v17295_v4, %v17294_v58  ;;  %v18647_v26 = vpop.f32.mrf.mxu1  ;;  %17523 = vmatprep.subr.bf16.mxu0 %v25885_v51 }
 0x995   : > { %v17297_v53 = vpop.f32.mrf.mxu0  ;;  %17545 = vmatprep.subr.bf16.mxu1 %v25892_v60 }
 0x996   : > { %v10644_v45 = vadd.f32 %v17296_v41, %v25804_v36  ;;  %v10686_v15 = vpop.f32.mrf.mxu1  ;;  %17524 = vmatpush3.bf16.msra.mxu0 %v25904_v11  ;;  %v25990_v36 = vld [vmem:[%s27256_s3 + $0x598] sm:$0xff]   ;;  %v26095_v53 = vld [vmem:[%s27256_s3 + $0x628] sm:$0xff]  }
 0x997   : > { %17546 = vmatpush3.bf16.msra.mxu1 %v25912_v13  ;;  %v17298_v43 = vpop.f32.mrf.mxu0  ;;  %17525 = vmatprep.subr.bf16.mxu0 %v25917_v9 }
 0x998   : > { %v10684_v62 = vadd.f32 %v10683_v44, %v10644_v45  ;;  %v18648_v61 = vpop.f32.mrf.mxu1  ;;  %17547 = vmatprep.subr.bf16.mxu1 %v25924_v20 }
 0x999   : > { %v26113_v61 = vld [vmem:[%s27256_s3 + $0x618] sm:$0xff]  }
 0x99a   : > { %v25953_v35 = vadd.f32 %v10684_v62, %v28320_v19  ;;  %17526 = vmatpush3.bf16.msra.mxu0 %v25932_v52  ;;  %v26104_v62 = vld [vmem:[%s27256_s3 + $0x620] sm:$0xff]   ;;  %v26122_v19 = vld [vmem:[%s27256_s3 + $0x610] sm:$0xff]  }
 0x99b   : > { %17548 = vmatpush3.bf16.msra.mxu1 %v25939_v22  ;;  %17527 = vmatprep.subr.bf16.mxu0 %v25944_v6 }
 0x99c   : > { %17549 = vmatprep.subr.bf16.mxu1 %v25950_v31 }
 0x99e   : > { %17528 = vmatpush3.bf16.msra.mxu0 %v25959_v29 }
 0x99f   : > { %17550 = vmatpush3.bf16.msra.mxu1 %v25966_v54  ;;  %17529 = vmatprep.subr.bf16.mxu0 %v25971_v42 }
 0x9a0   : > { %17551 = vmatprep.subr.bf16.mxu1 %v25977_v8 }
 0x9a2   : > { %17530 = vmatpush3.bf16.msra.mxu0 %v25983_v40 }
 0x9a3   : > { %17552 = vmatpush3.bf16.msra.mxu1 %v25990_v36  ;;  %17531 = vmatprep.subr.bf16.mxu0 %v25995_v14 }
 0x9a4   : > { %17553 = vmatprep.subr.bf16.mxu1 %v26001_v34 }
 0x9a6   : > { %17532 = vmatpush3.bf16.msra.mxu0 %v26007_v3 }
 0x9a7   : > { %17554 = vmatpush3.bf16.msra.mxu1 %v26014_v1  ;;  %17533 = vmatprep.subr.bf16.mxu0 %v26019_v23 }
 0x9a8   : > { %17555 = vmatprep.subr.bf16.mxu1 %v26025_v0 }
 0x9aa   : > { %17534 = vmatpush3.bf16.msra.mxu0 %v26031_v17 }
 0x9ab   : > { %17556 = vmatpush3.bf16.msra.mxu1 %v26038_v30  ;;  %17535 = vmatprep.subr.bf16.mxu0 %v26043_v33 }
 0x9ac   : > { %17557 = vmatprep.subr.bf16.mxu1 %v26049_v38 }
 0x9ae   : > { %17536 = vmatpush3.bf16.msra.mxu0 %v26055_v49 }
 0x9af   : > { %17558 = vmatpush3.bf16.msra.mxu1 %v26062_v63  ;;  %18729 = vmatprep.subr.bf16.mxu0 %v27973_v46 }
 0x9b0   : > { %17574 = vmatprep.subr.bf16.mxu1 %v25858_v57 }
 0x9b1   : > { %v17325_v58 = vpop.f32.mrf.mxu0  ;;  %11554 = vmatmul.mubr.bf16.vlgmr.msra.gmra.mxu0 %v11271_v48  ;;  %v26140_v48 = vld [vmem:[%s27256_s3 + $0x600] sm:$0xff]  }
 0x9b2   : > { %v17347_v44 = vpop.f32.mrf.mxu1  ;;  %11594 = vmatmul.mubr.bf16.vlgmr.msra.gmra.mxu1 %v26075_v12  ;;  %18730 = vmatpush3.bf16.msra.mxu0 %v26069_v5 }
 0x9b3   : > { %17575 = vmatpush3.bf16.msra.mxu1 %v25872_v39  ;;  %11676 = vmatprep.mubr.bf16.mxu1 %v26075_v12  ;;  %v17326_v56 = vpop.f32.mrf.mxu0 }
 0x9b4   : > { %v17327_v55 = vadd.f32 %v17326_v56, %v17325_v58  ;;  %v17348_v37 = vpop.f32.mrf.mxu1  ;;  %18731 = vmatprep.subr.bf16.mxu0 %v27973_v46  ;;  %17576 = vmatprep.subr.bf16.mxu1 %v25885_v51  ;;  %v26148_v58 = vrot.slane %v28323_v2, 2  ;;  %v28326_v2 = vld [vmem:[#allocation27_spill] sm:$0xff] }
 0x9b5   : > { %v17349_v4 = vadd.f32 %v17348_v37, %v17347_v44  ;;  %v17328_v41 = vpop.f32.mrf.mxu0  ;;  %18745 = vmatprep.mubr.msk.bf16.mxu0 %vm19824_vm11, %v27973_v46 }
 0x9b6   : > { %v17350_v26 = vpop.f32.mrf.mxu1  ;;  %18732 = vmatpush3.bf16.msra.mxu0 %v26083_v25 }
 0x9b7   : > { %17577 = vmatpush3.bf16.msra.mxu1 %v25904_v11  ;;  %v17329_v45 = vpop.f32.mrf.mxu0  ;;  %18733 = vmatprep.subr.bf16.mxu0 %v27973_v46  ;;  %v10769_v15 = vadd.f32 %v17349_v4, %v17327_v55  ;;  %v28324_v4 = vld [vmem:[#allocation31_spill] sm:$0xff] }
 0x9b8   : > { %v17351_v43 = vpop.f32.mrf.mxu1  ;;  %17578 = vmatprep.subr.bf16.mxu1 %v25917_v9 }
 0x9ba   : > { %18734 = vmatpush3.bf16.msra.mxu0 %v26095_v53 }
 0x9bb   : > { %17579 = vmatpush3.bf16.msra.mxu1 %v25932_v52  ;;  %18735 = vmatprep.subr.bf16.mxu0 %v27973_v46 }
 0x9bc   : > { %17580 = vmatprep.subr.bf16.mxu1 %v25944_v6 }
 0x9be   : > { %18736 = vmatpush3.bf16.msra.mxu0 %v26104_v62 }
 0x9bf   : > { %17581 = vmatpush3.bf16.msra.mxu1 %v25959_v29  ;;  %18737 = vmatprep.subr.bf16.mxu0 %v27973_v46 }
 0x9c0   : > { %17582 = vmatprep.subr.bf16.mxu1 %v25971_v42 }
 0x9c2   : > { %18738 = vmatpush3.bf16.msra.mxu0 %v26113_v61 }
 0x9c3   : > { %17583 = vmatpush3.bf16.msra.mxu1 %v25983_v40  ;;  %18739 = vmatprep.subr.bf16.mxu0 %v27973_v46 }
 0x9c4   : > { %17584 = vmatprep.subr.bf16.mxu1 %v25995_v14 }
 0x9c6   : > { %18740 = vmatpush3.bf16.msra.mxu0 %v26122_v19 }
 0x9c7   : > { %17585 = vmatpush3.bf16.msra.mxu1 %v26007_v3  ;;  %18741 = vmatprep.subr.bf16.mxu0 %v27973_v46 }
 0x9c8   : > { %17586 = vmatprep.subr.bf16.mxu1 %v26019_v23 }
 0x9ca   : > { %18742 = vmatpush3.bf16.msra.mxu0 %v26131_v27 }
 0x9cb   : > { %17587 = vmatpush3.bf16.msra.mxu1 %v26031_v17  ;;  %18743 = vmatprep.subr.bf16.mxu0 %v27973_v46 }
 0x9cc   : > { %17588 = vmatprep.subr.bf16.mxu1 %v26043_v33 }
 0x9ce   : > { %18744 = vmatpush3.bf16.msra.mxu0 %v26140_v48 }
 0x9cf   : > { %17589 = vmatpush3.bf16.msra.mxu1 %v26055_v49  ;;  %17596 = vmatprep.subr.bf16.mxu0 %v25864_v24 }
 0x9d0   : > { %18749 = vmatprep.subr.bf16.mxu1 %v27973_v46 }
 0x9d1   : > { %v10808_v44 = vpop.f32.mrf.mxu0  ;;  %18746 = vmatmul.mubr.bf16.vlgmr.msra.gmra.mxu0 %v26148_v58 }
 0x9d2   : > { %v10809_v56 = vadd.f32 %v10808_v44, %v10769_v15  ;;  %v17378_v55 = vpop.f32.mrf.mxu1  ;;  %11677 = vmatmul.mubr.bf16.vlgmr.msra.gmra.mxu1 %v11272_v18  ;;  %17597 = vmatpush3.bf16.msra.mxu0 %v25879_v10  ;;  %v26193_v44 = vrot.slane %v28326_v2, 2 }
 0x9d3   : > { %11716 = vmatprep.mubr.bf16.mxu0 %v26148_v58  ;;  %18750 = vmatpush3.bf16.msra.mxu1 %v26069_v5  ;;  %v18667_v37 = vpop.f32.mrf.mxu0 }
 0x9d4   : > { %v26159_v41 = vadd.f32 %v10809_v56, %v28324_v4  ;;  %v17379_v26 = vpop.f32.mrf.mxu1  ;;  %17598 = vmatprep.subr.bf16.mxu0 %v25892_v60  ;;  %18751 = vmatprep.subr.bf16.mxu1 %v27973_v46 }
 0x9d5   : > { %v17380_v45 = vadd.f32 %v17379_v26, %v17378_v55  ;;  %v10811_v15 = vpop.f32.mrf.mxu0  ;;  %18765 = vmatprep.mubr.msk.bf16.mxu1 %vm19824_vm11, %v27973_v46 }
 0x9d6   : > { %28325 = vst [vmem:[#allocation36_spill] sm:$0xff] %v26159_v41  ;;  %v17381_v59 = vpop.f32.mrf.mxu1  ;;  %17599 = vmatpush3.bf16.msra.mxu0 %v25912_v13 }
 0x9d7   : > { %18752 = vmatpush3.bf16.msra.mxu1 %v26083_v25  ;;  %v18668_v18 = vpop.f32.mrf.mxu0  ;;  %17600 = vmatprep.subr.bf16.mxu0 %v25924_v20 }
 0x9d8   : > { %v17382_v43 = vpop.f32.mrf.mxu1  ;;  %18753 = vmatprep.subr.bf16.mxu1 %v27973_v46 }
 0x9da   : > { %17601 = vmatpush3.bf16.msra.mxu0 %v25939_v22 }
 0x9db   : > { %18754 = vmatpush3.bf16.msra.mxu1 %v26095_v53  ;;  %17602 = vmatprep.subr.bf16.mxu0 %v25950_v31 }
 0x9dc   : > { %18755 = vmatprep.subr.bf16.mxu1 %v27973_v46 }
 0x9de   : > { %17603 = vmatpush3.bf16.msra.mxu0 %v25966_v54 }
 0x9df   : > { %18756 = vmatpush3.bf16.msra.mxu1 %v26104_v62  ;;  %17604 = vmatprep.subr.bf16.mxu0 %v25977_v8 }
 0x9e0   : > { %18757 = vmatprep.subr.bf16.mxu1 %v27973_v46 }
 0x9e2   : > { %17605 = vmatpush3.bf16.msra.mxu0 %v25990_v36 }
 0x9e3   : > { %18758 = vmatpush3.bf16.msra.mxu1 %v26113_v61  ;;  %17606 = vmatprep.subr.bf16.mxu0 %v26001_v34 }
 0x9e4   : > { %18759 = vmatprep.subr.bf16.mxu1 %v27973_v46 }
 0x9e6   : > { %17607 = vmatpush3.bf16.msra.mxu0 %v26014_v1 }
 0x9e7   : > { %18760 = vmatpush3.bf16.msra.mxu1 %v26122_v19  ;;  %17608 = vmatprep.subr.bf16.mxu0 %v26025_v0 }
 0x9e8   : > { %18761 = vmatprep.subr.bf16.mxu1 %v27973_v46 }
 0x9ea   : > { %17609 = vmatpush3.bf16.msra.mxu0 %v26038_v30 }
 0x9eb   : > { %18762 = vmatpush3.bf16.msra.mxu1 %v26131_v27  ;;  %17610 = vmatprep.subr.bf16.mxu0 %v26049_v38 }
 0x9ec   : > { %18763 = vmatprep.subr.bf16.mxu1 %v27973_v46 }
 0x9ee   : > { %17611 = vmatpush3.bf16.msra.mxu0 %v26062_v63 }
 0x9ef   : > { %18764 = vmatpush3.bf16.msra.mxu1 %v26140_v48  ;;  %17627 = vmatprep.subr.bf16.mxu0 %v25858_v57 }
 0x9f0   : > { %17649 = vmatprep.subr.bf16.mxu1 %v25864_v24 }
 0x9f1   : > { %v17400_v56 = vpop.f32.mrf.mxu0  ;;  %11717 = vmatmul.mubr.bf16.vlgmr.msra.gmra.mxu0 %v25899_v50 }
 0x9f2   : > { %v10933_v55 = vpop.f32.mrf.mxu1  ;;  %18766 = vmatmul.mubr.bf16.vlgmr.msra.gmra.mxu1 %v26193_v44  ;;  %17628 = vmatpush3.bf16.msra.mxu0 %v25872_v39 }
 0x9f3   : > { %11799 = vmatprep.mubr.bf16.mxu0 %v25899_v50  ;;  %17650 = vmatpush3.bf16.msra.mxu1 %v25879_v10  ;;  %v17401_v37 = vpop.f32.mrf.mxu0 }
 0x9f4   : > { %11839 = vmatprep.mubr.bf16.mxu1 %v26193_v44  ;;  %v17402_v4 = vadd.f32 %v17401_v37, %v17400_v56  ;;  %v18687_v26 = vpop.f32.mrf.mxu1  ;;  %17629 = vmatprep.subr.bf16.mxu0 %v25885_v51 }
 0x9f5   : > { %v17403_v15 = vpop.f32.mrf.mxu0  ;;  %17651 = vmatprep.subr.bf16.mxu1 %v25892_v60 }
 0x9f6   : > { %v10894_v59 = vadd.f32 %v17402_v4, %v17380_v45  ;;  %v10936_v18 = vpop.f32.mrf.mxu1  ;;  %17630 = vmatpush3.bf16.msra.mxu0 %v25904_v11 }
 0x9f7   : > { %17652 = vmatpush3.bf16.msra.mxu1 %v25912_v13  ;;  %v17404_v43 = vpop.f32.mrf.mxu0  ;;  %17631 = vmatprep.subr.bf16.mxu0 %v25917_v9 }
 0x9f8   : > { %v10934_v2 = vadd.f32 %v10933_v55, %v10894_v59  ;;  %v18688_v41 = vpop.f32.mrf.mxu1  ;;  %17653 = vmatprep.subr.bf16.mxu1 %v25924_v20  ;;  %v28327_v43 = vld [vmem:[#allocation25_spill] sm:$0xff] }
 0x9fa   : > { %v26209_v56 = vadd.f32 %v10934_v2, %v25483_v16  ;;  %17632 = vmatpush3.bf16.msra.mxu0 %v25932_v52  ;;  %v26271_v2 = vrot.slane %v28327_v43, 2 }
 0x9fb   : > { %17654 = vmatpush3.bf16.msra.mxu1 %v25939_v22  ;;  %17633 = vmatprep.subr.bf16.mxu0 %v25944_v6 }
 0x9fc   : > { %17655 = vmatprep.subr.bf16.mxu1 %v25950_v31 }
 0x9fe   : > { %17634 = vmatpush3.bf16.msra.mxu0 %v25959_v29 }
 0x9ff   : > { %17656 = vmatpush3.bf16.msra.mxu1 %v25966_v54  ;;  %17635 = vmatprep.subr.bf16.mxu0 %v25971_v42 }
 0xa00   : > { %17657 = vmatprep.subr.bf16.mxu1 %v25977_v8 }
 0xa02   : > { %17636 = vmatpush3.bf16.msra.mxu0 %v25983_v40 }
 0xa03   : > { %17658 = vmatpush3.bf16.msra.mxu1 %v25990_v36  ;;  %17637 = vmatprep.subr.bf16.mxu0 %v25995_v14 }
 0xa04   : > { %17659 = vmatprep.subr.bf16.mxu1 %v26001_v34 }
 0xa06   : > { %17638 = vmatpush3.bf16.msra.mxu0 %v26007_v3 }
 0xa07   : > { %17660 = vmatpush3.bf16.msra.mxu1 %v26014_v1  ;;  %17639 = vmatprep.subr.bf16.mxu0 %v26019_v23 }
 0xa08   : > { %17661 = vmatprep.subr.bf16.mxu1 %v26025_v0 }
 0xa0a   : > { %17640 = vmatpush3.bf16.msra.mxu0 %v26031_v17 }
 0xa0b   : > { %17662 = vmatpush3.bf16.msra.mxu1 %v26038_v30  ;;  %17641 = vmatprep.subr.bf16.mxu0 %v26043_v33 }
 0xa0c   : > { %17663 = vmatprep.subr.bf16.mxu1 %v26049_v38 }
 0xa0e   : > { %17642 = vmatpush3.bf16.msra.mxu0 %v26055_v49 }
 0xa0f   : > { %17664 = vmatpush3.bf16.msra.mxu1 %v26062_v63  ;;  %18769 = vmatprep.subr.bf16.mxu0 %v27973_v46 }
 0xa10   : > { %17680 = vmatprep.subr.bf16.mxu1 %v25858_v57 }
 0xa11   : > { %v17431_v16 = vpop.f32.mrf.mxu0  ;;  %11800 = vmatmul.mubr.bf16.vlgmr.msra.gmra.mxu0 %v26075_v12 }
 0xa12   : > { %v17453_v41 = vpop.f32.mrf.mxu1  ;;  %11840 = vmatmul.mubr.bf16.vlgmr.msra.gmra.mxu1 %v26148_v58  ;;  %18770 = vmatpush3.bf16.msra.mxu0 %v26069_v5 }
 0xa13   : > { %17681 = vmatpush3.bf16.msra.mxu1 %v25872_v39  ;;  %11922 = vmatprep.mubr.bf16.mxu1 %v26148_v58  ;;  %v17432_v45 = vpop.f32.mrf.mxu0 }
 0xa14   : > { %v17433_v55 = vadd.f32 %v17432_v45, %v17431_v16  ;;  %v17454_v37 = vpop.f32.mrf.mxu1  ;;  %18771 = vmatprep.subr.bf16.mxu0 %v27973_v46  ;;  %17682 = vmatprep.subr.bf16.mxu1 %v25885_v51 }
 0xa15   : > { %v17455_v4 = vadd.f32 %v17454_v37, %v17453_v41  ;;  %v17434_v26 = vpop.f32.mrf.mxu0  ;;  %18785 = vmatprep.mubr.msk.bf16.mxu0 %vm19824_vm11, %v27973_v46 }
 0xa16   : > { %v17456_v12 = vpop.f32.mrf.mxu1  ;;  %18772 = vmatpush3.bf16.msra.mxu0 %v26083_v25 }
 0xa17   : > { %17683 = vmatpush3.bf16.msra.mxu1 %v25904_v11  ;;  %v17435_v15 = vpop.f32.mrf.mxu0  ;;  %18773 = vmatprep.subr.bf16.mxu0 %v27973_v46  ;;  %v11019_v59 = vadd.f32 %v17455_v4, %v17433_v55 }
 0xa18   : > { %v17457_v18 = vpop.f32.mrf.mxu1  ;;  %17684 = vmatprep.subr.bf16.mxu1 %v25917_v9 }
 0xa1a   : > { %18774 = vmatpush3.bf16.msra.mxu0 %v26095_v53 }
 0xa1b   : > { %17685 = vmatpush3.bf16.msra.mxu1 %v25932_v52  ;;  %18775 = vmatprep.subr.bf16.mxu0 %v27973_v46 }
 0xa1c   : > { %17686 = vmatprep.subr.bf16.mxu1 %v25944_v6 }
 0xa1e   : > { %18776 = vmatpush3.bf16.msra.mxu0 %v26104_v62 }
 0xa1f   : > { %17687 = vmatpush3.bf16.msra.mxu1 %v25959_v29  ;;  %18777 = vmatprep.subr.bf16.mxu0 %v27973_v46 }
 0xa20   : > { %17688 = vmatprep.subr.bf16.mxu1 %v25971_v42 }
 0xa22   : > { %18778 = vmatpush3.bf16.msra.mxu0 %v26113_v61 }
 0xa23   : > { %17689 = vmatpush3.bf16.msra.mxu1 %v25983_v40  ;;  %18779 = vmatprep.subr.bf16.mxu0 %v27973_v46 }
 0xa24   : > { %17690 = vmatprep.subr.bf16.mxu1 %v25995_v14 }
 0xa26   : > { %18780 = vmatpush3.bf16.msra.mxu0 %v26122_v19 }
 0xa27   : > { %17691 = vmatpush3.bf16.msra.mxu1 %v26007_v3  ;;  %18781 = vmatprep.subr.bf16.mxu0 %v27973_v46 }
 0xa28   : > { %17692 = vmatprep.subr.bf16.mxu1 %v26019_v23 }
 0xa2a   : > { %18782 = vmatpush3.bf16.msra.mxu0 %v26131_v27 }
 0xa2b   : > { %17693 = vmatpush3.bf16.msra.mxu1 %v26031_v17  ;;  %18783 = vmatprep.subr.bf16.mxu0 %v27973_v46 }
 0xa2c   : > { %17694 = vmatprep.subr.bf16.mxu1 %v26043_v33 }
 0xa2e   : > { %18784 = vmatpush3.bf16.msra.mxu0 %v26140_v48 }
 0xa2f   : > { %17695 = vmatpush3.bf16.msra.mxu1 %v26055_v49  ;;  %17702 = vmatprep.subr.bf16.mxu0 %v25864_v24 }
 0xa30   : > { %18789 = vmatprep.subr.bf16.mxu1 %v27973_v46 }
 0xa31   : > { %v11058_v16 = vpop.f32.mrf.mxu0  ;;  %18786 = vmatmul.mubr.bf16.vlgmr.msra.gmra.mxu0 %v26271_v2 }
 0xa32   : > { %v11059_v41 = vadd.f32 %v11058_v16, %v11019_v59  ;;  %v17484_v45 = vpop.f32.mrf.mxu1  ;;  %11923 = vmatmul.mubr.bf16.vlgmr.msra.gmra.mxu1 %v25899_v50  ;;  %17703 = vmatpush3.bf16.msra.mxu0 %v25879_v10  ;;  %v28328_v59 = vld [vmem:[#allocation68_spill] sm:$0xff] }
 0xa33   : > { %11962 = vmatprep.mubr.bf16.mxu0 %v26271_v2  ;;  %18790 = vmatpush3.bf16.msra.mxu1 %v26069_v5  ;;  %v18707_v55 = vpop.f32.mrf.mxu0  ;;  %v26315_v18 = vrot.slane %v28328_v59, 2 }
 0xa34   : > { %v26281_v37 = vadd.f32 %v11059_v41, %v25552_v47  ;;  %v17485_v4 = vpop.f32.mrf.mxu1  ;;  %17704 = vmatprep.subr.bf16.mxu0 %v25892_v60  ;;  %18791 = vmatprep.subr.bf16.mxu1 %v27973_v46 }
 0xa35   : > { %v17486_v26 = vadd.f32 %v17485_v4, %v17484_v45  ;;  %v11061_v12 = vpop.f32.mrf.mxu0  ;;  %18805 = vmatprep.mubr.msk.bf16.mxu1 %vm19824_vm11, %v27973_v46 }
 0xa36   : > { %v17487_v50 = vpop.f32.mrf.mxu1  ;;  %17705 = vmatpush3.bf16.msra.mxu0 %v25912_v13 }
 0xa37   : > { %18792 = vmatpush3.bf16.msra.mxu1 %v26083_v25  ;;  %v18708_v15 = vpop.f32.mrf.mxu0  ;;  %17706 = vmatprep.subr.bf16.mxu0 %v25924_v20 }
 0xa38   : > { %v17488_v47 = vpop.f32.mrf.mxu1  ;;  %18793 = vmatprep.subr.bf16.mxu1 %v27973_v46 }
 0xa3a   : > { %17707 = vmatpush3.bf16.msra.mxu0 %v25939_v22 }
 0xa3b   : > { %18794 = vmatpush3.bf16.msra.mxu1 %v26095_v53  ;;  %17708 = vmatprep.subr.bf16.mxu0 %v25950_v31 }
 0xa3c   : > { %18795 = vmatprep.subr.bf16.mxu1 %v27973_v46 }
 0xa3e   : > { %17709 = vmatpush3.bf16.msra.mxu0 %v25966_v54 }
 0xa3f   : > { %18796 = vmatpush3.bf16.msra.mxu1 %v26104_v62  ;;  %17710 = vmatprep.subr.bf16.mxu0 %v25977_v8 }
 0xa40   : > { %18797 = vmatprep.subr.bf16.mxu1 %v27973_v46 }
 0xa42   : > { %17711 = vmatpush3.bf16.msra.mxu0 %v25990_v36 }
 0xa43   : > { %18798 = vmatpush3.bf16.msra.mxu1 %v26113_v61  ;;  %17712 = vmatprep.subr.bf16.mxu0 %v26001_v34 }
 0xa44   : > { %18799 = vmatprep.subr.bf16.mxu1 %v27973_v46 }
 0xa46   : > { %17713 = vmatpush3.bf16.msra.mxu0 %v26014_v1 }
 0xa47   : > { %18800 = vmatpush3.bf16.msra.mxu1 %v26122_v19  ;;  %17714 = vmatprep.subr.bf16.mxu0 %v26025_v0 }
 0xa48   : > { %18801 = vmatprep.subr.bf16.mxu1 %v27973_v46 }
 0xa4a   : > { %17715 = vmatpush3.bf16.msra.mxu0 %v26038_v30 }
 0xa4b   : > { %18802 = vmatpush3.bf16.msra.mxu1 %v26131_v27  ;;  %17716 = vmatprep.subr.bf16.mxu0 %v26049_v38 }
 0xa4c   : > { %18803 = vmatprep.subr.bf16.mxu1 %v27973_v46 }
 0xa4e   : > { %17717 = vmatpush3.bf16.msra.mxu0 %v26062_v63 }
 0xa4f   : > { %18804 = vmatpush3.bf16.msra.mxu1 %v26140_v48  ;;  %17733 = vmatprep.subr.bf16.mxu0 %v25858_v57 }
 0xa50   : > { %17755 = vmatprep.subr.bf16.mxu1 %v25864_v24 }
 0xa51   : > { %v17506_v43 = vpop.f32.mrf.mxu0  ;;  %11963 = vmatmul.mubr.bf16.vlgmr.msra.gmra.mxu0 %v26193_v44 }
 0xa52   : > { %v11183_v16 = vpop.f32.mrf.mxu1  ;;  %18806 = vmatmul.mubr.bf16.vlgmr.msra.gmra.mxu1 %v26315_v18  ;;  %17734 = vmatpush3.bf16.msra.mxu0 %v25872_v39 }
 0xa53   : > { %12045 = vmatprep.mubr.bf16.mxu0 %v26193_v44  ;;  %17756 = vmatpush3.bf16.msra.mxu1 %v25879_v10  ;;  %v17507_v41 = vpop.f32.mrf.mxu0 }
 0xa54   : > { %12085 = vmatprep.mubr.bf16.mxu1 %v26315_v18  ;;  %v17508_v45 = vadd.f32 %v17507_v41, %v17506_v43  ;;  %v18727_v55 = vpop.f32.mrf.mxu1  ;;  %17735 = vmatprep.subr.bf16.mxu0 %v25885_v51 }
 0xa55   : > { %v17509_v4 = vpop.f32.mrf.mxu0  ;;  %17757 = vmatprep.subr.bf16.mxu1 %v25892_v60 }
 0xa56   : > { %v11144_v12 = vadd.f32 %v17508_v45, %v17486_v26  ;;  %v11186_v50 = vpop.f32.mrf.mxu1  ;;  %17736 = vmatpush3.bf16.msra.mxu0 %v25904_v11 }
 0xa57   : > { %17758 = vmatpush3.bf16.msra.mxu1 %v25912_v13  ;;  %v17510_v15 = vpop.f32.mrf.mxu0  ;;  %17737 = vmatprep.subr.bf16.mxu0 %v25917_v9 }
 0xa58   : > { %v11184_v47 = vadd.f32 %v11183_v16, %v11144_v12  ;;  %v18728_v59 = vpop.f32.mrf.mxu1  ;;  %17759 = vmatprep.subr.bf16.mxu1 %v25924_v20 }
 0xa5a   : > { %v26331_v43 = vadd.f32 %v11184_v47, %v25599_v21  ;;  %17738 = vmatpush3.bf16.msra.mxu0 %v25932_v52  ;;  %v28329_v47 = vld [vmem:[#allocation78_spill] sm:$0xff] }
 0xa5b   : > { %17760 = vmatpush3.bf16.msra.mxu1 %v25939_v22  ;;  %17739 = vmatprep.subr.bf16.mxu0 %v25944_v6  ;;  %v26393_v59 = vrot.slane %v28329_v47, 2 }
 0xa5c   : > { %17761 = vmatprep.subr.bf16.mxu1 %v25950_v31 }
 0xa5e   : > { %17740 = vmatpush3.bf16.msra.mxu0 %v25959_v29 }
 0xa5f   : > { %17762 = vmatpush3.bf16.msra.mxu1 %v25966_v54  ;;  %17741 = vmatprep.subr.bf16.mxu0 %v25971_v42 }
 0xa60   : > { %17763 = vmatprep.subr.bf16.mxu1 %v25977_v8 }
 0xa62   : > { %17742 = vmatpush3.bf16.msra.mxu0 %v25983_v40 }
 0xa63   : > { %17764 = vmatpush3.bf16.msra.mxu1 %v25990_v36  ;;  %17743 = vmatprep.subr.bf16.mxu0 %v25995_v14 }
 0xa64   : > { %17765 = vmatprep.subr.bf16.mxu1 %v26001_v34 }
 0xa66   : > { %17744 = vmatpush3.bf16.msra.mxu0 %v26007_v3 }
 0xa67   : > { %17766 = vmatpush3.bf16.msra.mxu1 %v26014_v1  ;;  %17745 = vmatprep.subr.bf16.mxu0 %v26019_v23 }
 0xa68   : > { %17767 = vmatprep.subr.bf16.mxu1 %v26025_v0 }
 0xa6a   : > { %17746 = vmatpush3.bf16.msra.mxu0 %v26031_v17 }
 0xa6b   : > { %17768 = vmatpush3.bf16.msra.mxu1 %v26038_v30  ;;  %17747 = vmatprep.subr.bf16.mxu0 %v26043_v33 }
 0xa6c   : > { %17769 = vmatprep.subr.bf16.mxu1 %v26049_v38 }
 0xa6e   : > { %17748 = vmatpush3.bf16.msra.mxu0 %v26055_v49 }
 0xa6f   : > { %17770 = vmatpush3.bf16.msra.mxu1 %v26062_v63  ;;  %18809 = vmatprep.subr.bf16.mxu0 %v27973_v46 }
 0xa70   : > { %17786 = vmatprep.subr.bf16.mxu1 %v25858_v57 }
 0xa71   : > { %v17537_v21 = vpop.f32.mrf.mxu0  ;;  %12046 = vmatmul.mubr.bf16.vlgmr.msra.gmra.mxu0 %v26148_v58 }
 0xa72   : > { %v17559_v26 = vpop.f32.mrf.mxu1  ;;  %12086 = vmatmul.mubr.bf16.vlgmr.msra.gmra.mxu1 %v26271_v2  ;;  %18810 = vmatpush3.bf16.msra.mxu0 %v26069_v5 }
 0xa73   : > { %17787 = vmatpush3.bf16.msra.mxu1 %v25872_v39  ;;  %12168 = vmatprep.mubr.bf16.mxu1 %v26271_v2  ;;  %v17538_v16 = vpop.f32.mrf.mxu0 }
 0xa74   : > { %v17539_v41 = vadd.f32 %v17538_v16, %v17537_v21  ;;  %v17560_v45 = vpop.f32.mrf.mxu1  ;;  %18811 = vmatprep.subr.bf16.mxu0 %v27973_v46  ;;  %17788 = vmatprep.subr.bf16.mxu1 %v25885_v51 }
 0xa75   : > { %v17561_v55 = vadd.f32 %v17560_v45, %v17559_v26  ;;  %v17540_v4 = vpop.f32.mrf.mxu0  ;;  %18825 = vmatprep.mubr.msk.bf16.mxu0 %vm19824_vm11, %v27973_v46 }
 0xa76   : > { %v17562_v58 = vpop.f32.mrf.mxu1  ;;  %18812 = vmatpush3.bf16.msra.mxu0 %v26083_v25 }
 0xa77   : > { %17789 = vmatpush3.bf16.msra.mxu1 %v25904_v11  ;;  %v17541_v12 = vpop.f32.mrf.mxu0  ;;  %18813 = vmatprep.subr.bf16.mxu0 %v27973_v46  ;;  %v11596_v50 = vadd.f32 %v17561_v55, %v17539_v41 }
 0xa78   : > { %v17563_v15 = vpop.f32.mrf.mxu1  ;;  %17790 = vmatprep.subr.bf16.mxu1 %v25917_v9 }
 0xa7a   : > { %18814 = vmatpush3.bf16.msra.mxu0 %v26095_v53 }
 0xa7b   : > { %17791 = vmatpush3.bf16.msra.mxu1 %v25932_v52  ;;  %18815 = vmatprep.subr.bf16.mxu0 %v27973_v46 }
 0xa7c   : > { %17792 = vmatprep.subr.bf16.mxu1 %v25944_v6 }
 0xa7e   : > { %18816 = vmatpush3.bf16.msra.mxu0 %v26104_v62 }
 0xa7f   : > { %17793 = vmatpush3.bf16.msra.mxu1 %v25959_v29  ;;  %18817 = vmatprep.subr.bf16.mxu0 %v27973_v46 }
 0xa80   : > { %17794 = vmatprep.subr.bf16.mxu1 %v25971_v42 }
 0xa82   : > { %18818 = vmatpush3.bf16.msra.mxu0 %v26113_v61 }
 0xa83   : > { %17795 = vmatpush3.bf16.msra.mxu1 %v25983_v40  ;;  %18819 = vmatprep.subr.bf16.mxu0 %v27973_v46 }
 0xa84   : > { %17796 = vmatprep.subr.bf16.mxu1 %v25995_v14 }
 0xa86   : > { %18820 = vmatpush3.bf16.msra.mxu0 %v26122_v19 }
 0xa87   : > { %17797 = vmatpush3.bf16.msra.mxu1 %v26007_v3  ;;  %18821 = vmatprep.subr.bf16.mxu0 %v27973_v46 }
 0xa88   : > { %17798 = vmatprep.subr.bf16.mxu1 %v26019_v23 }
 0xa8a   : > { %18822 = vmatpush3.bf16.msra.mxu0 %v26131_v27 }
 0xa8b   : > { %17799 = vmatpush3.bf16.msra.mxu1 %v26031_v17  ;;  %18823 = vmatprep.subr.bf16.mxu0 %v27973_v46 }
 0xa8c   : > { %17800 = vmatprep.subr.bf16.mxu1 %v26043_v33 }
 0xa8e   : > { %18824 = vmatpush3.bf16.msra.mxu0 %v26140_v48 }
 0xa8f   : > { %17801 = vmatpush3.bf16.msra.mxu1 %v26055_v49  ;;  %17808 = vmatprep.subr.bf16.mxu0 %v25864_v24 }
 0xa90   : > { %18829 = vmatprep.subr.bf16.mxu1 %v27973_v46 }
 0xa91   : > { %v11635_v21 = vpop.f32.mrf.mxu0  ;;  %18826 = vmatmul.mubr.bf16.vlgmr.msra.gmra.mxu0 %v26393_v59 }
 0xa92   : > { %v11636_v26 = vadd.f32 %v11635_v21, %v11596_v50  ;;  %v17590_v16 = vpop.f32.mrf.mxu1  ;;  %12169 = vmatmul.mubr.bf16.vlgmr.msra.gmra.mxu1 %v26193_v44  ;;  %17809 = vmatpush3.bf16.msra.mxu0 %v25879_v10  ;;  %v28330_v50 = vld [vmem:[#allocation17_spill] sm:$0xff] }
 0xa93   : > { %12208 = vmatprep.mubr.bf16.mxu0 %v26393_v59  ;;  %18830 = vmatpush3.bf16.msra.mxu1 %v26069_v5  ;;  %v18747_v41 = vpop.f32.mrf.mxu0  ;;  %v26437_v15 = vrot.slane %v28330_v50, 2  ;;  %v19749_v50 = vld [vmem:[%s27256_s3 + $0x5a8] sm:$0xff]  }
 0xa94   : > { %v26403_v45 = vadd.f32 %v11636_v26, %v25668_v7  ;;  %v17591_v55 = vpop.f32.mrf.mxu1  ;;  %17810 = vmatprep.subr.bf16.mxu0 %v25892_v60  ;;  %18831 = vmatprep.subr.bf16.mxu1 %v27973_v46 }
 0xa95   : > { %v17592_v4 = vadd.f32 %v17591_v55, %v17590_v16  ;;  %v11638_v58 = vpop.f32.mrf.mxu0  ;;  %18845 = vmatprep.mubr.msk.bf16.mxu1 %vm19824_vm11, %v27973_v46 }
 0xa96   : > { %v17593_v44 = vpop.f32.mrf.mxu1  ;;  %17811 = vmatpush3.bf16.msra.mxu0 %v25912_v13 }
 0xa97   : > { %18832 = vmatpush3.bf16.msra.mxu1 %v26083_v25  ;;  %v18748_v12 = vpop.f32.mrf.mxu0  ;;  %17812 = vmatprep.subr.bf16.mxu0 %v25924_v20 }
 0xa98   : > { %v17594_v7 = vpop.f32.mrf.mxu1  ;;  %18833 = vmatprep.subr.bf16.mxu1 %v27973_v46  ;;  %v19748_v12 = vld [vmem:[%s27256_s3 + $0x5e8] sm:$0xff]  }
 0xa9a   : > { %17813 = vmatpush3.bf16.msra.mxu0 %v25939_v22 }
 0xa9b   : > { %18834 = vmatpush3.bf16.msra.mxu1 %v26095_v53  ;;  %17814 = vmatprep.subr.bf16.mxu0 %v25950_v31 }
 0xa9c   : > { %18835 = vmatprep.subr.bf16.mxu1 %v27973_v46 }
 0xa9e   : > { %17815 = vmatpush3.bf16.msra.mxu0 %v25966_v54 }
 0xa9f   : > { %18836 = vmatpush3.bf16.msra.mxu1 %v26104_v62  ;;  %17816 = vmatprep.subr.bf16.mxu0 %v25977_v8 }
 0xaa0   : > { %18837 = vmatprep.subr.bf16.mxu1 %v27973_v46 }
 0xaa2   : > { %17817 = vmatpush3.bf16.msra.mxu0 %v25990_v36 }
 0xaa3   : > { %18838 = vmatpush3.bf16.msra.mxu1 %v26113_v61  ;;  %17818 = vmatprep.subr.bf16.mxu0 %v26001_v34 }
 0xaa4   : > { %18839 = vmatprep.subr.bf16.mxu1 %v27973_v46 }
 0xaa6   : > { %17819 = vmatpush3.bf16.msra.mxu0 %v26014_v1 }
 0xaa7   : > { %18840 = vmatpush3.bf16.msra.mxu1 %v26122_v19  ;;  %17820 = vmatprep.subr.bf16.mxu0 %v26025_v0 }
 0xaa8   : > { %18841 = vmatprep.subr.bf16.mxu1 %v27973_v46 }
 0xaaa   : > { %17821 = vmatpush3.bf16.msra.mxu0 %v26038_v30 }
 0xaab   : > { %18842 = vmatpush3.bf16.msra.mxu1 %v26131_v27  ;;  %17822 = vmatprep.subr.bf16.mxu0 %v26049_v38 }
 0xaac   : > { %18843 = vmatprep.subr.bf16.mxu1 %v27973_v46 }
 0xaae   : > { %17823 = vmatpush3.bf16.msra.mxu0 %v26062_v63 }
 0xaaf   : > { %18844 = vmatpush3.bf16.msra.mxu1 %v26140_v48  ;;  %17839 = vmatprep.subr.bf16.mxu0 %v25858_v57 }
 0xab0   : > { %17861 = vmatprep.subr.bf16.mxu1 %v25864_v24 }
 0xab1   : > { %v17612_v47 = vpop.f32.mrf.mxu0  ;;  %12209 = vmatmul.mubr.bf16.vlgmr.msra.gmra.mxu0 %v26315_v18 }
 0xab2   : > { %v11758_v21 = vpop.f32.mrf.mxu1  ;;  %18846 = vmatmul.mubr.bf16.vlgmr.msra.gmra.mxu1 %v26437_v15  ;;  %17840 = vmatpush3.bf16.msra.mxu0 %v25872_v39 }
 0xab3   : > { %12291 = vmatprep.mubr.bf16.mxu0 %v26315_v18  ;;  %17862 = vmatpush3.bf16.msra.mxu1 %v25879_v10  ;;  %v17613_v26 = vpop.f32.mrf.mxu0 }
 0xab4   : > { %12331 = vmatprep.mubr.bf16.mxu1 %v26437_v15  ;;  %v17614_v57 = vadd.f32 %v17613_v26, %v17612_v47  ;;  %v18767_v16 = vpop.f32.mrf.mxu1  ;;  %17841 = vmatprep.subr.bf16.mxu0 %v25885_v51  ;;  %v19751_v47 = vld [vmem:[%s27256_s3 + $0x5a0] sm:$0xff]   ;;  %v19754_v26 = vld [vmem:[%s27256_s3 + $0x5d0] sm:$0xff]  }
 0xab5   : > { %v17615_v24 = vpop.f32.mrf.mxu0  ;;  %17863 = vmatprep.subr.bf16.mxu1 %v25892_v60  ;;  %v19758_v16 = vld [vmem:[%s27256_s3 + $0x5c0] sm:$0xff]  }
 0xab6   : > { %v11719_v41 = vadd.f32 %v17614_v57, %v17592_v4  ;;  %v11761_v55 = vpop.f32.mrf.mxu1  ;;  %17842 = vmatpush3.bf16.msra.mxu0 %v25904_v11  ;;  %v19756_v57 = vld [vmem:[%s27256_s3 + $0x5c8] sm:$0xff]   ;;  %v19451_v24 = vld [vmem:[%s27258_s5 + $0x138] sm:$0xff]  }
 0xab7   : > { %17864 = vmatpush3.bf16.msra.mxu1 %v25912_v13  ;;  %v17616_v39 = vpop.f32.mrf.mxu0  ;;  %17843 = vmatprep.subr.bf16.mxu0 %v25917_v9  ;;  %v19737_v13 = vld [vmem:[%s27256_s3 + $0x538] sm:$0xff]  }
 0xab8   : > { %v11759_v10 = vadd.f32 %v11758_v21, %v11719_v41  ;;  %v18768_v58 = vpop.f32.mrf.mxu1  ;;  %17865 = vmatprep.subr.bf16.mxu1 %v25924_v20  ;;  %v19752_v21 = vld [vmem:[%s27256_s3 + $0x5d8] sm:$0xff]  }
 0xab9   : > { %v28332_v41 = vld [vmem:[#allocation92_spill] sm:$0xff] }
 0xaba   : > { %v11764_v44 = vadd.f32 %v11759_v10, %v25715_v32  ;;  %17844 = vmatpush3.bf16.msra.mxu0 %v25932_v52  ;;  %v19736_v32 = vld [vmem:[%s27256_s3 + $0x578] sm:$0xff]   ;;  %v12380_v55 = vrot.slane %v28332_v41, 2 }
 0xabb   : > { %17866 = vmatpush3.bf16.msra.mxu1 %v25939_v22  ;;  %17845 = vmatprep.subr.bf16.mxu0 %v25944_v6  ;;  %v19738_v22 = vld [vmem:[%s27256_s3 + $0x570] sm:$0xff]   ;;  %v19475_v41 = vld [vmem:[%s27258_s5 + $0x218] sm:$0xff]  }
 0xabc   : > { %v26457_v51 = vmax.f32 %v26403_v45, %v11764_v44  ;;  %17867 = vmatprep.subr.bf16.mxu1 %v25950_v31  ;;  %v19454_v44 = vld [vmem:[%s27258_s5 + $0x30] sm:$0xff]  }
 0xabe   : > { %17846 = vmatpush3.bf16.msra.mxu0 %v25959_v29 }
 0xabf   : > { %17868 = vmatpush3.bf16.msra.mxu1 %v25966_v54  ;;  %17847 = vmatprep.subr.bf16.mxu0 %v25971_v42  ;;  %v19739_v54 = vld [vmem:[%s27256_s3 + $0x530] sm:$0xff]  }
 0xac0   : > { %17869 = vmatprep.subr.bf16.mxu1 %v25977_v8 }
 0xac2   : > { %17848 = vmatpush3.bf16.msra.mxu0 %v25983_v40 }
 0xac3   : > { %17870 = vmatpush3.bf16.msra.mxu1 %v25990_v36  ;;  %17849 = vmatprep.subr.bf16.mxu0 %v25995_v14 }
 0xac4   : > { %17871 = vmatprep.subr.bf16.mxu1 %v26001_v34 }
 0xac6   : > { %17850 = vmatpush3.bf16.msra.mxu0 %v26007_v3 }
 0xac7   : > { %17872 = vmatpush3.bf16.msra.mxu1 %v26014_v1  ;;  %17851 = vmatprep.subr.bf16.mxu0 %v26019_v23  ;;  %v19740_v1 = vld [vmem:[%s27256_s3 + $0x568] sm:$0xff]  }
 0xac8   : > { %17873 = vmatprep.subr.bf16.mxu1 %v26025_v0  ;;  %v19741_v0 = vld [vmem:[%s27256_s3 + $0x528] sm:$0xff]  }
 0xaca   : > { %17852 = vmatpush3.bf16.msra.mxu0 %v26031_v17 }
 0xacb   : > { %17874 = vmatpush3.bf16.msra.mxu1 %v26038_v30  ;;  %17853 = vmatprep.subr.bf16.mxu0 %v26043_v33  ;;  %v19742_v30 = vld [vmem:[%s27256_s3 + $0x560] sm:$0xff]  }
 0xacc   : > { %17875 = vmatprep.subr.bf16.mxu1 %v26049_v38  ;;  %v19743_v38 = vld [vmem:[%s27256_s3 + $0x520] sm:$0xff]  }
 0xace   : > { %17854 = vmatpush3.bf16.msra.mxu0 %v26055_v49 }
 0xacf   : > { %17876 = vmatpush3.bf16.msra.mxu1 %v26062_v63  ;;  %18849 = vmatprep.subr.bf16.mxu0 %v27973_v46 }
 0xad0   : > { %17892 = vmatprep.subr.bf16.mxu1 %v19736_v32 }
 0xad1   : > { %v17643_v60 = vpop.f32.mrf.mxu0  ;;  %12292 = vmatmul.mubr.bf16.vlgmr.msra.gmra.mxu0 %v26271_v2 }
 0xad2   : > { %v17665_v11 = vpop.f32.mrf.mxu1  ;;  %12332 = vmatmul.mubr.bf16.vlgmr.msra.gmra.mxu1 %v26393_v59  ;;  %18850 = vmatpush3.bf16.msra.mxu0 %v26069_v5 }
 0xad3   : > { %17893 = vmatpush3.bf16.msra.mxu1 %v19737_v13  ;;  %12414 = vmatprep.mubr.bf16.mxu1 %v26393_v59  ;;  %v17644_v9 = vpop.f32.mrf.mxu0  ;;  %v19746_v59 = vld [vmem:[%s27256_s3 + $0x5f0] sm:$0xff]  }
 0xad4   : > { %v17645_v20 = vadd.f32 %v17644_v9, %v17643_v60  ;;  %v17666_v52 = vpop.f32.mrf.mxu1  ;;  %18851 = vmatprep.subr.bf16.mxu0 %v27973_v46  ;;  %17894 = vmatprep.subr.bf16.mxu1 %v19738_v22  ;;  %v19455_v9 = vld [vmem:[%s27258_s5 + $0x128] sm:$0xff]  }
 0xad5   : > { %v17667_v6 = vadd.f32 %v17666_v52, %v17665_v11  ;;  %v17646_v31 = vpop.f32.mrf.mxu0  ;;  %18865 = vmatprep.mubr.msk.bf16.mxu0 %vm19824_vm11, %v27973_v46  ;;  %v19456_v52 = vld [vmem:[%s27258_s5 + $0x28] sm:$0xff]  }
 0xad6   : > { %v17668_v29 = vpop.f32.mrf.mxu1  ;;  %18852 = vmatpush3.bf16.msra.mxu0 %v26083_v25 }
 0xad7   : > { %17895 = vmatpush3.bf16.msra.mxu1 %v19739_v54  ;;  %v17647_v8 = vpop.f32.mrf.mxu0  ;;  %18853 = vmatprep.subr.bf16.mxu0 %v27973_v46  ;;  %v11842_v36 = vadd.f32 %v17667_v6, %v17645_v20  ;;  %v19457_v29 = vld [vmem:[%s27258_s5 + $0x120] sm:$0xff]   ;;  %v12506_v54 = vrot.slane %v26457_v51, 1 }
 0xad8   : > { %v17669_v34 = vpop.f32.mrf.mxu1  ;;  %17896 = vmatprep.subr.bf16.mxu1 %v19740_v1  ;;  %v19458_v8 = vld [vmem:[%s27258_s5 + $0x20] sm:$0xff]   ;;  %v28333_v1 = vld [vmem:[#allocation91_spill] sm:$0xff] }
 0xad9   : > { %v19459_v34 = vld [vmem:[%s27258_s5 + $0x118] sm:$0xff]  }
 0xada   : > { %18854 = vmatpush3.bf16.msra.mxu0 %v26095_v53 }
 0xadb   : > { %17897 = vmatpush3.bf16.msra.mxu1 %v19741_v0  ;;  %18855 = vmatprep.subr.bf16.mxu0 %v27973_v46 }
 0xadc   : > { %17898 = vmatprep.subr.bf16.mxu1 %v19742_v30  ;;  %v12508_v30 = vmax.f32 %v26457_v51, %v12506_v54  ;;  %v19462_v51 = vld [vmem:[%s27258_s5 + $0x10] sm:$0xff]  }
 0xade   : > { %18856 = vmatpush3.bf16.msra.mxu0 %v26104_v62 }
 0xadf   : > { %17899 = vmatpush3.bf16.msra.mxu1 %v19743_v38  ;;  %18857 = vmatprep.subr.bf16.mxu0 %v27973_v46  ;;  %v19460_v38 = vld [vmem:[%s27258_s5 + $0x18] sm:$0xff]  }
 0xae0   : > { %17900 = vmatprep.subr.bf16.mxu1 %v25971_v42  ;;  %v28331_v42 = vld [vmem:[#allocation26_spill] sm:$0xff] }
 0xae2   : > { %18858 = vmatpush3.bf16.msra.mxu0 %v26113_v61 }
 0xae3   : > { %17901 = vmatpush3.bf16.msra.mxu1 %v25983_v40  ;;  %18859 = vmatprep.subr.bf16.mxu0 %v27973_v46  ;;  %v12257_v40 = vrot.slane %v28331_v42, 2  ;;  %v19461_v42 = vld [vmem:[%s27258_s5 + $0x110] sm:$0xff]  }
 0xae4   : > { %17902 = vmatprep.subr.bf16.mxu1 %v25995_v14  ;;  %v19744_v14 = vld [vmem:[%s27256_s3 + $0x5f8] sm:$0xff]  }
 0xae6   : > { %18860 = vmatpush3.bf16.msra.mxu0 %v26122_v19 }
 0xae7   : > { %17903 = vmatpush3.bf16.msra.mxu1 %v26007_v3  ;;  %18861 = vmatprep.subr.bf16.mxu0 %v27973_v46 }
 0xae8   : > { %17904 = vmatprep.subr.bf16.mxu1 %v26019_v23 }
 0xaea   : > { %18862 = vmatpush3.bf16.msra.mxu0 %v26131_v27 }
 0xaeb   : > { %17905 = vmatpush3.bf16.msra.mxu1 %v26031_v17  ;;  %18863 = vmatprep.subr.bf16.mxu0 %v27973_v46 }
 0xaec   : > { %17906 = vmatprep.subr.bf16.mxu1 %v26043_v33  ;;  %v19745_v33 = vld [vmem:[%s27256_s3 + $0x5b8] sm:$0xff]  }
 0xaee   : > { %18864 = vmatpush3.bf16.msra.mxu0 %v26140_v48 }
 0xaef   : > { %17907 = vmatpush3.bf16.msra.mxu1 %v26055_v49  ;;  %17914 = vmatprep.subr.bf16.mxu0 %v19744_v14  ;;  %v19463_v14 = vld [vmem:[%s27258_s5 + $0x108] sm:$0xff]  }
 0xaf0   : > { %18869 = vmatprep.subr.bf16.mxu1 %v27973_v46 }
 0xaf1   : > { %v11881_v3 = vpop.f32.mrf.mxu0  ;;  %18866 = vmatmul.mubr.bf16.vlgmr.msra.gmra.mxu0 %v12257_v40 }
 0xaf2   : > { %v11882_v23 = vadd.f32 %v11881_v3, %v11842_v36  ;;  %v17696_v17 = vpop.f32.mrf.mxu1  ;;  %12415 = vmatmul.mubr.bf16.vlgmr.msra.gmra.mxu1 %v26315_v18  ;;  %17915 = vmatpush3.bf16.msra.mxu0 %v19745_v33  ;;  %v26647_v36 = vld [vmem:[%s27257_s4] sm:$0x1] }
 0xaf3   : > { %12454 = vmatprep.mubr.bf16.mxu0 %v12257_v40  ;;  %18870 = vmatpush3.bf16.msra.mxu1 %v26069_v5  ;;  %v18787_v49 = vpop.f32.mrf.mxu0  ;;  %v26658_v0 = vrot.slane %v26647_v36, %v28333_v1  ;;  %v19465_v33 = vld [vmem:[%s27258_s5 + $0x100] sm:$0xff]  }
 0xaf4   : > { %v26542_v63 = vadd.f32 %v11882_v23, %v25798_v28  ;;  %v17697_v2 = vpop.f32.mrf.mxu1  ;;  %17916 = vmatprep.subr.bf16.mxu0 %v19746_v59  ;;  %18871 = vmatprep.subr.bf16.mxu1 %v27973_v46  ;;  %v19747_v28 = vld [vmem:[%s27256_s3 + $0x5b0] sm:$0xff]   ;;  %v19464_v23 = vld [vmem:[%s27258_s5 + $0x8] sm:$0xff]   ;;  %v19467_v59 = vld [vmem:[%s27258_s5 + $0x238] sm:$0xff]  }
 0xaf5   : > { %v26548_v18 = vadd.f32 %v17697_v2, %v17696_v17  ;;  %v11884_v45 = vpop.f32.mrf.mxu0  ;;  %18885 = vmatprep.mubr.msk.bf16.mxu1 %vm19824_vm11, %v27973_v46  ;;  %v12534_v40 = vadd.f32 %v26658_v0, %v12508_v30  ;;  %v12509_v17 = vadd.f32 %v12508_v30, %v26647_v36 }
 0xaf6   : > { %v17699_v4 = vpop.f32.mrf.mxu1  ;;  %17917 = vmatpush3.bf16.msra.mxu0 %v19747_v28  ;;  %v19468_v45 = vld [vmem:[%s27258_s5 + $0x338] sm:$0xff]  }
 0xaf7   : > { %18872 = vmatpush3.bf16.msra.mxu1 %v26083_v25  ;;  %v18788_v5 = vpop.f32.mrf.mxu0  ;;  %17918 = vmatprep.subr.bf16.mxu0 %v19748_v12  ;;  %v19750_v25 = vld [vmem:[%s27256_s3 + $0x5e0] sm:$0xff]   ;;  %v12535_v3 = vmax.f32 %v12534_v40, 0.0  ;;  %v12510_v2 = vmax.f32 %v12509_v17, 0.0  ;;  %v19469_v12 = vld [vmem:[%s27258_s5 + $0x230] sm:$0xff]   ;;  %v19488_v40 = vld [vmem:[%s27258_s5 + $0x168] sm:$0xff]  }
 0xaf8   : > { %v17700_v7 = vpop.f32.mrf.mxu1  ;;  %18873 = vmatprep.subr.bf16.mxu1 %v27973_v46  ;;  %v19491_v17 = vld [vmem:[%s27258_s5 + $0x58] sm:$0xff]  }
 0xaf9   : > { %v26687_v49 = vpack.c.bf16 %v12535_v3, %v12535_v3  ;;  %v12511_v4 = vpack.c.bf16 %v12510_v2, %v12510_v2  ;;  %v19490_v3 = vld [vmem:[%s27258_s5 + $0x160] sm:$0xff]   ;;  %v19494_v2 = vld [vmem:[%s27258_s5 + $0x150] sm:$0xff]  }
 0xafa   : > { %17919 = vmatpush3.bf16.msra.mxu0 %v19749_v50  ;;  %v19470_v50 = vld [vmem:[%s27258_s5 + $0x330] sm:$0xff]  }
 0xafb   : > { %18874 = vmatpush3.bf16.msra.mxu1 %v26095_v53  ;;  %17920 = vmatprep.subr.bf16.mxu0 %v19750_v25  ;;  %v19753_v53 = vld [vmem:[%s27256_s3 + $0x598] sm:$0xff]  }
 0xafc   : > { %18875 = vmatprep.subr.bf16.mxu1 %v27973_v46 }
 0xafe   : > { %17921 = vmatpush3.bf16.msra.mxu0 %v19751_v47 }
 0xaff   : > { %18876 = vmatpush3.bf16.msra.mxu1 %v26104_v62  ;;  %17922 = vmatprep.subr.bf16.mxu0 %v19752_v21  ;;  %v19755_v62 = vld [vmem:[%s27256_s3 + $0x590] sm:$0xff]  }
 0xb00   : > { %18877 = vmatprep.subr.bf16.mxu1 %v27973_v46 }
 0xb02   : > { %17923 = vmatpush3.bf16.msra.mxu0 %v19753_v53 }
 0xb03   : > { %18878 = vmatpush3.bf16.msra.mxu1 %v26113_v61  ;;  %17924 = vmatprep.subr.bf16.mxu0 %v19754_v26  ;;  %v19757_v61 = vld [vmem:[%s27256_s3 + $0x588] sm:$0xff]  }
 0xb04   : > { %18879 = vmatprep.subr.bf16.mxu1 %v27973_v46 }
 0xb06   : > { %17925 = vmatpush3.bf16.msra.mxu0 %v19755_v62  ;;  %v19471_v62 = vld [vmem:[%s27258_s5 + $0x228] sm:$0xff]  }
 0xb07   : > { %18880 = vmatpush3.bf16.msra.mxu1 %v26122_v19  ;;  %17926 = vmatprep.subr.bf16.mxu0 %v19756_v57  ;;  %v19759_v19 = vld [vmem:[%s27256_s3 + $0x580] sm:$0xff]  }
 0xb08   : > { %18881 = vmatprep.subr.bf16.mxu1 %v27973_v46 }
 0xb0a   : > { %17927 = vmatpush3.bf16.msra.mxu0 %v19757_v61  ;;  %v19472_v61 = vld [vmem:[%s27258_s5 + $0x328] sm:$0xff]  }
 0xb0b   : > { %18882 = vmatpush3.bf16.msra.mxu1 %v26131_v27  ;;  %17928 = vmatprep.subr.bf16.mxu0 %v19758_v16  ;;  %v19452_v27 = vld [vmem:[%s27258_s5 + $0x38] sm:$0xff]  }
 0xb0c   : > { %18883 = vmatprep.subr.bf16.mxu1 %v27973_v46 }
 0xb0e   : > { %17929 = vmatpush3.bf16.msra.mxu0 %v19759_v19 }
 0xb0f   : > { %18884 = vmatpush3.bf16.msra.mxu1 %v26140_v48  ;;  %18889 = vmatprep.subr.bf16.mxu0 %v27973_v46  ;;  %v19453_v48 = vld [vmem:[%s27258_s5 + $0x130] sm:$0xff]  }
 0xb10   : > { %18909 = vmatprep.subr.bf16.mxu1 %v27973_v46 }
 0xb11   : > { %v17718_v39 = vpop.f32.mrf.mxu0  ;;  %12455 = vmatmul.mubr.bf16.vlgmr.msra.gmra.mxu0 %v26437_v15 }
 0xb12   : > { %v12004_v10 = vpop.f32.mrf.mxu1  ;;  %18886 = vmatmul.mubr.bf16.vlgmr.msra.gmra.mxu1 %v12380_v55  ;;  %18890 = vmatpush3.bf16.msra.mxu0 %v19451_v24  ;;  %v19473_v24 = vld [vmem:[%s27258_s5 + $0x220] sm:$0xff]   ;;  %v19476_v55 = vld [vmem:[%s27258_s5 + $0x318] sm:$0xff]  }
 0xb13   : > { %18910 = vmatpush3.bf16.msra.mxu1 %v19452_v27  ;;  %v17719_v58 = vpop.f32.mrf.mxu0  ;;  %18891 = vmatprep.subr.bf16.mxu0 %v27973_v46  ;;  %v19474_v27 = vld [vmem:[%s27258_s5 + $0x320] sm:$0xff]  }
 0xb14   : > { %v17720_v32 = vadd.f32 %v17719_v58, %v17718_v39  ;;  %v18807_v60 = vpop.f32.mrf.mxu1  ;;  %18911 = vmatprep.subr.bf16.mxu1 %v27973_v46  ;;  %18905 = vmatprep.mubr.msk.bf16.mxu0 %vm19824_vm11, %v27973_v46  ;;  %v19477_v39 = vld [vmem:[%s27258_s5 + $0x210] sm:$0xff]   ;;  %v19480_v58 = vld [vmem:[%s27258_s5 + $0x308] sm:$0xff]  }
 0xb15   : > { %v17721_v15 = vpop.f32.mrf.mxu0  ;;  %18925 = vmatprep.mubr.msk.bf16.mxu1 %vm19824_vm11, %v27973_v46  ;;  %v19483_v60 = vld [vmem:[%s27258_s5 + $0x78] sm:$0xff]  }
 0xb16   : > { %v11965_v11 = vadd.f32 %v17720_v32, %v26548_v18  ;;  %v12007_v13 = vpop.f32.mrf.mxu1  ;;  %18892 = vmatpush3.bf16.msra.mxu0 %v19453_v48  ;;  %v12555_v18 = vrot.slane %v26687_v49, 1  ;;  %v19479_v48 = vld [vmem:[%s27258_s5 + $0x208] sm:$0xff]   ;;  %v19482_v32 = vld [vmem:[%s27258_s5 + $0x300] sm:$0xff]   ;;  %v12750_v15 = vrot.slane %v26687_v49, 2 }
 0xb17   : > { %18912 = vmatpush3.bf16.msra.mxu1 %v19454_v44  ;;  %v17722_v20 = vpop.f32.mrf.mxu0  ;;  %18893 = vmatprep.subr.bf16.mxu0 %v27973_v46  ;;  %v19481_v44 = vld [vmem:[%s27258_s5 + $0x200] sm:$0xff]   ;;  %v12858_v13 = vrot.slane %v26687_v49, 3 }
 0xb18   : > { %v12005_v22 = vadd.f32 %v12004_v10, %v11965_v11  ;;  %v18808_v6 = vpop.f32.mrf.mxu1  ;;  %18913 = vmatprep.subr.bf16.mxu1 %v27973_v46  ;;  %v19478_v10 = vld [vmem:[%s27258_s5 + $0x310] sm:$0xff]   ;;  %v19484_v11 = vld [vmem:[%s27258_s5 + $0x178] sm:$0xff]  }
 0xb1a   : > { %v12010_v31 = vadd.f32 %v12005_v22, %v25953_v35  ;;  %18894 = vmatpush3.bf16.msra.mxu0 %v19455_v9  ;;  %v19485_v22 = vld [vmem:[%s27258_s5 + $0x70] sm:$0xff]  }
 0xb1b   : > { %18914 = vmatpush3.bf16.msra.mxu1 %v19456_v52  ;;  %18895 = vmatprep.subr.bf16.mxu0 %v27973_v46 }
 0xb1c   : > { %v26650_v35 = vmax.f32 %v26542_v63, %v12010_v31  ;;  %18915 = vmatprep.subr.bf16.mxu1 %v27973_v46  ;;  %v19466_v63 = vld [vmem:[%s27258_s5] sm:$0xff]   ;;  %v19486_v31 = vld [vmem:[%s27258_s5 + $0x170] sm:$0xff]  }
 0xb1e   : > { %18896 = vmatpush3.bf16.msra.mxu0 %v19457_v29  ;;  %v28334_v29 = vld [vmem:[#allocation36_spill] sm:$0xff] }
 0xb1f   : > { %18916 = vmatpush3.bf16.msra.mxu1 %v19458_v8  ;;  %18897 = vmatprep.subr.bf16.mxu0 %v27973_v46 }
 0xb20   : > { %18917 = vmatprep.subr.bf16.mxu1 %v27973_v46 }
 0xb22   : > { %18898 = vmatpush3.bf16.msra.mxu0 %v19459_v34 }
 0xb23   : > { %18918 = vmatpush3.bf16.msra.mxu1 %v19460_v38  ;;  %18899 = vmatprep.subr.bf16.mxu0 %v27973_v46  ;;  %v19487_v38 = vld [vmem:[%s27258_s5 + $0x68] sm:$0xff]  }
 0xb24   : > { %18919 = vmatprep.subr.bf16.mxu1 %v27973_v46 }
 0xb26   : > { %18900 = vmatpush3.bf16.msra.mxu0 %v19461_v42 }
 0xb27   : > { %18920 = vmatpush3.bf16.msra.mxu1 %v19462_v51  ;;  %18901 = vmatprep.subr.bf16.mxu0 %v27973_v46 }
 0xb28   : > { %18921 = vmatprep.subr.bf16.mxu1 %v27973_v46 }
 0xb2a   : > { %18902 = vmatpush3.bf16.msra.mxu0 %v19463_v14  ;;  %v19489_v14 = vld [vmem:[%s27258_s5 + $0x60] sm:$0xff]  }
 0xb2b   : > { %18922 = vmatpush3.bf16.msra.mxu1 %v19464_v23  ;;  %18903 = vmatprep.subr.bf16.mxu0 %v27973_v46  ;;  %v12951_v23 = vrot.slane %v26650_v35, 1 }
 0xb2c   : > { %18923 = vmatprep.subr.bf16.mxu1 %v27973_v46 }
 0xb2d   : > { %v12953_v49 = vmax.f32 %v26650_v35, %v12951_v23  ;;  %v19495_v35 = vld [vmem:[%s27258_s5 + $0x48] sm:$0xff]  }
 0xb2e   : > { %18904 = vmatpush3.bf16.msra.mxu0 %v19465_v33  ;;  %v19492_v33 = vld [vmem:[%s27258_s5 + $0x158] sm:$0xff]  }
 0xb2f   : > { %18924 = vmatpush3.bf16.msra.mxu1 %v19466_v63  ;;  %18929 = vmatprep.subr.bf16.mxu0 %v27973_v46  ;;  %v19493_v63 = vld [vmem:[%s27258_s5 + $0x50] sm:$0xff]  }
 0xb30   : > { %18949 = vmatprep.subr.bf16.mxu1 %v27973_v46 }
 0xb31   : > { %v17749_v28 = vpop.f32.mrf.mxu0  ;;  %18906 = vmatmul.mubr.bf16.vlgmr.msra.gmra.mxu0 %v12555_v18  ;;  %v12954_v18 = vadd.f32 %v12953_v49, %v26647_v36 }
 0xb32   : > { %v17771_v5 = vpop.f32.mrf.mxu1  ;;  %18926 = vmatmul.mubr.bf16.vlgmr.msra.gmra.mxu1 %v12511_v4  ;;  %18930 = vmatpush3.bf16.msra.mxu0 %v19467_v59  ;;  %v13063_v59 = vadd.f32 %v12953_v49, %v26658_v0  ;;  %v19520_v49 = vld [vmem:[%s27258_s5 + $0x1a8] sm:$0xff]  }
 0xb33   : > { %18950 = vmatpush3.bf16.msra.mxu1 %v19468_v45  ;;  %v17750_v7 = vpop.f32.mrf.mxu0  ;;  %18931 = vmatprep.subr.bf16.mxu0 %v27973_v46  ;;  %v19496_v45 = vld [vmem:[%s27258_s5 + $0x148] sm:$0xff]  }
 0xb34   : > { %v17751_v25 = vadd.f32 %v17750_v7, %v17749_v28  ;;  %v17772_v47 = vpop.f32.mrf.mxu1  ;;  %18951 = vmatprep.subr.bf16.mxu1 %v27973_v46  ;;  %18945 = vmatprep.mubr.msk.bf16.mxu0 %vm19824_vm11, %v27973_v46  ;;  %v13064_v4 = vmax.f32 %v13063_v59, 0.0  ;;  %v19497_v28 = vld [vmem:[%s27258_s5 + $0x40] sm:$0xff]  }
 0xb35   : > { %v17773_v21 = vadd.f32 %v17772_v47, %v17771_v5  ;;  %v17752_v53 = vpop.f32.mrf.mxu0  ;;  %18965 = vmatprep.mubr.msk.bf16.mxu1 %vm19824_vm11, %v27973_v46  ;;  %v19498_v5 = vld [vmem:[%s27258_s5 + $0x140] sm:$0xff]   ;;  %v19500_v47 = vld [vmem:[%s27258_s5 + $0x378] sm:$0xff]  }
 0xb36   : > { %v17774_v26 = vpop.f32.mrf.mxu1  ;;  %18932 = vmatpush3.bf16.msra.mxu0 %v19469_v12  ;;  %v12955_v12 = vmax.f32 %v12954_v18, 0.0  ;;  %v26841_v7 = vpack.c.bf16 %v13064_v4, %v13064_v4  ;;  %v19521_v59 = vld [vmem:[%s27258_s5 + $0xa0] sm:$0xff]   ;;  %v19524_v4 = vld [vmem:[%s27258_s5 + $0x198] sm:$0xff]  }
 0xb37   : > { %18952 = vmatpush3.bf16.msra.mxu1 %v19470_v50  ;;  %v17753_v57 = vpop.f32.mrf.mxu0  ;;  %18933 = vmatprep.subr.bf16.mxu0 %v27973_v46  ;;  %v12088_v16 = vadd.f32 %v17773_v21, %v17751_v25  ;;  %v19499_v50 = vld [vmem:[%s27258_s5 + $0x278] sm:$0xff]  }
 0xb38   : > { %v17775_v19 = vpop.f32.mrf.mxu1  ;;  %18953 = vmatprep.subr.bf16.mxu1 %v27973_v46  ;;  %v12956_v25 = vpack.c.bf16 %v12955_v12, %v12955_v12  ;;  %v13084_v21 = vrot.slane %v26841_v7, 1  ;;  %v19526_v12 = vld [vmem:[%s27258_s5 + $0x190] sm:$0xff]  }
 0xb3a   : > { %18934 = vmatpush3.bf16.msra.mxu0 %v19471_v62  ;;  %v19501_v62 = vld [vmem:[%s27258_s5 + $0x270] sm:$0xff]  }
 0xb3b   : > { %18954 = vmatpush3.bf16.msra.mxu1 %v19472_v61  ;;  %18935 = vmatprep.subr.bf16.mxu0 %v27973_v46  ;;  %v19502_v61 = vld [vmem:[%s27258_s5 + $0x370] sm:$0xff]  }
 0xb3c   : > { %18955 = vmatprep.subr.bf16.mxu1 %v27973_v46 }
 0xb3e   : > { %18936 = vmatpush3.bf16.msra.mxu0 %v19473_v24 }
 0xb3f   : > { %18956 = vmatpush3.bf16.msra.mxu1 %v19474_v27  ;;  %18937 = vmatprep.subr.bf16.mxu0 %v27973_v46 }
 0xb40   : > { %18957 = vmatprep.subr.bf16.mxu1 %v27973_v46 }
 0xb42   : > { %18938 = vmatpush3.bf16.msra.mxu0 %v19475_v41 }
 0xb43   : > { %18958 = vmatpush3.bf16.msra.mxu1 %v19476_v55  ;;  %18939 = vmatprep.subr.bf16.mxu0 %v27973_v46  ;;  %v19503_v55 = vld [vmem:[%s27258_s5 + $0x268] sm:$0xff]  }
 0xb44   : > { %18959 = vmatprep.subr.bf16.mxu1 %v27973_v46 }
 0xb46   : > { %18940 = vmatpush3.bf16.msra.mxu0 %v19477_v39 }
 0xb47   : > { %18960 = vmatpush3.bf16.msra.mxu1 %v19478_v10  ;;  %18941 = vmatprep.subr.bf16.mxu0 %v27973_v46  ;;  %v19504_v10 = vld [vmem:[%s27258_s5 + $0x368] sm:$0xff]  }
 0xb48   : > { %18961 = vmatprep.subr.bf16.mxu1 %v27973_v46 }
 0xb4a   : > { %18942 = vmatpush3.bf16.msra.mxu0 %v19479_v48 }
 0xb4b   : > { %18962 = vmatpush3.bf16.msra.mxu1 %v19480_v58  ;;  %18943 = vmatprep.subr.bf16.mxu0 %v27973_v46 }
 0xb4c   : > { %18963 = vmatprep.subr.bf16.mxu1 %v27973_v46 }
 0xb4e   : > { %18944 = vmatpush3.bf16.msra.mxu0 %v19481_v44 }
 0xb4f   : > { %18964 = vmatpush3.bf16.msra.mxu1 %v19482_v32  ;;  %18969 = vmatprep.subr.bf16.mxu0 %v27973_v46  ;;  %v19505_v32 = vld [vmem:[%s27258_s5 + $0x260] sm:$0xff]  }
 0xb50   : > { %18989 = vmatprep.subr.bf16.mxu1 %v27973_v46 }
 0xb51   : > { %v12127_v9 = vpop.f32.mrf.mxu0  ;;  %18946 = vmatmul.mubr.bf16.vlgmr.msra.gmra.mxu0 %v12750_v15 }
 0xb52   : > { %v12128_v20 = vadd.f32 %v12127_v9, %v12088_v16  ;;  %v17802_v52 = vpop.f32.mrf.mxu1  ;;  %18966 = vmatmul.mubr.bf16.vlgmr.msra.gmra.mxu1 %v12858_v13  ;;  %18970 = vmatpush3.bf16.msra.mxu0 %v19483_v60  ;;  %v19506_v60 = vld [vmem:[%s27258_s5 + $0x360] sm:$0xff]   ;;  %v19509_v13 = vld [vmem:[%s27258_s5 + $0x250] sm:$0xff]  }
 0xb53   : > { %18990 = vmatpush3.bf16.msra.mxu1 %v19484_v11  ;;  %v18827_v6 = vpop.f32.mrf.mxu0  ;;  %18971 = vmatprep.subr.bf16.mxu0 %v27973_v46  ;;  %v19508_v11 = vld [vmem:[%s27258_s5 + $0x358] sm:$0xff]   ;;  %v19510_v9 = vld [vmem:[%s27258_s5 + $0x350] sm:$0xff]  }
 0xb54   : > { %v26781_v54 = vadd.f32 %v12128_v20, %v28334_v29  ;;  %v17803_v8 = vpop.f32.mrf.mxu1  ;;  %18991 = vmatprep.subr.bf16.mxu1 %v27973_v46  ;;  %18985 = vmatprep.mubr.msk.bf16.mxu0 %vm19824_vm11, %v27973_v46  ;;  %v19511_v20 = vld [vmem:[%s27258_s5 + $0x248] sm:$0xff]   ;;  %v19514_v6 = vld [vmem:[%s27258_s5 + $0x340] sm:$0xff]   ;;  %v13192_v29 = vrot.slane %v26841_v7, 2 }
 0xb55   : > { %v26786_v34 = vadd.f32 %v17803_v8, %v17802_v52  ;;  %v12130_v1 = vpop.f32.mrf.mxu0  ;;  %19005 = vmatprep.mubr.msk.bf16.mxu1 %vm19824_vm11, %v27973_v46  ;;  %v19512_v52 = vld [vmem:[%s27258_s5 + $0x348] sm:$0xff]   ;;  %v13300_v8 = vrot.slane %v26841_v7, 3 }
 0xb56   : > { %v17805_v30 = vpop.f32.mrf.mxu1  ;;  %18972 = vmatpush3.bf16.msra.mxu0 %v19485_v22  ;;  %v19513_v22 = vld [vmem:[%s27258_s5 + $0x240] sm:$0xff]  }
 0xb57   : > { %18992 = vmatpush3.bf16.msra.mxu1 %v19486_v31  ;;  %v18828_v42 = vpop.f32.mrf.mxu0  ;;  %18973 = vmatprep.subr.bf16.mxu0 %v27973_v46  ;;  %v19515_v31 = vld [vmem:[%s27258_s5 + $0xb8] sm:$0xff]   ;;  %v19517_v30 = vld [vmem:[%s27258_s5 + $0xb0] sm:$0xff]  }
 0xb58   : > { %v17806_v51 = vpop.f32.mrf.mxu1  ;;  %18993 = vmatprep.subr.bf16.mxu1 %v27973_v46  ;;  %v19518_v42 = vld [vmem:[%s27258_s5 + $0x1b0] sm:$0xff]  }
 0xb5a   : > { %18974 = vmatpush3.bf16.msra.mxu0 %v19487_v38 }
 0xb5b   : > { %18994 = vmatpush3.bf16.msra.mxu1 %v19488_v40  ;;  %18975 = vmatprep.subr.bf16.mxu0 %v27973_v46 }
 0xb5c   : > { %18995 = vmatprep.subr.bf16.mxu1 %v27973_v46 }
 0xb5e   : > { %18976 = vmatpush3.bf16.msra.mxu0 %v19489_v14 }
 0xb5f   : > { %18996 = vmatpush3.bf16.msra.mxu1 %v19490_v3  ;;  %18977 = vmatprep.subr.bf16.mxu0 %v27973_v46 }
 0xb60   : > { %18997 = vmatprep.subr.bf16.mxu1 %v27973_v46 }
 0xb62   : > { %18978 = vmatpush3.bf16.msra.mxu0 %v19491_v17  ;;  %v19519_v17 = vld [vmem:[%s27258_s5 + $0xa8] sm:$0xff]  }
 0xb63   : > { %18998 = vmatpush3.bf16.msra.mxu1 %v19492_v33  ;;  %18979 = vmatprep.subr.bf16.mxu0 %v27973_v46 }
 0xb64   : > { %18999 = vmatprep.subr.bf16.mxu1 %v27973_v46 }
 0xb66   : > { %18980 = vmatpush3.bf16.msra.mxu0 %v19493_v63 }
 0xb67   : > { %19000 = vmatpush3.bf16.msra.mxu1 %v19494_v2  ;;  %18981 = vmatprep.subr.bf16.mxu0 %v27973_v46 }
 0xb68   : > { %19001 = vmatprep.subr.bf16.mxu1 %v27973_v46 }
 0xb6a   : > { %18982 = vmatpush3.bf16.msra.mxu0 %v19495_v35  ;;  %v19522_v35 = vld [vmem:[%s27258_s5 + $0x1a0] sm:$0xff]  }
 0xb6b   : > { %19002 = vmatpush3.bf16.msra.mxu1 %v19496_v45  ;;  %18983 = vmatprep.subr.bf16.mxu0 %v27973_v46  ;;  %v19523_v45 = vld [vmem:[%s27258_s5 + $0x98] sm:$0xff]  }
 0xb6c   : > { %19003 = vmatprep.subr.bf16.mxu1 %v27973_v46 }
 0xb6e   : > { %18984 = vmatpush3.bf16.msra.mxu0 %v19497_v28 }
 0xb6f   : > { %19004 = vmatpush3.bf16.msra.mxu1 %v19498_v5  ;;  %19009 = vmatprep.subr.bf16.mxu0 %v27973_v46  ;;  %v19525_v5 = vld [vmem:[%s27258_s5 + $0x90] sm:$0xff]  }
 0xb70   : > { %19029 = vmatprep.subr.bf16.mxu1 %v27973_v46 }
 0xb71   : > { %v17824_v53 = vpop.f32.mrf.mxu0  ;;  %18986 = vmatmul.mubr.bf16.vlgmr.msra.gmra.mxu0 %v12956_v25 }
 0xb72   : > { %v12250_v26 = vpop.f32.mrf.mxu1  ;;  %19006 = vmatmul.mubr.bf16.vlgmr.msra.gmra.mxu1 %v13084_v21  ;;  %19010 = vmatpush3.bf16.msra.mxu0 %v19499_v50  ;;  %v19527_v50 = vld [vmem:[%s27258_s5 + $0x88] sm:$0xff]  }
 0xb73   : > { %19030 = vmatpush3.bf16.msra.mxu1 %v19500_v47  ;;  %v17825_v57 = vpop.f32.mrf.mxu0  ;;  %19011 = vmatprep.subr.bf16.mxu0 %v27973_v46  ;;  %v19528_v47 = vld [vmem:[%s27258_s5 + $0x188] sm:$0xff]  }
 0xb74   : > { %v17826_v16 = vadd.f32 %v17825_v57, %v17824_v53  ;;  %v18847_v19 = vpop.f32.mrf.mxu1  ;;  %19031 = vmatprep.subr.bf16.mxu1 %v27973_v46  ;;  %19025 = vmatprep.mubr.msk.bf16.mxu0 %vm19824_vm11, %v27973_v46  ;;  %v19529_v53 = vld [vmem:[%s27258_s5 + $0x80] sm:$0xff]  }
 0xb75   : > { %v17827_v24 = vpop.f32.mrf.mxu0  ;;  %19045 = vmatprep.mubr.msk.bf16.mxu1 %vm19824_vm11, %v27973_v46  ;;  %v19532_v19 = vld [vmem:[%s27258_s5 + $0x3b8] sm:$0xff]  }
 0xb76   : > { %v12211_v27 = vadd.f32 %v17826_v16, %v26786_v34  ;;  %v12253_v41 = vpop.f32.mrf.mxu1  ;;  %19012 = vmatpush3.bf16.msra.mxu0 %v19501_v62 }
 0xb77   : > { %19032 = vmatpush3.bf16.msra.mxu1 %v19502_v61  ;;  %v17828_v39 = vpop.f32.mrf.mxu0  ;;  %19013 = vmatprep.subr.bf16.mxu0 %v27973_v46  ;;  %v19531_v61 = vld [vmem:[%s27258_s5 + $0x2b8] sm:$0xff]  }
 0xb78   : > { %v12251_v48 = vadd.f32 %v12250_v26, %v12211_v27  ;;  %v18848_v58 = vpop.f32.mrf.mxu1  ;;  %19033 = vmatprep.subr.bf16.mxu1 %v27973_v46  ;;  %v19530_v26 = vld [vmem:[%s27258_s5 + $0x180] sm:$0xff]   ;;  %v19533_v39 = vld [vmem:[%s27258_s5 + $0x2b0] sm:$0xff]  }
 0xb7a   : > { %v12256_v44 = vadd.f32 %v12251_v48, %v26209_v56  ;;  %19014 = vmatpush3.bf16.msra.mxu0 %v19503_v55  ;;  %v19507_v56 = vld [vmem:[%s27258_s5 + $0x258] sm:$0xff]   ;;  %v19534_v48 = vld [vmem:[%s27258_s5 + $0x3b0] sm:$0xff]  }
 0xb7b   : > { %19034 = vmatpush3.bf16.msra.mxu1 %v19504_v10  ;;  %19015 = vmatprep.subr.bf16.mxu0 %v27973_v46 }
 0xb7c   : > { %v26883_v15 = vmax.f32 %v26781_v54, %v12256_v44  ;;  %19035 = vmatprep.subr.bf16.mxu1 %v27973_v46  ;;  %v19516_v54 = vld [vmem:[%s27258_s5 + $0x1b8] sm:$0xff]  }
 0xb7e   : > { %19016 = vmatpush3.bf16.msra.mxu0 %v19505_v32  ;;  %v13393_v18 = vrot.slane %v26883_v15, 1 }
 0xb7f   : > { %19036 = vmatpush3.bf16.msra.mxu1 %v19506_v60  ;;  %19017 = vmatprep.subr.bf16.mxu0 %v27973_v46 }
 0xb80   : > { %19037 = vmatprep.subr.bf16.mxu1 %v27973_v46  ;;  %v13395_v28 = vmax.f32 %v26883_v15, %v13393_v18  ;;  %v19535_v15 = vld [vmem:[%s27258_s5 + $0x2a8] sm:$0xff]  }
 0xb81   : > { %v19552_v18 = vld [vmem:[%s27258_s5 + $0x1e8] sm:$0xff]  }
 0xb82   : > { %19018 = vmatpush3.bf16.msra.mxu0 %v19507_v56  ;;  %v13505_v7 = vadd.f32 %v13395_v28, %v26658_v0  ;;  %v13396_v25 = vadd.f32 %v13395_v28, %v26647_v36 }
 0xb83   : > { %19038 = vmatpush3.bf16.msra.mxu1 %v19508_v11  ;;  %19019 = vmatprep.subr.bf16.mxu0 %v27973_v46 }
 0xb84   : > { %19039 = vmatprep.subr.bf16.mxu1 %v27973_v46  ;;  %v13506_v21 = vmax.f32 %v13505_v7, 0.0  ;;  %v13397_v62 = vmax.f32 %v13396_v25, 0.0  ;;  %v19556_v25 = vld [vmem:[%s27258_s5 + $0x1d8] sm:$0xff]  }
 0xb86   : > { %19020 = vmatpush3.bf16.msra.mxu0 %v19509_v13  ;;  %v26991_v57 = vpack.c.bf16 %v13506_v21, %v13506_v21  ;;  %v13398_v16 = vpack.c.bf16 %v13397_v62, %v13397_v62  ;;  %v19537_v13 = vld [vmem:[%s27258_s5 + $0x2a0] sm:$0xff]   ;;  %v19557_v21 = vld [vmem:[%s27258_s5 + $0xd0] sm:$0xff]   ;;  %v19559_v62 = vld [vmem:[%s27258_s5 + $0xc8] sm:$0xff]  }
 0xb87   : > { %19040 = vmatpush3.bf16.msra.mxu1 %v19510_v9  ;;  %19021 = vmatprep.subr.bf16.mxu0 %v27973_v46  ;;  %v19538_v9 = vld [vmem:[%s27258_s5 + $0x3a0] sm:$0xff]  }
 0xb88   : > { %19041 = vmatprep.subr.bf16.mxu1 %v27973_v46  ;;  %v13526_v24 = vrot.slane %v26991_v57, 1 }
 0xb8a   : > { %19022 = vmatpush3.bf16.msra.mxu0 %v19511_v20  ;;  %v19539_v20 = vld [vmem:[%s27258_s5 + $0x298] sm:$0xff]  }
 0xb8b   : > { %19042 = vmatpush3.bf16.msra.mxu1 %v19512_v52  ;;  %19023 = vmatprep.subr.bf16.mxu0 %v27973_v46  ;;  %v19540_v52 = vld [vmem:[%s27258_s5 + $0x398] sm:$0xff]  }
 0xb8c   : > { %19043 = vmatprep.subr.bf16.mxu1 %v27973_v46 }
 0xb8e   : > { %19024 = vmatpush3.bf16.msra.mxu0 %v19513_v22  ;;  %v19541_v22 = vld [vmem:[%s27258_s5 + $0x290] sm:$0xff]  }
 0xb8f   : > { %19044 = vmatpush3.bf16.msra.mxu1 %v19514_v6  ;;  %19049 = vmatprep.subr.bf16.mxu0 %v27973_v46  ;;  %v19542_v6 = vld [vmem:[%s27258_s5 + $0x390] sm:$0xff]  }
 0xb90   : > { %19069 = vmatprep.subr.bf16.mxu1 %v27973_v46 }
 0xb91   : > { %v17855_v34 = vpop.f32.mrf.mxu0  ;;  %19026 = vmatmul.mubr.bf16.vlgmr.msra.gmra.mxu0 %v13192_v29  ;;  %v19544_v29 = vld [vmem:[%s27258_s5 + $0x388] sm:$0xff]  }
 0xb92   : > { %v17877_v1 = vpop.f32.mrf.mxu1  ;;  %19046 = vmatmul.mubr.bf16.vlgmr.msra.gmra.mxu1 %v13300_v8  ;;  %19050 = vmatpush3.bf16.msra.mxu0 %v19515_v31  ;;  %v19543_v31 = vld [vmem:[%s27258_s5 + $0x288] sm:$0xff]   ;;  %v19546_v8 = vld [vmem:[%s27258_s5 + $0x380] sm:$0xff]  }
 0xb93   : > { %19070 = vmatpush3.bf16.msra.mxu1 %v19516_v54  ;;  %v17856_v38 = vpop.f32.mrf.mxu0  ;;  %19051 = vmatprep.subr.bf16.mxu0 %v27973_v46  ;;  %v19545_v54 = vld [vmem:[%s27258_s5 + $0x280] sm:$0xff]  }
 0xb94   : > { %v17857_v40 = vadd.f32 %v17856_v38, %v17855_v34  ;;  %v17878_v51 = vpop.f32.mrf.mxu1  ;;  %19071 = vmatprep.subr.bf16.mxu1 %v27973_v46  ;;  %19065 = vmatprep.mubr.msk.bf16.mxu0 %vm19824_vm11, %v27973_v46  ;;  %v19547_v34 = vld [vmem:[%s27258_s5 + $0xf8] sm:$0xff]   ;;  %v13742_v38 = vrot.slane %v26991_v57, 3 }
 0xb95   : > { %v17879_v14 = vadd.f32 %v17878_v51, %v17877_v1  ;;  %v17858_v3 = vpop.f32.mrf.mxu0  ;;  %19085 = vmatprep.mubr.msk.bf16.mxu1 %vm19824_vm11, %v27973_v46  ;;  %v13634_v1 = vrot.slane %v26991_v57, 2  ;;  %v19549_v51 = vld [vmem:[%s27258_s5 + $0xf0] sm:$0xff]  }
 0xb96   : > { %v17880_v23 = vpop.f32.mrf.mxu1  ;;  %19052 = vmatpush3.bf16.msra.mxu0 %v19517_v30  ;;  %v19548_v30 = vld [vmem:[%s27258_s5 + $0x1f8] sm:$0xff]   ;;  %v19550_v3 = vld [vmem:[%s27258_s5 + $0x1f0] sm:$0xff]  }
 0xb97   : > { %19072 = vmatpush3.bf16.msra.mxu1 %v19518_v42  ;;  %v17859_v33 = vpop.f32.mrf.mxu0  ;;  %19053 = vmatprep.subr.bf16.mxu0 %v27973_v46  ;;  %v12334_v63 = vadd.f32 %v17879_v14, %v17857_v40 }
 0xb98   : > { %v17881_v2 = vpop.f32.mrf.mxu1  ;;  %19073 = vmatprep.subr.bf16.mxu1 %v27973_v46 }
 0xb9a   : > { %19054 = vmatpush3.bf16.msra.mxu0 %v19519_v17 }
 0xb9b   : > { %19074 = vmatpush3.bf16.msra.mxu1 %v19520_v49  ;;  %19055 = vmatprep.subr.bf16.mxu0 %v27973_v46 }
 0xb9c   : > { %19075 = vmatprep.subr.bf16.mxu1 %v27973_v46 }
 0xb9e   : > { %19056 = vmatpush3.bf16.msra.mxu0 %v19521_v59  ;;  %v19551_v59 = vld [vmem:[%s27258_s5 + $0xe8] sm:$0xff]  }
 0xb9f   : > { %19076 = vmatpush3.bf16.msra.mxu1 %v19522_v35  ;;  %19057 = vmatprep.subr.bf16.mxu0 %v27973_v46 }
 0xba0   : > { %19077 = vmatprep.subr.bf16.mxu1 %v27973_v46 }
 0xba2   : > { %19058 = vmatpush3.bf16.msra.mxu0 %v19523_v45 }
 0xba3   : > { %19078 = vmatpush3.bf16.msra.mxu1 %v19524_v4  ;;  %19059 = vmatprep.subr.bf16.mxu0 %v27973_v46 }
 0xba4   : > { %19079 = vmatprep.subr.bf16.mxu1 %v27973_v46 }
 0xba6   : > { %19060 = vmatpush3.bf16.msra.mxu0 %v19525_v5  ;;  %v19553_v5 = vld [vmem:[%s27258_s5 + $0xe0] sm:$0xff]  }
 0xba7   : > { %19080 = vmatpush3.bf16.msra.mxu1 %v19526_v12  ;;  %19061 = vmatprep.subr.bf16.mxu0 %v27973_v46  ;;  %v19554_v12 = vld [vmem:[%s27258_s5 + $0x1e0] sm:$0xff]  }
 0xba8   : > { %19081 = vmatprep.subr.bf16.mxu1 %v27973_v46 }
 0xbaa   : > { %19062 = vmatpush3.bf16.msra.mxu0 %v19527_v50 }
 0xbab   : > { %19082 = vmatpush3.bf16.msra.mxu1 %v19528_v47  ;;  %19063 = vmatprep.subr.bf16.mxu0 %v27973_v46 }
 0xbac   : > { %19083 = vmatprep.subr.bf16.mxu1 %v27973_v46 }
 0xbae   : > { %19064 = vmatpush3.bf16.msra.mxu0 %v19529_v53  ;;  %v19558_v53 = vld [vmem:[%s27258_s5 + $0x1d0] sm:$0xff]  }
 0xbaf   : > { %19084 = vmatpush3.bf16.msra.mxu1 %v19530_v26  ;;  %19089 = vmatprep.subr.bf16.mxu0 %v27973_v46 }
 0xbb0   : > { %19109 = vmatprep.subr.bf16.mxu1 %v27973_v46 }
 0xbb1   : > { %v12373_v27 = vpop.f32.mrf.mxu0  ;;  %19066 = vmatmul.mubr.bf16.vlgmr.msra.gmra.mxu0 %v13398_v16 }
 0xbb2   : > { %v12374_v41 = vadd.f32 %v12373_v27, %v12334_v63  ;;  %v27003_v55 = vpop.f32.mrf.mxu1  ;;  %19086 = vmatmul.mubr.bf16.vlgmr.msra.gmra.mxu1 %v13526_v24  ;;  %19090 = vmatpush3.bf16.msra.mxu0 %v19531_v61  ;;  %v19560_v61 = vld [vmem:[%s27258_s5 + $0x1c8] sm:$0xff]   ;;  %v19563_v27 = vld [vmem:[%s27258_s5 + $0x2f8] sm:$0xff]  }
 0xbb3   : > { %19110 = vmatpush3.bf16.msra.mxu1 %v19532_v19  ;;  %v18867_v10 = vpop.f32.mrf.mxu0  ;;  %19091 = vmatprep.subr.bf16.mxu0 %v27973_v46 }
 0xbb4   : > { %v27013_v58 = vadd.f32 %v12374_v41, %v26281_v37  ;;  %v17909_v44 = vpop.f32.mrf.mxu1  ;;  %19111 = vmatprep.subr.bf16.mxu1 %v27973_v46  ;;  %19105 = vmatprep.mubr.msk.bf16.mxu0 %vm19824_vm11, %v27973_v46  ;;  %v19536_v37 = vld [vmem:[%s27258_s5 + $0x3a8] sm:$0xff]  }
 0xbb5   : > { %v12376_v32 = vpop.f32.mrf.mxu0  ;;  %19125 = vmatprep.mubr.msk.bf16.mxu1 %vm19824_vm11, %v27973_v46  ;;  %v17910_v23 = vadd.f32 %v17909_v44, %v27003_v55  ;;  %v19564_v55 = vld [vmem:[%s27258_s5 + $0x3f8] sm:$0xff]  }
 0xbb6   : > { %v17911_v60 = vpop.f32.mrf.mxu1  ;;  %19092 = vmatpush3.bf16.msra.mxu0 %v19533_v39 }
 0xbb7   : > { %19112 = vmatpush3.bf16.msra.mxu1 %v19534_v48  ;;  %v18868_v56 = vpop.f32.mrf.mxu0  ;;  %19093 = vmatprep.subr.bf16.mxu0 %v27973_v46  ;;  %v19566_v60 = vld [vmem:[%s27258_s5 + $0x3f0] sm:$0xff]  }
 0xbb8   : > { %v17912_v11 = vpop.f32.mrf.mxu1  ;;  %19113 = vmatprep.subr.bf16.mxu1 %v27973_v46 }
 0xbb9   : > { %v19567_v11 = vld [vmem:[%s27258_s5 + $0x2e8] sm:$0xff]  }
 0xbba   : > { %19094 = vmatpush3.bf16.msra.mxu0 %v19535_v15 }
 0xbbb   : > { %19114 = vmatpush3.bf16.msra.mxu1 %v19536_v37  ;;  %19095 = vmatprep.subr.bf16.mxu0 %v27973_v46 }
 0xbbc   : > { %19115 = vmatprep.subr.bf16.mxu1 %v27973_v46 }
 0xbbe   : > { %19096 = vmatpush3.bf16.msra.mxu0 %v19537_v13 }
 0xbbf   : > { %19116 = vmatpush3.bf16.msra.mxu1 %v19538_v9  ;;  %19097 = vmatprep.subr.bf16.mxu0 %v27973_v46  ;;  %v19568_v9 = vld [vmem:[%s27258_s5 + $0x3e8] sm:$0xff]  }
 0xbc0   : > { %19117 = vmatprep.subr.bf16.mxu1 %v27973_v46 }
 0xbc2   : > { %19098 = vmatpush3.bf16.msra.mxu0 %v19539_v20 }
 0xbc3   : > { %19118 = vmatpush3.bf16.msra.mxu1 %v19540_v52  ;;  %19099 = vmatprep.subr.bf16.mxu0 %v27973_v46  ;;  %v19569_v52 = vld [vmem:[%s27258_s5 + $0x2e0] sm:$0xff]  }
 0xbc4   : > { %19119 = vmatprep.subr.bf16.mxu1 %v27973_v46 }
 0xbc6   : > { %19100 = vmatpush3.bf16.msra.mxu0 %v19541_v22  ;;  %v19570_v22 = vld [vmem:[%s27258_s5 + $0x3e0] sm:$0xff]  }
 0xbc7   : > { %19120 = vmatpush3.bf16.msra.mxu1 %v19542_v6  ;;  %19101 = vmatprep.subr.bf16.mxu0 %v27973_v46  ;;  %v19571_v6 = vld [vmem:[%s27258_s5 + $0x2d8] sm:$0xff]  }
 0xbc8   : > { %19121 = vmatprep.subr.bf16.mxu1 %v27973_v46 }
 0xbca   : > { %19102 = vmatpush3.bf16.msra.mxu0 %v19543_v31  ;;  %v19572_v31 = vld [vmem:[%s27258_s5 + $0x3d8] sm:$0xff]  }
 0xbcb   : > { %19122 = vmatpush3.bf16.msra.mxu1 %v19544_v29  ;;  %19103 = vmatprep.subr.bf16.mxu0 %v27973_v46  ;;  %v19573_v29 = vld [vmem:[%s27258_s5 + $0x2d0] sm:$0xff]  }
 0xbcc   : > { %19123 = vmatprep.subr.bf16.mxu1 %v27973_v46 }
 0xbce   : > { %19104 = vmatpush3.bf16.msra.mxu0 %v19545_v54  ;;  %v19574_v54 = vld [vmem:[%s27258_s5 + $0x3d0] sm:$0xff]  }
 0xbcf   : > { %19124 = vmatpush3.bf16.msra.mxu1 %v19546_v8  ;;  %19129 = vmatprep.subr.bf16.mxu0 %v27973_v46  ;;  %v19575_v8 = vld [vmem:[%s27258_s5 + $0x2c8] sm:$0xff]  }
 0xbd0   : > { %19149 = vmatprep.subr.bf16.mxu1 %v27973_v46 }
 0xbd1   : > { %v17930_v42 = vpop.f32.mrf.mxu0  ;;  %19106 = vmatmul.mubr.bf16.vlgmr.msra.gmra.mxu0 %v13634_v1  ;;  %v19577_v1 = vld [vmem:[%s27258_s5 + $0x2c0] sm:$0xff]  }
 0xbd2   : > { %v12496_v40 = vpop.f32.mrf.mxu1  ;;  %19126 = vmatmul.mubr.bf16.vlgmr.msra.gmra.mxu1 %v13742_v38  ;;  %19130 = vmatpush3.bf16.msra.mxu0 %v19547_v34  ;;  %v19576_v34 = vld [vmem:[%s27258_s5 + $0x3c8] sm:$0xff]  }
 0xbd3   : > { %19150 = vmatpush3.bf16.msra.mxu1 %v19548_v30  ;;  %v17931_v14 = vpop.f32.mrf.mxu0  ;;  %19131 = vmatprep.subr.bf16.mxu0 %v27973_v46  ;;  %v19578_v30 = vld [vmem:[%s27258_s5 + $0x3c0] sm:$0xff]  }
 0xbd4   : > { %v17932_v17 = vadd.f32 %v17931_v14, %v17930_v42  ;;  %v18887_v33 = vpop.f32.mrf.mxu1  ;;  %19151 = vmatprep.subr.bf16.mxu1 %v27973_v46  ;;  %19145 = vmatprep.mubr.msk.bf16.mxu0 %vm19824_vm11, %v27973_v46 }
 0xbd5   : > { %v17933_v49 = vpop.f32.mrf.mxu0  ;;  %19165 = vmatprep.mubr.msk.bf16.mxu1 %vm19824_vm11, %v27973_v46 }
 0xbd6   : > { %v12457_v63 = vadd.f32 %v17932_v17, %v17910_v23  ;;  %v12499_v2 = vpop.f32.mrf.mxu1  ;;  %19132 = vmatpush3.bf16.msra.mxu0 %v19549_v51 }
 0xbd7   : > { %19152 = vmatpush3.bf16.msra.mxu1 %v19550_v3  ;;  %v17934_v35 = vpop.f32.mrf.mxu0  ;;  %19133 = vmatprep.subr.bf16.mxu0 %v27973_v46 }
 0xbd8   : > { %v12497_v45 = vadd.f32 %v12496_v40, %v12457_v63  ;;  %v18888_v4 = vpop.f32.mrf.mxu1  ;;  %19153 = vmatprep.subr.bf16.mxu1 %v27973_v46 }
 0xbda   : > { %v12502_v28 = vadd.f32 %v12497_v45, %v26331_v43  ;;  %19134 = vmatpush3.bf16.msra.mxu0 %v19551_v59  ;;  %v19555_v43 = vld [vmem:[%s27258_s5 + $0xd8] sm:$0xff]  }
 0xbdb   : > { %19154 = vmatpush3.bf16.msra.mxu1 %v19552_v18  ;;  %19135 = vmatprep.subr.bf16.mxu0 %v27973_v46 }
 0xbdc   : > { %v13833_v7 = vmax.f32 %v27013_v58, %v12502_v28  ;;  %19155 = vmatprep.subr.bf16.mxu1 %v27973_v46  ;;  %v19565_v58 = vld [vmem:[%s27258_s5 + $0x2f0] sm:$0xff]  }
 0xbde   : > { %v13835_v50 = vrot.slane %v13833_v7, 1  ;;  %19136 = vmatpush3.bf16.msra.mxu0 %v19553_v5 }
 0xbdf   : > { %19156 = vmatpush3.bf16.msra.mxu1 %v19554_v12  ;;  %19137 = vmatprep.subr.bf16.mxu0 %v27973_v46 }
 0xbe0   : > { %v13837_v47 = vmax.f32 %v13833_v7, %v13835_v50  ;;  %19157 = vmatprep.subr.bf16.mxu1 %v27973_v46 }
 0xbe2   : > { %19138 = vmatpush3.bf16.msra.mxu0 %v19555_v43  ;;  %v13947_v26 = vadd.f32 %v13837_v47, %v26658_v0  ;;  %v13838_v57 = vadd.f32 %v13837_v47, %v26647_v36  ;;  %v19561_v0 = vld [vmem:[%s27258_s5 + $0xc0] sm:$0xff]  }
 0xbe3   : > { %19158 = vmatpush3.bf16.msra.mxu1 %v19556_v25  ;;  %19139 = vmatprep.subr.bf16.mxu0 %v27973_v46  ;;  %v19562_v36 = vld [vmem:[%s27258_s5 + $0x1c0] sm:$0xff]  }
 0xbe4   : > { %19159 = vmatprep.subr.bf16.mxu1 %v27973_v46  ;;  %v13948_v16 = vmax.f32 %v13947_v26, 0.0  ;;  %v13839_v19 = vmax.f32 %v13838_v57, 0.0 }
 0xbe6   : > { %19140 = vmatpush3.bf16.msra.mxu0 %v19557_v21  ;;  %v27142_v24 = vpack.c.bf16 %v13948_v16, %v13948_v16  ;;  %v13840_v41 = vpack.c.bf16 %v13839_v19, %v13839_v19 }
 0xbe7   : > { %19160 = vmatpush3.bf16.msra.mxu1 %v19558_v53  ;;  %19141 = vmatprep.subr.bf16.mxu0 %v27973_v46 }
 0xbe8   : > { %19161 = vmatprep.subr.bf16.mxu1 %v27973_v46  ;;  %v13968_v39 = vrot.slane %v27142_v24, 1  ;;  %v14076_v38 = vrot.slane %v27142_v24, 2  ;;  %v14184_v42 = vrot.slane %v27142_v24, 3 }
 0xbea   : > { %19142 = vmatpush3.bf16.msra.mxu0 %v19559_v62 }
 0xbeb   : > { %19162 = vmatpush3.bf16.msra.mxu1 %v19560_v61  ;;  %19143 = vmatprep.subr.bf16.mxu0 %v27973_v46 }
 0xbec   : > { %19163 = vmatprep.subr.bf16.mxu1 %v27973_v46 }
 0xbee   : > { %19144 = vmatpush3.bf16.msra.mxu0 %v19561_v0 }
 0xbef   : > { %19164 = vmatpush3.bf16.msra.mxu1 %v19562_v36  ;;  %19169 = vmatprep.subr.bf16.mxu0 %v27973_v46 }
 0xbf0   : > { %19189 = vmatprep.subr.bf16.mxu1 %v27973_v46 }
 0xbf1   : > { %v12639_v10 = vpop.f32.mrf.mxu0  ;;  %19146 = vmatmul.mubr.bf16.vlgmr.msra.gmra.mxu0 %v13840_v41 }
 0xbf2   : > { %v12727_v48 = vpop.f32.mrf.mxu1  ;;  %19166 = vmatmul.mubr.bf16.vlgmr.msra.gmra.mxu1 %v13968_v39  ;;  %19170 = vmatpush3.bf16.msra.mxu0 %v19563_v27 }
 0xbf3   : > { %v12728_v44 = vadd.f32 %v12727_v48, %v12639_v10  ;;  %19190 = vmatpush3.bf16.msra.mxu1 %v19564_v55  ;;  %v18907_v32 = vpop.f32.mrf.mxu0  ;;  %19171 = vmatprep.subr.bf16.mxu0 %v27973_v46 }
 0xbf4   : > { %v18927_v15 = vpop.f32.mrf.mxu1  ;;  %19191 = vmatprep.subr.bf16.mxu1 %v27973_v46  ;;  %19185 = vmatprep.mubr.msk.bf16.mxu0 %vm19824_vm11, %v27973_v46 }
 0xbf5   : > { %v12642_v56 = vpop.f32.mrf.mxu0  ;;  %19205 = vmatprep.mubr.msk.bf16.mxu1 %vm19824_vm11, %v27973_v46 }
 0xbf6   : > { %v12730_v37 = vpop.f32.mrf.mxu1  ;;  %19172 = vmatpush3.bf16.msra.mxu0 %v19565_v58 }
 0xbf7   : > { %19192 = vmatpush3.bf16.msra.mxu1 %v19566_v60  ;;  %v18908_v13 = vpop.f32.mrf.mxu0  ;;  %19173 = vmatprep.subr.bf16.mxu0 %v27973_v46 }
 0xbf8   : > { %v18928_v20 = vpop.f32.mrf.mxu1  ;;  %19193 = vmatprep.subr.bf16.mxu1 %v27973_v46 }
 0xbfa   : > { %19174 = vmatpush3.bf16.msra.mxu0 %v19567_v11 }
 0xbfb   : > { %19194 = vmatpush3.bf16.msra.mxu1 %v19568_v9  ;;  %19175 = vmatprep.subr.bf16.mxu0 %v27973_v46 }
 0xbfc   : > { %19195 = vmatprep.subr.bf16.mxu1 %v27973_v46 }
 0xbfe   : > { %19176 = vmatpush3.bf16.msra.mxu0 %v19569_v52 }
 0xbff   : > { %19196 = vmatpush3.bf16.msra.mxu1 %v19570_v22  ;;  %19177 = vmatprep.subr.bf16.mxu0 %v27973_v46 }
 0xc00   : > { %19197 = vmatprep.subr.bf16.mxu1 %v27973_v46 }
 0xc02   : > { %19178 = vmatpush3.bf16.msra.mxu0 %v19571_v6 }
 0xc03   : > { %19198 = vmatpush3.bf16.msra.mxu1 %v19572_v31  ;;  %19179 = vmatprep.subr.bf16.mxu0 %v27973_v46 }
 0xc04   : > { %19199 = vmatprep.subr.bf16.mxu1 %v27973_v46 }
 0xc06   : > { %19180 = vmatpush3.bf16.msra.mxu0 %v19573_v29 }
 0xc07   : > { %19200 = vmatpush3.bf16.msra.mxu1 %v19574_v54  ;;  %19181 = vmatprep.subr.bf16.mxu0 %v27973_v46 }
 0xc08   : > { %19201 = vmatprep.subr.bf16.mxu1 %v27973_v46 }
 0xc0a   : > { %19182 = vmatpush3.bf16.msra.mxu0 %v19575_v8 }
 0xc0b   : > { %19202 = vmatpush3.bf16.msra.mxu1 %v19576_v34  ;;  %19183 = vmatprep.subr.bf16.mxu0 %v27973_v46 }
 0xc0c   : > { %19203 = vmatprep.subr.bf16.mxu1 %v27973_v46 }
 0xc0e   : > { %19184 = vmatpush3.bf16.msra.mxu0 %v19577_v1 }
 0xc0f   : > { %19204 = vmatpush3.bf16.msra.mxu1 %v19578_v30 }
 0xc11   : > { %v12834_v40 = vpop.f32.mrf.mxu0  ;;  %19186 = vmatmul.mubr.bf16.vlgmr.msra.gmra.mxu0 %v14076_v38 }
 0xc12   : > { %v12840_v51 = vadd.f32 %v12834_v40, %v12728_v44  ;;  %v12942_v14 = vpop.f32.mrf.mxu1  ;;  %19206 = vmatmul.mubr.bf16.vlgmr.msra.gmra.mxu1 %v14184_v42  ;;  %v14275_v42 = vld [vmem:[%s27259_s6] sm:$0x1] }
 0xc13   : > { %v18947_v3 = vpop.f32.mrf.mxu0 }
 0xc14   : > { %v12948_v23 = vadd.f32 %v12942_v14, %v12840_v51  ;;  %v18967_v17 = vpop.f32.mrf.mxu1 }
 0xc15   : > { %v12837_v33 = vpop.f32.mrf.mxu0 }
 0xc16   : > { %v12945_v49 = vpop.f32.mrf.mxu1 }
 0xc17   : > { %v18948_v63 = vpop.f32.mrf.mxu0 }
 0xc18   : > { %v18968_v2 = vpop.f32.mrf.mxu1 }
 0xc31   : > { %v13056_v59 = vpop.f32.mrf.mxu0 }
 0xc32   : > { %v13062_v46 = vadd.f32 %v13056_v59, %v12948_v23  ;;  %v13168_v35 = vpop.f32.mrf.mxu1 }
 0xc33   : > { %v18987_v18 = vpop.f32.mrf.mxu0 }
 0xc34   : > { %v13174_v45 = vadd.f32 %v13168_v35, %v13062_v46  ;;  %v19007_v4 = vpop.f32.mrf.mxu1 }
 0xc35   : > { %v13059_v28 = vpop.f32.mrf.mxu0 }
 0xc36   : > { %v13171_v5 = vpop.f32.mrf.mxu1 }
 0xc37   : > { %v18988_v12 = vpop.f32.mrf.mxu0 }
 0xc38   : > { %v19008_v7 = vpop.f32.mrf.mxu1 }
 0xc51   : > { %v13276_v50 = vpop.f32.mrf.mxu0 }
 0xc52   : > { %v13282_v43 = vadd.f32 %v13276_v50, %v13174_v45  ;;  %v13384_v25 = vpop.f32.mrf.mxu1 }
 0xc53   : > { %v19027_v47 = vpop.f32.mrf.mxu0 }
 0xc54   : > { %v13390_v21 = vadd.f32 %v13384_v25, %v13282_v43  ;;  %v19047_v53 = vpop.f32.mrf.mxu1 }
 0xc55   : > { %v13279_v26 = vpop.f32.mrf.mxu0 }
 0xc56   : > { %v13387_v62 = vpop.f32.mrf.mxu1 }
 0xc57   : > { %v19028_v57 = vpop.f32.mrf.mxu0 }
 0xc58   : > { %v19048_v61 = vpop.f32.mrf.mxu1 }
 0xc71   : > { %v13498_v16 = vpop.f32.mrf.mxu0 }
 0xc72   : > { %v13504_v0 = vadd.f32 %v13498_v16, %v13390_v21  ;;  %v13610_v36 = vpop.f32.mrf.mxu1 }
 0xc73   : > { %v19067_v19 = vpop.f32.mrf.mxu0 }
 0xc74   : > { %v13616_v24 = vadd.f32 %v13610_v36, %v13504_v0  ;;  %v19087_v27 = vpop.f32.mrf.mxu1 }
 0xc75   : > { %v13501_v41 = vpop.f32.mrf.mxu0 }
 0xc76   : > { %v13613_v55 = vpop.f32.mrf.mxu1 }
 0xc77   : > { %v19068_v39 = vpop.f32.mrf.mxu0 }
 0xc78   : > { %v19088_v10 = vpop.f32.mrf.mxu1 }
 0xc91   : > { %v13718_v48 = vpop.f32.mrf.mxu0 }
 0xc92   : > { %v13826_v58 = vpop.f32.mrf.mxu1  ;;  %v13724_v29 = vadd.f32 %v13718_v48, %v13616_v24 }
 0xc93   : > { %v19107_v44 = vpop.f32.mrf.mxu0 }
 0xc94   : > { %v19127_v32 = vpop.f32.mrf.mxu1  ;;  %v13832_v54 = vadd.f32 %v13826_v58, %v13724_v29 }
 0xc95   : > { %v13721_v60 = vpop.f32.mrf.mxu0 }
 0xc96   : > { %v13829_v15 = vpop.f32.mrf.mxu1 }
 0xc97   : > { %v19108_v56 = vpop.f32.mrf.mxu0 }
 0xc98   : > { %v19128_v37 = vpop.f32.mrf.mxu1 }
 0xcb1   : > { %v13940_v11 = vpop.f32.mrf.mxu0 }
 0xcb2   : > { %v14052_v13 = vpop.f32.mrf.mxu1  ;;  %v13946_v8 = vadd.f32 %v13940_v11, %v13832_v54 }
 0xcb3   : > { %v19147_v9 = vpop.f32.mrf.mxu0 }
 0xcb4   : > { %v19167_v20 = vpop.f32.mrf.mxu1  ;;  %v14058_v34 = vadd.f32 %v14052_v13, %v13946_v8 }
 0xcb5   : > { %v13943_v52 = vpop.f32.mrf.mxu0 }
 0xcb6   : > { %v14055_v22 = vpop.f32.mrf.mxu1 }
 0xcb7   : > { %v19148_v6 = vpop.f32.mrf.mxu0 }
 0xcb8   : > { %v19168_v31 = vpop.f32.mrf.mxu1 }
 0xcd1   : > { %v14160_v1 = vpop.f32.mrf.mxu0 }
 0xcd2   : > { %v14166_v30 = vadd.f32 %v14160_v1, %v14058_v34  ;;  %v14268_v38 = vpop.f32.mrf.mxu1 }
 0xcd3   : > { %v19187_v40 = vpop.f32.mrf.mxu0 }
 0xcd4   : > { %v14274_v51 = vadd.f32 %v14268_v38, %v14166_v30  ;;  %v19207_v14 = vpop.f32.mrf.mxu1 }
 0xcd5   : > { %v14163_v3 = vpop.f32.mrf.mxu0 }
 0xcd6   : > { %v14276_v23 = vadd.f32 %v14275_v42, %v14274_v51  ;;  %v14271_v17 = vpop.f32.mrf.mxu1 }
 0xcd7   : > { %v19188_v33 = vpop.f32.mrf.mxu0 }
 0xcd8   : > { %v14277_v49 = vmax.f32 %v14276_v23, 0.0  ;;  %v19208_v63 = vpop.f32.mrf.mxu1 }
 0xcda   : > { %14278 = vst [vmem:[%s270_s14] sm:$0x1] %v14277_v49 }
 0xcdb   : > { %19773 = shalt.err (!%p19770_p3)
}
 0xcdc   : > { %s19774_s23 = scalar_lea.hbm %s14290_s18, 16  ;;  %s19778_s9 = scalar_lea.hbm %s27260_s7, 32 }
 0xcdd   : > { %p19775_p4 = scmp.ne.s32.totalorder %s14290_s18, %s19774_s23  ;;  %p19779_p9 = scmp.lt.s32.totalorder %s14290_s18, %s27260_s7 }
 0xcde   : > { %p19780_p10 = scmp.lt.s32.totalorder %s19778_s9, %s19774_s23 }
 0xcdf   : > { %p19776_p7 = pnand %p19775_p4, %p19904_p5 }
 0xce0   : > { %p19781_p11 = por %p19780_p10, %p19779_p9 }
 0xce1   : > { %p19777_p8 = pneg %p19776_p7 }
 0xce3   : > { %p19782_p12 = pnand %p19781_p11, %p19777_p8 }
 0xce5   : > { %19785 = shalt.err (!%p19782_p12)
}
 0xce6   : > { %19209 = dma.vmem_to_hbm [thread:$0]  (%p19904_p5), %s14293_s15, 16, %s14290_s18, %s14280_s19  }
 0xce7 PF: > { %p19215_p13 = scmp.ge.s32.totalorder %s19820_s27, 2  ;;  %s14304_s16 = sand.u32 1, %s19808_s24  }
 0xce8   : > { %s14305_s17 = scalar_lea.sflag [#allocation3], %s14304_s16 }
 0xce9   : > { %p19212_p0 = pnand %p19215_p13, %p19908_p6 }
 0xceb   : > { %p19213_p1 = pneg %p19212_p0 }
 0xced   : > { %19803 = dma.done.wait (%p19213_p1), %s14305_s17, 16  }
 0xcee   : > { %19805 = vsyncadd (%p19213_p1), %s14305_s17, 4294967280  ;;  %p17_p2 = scmp.ge.s32.totalorder %s19891_s30, 4   ;;  %s28335_s24 = smov %s19812_s25 }
 0xcef   : > { %s28336_s25 = smov %s19816_s26  ;;  %s28337_s26 = smov %s19902_s10 }
 0xcf0   : > { %s28338_s27 = smov %s19891_s30  ;;  %19 = sbr.rel (!%p17_p2) target bundleno = 3 (0x3), region = 106 }
 0xcf5   :  { %14309 = vsyncpa [#allocation3], 1 }
 0xcf6   :  { %14311 = vsyncpa [#allocation3 + $0x1], 1 }

</bundles_post_ra>
